<compile_context>
chip_gen: v6e
topology: v6e:2x2x1
jax: 0.10.0
libtpu: 0.0.40
codegen_flags: <defaults>
</compile_context>

<pallas_src>
import functools
import math

import jax
import jax.numpy as jnp
from jax.experimental import pallas as pl
from jax.experimental.pallas import tpu as pltpu

_VMEM_LIMIT = 32 * 1024 * 1024   # safe on v5e/v6e/v7x; actual use is < 8 MiB
_NUM_CLASSES = 1000

# (in_ch placeholder for layer 0, out_ch, kernel, stride)
_CONV_CFG = [
    (None, 48, 9, 4),
    (48, 48, 3, 2),
    (48, 96, 5, 1),
    (96, 96, 3, 2),
    (96, 192, 3, 1),
    (192, 192, 3, 2),
    (192, 384, 3, 1),
]


def _round_up(x, m):
    return ((x + m - 1) // m) * m


def _choose_tile_m(M):
    """Row-tile selection: single clamped block for small M, big tiles for
    large M with <=25% padded-row waste (keeps a multi-step parallel grid)."""
    if M <= 512:
        return _round_up(M, 16)          # single block, bf16 sublane packing
    for t in (512, 256, 128):
        if (_round_up(M, t) - M) * 4 <= M:
            return t
    return 128


# ----------------------------------------------------------------------------
# Pallas kernel: fused (x @ w) + bias (+ optional ReLU), bf16 in / f32 acc
# ----------------------------------------------------------------------------
def _matmul_bias_act_kernel(x_ref, w_ref, b_ref, o_ref, *, apply_relu):
    acc = jnp.dot(x_ref[...], w_ref[...], preferred_element_type=jnp.float32)
    acc = acc + b_ref[...]                 # (TM, Np) + (1, Np) broadcast, f32
    if apply_relu:
        acc = jnp.maximum(acc, 0.0)
    o_ref[...] = acc.astype(o_ref.dtype)


def fused_matmul_bias_act(x, w_p, b_p, n_valid, *, apply_relu):
    """x: [M, K] float; w_p: [K_pad, N_pad] bf16 (pre-padded, pre-transposed);
    b_p: [1, N_pad] f32.  Returns [M, n_valid] f32."""
    M, K = x.shape
    K_pad, N_pad = w_p.shape

    tile_m = _choose_tile_m(M)
    M_pad = _round_up(M, tile_m)

    x_p = jnp.pad(x.astype(jnp.bfloat16), ((0, M_pad - M), (0, K_pad - K)))

    kernel = functools.partial(_matmul_bias_act_kernel, apply_relu=apply_relu)
    out = pl.pallas_call(
        kernel,
        out_shape=jax.ShapeDtypeStruct((M_pad, N_pad), jnp.float32),
        grid_spec=pltpu.PrefetchScalarGridSpec(
            num_scalar_prefetch=0,
            grid=(M_pad // tile_m,),
            in_specs=[
                pl.BlockSpec((tile_m, K_pad), lambda i: (i, 0)),
                pl.BlockSpec((K_pad, N_pad), lambda i: (0, 0)),
                pl.BlockSpec((1, N_pad), lambda i: (0, 0)),
            ],
            out_specs=pl.BlockSpec((tile_m, N_pad), lambda i: (i, 0)),
        ),
        compiler_params=pltpu.CompilerParams(
            dimension_semantics=("parallel",),
            vmem_limit_bytes=_VMEM_LIMIT,
        ),
    )(x_p, w_p, b_p)

    return out[:M, :n_valid]


# ----------------------------------------------------------------------------
# Pallas kernel: fused tail — conv6 (3x3 s2) + conv7 (3x3 s1 -> 1x1) + Linear
# All weights resident in VMEM; activations are tiny at this point.
# ----------------------------------------------------------------------------
def _tail_kernel(cols6_ref, w6_ref, b6_ref, w7_ref, b7_ref, wfc_ref, bfc_ref,
                 out_ref, h7in_ref, *, batch, c6_pad):
    # conv6: [M6_pad, K6_pad] @ [K6_pad, C6_pad] + bias, ReLU  (f32 acc)
    h6 = jnp.dot(cols6_ref[...], w6_ref[...], preferred_element_type=jnp.float32)
    h6 = jnp.maximum(h6 + b6_ref[...], 0.0)

    # Rearrange conv6 output rows (n*9 + p) into conv7's flattened full-window
    # input: h7in[n, p*C6_pad:(p+1)*C6_pad] = conv6_out[n, oh, ow, :], p=oh*3+ow.
    h7in_ref[...] = jnp.zeros_like(h7in_ref)
    for n in range(batch):
        for p in range(9):
            r = n * 9 + p
            h7in_ref[n:n + 1, p * c6_pad:(p + 1) * c6_pad] = h6[r:r + 1, :]

    # conv7 has 1x1 spatial output == full-window matmul, + bias, ReLU
    h7 = jnp.dot(h7in_ref[...].astype(jnp.bfloat16), w7_ref[...],
                 preferred_element_type=jnp.float32)
    h7 = jnp.maximum(h7 + b7_ref[...], 0.0)

    # classifier Linear(384, 1000)
    logits = jnp.dot(h7.astype(jnp.bfloat16), wfc_ref[...],
                     preferred_element_type=jnp.float32)
    out_ref[...] = logits + bfc_ref[...]


def fused_tail(cols6, tail, batch):
    """cols6: [batch*9, 1728] im2col of conv6's input. Returns [batch, 1000]."""
    M6, K6 = cols6.shape
    K6_pad, C6_pad = tail["w6"].shape
    M6_pad = _round_up(M6, 16)
    cols6_p = jnp.pad(cols6.astype(jnp.bfloat16),
                      ((0, M6_pad - M6), (0, K6_pad - K6)))

    m_out = _round_up(max(batch, 8), 8)
    n_fc_pad = tail["wfc"].shape[1]

    kernel = functools.partial(_tail_kernel, batch=batch, c6_pad=C6_pad)
    out = pl.pallas_call(
        kernel,
        out_shape=jax.ShapeDtypeStruct((m_out, n_fc_pad), jnp.float32),
        grid_spec=pltpu.PrefetchScalarGridSpec(
            num_scalar_prefetch=0,
            grid=(1,),
            in_specs=[
                pl.BlockSpec((M6_pad, K6_pad), lambda i: (0, 0)),
                pl.BlockSpec(tail["w6"].shape, lambda i: (0, 0)),
                pl.BlockSpec(tail["b6"].shape, lambda i: (0, 0)),
                pl.BlockSpec(tail["w7"].shape, lambda i: (0, 0)),
                pl.BlockSpec(tail["b7"].shape, lambda i: (0, 0)),
                pl.BlockSpec(tail["wfc"].shape, lambda i: (0, 0)),
                pl.BlockSpec(tail["bfc"].shape, lambda i: (0, 0)),
            ],
            out_specs=pl.BlockSpec((m_out, n_fc_pad), lambda i: (0, 0)),
            scratch_shapes=[pltpu.VMEM((m_out, 9 * C6_pad), jnp.float32)],
        ),
        compiler_params=pltpu.CompilerParams(
            dimension_semantics=("arbitrary",),
            vmem_limit_bytes=_VMEM_LIMIT,
        ),
    )(cols6_p, tail["w6"], tail["b6"], tail["w7"], tail["b7"],
      tail["wfc"], tail["bfc"])

    return out[:batch, :_NUM_CLASSES]


# ----------------------------------------------------------------------------
# Conv2d (valid padding, stride s) = im2col glue + Pallas matmul kernel
# TODO(synk): the strided-window patch extraction (im2col) stays as XLA glue;
# an in-kernel implicit-GEMM version would need strided in-VMEM slicing.
# ----------------------------------------------------------------------------
def _im2col_nhwc(x, kh, kw, stride):
    """x: [N, H, W, C] -> cols: [N*OH*OW, kh*kw*C] with (kh, kw, C) ordering."""
    N, H, W, C = x.shape
    OH = (H - kh) // stride + 1
    OW = (W - kw) // stride + 1
    patches = []
    for i in range(kh):
        for j in range(kw):
            patches.append(
                x[:, i:i + stride * OH:stride, j:j + stride * OW:stride, :]
            )
    cols = jnp.stack(patches, axis=3)            # [N, OH, OW, kh*kw, C]
    cols = cols.reshape(N, OH, OW, kh * kw * C)  # (kh, kw, C) flattened
    return cols.reshape(N * OH * OW, kh * kw * C), OH, OW


# ----------------------------------------------------------------------------
# Parameter init (matches module's _initialize_weights, deterministic)
# ----------------------------------------------------------------------------
def init_params(key, input_channels):
    params = {"convs": [], "fc": None}
    cfg = [(input_channels if c_in is None else c_in, c_out, k, s)
           for (c_in, c_out, k, s) in _CONV_CFG]
    keys = jax.random.split(key, len(cfg) + 1)
    for (c_in, c_out, k, s), kk in zip(cfg, keys[:-1]):
        # kaiming_normal_, mode='fan_out', nonlinearity='relu'
        fan_out = c_out * k * k
        std = math.sqrt(2.0 / fan_out)
        w = std * jax.random.normal(kk, (c_out, c_in, k, k), dtype=jnp.float32)
        b = jnp.zeros((c_out,), jnp.float32)
        params["convs"].append({"w": w, "b": b, "stride": s})
    # Linear(384, 1000): normal(0, 0.01), bias 0
    w_fc = 0.01 * jax.random.normal(keys[-1], (_NUM_CLASSES, 384),
                                    dtype=jnp.float32)
    b_fc = jnp.zeros((_NUM_CLASSES,), jnp.float32)
    params["fc"] = {"w": w_fc, "b": b_fc}
    return params


def prepare_params(params):
    """One-time: transpose / zero-pad / cast weights into the layouts the
    Pallas kernels expect (done once, NOT per forward pass)."""
    convs = params["convs"]
    prepared = {"convs": [], "tail": {}}

    # conv1..conv5 -> standalone fused-matmul layers
    for layer in convs[:5]:
        w = layer["w"]                               # [C_out, C_in, k, k]
        c_out, c_in, k, _ = w.shape
        K = k * k * c_in
        K_pad = _round_up(K, 128)
        N_pad = _round_up(c_out, 128)
        w_mat = jnp.transpose(w, (2, 3, 1, 0)).reshape(K, c_out)
        w_p = jnp.pad(w_mat, ((0, K_pad - K),
                              (0, N_pad - c_out))).astype(jnp.bfloat16)
        b_p = jnp.pad(layer["b"], (0, N_pad - c_out)
                      ).reshape(1, N_pad).astype(jnp.float32)
        prepared["convs"].append({"w": w_p, "b": b_p})

    tail = prepared["tail"]

    # conv6 (3x3, stride 2)
    w6 = convs[5]["w"]                               # [192, 192, 3, 3]
    c6_out, c6_in, _, _ = w6.shape
    K6 = 9 * c6_in
    K6_pad = _round_up(K6, 128)
    C6_pad = _round_up(c6_out, 128)
    w6_mat = jnp.transpose(w6, (2, 3, 1, 0)).reshape(K6, c6_out)
    tail["w6"] = jnp.pad(w6_mat, ((0, K6_pad - K6),
                                  (0, C6_pad - c6_out))).astype(jnp.bfloat16)
    tail["b6"] = jnp.pad(convs[5]["b"], (0, C6_pad - c6_out)
                         ).reshape(1, C6_pad).astype(jnp.float32)

    # conv7 (3x3, stride 1, full-window): chunks laid out per tap, each chunk's
    # input-channel dim zero-padded to C6_pad to match the kernel's packing.
    w7 = convs[6]["w"]                               # [384, 192, 3, 3]
    c7_out = w7.shape[0]
    N7_pad = _round_up(c7_out, 128)                  # 384
    w7_mat = jnp.transpose(w7, (2, 3, 1, 0)).reshape(9, c6_out, c7_out)
    w7_mat = jnp.pad(w7_mat, ((0, 0), (0, C6_pad - c6_out),
                              (0, N7_pad - c7_out)))
    tail["w7"] = w7_mat.reshape(9 * C6_pad, N7_pad).astype(jnp.bfloat16)
    tail["b7"] = jnp.pad(convs[6]["b"], (0, N7_pad - c7_out)
                         ).reshape(1, N7_pad).astype(jnp.float32)

    # classifier Linear(384, 1000): y = x @ W.T + b
    w_fc, b_fc = params["fc"]["w"], params["fc"]["b"]    # [1000, 384], [1000]
    n_cls, k_fc = w_fc.shape
    Nfc_pad = _round_up(n_cls, 128)
    wfc_mat = jnp.pad(w_fc.T, ((0, N7_pad - k_fc), (0, Nfc_pad - n_cls)))
    tail["wfc"] = wfc_mat.astype(jnp.bfloat16)
    tail["bfc"] = jnp.pad(b_fc, (0, Nfc_pad - n_cls)
                          ).reshape(1, Nfc_pad).astype(jnp.float32)
    return prepared


# ----------------------------------------------------------------------------
# Full forward pass
# ----------------------------------------------------------------------------
def imagenet_convnet_bp_forward(prepared, x_nchw):
    batch = x_nchw.shape[0]
    # NCHW (PyTorch) -> NHWC (kernel layout), bf16 activations between layers
    x = jnp.transpose(x_nchw, (0, 2, 3, 1)).astype(jnp.bfloat16)

    # conv1 .. conv5: XLA im2col + fused Pallas matmul/bias/ReLU
    for layer, (_, c_out, k, stride) in zip(prepared["convs"], _CONV_CFG[:5]):
        cols, OH, OW = _im2col_nhwc(x, k, k, stride)
        out = fused_matmul_bias_act(cols, layer["w"], layer["b"], c_out,
                                    apply_relu=True)
        x = out.reshape(batch, OH, OW, c_out).astype(jnp.bfloat16)

    # fused tail: conv6 + conv7 + classifier in one Pallas kernel
    cols6, oh6, ow6 = _im2col_nhwc(x, 3, 3, 2)
    assert oh6 == 3 and ow6 == 3, (oh6, ow6)   # implied by Linear(384, 1000)
    logits = fused_tail(cols6, prepared["tail"], batch)
    return logits  # [batch, 1000] f32


if __name__ == "__main__":
    key = jax.random.PRNGKey(0)
    k_params, k_input = jax.random.split(key)

    input_channels = 3
    batch = 2
    # 193x193 is the minimal input for which the conv stack ends at 1x1 and the
    # flatten feeds exactly 384 features into Linear(384, 1000).
    H = W = 193

    params = init_params(k_params, input_channels)
    prepared = prepare_params(params)   # one-time weight layout prep
    x = jax.random.normal(k_input, (batch, input_channels, H, W),
                          dtype=jnp.float32)

    fwd = jax.jit(imagenet_convnet_bp_forward)
    out = fwd(prepared, x)
    out = jax.block_until_ready(out)
    assert out.shape == (batch, _NUM_CLASSES), out.shape
    assert jnp.all(jnp.isfinite(out))
    print("KERNEL_OK")
</pallas_src>

<mosaic_0001>
module attributes {stable_mosaic.version = 11 : i64} {
  func.func @_matmul_bias_act_kernel(%arg0: i32, %arg1: memref<512x256xbf16, #tpu.memory_space<vmem>>, %arg2: memref<256x128xbf16, #tpu.memory_space<vmem>>, %arg3: memref<1x128xf32, #tpu.memory_space<vmem>>, %arg4: memref<512x128xf32, #tpu.memory_space<vmem>>) attributes {dimension_semantics = [#tpu.dimension_semantics<parallel>], iteration_bounds = array<i64: 9>, scalar_prefetch = 0 : i64, scratch_operands = 0 : i64, tpu.core_type = #tpu.core_type<tc>, window_params = [{transform_indices = @transform_0, window_bounds = array<i64: 512, 256>}, {pipeline_mode = #tpu.pipeline_mode<synchronous>, transform_indices = @transform_1, window_bounds = array<i64: 256, 128>}, {pipeline_mode = #tpu.pipeline_mode<synchronous>, transform_indices = @transform_2, window_bounds = array<i64: 1, 128>}, {transform_indices = @transform_3, window_bounds = array<i64: 512, 128>}]} {
    %c0 = arith.constant 0 : index
    %c0_0 = arith.constant 0 : index
    %0 = vector.load %arg1[%c0, %c0_0] : memref<512x256xbf16, #tpu.memory_space<vmem>>, vector<512x256xbf16>
    %c0_1 = arith.constant 0 : index
    %c0_2 = arith.constant 0 : index
    %1 = vector.load %arg2[%c0_1, %c0_2] : memref<256x128xbf16, #tpu.memory_space<vmem>>, vector<256x128xbf16>
    %cst = arith.constant dense<0.000000e+00> : vector<512x128xf32>
    %2 = tpu.matmul %0, %1, %cst {dimension_numbers = #tpu.dot_dimension_numbers<[1], [0], [0], [1], [0, 0, 1, 1], [], []>} : vector<512x256xbf16>, vector<256x128xbf16>, vector<512x128xf32> -> vector<512x128xf32>
    %c0_3 = arith.constant 0 : index
    %c0_4 = arith.constant 0 : index
    %3 = vector.load %arg3[%c0_3, %c0_4] : memref<1x128xf32, #tpu.memory_space<vmem>>, vector<1x128xf32>
    %4 = vector.broadcast %3 : vector<1x128xf32> to vector<512x128xf32>
    %5 = arith.addf %2, %4 : vector<512x128xf32>
    %cst_5 = arith.constant 0.000000e+00 : f32
    %6 = vector.broadcast %cst_5 : f32 to vector<512x128xf32>
    %7 = arith.maximumf %5, %6 : vector<512x128xf32>
    %c0_6 = arith.constant 0 : index
    %c0_7 = arith.constant 0 : index
    %8 = vector.load %arg4[%c0_6, %c0_7] : memref<512x128xf32, #tpu.memory_space<vmem>>, vector<512x128xf32>
    tpu.vector_store %arg4[%c0_6, %c0_7], %7 {strides = array<i32>} : memref<512x128xf32, #tpu.memory_space<vmem>>, vector<512x128xf32>,
    return
  }
  func.func @transform_0(%arg0: i32) -> (i32, i32) {
    %c0_i32 = arith.constant 0 : i32
    %c0_i32_0 = arith.constant 0 : i32
    return %arg0, %c0_i32 : i32, i32
  }
  func.func @transform_1(%arg0: i32) -> (i32, i32) {
    %c0_i32 = arith.constant 0 : i32
    %c0_i32_0 = arith.constant 0 : i32
    %c0_i32_1 = arith.constant 0 : i32
    return %c0_i32, %c0_i32_0 : i32, i32
  }
  func.func @transform_2(%arg0: i32) -> (i32, i32) {
    %c0_i32 = arith.constant 0 : i32
    %c0_i32_0 = arith.constant 0 : i32
    %c0_i32_1 = arith.constant 0 : i32
    return %c0_i32, %c0_i32_0 : i32, i32
  }
  func.func @transform_3(%arg0: i32) -> (i32, i32) {
    %c0_i32 = arith.constant 0 : i32
    %c0_i32_0 = arith.constant 0 : i32
    return %arg0, %c0_i32 : i32, i32
  }
}

module attributes {stable_mosaic.version = 11 : i64} {
  func.func @_matmul_bias_act_kernel(%arg0: i32, %arg1: memref<256x512xbf16, #tpu.memory_space<vmem>>, %arg2: memref<512x128xbf16, #tpu.memory_space<vmem>>, %arg3: memref<1x128xf32, #tpu.memory_space<vmem>>, %arg4: memref<256x128xf32, #tpu.memory_space<vmem>>) attributes {dimension_semantics = [#tpu.dimension_semantics<parallel>], iteration_bounds = array<i64: 5>, scalar_prefetch = 0 : i64, scratch_operands = 0 : i64, tpu.core_type = #tpu.core_type<tc>, window_params = [{transform_indices = @transform_0, window_bounds = array<i64: 256, 512>}, {pipeline_mode = #tpu.pipeline_mode<synchronous>, transform_indices = @transform_1, window_bounds = array<i64: 512, 128>}, {pipeline_mode = #tpu.pipeline_mode<synchronous>, transform_indices = @transform_2, window_bounds = array<i64: 1, 128>}, {transform_indices = @transform_3, window_bounds = array<i64: 256, 128>}]} {
    %c0 = arith.constant 0 : index
    %c0_0 = arith.constant 0 : index
    %0 = vector.load %arg1[%c0, %c0_0] : memref<256x512xbf16, #tpu.memory_space<vmem>>, vector<256x512xbf16>
    %c0_1 = arith.constant 0 : index
    %c0_2 = arith.constant 0 : index
    %1 = vector.load %arg2[%c0_1, %c0_2] : memref<512x128xbf16, #tpu.memory_space<vmem>>, vector<512x128xbf16>
    %cst = arith.constant dense<0.000000e+00> : vector<256x128xf32>
    %2 = tpu.matmul %0, %1, %cst {dimension_numbers = #tpu.dot_dimension_numbers<[1], [0], [0], [1], [0, 0, 1, 1], [], []>} : vector<256x512xbf16>, vector<512x128xbf16>, vector<256x128xf32> -> vector<256x128xf32>
    %c0_3 = arith.constant 0 : index
    %c0_4 = arith.constant 0 : index
    %3 = vector.load %arg3[%c0_3, %c0_4] : memref<1x128xf32, #tpu.memory_space<vmem>>, vector<1x128xf32>
    %4 = vector.broadcast %3 : vector<1x128xf32> to vector<256x128xf32>
    %5 = arith.addf %2, %4 : vector<256x128xf32>
    %cst_5 = arith.constant 0.000000e+00 : f32
    %6 = vector.broadcast %cst_5 : f32 to vector<256x128xf32>
    %7 = arith.maximumf %5, %6 : vector<256x128xf32>
    %c0_6 = arith.constant 0 : index
    %c0_7 = arith.constant 0 : index
    %8 = vector.load %arg4[%c0_6, %c0_7] : memref<256x128xf32, #tpu.memory_space<vmem>>, vector<256x128xf32>
    tpu.vector_store %arg4[%c0_6, %c0_7], %7 {strides = array<i32>} : memref<256x128xf32, #tpu.memory_space<vmem>>, vector<256x128xf32>,
    return
  }
  func.func @transform_0(%arg0: i32) -> (i32, i32) {
    %c0_i32 = arith.constant 0 : i32
    %c0_i32_0 = arith.constant 0 : i32
    return %arg0, %c0_i32 : i32, i32
  }
  func.func @transform_1(%arg0: i32) -> (i32, i32) {
    %c0_i32 = arith.constant 0 : i32
    %c0_i32_0 = arith.constant 0 : i32
    %c0_i32_1 = arith.constant 0 : i32
    return %c0_i32, %c0_i32_0 : i32, i32
  }
  func.func @transform_2(%arg0: i32) -> (i32, i32) {
    %c0_i32 = arith.constant 0 : i32
    %c0_i32_0 = arith.constant 0 : i32
    %c0_i32_1 = arith.constant 0 : i32
    return %c0_i32, %c0_i32_0 : i32, i32
  }
  func.func @transform_3(%arg0: i32) -> (i32, i32) {
    %c0_i32 = arith.constant 0 : i32
    %c0_i32_0 = arith.constant 0 : i32
    return %arg0, %c0_i32 : i32, i32
  }
}

module attributes {stable_mosaic.version = 11 : i64} {
  func.func @_matmul_bias_act_kernel(%arg0: i32, %arg1: memref<256x1280xbf16, #tpu.memory_space<vmem>>, %arg2: memref<1280x128xbf16, #tpu.memory_space<vmem>>, %arg3: memref<1x128xf32, #tpu.memory_space<vmem>>, %arg4: memref<256x128xf32, #tpu.memory_space<vmem>>) attributes {dimension_semantics = [#tpu.dimension_semantics<parallel>], iteration_bounds = array<i64: 3>, scalar_prefetch = 0 : i64, scratch_operands = 0 : i64, tpu.core_type = #tpu.core_type<tc>, window_params = [{transform_indices = @transform_0, window_bounds = array<i64: 256, 1280>}, {pipeline_mode = #tpu.pipeline_mode<synchronous>, transform_indices = @transform_1, window_bounds = array<i64: 1280, 128>}, {pipeline_mode = #tpu.pipeline_mode<synchronous>, transform_indices = @transform_2, window_bounds = array<i64: 1, 128>}, {transform_indices = @transform_3, window_bounds = array<i64: 256, 128>}]} {
    %c0 = arith.constant 0 : index
    %c0_0 = arith.constant 0 : index
    %0 = vector.load %arg1[%c0, %c0_0] : memref<256x1280xbf16, #tpu.memory_space<vmem>>, vector<256x1280xbf16>
    %c0_1 = arith.constant 0 : index
    %c0_2 = arith.constant 0 : index
    %1 = vector.load %arg2[%c0_1, %c0_2] : memref<1280x128xbf16, #tpu.memory_space<vmem>>, vector<1280x128xbf16>
    %cst = arith.constant dense<0.000000e+00> : vector<256x128xf32>
    %2 = tpu.matmul %0, %1, %cst {dimension_numbers = #tpu.dot_dimension_numbers<[1], [0], [0], [1], [0, 0, 1, 1], [], []>} : vector<256x1280xbf16>, vector<1280x128xbf16>, vector<256x128xf32> -> vector<256x128xf32>
    %c0_3 = arith.constant 0 : index
    %c0_4 = arith.constant 0 : index
    %3 = vector.load %arg3[%c0_3, %c0_4] : memref<1x128xf32, #tpu.memory_space<vmem>>, vector<1x128xf32>
    %4 = vector.broadcast %3 : vector<1x128xf32> to vector<256x128xf32>
    %5 = arith.addf %2, %4 : vector<256x128xf32>
    %cst_5 = arith.constant 0.000000e+00 : f32
    %6 = vector.broadcast %cst_5 : f32 to vector<256x128xf32>
    %7 = arith.maximumf %5, %6 : vector<256x128xf32>
    %c0_6 = arith.constant 0 : index
    %c0_7 = arith.constant 0 : index
    %8 = vector.load %arg4[%c0_6, %c0_7] : memref<256x128xf32, #tpu.memory_space<vmem>>, vector<256x128xf32>
    tpu.vector_store %arg4[%c0_6, %c0_7], %7 {strides = array<i32>} : memref<256x128xf32, #tpu.memory_space<vmem>>, vector<256x128xf32>,
    return
  }
  func.func @transform_0(%arg0: i32) -> (i32, i32) {
    %c0_i32 = arith.constant 0 : i32
    %c0_i32_0 = arith.constant 0 : i32
    return %arg0, %c0_i32 : i32, i32
  }
  func.func @transform_1(%arg0: i32) -> (i32, i32) {
    %c0_i32 = arith.constant 0 : i32
    %c0_i32_0 = arith.constant 0 : i32
    %c0_i32_1 = arith.constant 0 : i32
    return %c0_i32, %c0_i32_0 : i32, i32
  }
  func.func @transform_2(%arg0: i32) -> (i32, i32) {
    %c0_i32 = arith.constant 0 : i32
    %c0_i32_0 = arith.constant 0 : i32
    %c0_i32_1 = arith.constant 0 : i32
    return %c0_i32, %c0_i32_0 : i32, i32
  }
  func.func @transform_3(%arg0: i32) -> (i32, i32) {
    %c0_i32 = arith.constant 0 : i32
    %c0_i32_0 = arith.constant 0 : i32
    return %arg0, %c0_i32 : i32, i32
  }
}

module attributes {stable_mosaic.version = 11 : i64} {
  func.func @_matmul_bias_act_kernel(%arg0: i32, %arg1: memref<176x896xbf16, #tpu.memory_space<vmem>>, %arg2: memref<896x128xbf16, #tpu.memory_space<vmem>>, %arg3: memref<1x128xf32, #tpu.memory_space<vmem>>, %arg4: memref<176x128xf32, #tpu.memory_space<vmem>>) attributes {dimension_semantics = [#tpu.dimension_semantics<parallel>], iteration_bounds = array<i64: 1>, scalar_prefetch = 0 : i64, scratch_operands = 0 : i64, tpu.core_type = #tpu.core_type<tc>, window_params = [{transform_indices = @transform_0, window_bounds = array<i64: 176, 896>}, {pipeline_mode = #tpu.pipeline_mode<synchronous>, transform_indices = @transform_1, window_bounds = array<i64: 896, 128>}, {pipeline_mode = #tpu.pipeline_mode<synchronous>, transform_indices = @transform_2, window_bounds = array<i64: 1, 128>}, {transform_indices = @transform_3, window_bounds = array<i64: 176, 128>}]} {
    %c0 = arith.constant 0 : index
    %c0_0 = arith.constant 0 : index
    %0 = vector.load %arg1[%c0, %c0_0] : memref<176x896xbf16, #tpu.memory_space<vmem>>, vector<176x896xbf16>
    %c0_1 = arith.constant 0 : index
    %c0_2 = arith.constant 0 : index
    %1 = vector.load %arg2[%c0_1, %c0_2] : memref<896x128xbf16, #tpu.memory_space<vmem>>, vector<896x128xbf16>
    %cst = arith.constant dense<0.000000e+00> : vector<176x128xf32>
    %2 = tpu.matmul %0, %1, %cst {dimension_numbers = #tpu.dot_dimension_numbers<[1], [0], [0], [1], [0, 0, 1, 1], [], []>} : vector<176x896xbf16>, vector<896x128xbf16>, vector<176x128xf32> -> vector<176x128xf32>
    %c0_3 = arith.constant 0 : index
    %c0_4 = arith.constant 0 : index
    %3 = vector.load %arg3[%c0_3, %c0_4] : memref<1x128xf32, #tpu.memory_space<vmem>>, vector<1x128xf32>
    %4 = vector.broadcast %3 : vector<1x128xf32> to vector<176x128xf32>
    %5 = arith.addf %2, %4 : vector<176x128xf32>
    %cst_5 = arith.constant 0.000000e+00 : f32
    %6 = vector.broadcast %cst_5 : f32 to vector<176x128xf32>
    %7 = arith.maximumf %5, %6 : vector<176x128xf32>
    %c0_6 = arith.constant 0 : index
    %c0_7 = arith.constant 0 : index
    %8 = vector.load %arg4[%c0_6, %c0_7] : memref<176x128xf32, #tpu.memory_space<vmem>>, vector<176x128xf32>
    tpu.vector_store %arg4[%c0_6, %c0_7], %7 {strides = array<i32>} : memref<176x128xf32, #tpu.memory_space<vmem>>, vector<176x128xf32>,
    return
  }
  func.func @transform_0(%arg0: i32) -> (i32, i32) {
    %c0_i32 = arith.constant 0 : i32
    %c0_i32_0 = arith.constant 0 : i32
    return %arg0, %c0_i32 : i32, i32
  }
  func.func @transform_1(%arg0: i32) -> (i32, i32) {
    %c0_i32 = arith.constant 0 : i32
    %c0_i32_0 = arith.constant 0 : i32
    %c0_i32_1 = arith.constant 0 : i32
    return %c0_i32, %c0_i32_0 : i32, i32
  }
  func.func @transform_2(%arg0: i32) -> (i32, i32) {
    %c0_i32 = arith.constant 0 : i32
    %c0_i32_0 = arith.constant 0 : i32
    %c0_i32_1 = arith.constant 0 : i32
    return %c0_i32, %c0_i32_0 : i32, i32
  }
  func.func @transform_3(%arg0: i32) -> (i32, i32) {
    %c0_i32 = arith.constant 0 : i32
    %c0_i32_0 = arith.constant 0 : i32
    return %arg0, %c0_i32 : i32, i32
  }
}

module attributes {stable_mosaic.version = 11 : i64} {
  func.func @_matmul_bias_act_kernel(%arg0: i32, %arg1: memref<112x896xbf16, #tpu.memory_space<vmem>>, %arg2: memref<896x256xbf16, #tpu.memory_space<vmem>>, %arg3: memref<1x256xf32, #tpu.memory_space<vmem>>, %arg4: memref<112x256xf32, #tpu.memory_space<vmem>>) attributes {dimension_semantics = [#tpu.dimension_semantics<parallel>], iteration_bounds = array<i64: 1>, scalar_prefetch = 0 : i64, scratch_operands = 0 : i64, tpu.core_type = #tpu.core_type<tc>, window_params = [{transform_indices = @transform_0, window_bounds = array<i64: 112, 896>}, {pipeline_mode = #tpu.pipeline_mode<synchronous>, transform_indices = @transform_1, window_bounds = array<i64: 896, 256>}, {pipeline_mode = #tpu.pipeline_mode<synchronous>, transform_indices = @transform_2, window_bounds = array<i64: 1, 256>}, {transform_indices = @transform_3, window_bounds = array<i64: 112, 256>}]} {
    %c0 = arith.constant 0 : index
    %c0_0 = arith.constant 0 : index
    %0 = vector.load %arg1[%c0, %c0_0] : memref<112x896xbf16, #tpu.memory_space<vmem>>, vector<112x896xbf16>
    %c0_1 = arith.constant 0 : index
    %c0_2 = arith.constant 0 : index
    %1 = vector.load %arg2[%c0_1, %c0_2] : memref<896x256xbf16, #tpu.memory_space<vmem>>, vector<896x256xbf16>
    %cst = arith.constant dense<0.000000e+00> : vector<112x256xf32>
    %2 = tpu.matmul %0, %1, %cst {dimension_numbers = #tpu.dot_dimension_numbers<[1], [0], [0], [1], [0, 0, 1, 1], [], []>} : vector<112x896xbf16>, vector<896x256xbf16>, vector<112x256xf32> -> vector<112x256xf32>
    %c0_3 = arith.constant 0 : index
    %c0_4 = arith.constant 0 : index
    %3 = vector.load %arg3[%c0_3, %c0_4] : memref<1x256xf32, #tpu.memory_space<vmem>>, vector<1x256xf32>
    %4 = vector.broadcast %3 : vector<1x256xf32> to vector<112x256xf32>
    %5 = arith.addf %2, %4 : vector<112x256xf32>
    %cst_5 = arith.constant 0.000000e+00 : f32
    %6 = vector.broadcast %cst_5 : f32 to vector<112x256xf32>
    %7 = arith.maximumf %5, %6 : vector<112x256xf32>
    %c0_6 = arith.constant 0 : index
    %c0_7 = arith.constant 0 : index
    %8 = vector.load %arg4[%c0_6, %c0_7] : memref<112x256xf32, #tpu.memory_space<vmem>>, vector<112x256xf32>
    tpu.vector_store %arg4[%c0_6, %c0_7], %7 {strides = array<i32>} : memref<112x256xf32, #tpu.memory_space<vmem>>, vector<112x256xf32>,
    return
  }
  func.func @transform_0(%arg0: i32) -> (i32, i32) {
    %c0_i32 = arith.constant 0 : i32
    %c0_i32_0 = arith.constant 0 : i32
    return %arg0, %c0_i32 : i32, i32
  }
  func.func @transform_1(%arg0: i32) -> (i32, i32) {
    %c0_i32 = arith.constant 0 : i32
    %c0_i32_0 = arith.constant 0 : i32
    %c0_i32_1 = arith.constant 0 : i32
    return %c0_i32, %c0_i32_0 : i32, i32
  }
  func.func @transform_2(%arg0: i32) -> (i32, i32) {
    %c0_i32 = arith.constant 0 : i32
    %c0_i32_0 = arith.constant 0 : i32
    %c0_i32_1 = arith.constant 0 : i32
    return %c0_i32, %c0_i32_0 : i32, i32
  }
  func.func @transform_3(%arg0: i32) -> (i32, i32) {
    %c0_i32 = arith.constant 0 : i32
    %c0_i32_0 = arith.constant 0 : i32
    return %arg0, %c0_i32 : i32, i32
  }
}

module attributes {stable_mosaic.version = 11 : i64} {
  func.func @_tail_kernel(%arg0: i32, %arg1: memref<32x1792xbf16, #tpu.memory_space<vmem>>, %arg2: memref<1792x256xbf16, #tpu.memory_space<vmem>>, %arg3: memref<1x256xf32, #tpu.memory_space<vmem>>, %arg4: memref<2304x384xbf16, #tpu.memory_space<vmem>>, %arg5: memref<1x384xf32, #tpu.memory_space<vmem>>, %arg6: memref<384x1024xbf16, #tpu.memory_space<vmem>>, %arg7: memref<1x1024xf32, #tpu.memory_space<vmem>>, %arg8: memref<8x1024xf32, #tpu.memory_space<vmem>>, %arg9: memref<8x2304xf32, #tpu.memory_space<vmem>>) attributes {dimension_semantics = [#tpu.dimension_semantics<arbitrary>], iteration_bounds = array<i64: 1>, scalar_prefetch = 0 : i64, scratch_operands = 1 : i64, tpu.core_type = #tpu.core_type<tc>, window_params = [{pipeline_mode = #tpu.pipeline_mode<synchronous>, transform_indices = @transform_0, window_bounds = array<i64: 32, 1792>}, {pipeline_mode = #tpu.pipeline_mode<synchronous>, transform_indices = @transform_1, window_bounds = array<i64: 1792, 256>}, {pipeline_mode = #tpu.pipeline_mode<synchronous>, transform_indices = @transform_2, window_bounds = array<i64: 1, 256>}, {pipeline_mode = #tpu.pipeline_mode<synchronous>, transform_indices = @transform_3, window_bounds = array<i64: 2304, 384>}, {pipeline_mode = #tpu.pipeline_mode<synchronous>, transform_indices = @transform_4, window_bounds = array<i64: 1, 384>}, {pipeline_mode = #tpu.pipeline_mode<synchronous>, transform_indices = @transform_5, window_bounds = array<i64: 384, 1024>}, {pipeline_mode = #tpu.pipeline_mode<synchronous>, transform_indices = @transform_6, window_bounds = array<i64: 1, 1024>}, {pipeline_mode = #tpu.pipeline_mode<synchronous>, transform_indices = @transform_7, window_bounds = array<i64: 8, 1024>}]} {
    %c0 = arith.constant 0 : index
    %c0_0 = arith.constant 0 : index
    %0 = vector.load %arg1[%c0, %c0_0] : memref<32x1792xbf16, #tpu.memory_space<vmem>>, vector<32x1792xbf16>
    %c0_1 = arith.constant 0 : index
    %c0_2 = arith.constant 0 : index
    %1 = vector.load %arg2[%c0_1, %c0_2] : memref<1792x256xbf16, #tpu.memory_space<vmem>>, vector<1792x256xbf16>
    %cst = arith.constant dense<0.000000e+00> : vector<32x256xf32>
    %2 = tpu.matmul %0, %1, %cst {dimension_numbers = #tpu.dot_dimension_numbers<[1], [0], [0], [1], [0, 0, 1, 1], [], []>} : vector<32x1792xbf16>, vector<1792x256xbf16>, vector<32x256xf32> -> vector<32x256xf32>
    %c0_3 = arith.constant 0 : index
    %c0_4 = arith.constant 0 : index
    %3 = vector.load %arg3[%c0_3, %c0_4] : memref<1x256xf32, #tpu.memory_space<vmem>>, vector<1x256xf32>
    %4 = vector.broadcast %3 : vector<1x256xf32> to vector<32x256xf32>
    %5 = arith.addf %2, %4 : vector<32x256xf32>
    %cst_5 = arith.constant 0.000000e+00 : f32
    %6 = vector.broadcast %cst_5 : f32 to vector<32x256xf32>
    %7 = arith.maximumf %5, %6 : vector<32x256xf32>
    %cst_6 = arith.constant 0.000000e+00 : f32
    %8 = vector.broadcast %cst_6 : f32 to vector<8x2304xf32>
    %c0_7 = arith.constant 0 : index
    %c0_8 = arith.constant 0 : index
    %9 = vector.load %arg9[%c0_7, %c0_8] : memref<8x2304xf32, #tpu.memory_space<vmem>>, vector<8x2304xf32>
    tpu.vector_store %arg9[%c0_7, %c0_8], %8 {strides = array<i32>} : memref<8x2304xf32, #tpu.memory_space<vmem>>, vector<8x2304xf32>,
    %10 = vector.extract_strided_slice %7 {offsets = [0, 0], sizes = [1, 256], strides = [1, 1]} : vector<32x256xf32> to vector<1x256xf32>
    %c0_9 = arith.constant 0 : index
    %c0_10 = arith.constant 0 : index
    %11 = vector.load %arg9[%c0_9, %c0_10] : memref<8x2304xf32, #tpu.memory_space<vmem>>, vector<1x256xf32>
    tpu.vector_store %arg9[%c0_9, %c0_10], %10 {strides = array<i32>} : memref<8x2304xf32, #tpu.memory_space<vmem>>, vector<1x256xf32>,
    %12 = vector.extract_strided_slice %7 {offsets = [1, 0], sizes = [1, 256], strides = [1, 1]} : vector<32x256xf32> to vector<1x256xf32>
    %c0_11 = arith.constant 0 : index
    %c256 = arith.constant 256 : index
    %13 = vector.load %arg9[%c0_11, %c256] : memref<8x2304xf32, #tpu.memory_space<vmem>>, vector<1x256xf32>
    tpu.vector_store %arg9[%c0_11, %c256], %12 {strides = array<i32>} : memref<8x2304xf32, #tpu.memory_space<vmem>>, vector<1x256xf32>,
    %14 = vector.extract_strided_slice %7 {offsets = [2, 0], sizes = [1, 256], strides = [1, 1]} : vector<32x256xf32> to vector<1x256xf32>
    %c0_12 = arith.constant 0 : index
    %c512 = arith.constant 512 : index
    %15 = vector.load %arg9[%c0_12, %c512] : memref<8x2304xf32, #tpu.memory_space<vmem>>, vector<1x256xf32>
    tpu.vector_store %arg9[%c0_12, %c512], %14 {strides = array<i32>} : memref<8x2304xf32, #tpu.memory_space<vmem>>, vector<1x256xf32>,
    %16 = vector.extract_strided_slice %7 {offsets = [3, 0], sizes = [1, 256], strides = [1, 1]} : vector<32x256xf32> to vector<1x256xf32>
    %c0_13 = arith.constant 0 : index
    %c768 = arith.constant 768 : index
    %17 = vector.load %arg9[%c0_13, %c768] : memref<8x2304xf32, #tpu.memory_space<vmem>>, vector<1x256xf32>
    tpu.vector_store %arg9[%c0_13, %c768], %16 {strides = array<i32>} : memref<8x2304xf32, #tpu.memory_space<vmem>>, vector<1x256xf32>,
    %18 = vector.extract_strided_slice %7 {offsets = [4, 0], sizes = [1, 256], strides = [1, 1]} : vector<32x256xf32> to vector<1x256xf32>
    %c0_14 = arith.constant 0 : index
    %c1024 = arith.constant 1024 : index
    %19 = vector.load %arg9[%c0_14, %c1024] : memref<8x2304xf32, #tpu.memory_space<vmem>>, vector<1x256xf32>
    tpu.vector_store %arg9[%c0_14, %c1024], %18 {strides = array<i32>} : memref<8x2304xf32, #tpu.memory_space<vmem>>, vector<1x256xf32>,
    %20 = vector.extract_strided_slice %7 {offsets = [5, 0], sizes = [1, 256], strides = [1, 1]} : vector<32x256xf32> to vector<1x256xf32>
    %c0_15 = arith.constant 0 : index
    %c1280 = arith.constant 1280 : index
    %21 = vector.load %arg9[%c0_15, %c1280] : memref<8x2304xf32, #tpu.memory_space<vmem>>, vector<1x256xf32>
    tpu.vector_store %arg9[%c0_15, %c1280], %20 {strides = array<i32>} : memref<8x2304xf32, #tpu.memory_space<vmem>>, vector<1x256xf32>,
    %22 = vector.extract_strided_slice %7 {offsets = [6, 0], sizes = [1, 256], strides = [1, 1]} : vector<32x256xf32> to vector<1x256xf32>
    %c0_16 = arith.constant 0 : index
    %c1536 = arith.constant 1536 : index
    %23 = vector.load %arg9[%c0_16, %c1536] : memref<8x2304xf32, #tpu.memory_space<vmem>>, vector<1x256xf32>
    tpu.vector_store %arg9[%c0_16, %c1536], %22 {strides = array<i32>} : memref<8x2304xf32, #tpu.memory_space<vmem>>, vector<1x256xf32>,
    %24 = vector.extract_strided_slice %7 {offsets = [7, 0], sizes = [1, 256], strides = [1, 1]} : vector<32x256xf32> to vector<1x256xf32>
    %c0_17 = arith.constant 0 : index
    %c1792 = arith.constant 1792 : index
    %25 = vector.load %arg9[%c0_17, %c1792] : memref<8x2304xf32, #tpu.memory_space<vmem>>, vector<1x256xf32>
    tpu.vector_store %arg9[%c0_17, %c1792], %24 {strides = array<i32>} : memref<8x2304xf32, #tpu.memory_space<vmem>>, vector<1x256xf32>,
    %26 = vector.extract_strided_slice %7 {offsets = [8, 0], sizes = [1, 256], strides = [1, 1]} : vector<32x256xf32> to vector<1x256xf32>
    %c0_18 = arith.constant 0 : index
    %c2048 = arith.constant 2048 : index
    %27 = vector.load %arg9[%c0_18, %c2048] : memref<8x2304xf32, #tpu.memory_space<vmem>>, vector<1x256xf32>
    tpu.vector_store %arg9[%c0_18, %c2048], %26 {strides = array<i32>} : memref<8x2304xf32, #tpu.memory_space<vmem>>, vector<1x256xf32>,
    %28 = vector.extract_strided_slice %7 {offsets = [9, 0], sizes = [1, 256], strides = [1, 1]} : vector<32x256xf32> to vector<1x256xf32>
    %c1 = arith.constant 1 : index
    %c0_19 = arith.constant 0 : index
    %29 = vector.load %arg9[%c1, %c0_19] : memref<8x2304xf32, #tpu.memory_space<vmem>>, vector<1x256xf32>
    tpu.vector_store %arg9[%c1, %c0_19], %28 {strides = array<i32>} : memref<8x2304xf32, #tpu.memory_space<vmem>>, vector<1x256xf32>,
    %30 = vector.extract_strided_slice %7 {offsets = [10, 0], sizes = [1, 256], strides = [1, 1]} : vector<32x256xf32> to vector<1x256xf32>
    %c1_20 = arith.constant 1 : index
    %c256_21 = arith.constant 256 : index
    %31 = vector.load %arg9[%c1_20, %c256_21] : memref<8x2304xf32, #tpu.memory_space<vmem>>, vector<1x256xf32>
    tpu.vector_store %arg9[%c1_20, %c256_21], %30 {strides = array<i32>} : memref<8x2304xf32, #tpu.memory_space<vmem>>, vector<1x256xf32>,
    %32 = vector.extract_strided_slice %7 {offsets = [11, 0], sizes = [1, 256], strides = [1, 1]} : vector<32x256xf32> to vector<1x256xf32>
    %c1_22 = arith.constant 1 : index
    %c512_23 = arith.constant 512 : index
    %33 = vector.load %arg9[%c1_22, %c512_23] : memref<8x2304xf32, #tpu.memory_space<vmem>>, vector<1x256xf32>
    tpu.vector_store %arg9[%c1_22, %c512_23], %32 {strides = array<i32>} : memref<8x2304xf32, #tpu.memory_space<vmem>>, vector<1x256xf32>,
    %34 = vector.extract_strided_slice %7 {offsets = [12, 0], sizes = [1, 256], strides = [1, 1]} : vector<32x256xf32> to vector<1x256xf32>
    %c1_24 = arith.constant 1 : index
    %c768_25 = arith.constant 768 : index
    %35 = vector.load %arg9[%c1_24, %c768_25] : memref<8x2304xf32, #tpu.memory_space<vmem>>, vector<1x256xf32>
    tpu.vector_store %arg9[%c1_24, %c768_25], %34 {strides = array<i32>} : memref<8x2304xf32, #tpu.memory_space<vmem>>, vector<1x256xf32>,
    %36 = vector.extract_strided_slice %7 {offsets = [13, 0], sizes = [1, 256], strides = [1, 1]} : vector<32x256xf32> to vector<1x256xf32>
    %c1_26 = arith.constant 1 : index
    %c1024_27 = arith.constant 1024 : index
    %37 = vector.load %arg9[%c1_26, %c1024_27] : memref<8x2304xf32, #tpu.memory_space<vmem>>, vector<1x256xf32>
    tpu.vector_store %arg9[%c1_26, %c1024_27], %36 {strides = array<i32>} : memref<8x2304xf32, #tpu.memory_space<vmem>>, vector<1x256xf32>,
    %38 = vector.extract_strided_slice %7 {offsets = [14, 0], sizes = [1, 256], strides = [1, 1]} : vector<32x256xf32> to vector<1x256xf32>
    %c1_28 = arith.constant 1 : index
    %c1280_29 = arith.constant 1280 : index
    %39 = vector.load %arg9[%c1_28, %c1280_29] : memref<8x2304xf32, #tpu.memory_space<vmem>>, vector<1x256xf32>
    tpu.vector_store %arg9[%c1_28, %c1280_29], %38 {strides = array<i32>} : memref<8x2304xf32, #tpu.memory_space<vmem>>, vector<1x256xf32>,
    %40 = vector.extract_strided_slice %7 {offsets = [15, 0], sizes = [1, 256], strides = [1, 1]} : vector<32x256xf32> to vector<1x256xf32>
    %c1_30 = arith.constant 1 : index
    %c1536_31 = arith.constant 1536 : index
    %41 = vector.load %arg9[%c1_30, %c1536_31] : memref<8x2304xf32, #tpu.memory_space<vmem>>, vector<1x256xf32>
    tpu.vector_store %arg9[%c1_30, %c1536_31], %40 {strides = array<i32>} : memref<8x2304xf32, #tpu.memory_space<vmem>>, vector<1x256xf32>,
    %42 = vector.extract_strided_slice %7 {offsets = [16, 0], sizes = [1, 256], strides = [1, 1]} : vector<32x256xf32> to vector<1x256xf32>
    %c1_32 = arith.constant 1 : index
    %c1792_33 = arith.constant 1792 : index
    %43 = vector.load %arg9[%c1_32, %c1792_33] : memref<8x2304xf32, #tpu.memory_space<vmem>>, vector<1x256xf32>
    tpu.vector_store %arg9[%c1_32, %c1792_33], %42 {strides = array<i32>} : memref<8x2304xf32, #tpu.memory_space<vmem>>, vector<1x256xf32>,
    %44 = vector.extract_strided_slice %7 {offsets = [17, 0], sizes = [1, 256], strides = [1, 1]} : vector<32x256xf32> to vector<1x256xf32>
    %c1_34 = arith.constant 1 : index
    %c2048_35 = arith.constant 2048 : index
    %45 = vector.load %arg9[%c1_34, %c2048_35] : memref<8x2304xf32, #tpu.memory_space<vmem>>, vector<1x256xf32>
    tpu.vector_store %arg9[%c1_34, %c2048_35], %44 {strides = array<i32>} : memref<8x2304xf32, #tpu.memory_space<vmem>>, vector<1x256xf32>,
    %c0_36 = arith.constant 0 : index
    %c0_37 = arith.constant 0 : index
    %46 = vector.load %arg9[%c0_36, %c0_37] : memref<8x2304xf32, #tpu.memory_space<vmem>>, vector<8x2304xf32>
    %47 = arith.truncf %46 : vector<8x2304xf32> to vector<8x2304xbf16>
    %c0_38 = arith.constant 0 : index
    %c0_39 = arith.constant 0 : index
    %48 = vector.load %arg4[%c0_38, %c0_39] : memref<2304x384xbf16, #tpu.memory_space<vmem>>, vector<2304x384xbf16>
    %cst_40 = arith.constant dense<0.000000e+00> : vector<8x384xf32>
    %49 = tpu.matmul %47, %48, %cst_40 {dimension_numbers = #tpu.dot_dimension_numbers<[1], [0], [0], [1], [0, 0, 1, 1], [], []>} : vector<8x2304xbf16>, vector<2304x384xbf16>, vector<8x384xf32> -> vector<8x384xf32>
    %c0_41 = arith.constant 0 : index
    %c0_42 = arith.constant 0 : index
    %50 = vector.load %arg5[%c0_41, %c0_42] : memref<1x384xf32, #tpu.memory_space<vmem>>, vector<1x384xf32>
    %51 = vector.broadcast %50 : vector<1x384xf32> to vector<8x384xf32>
    %52 = arith.addf %49, %51 : vector<8x384xf32>
    %cst_43 = arith.constant 0.000000e+00 : f32
    %53 = vector.broadcast %cst_43 : f32 to vector<8x384xf32>
    %54 = arith.maximumf %52, %53 : vector<8x384xf32>
    %55 = arith.truncf %54 : vector<8x384xf32> to vector<8x384xbf16>
    %c0_44 = arith.constant 0 : index
    %c0_45 = arith.constant 0 : index
    %56 = vector.load %arg6[%c0_44, %c0_45] : memref<384x1024xbf16, #tpu.memory_space<vmem>>, vector<384x1024xbf16>
    %cst_46 = arith.constant dense<0.000000e+00> : vector<8x1024xf32>
    %57 = tpu.matmul %55, %56, %cst_46 {dimension_numbers = #tpu.dot_dimension_numbers<[1], [0], [0], [1], [0, 0, 1, 1], [], []>} : vector<8x384xbf16>, vector<384x1024xbf16>, vector<8x1024xf32> -> vector<8x1024xf32>
    %c0_47 = arith.constant 0 : index
    %c0_48 = arith.constant 0 : index
    %58 = vector.load %arg7[%c0_47, %c0_48] : memref<1x1024xf32, #tpu.memory_space<vmem>>, vector<1x1024xf32>
    %59 = vector.broadcast %58 : vector<1x1024xf32> to vector<8x1024xf32>
    %60 = arith.addf %57, %59 : vector<8x1024xf32>
    %c0_49 = arith.constant 0 : index
    %c0_50 = arith.constant 0 : index
    %61 = vector.load %arg8[%c0_49, %c0_50] : memref<8x1024xf32, #tpu.memory_space<vmem>>, vector<8x1024xf32>
    tpu.vector_store %arg8[%c0_49, %c0_50], %60 {strides = array<i32>} : memref<8x1024xf32, #tpu.memory_space<vmem>>, vector<8x1024xf32>,
    return
  }
  func.func @transform_0(%arg0: i32) -> (i32, i32) {
    %c0_i32 = arith.constant 0 : i32
    %c0_i32_0 = arith.constant 0 : i32
    %c0_i32_1 = arith.constant 0 : i32
    return %c0_i32, %c0_i32_0 : i32, i32
  }
  func.func @transform_1(%arg0: i32) -> (i32, i32) {
    %c0_i32 = arith.constant 0 : i32
    %c0_i32_0 = arith.constant 0 : i32
    %c0_i32_1 = arith.constant 0 : i32
    return %c0_i32, %c0_i32_0 : i32, i32
  }
  func.func @transform_2(%arg0: i32) -> (i32, i32) {
    %c0_i32 = arith.constant 0 : i32
    %c0_i32_0 = arith.constant 0 : i32
    %c0_i32_1 = arith.constant 0 : i32
    return %c0_i32, %c0_i32_0 : i32, i32
  }
  func.func @transform_3(%arg0: i32) -> (i32, i32) {
    %c0_i32 = arith.constant 0 : i32
    %c0_i32_0 = arith.constant 0 : i32
    %c0_i32_1 = arith.constant 0 : i32
    return %c0_i32, %c0_i32_0 : i32, i32
  }
  func.func @transform_4(%arg0: i32) -> (i32, i32) {
    %c0_i32 = arith.constant 0 : i32
    %c0_i32_0 = arith.constant 0 : i32
    %c0_i32_1 = arith.constant 0 : i32
    return %c0_i32, %c0_i32_0 : i32, i32
  }
  func.func @transform_5(%arg0: i32) -> (i32, i32) {
    %c0_i32 = arith.constant 0 : i32
    %c0_i32_0 = arith.constant 0 : i32
    %c0_i32_1 = arith.constant 0 : i32
    return %c0_i32, %c0_i32_0 : i32, i32
  }
  func.func @transform_6(%arg0: i32) -> (i32, i32) {
    %c0_i32 = arith.constant 0 : i32
    %c0_i32_0 = arith.constant 0 : i32
    %c0_i32_1 = arith.constant 0 : i32
    return %c0_i32, %c0_i32_0 : i32, i32
  }
  func.func @transform_7(%arg0: i32) -> (i32, i32) {
    %c0_i32 = arith.constant 0 : i32
    %c0_i32_0 = arith.constant 0 : i32
    %c0_i32_1 = arith.constant 0 : i32
    return %c0_i32, %c0_i32_0 : i32, i32
  }
}

</mosaic_0001>

<bundles_post_ra>
// kernel: imagenet_convnet_bp_forward.6
= control target key start
LH: loop header
LB: loop body
LE: loop exit
PB: predicated region body
PF: predicated region fallthrough
CT: control target
= control target key end

     0   :  { %s1446_s12 = smov 0   ;;  %s1751_s0 = inlined_call_operand.vmem [shape: bf16[4608,256], index: 0, kind: input, shape index: {}]   ;;  %s1752_s1 = inlined_call_operand.vmem [shape: bf16[256,128], index: 1, kind: input, shape index: {}]   ;;  %s1753_s2 = inlined_call_operand.vmem [shape: f32[1,128], index: 2, kind: input, shape index: {}]   ;;  %s1754_s3 = inlined_call_operand.vmem [shape: f32[4608,128], index: 3, kind: output, shape index: {}]  }
   0x1 LB: > { %s1170_s13 = sadd.s32 4294967295, %s1423_s12   ;;  %p1174_p0 = scmp.ge.s32.totalorder %s1423_s12, 1  ;;  %s1423_s12 = sphi %s1446_s12, %s13_s12  }
   0x2   : > { %p139_p1 = scmp.lt.s32.totalorder %s1423_s12, 10 }
   0x4   : > { %p140_p2 = pnand %p1174_p0, %p139_p1 }
   0x5   : > { %s1175_s16 = sshll.u32 (!%p140_p2), %s1170_s13, 6 }
   0x6   : > { %143 = sbr.rel (%p140_p2) target bundleno = 398 (0x18e), region = 32  ;;  %p165_p3 = scmp.lt.s32.totalorder (!%p140_p2), %s1175_s16, 575 }
   0xb   : > { %v1305_v0 = vld [vmem:[%s1752_s1 + $0x38] sm:$0xff]   ;;  %v1425_v1 = vmov 0   ;;  %v1306_v2 = vld [vmem:[%s1752_s1 + $0x30] sm:$0xff]   ;;  %v1307_v3 = vld [vmem:[%s1752_s1 + $0x28] sm:$0xff]   ;;  %s1756_s16 = smov (!%p165_p3, %s1175_s16), 575 }
   0xc   : > { %697 = vmatprep.subr.bf16.mxu0 %v1425_v1  ;;  %1264 = vmatprep.subr.bf16.mxu1 %v1425_v1  ;;  %v1308_v4 = vld [vmem:[%s1752_s1 + $0x20] sm:$0xff]   ;;  %s1263_s23 = sshll.u32 %s1756_s16, 3  ;;  %v1309_v5 = vld [vmem:[%s1752_s1 + $0x18] sm:$0xff]   ;;  %v1310_v7 = vld [vmem:[%s1752_s1 + $0x10] sm:$0xff]  }
   0xd   : > { %698 = vmatpush1.bf16.msra.mxu0 %v1305_v0  ;;  %1280 = vmatpush1.bf16.msra.mxu1 %v1305_v0  ;;  %s1485_s28 = scalar_lea.vmem %s1751_s0, %s1263_s23  ;;  %v1311_v9 = vld [vmem:[%s1752_s1 + $0x8] sm:$0xff]   ;;  %v1312_v10 = vld [vmem:[%s1752_s1] sm:$0xff]   ;;  %v1313_v11 = vld [vmem:[%s1752_s1 + $0x78] sm:$0xff]   ;;  %s1620_s5 = scalar_lea.vmem %s1754_s3, %s1263_s23 }
   0xe   : > { %699 = vmatprep.subr.bf16.mxu0 %v1425_v1  ;;  %1265 = vmatprep.subr.bf16.mxu1 %v1425_v1  ;;  %v1323_v6 = vld [vmem:[%s1485_s28 + $0x4] ss:$8 sps:$4 sm:$0xff]   ;;  %v1314_v12 = vld [vmem:[%s1752_s1 + $0x70] sm:$0xff]   ;;  %v1317_v15 = vld [vmem:[%s1752_s1 + $0x58] sm:$0xff]  }
   0xf   : > { %v1326_v8 = vld [vmem:[%s1485_s28 + $0x104] ss:$8 sps:$4 sm:$0xff]   ;;  %729 = vmatprep.mubr.bf16.mxu0 %v1323_v6  ;;  %v1318_v16 = vld [vmem:[%s1752_s1 + $0x50] sm:$0xff]   ;;  %v1321_v19 = vld [vmem:[%s1485_s28] ss:$8 sps:$4 sm:$0xff]  }
  0x10   : > { %857 = vmatprep.mubr.bf16.mxu1 %v1326_v8  ;;  %v1315_v13 = vld [vmem:[%s1752_s1 + $0x68] sm:$0xff]   ;;  %v1316_v14 = vld [vmem:[%s1752_s1 + $0x60] sm:$0xff]   ;;  %v1327_v21 = vld [vmem:[%s1485_s28 + $0x14] ss:$8 sps:$4 sm:$0xff]  }
  0x11   : > { %700 = vmatpush1.bf16.msra.mxu0 %v1306_v2  ;;  %1281 = vmatpush1.bf16.msra.mxu1 %v1306_v2  ;;  %v1319_v17 = vld [vmem:[%s1752_s1 + $0x48] sm:$0xff]   ;;  %v1320_v18 = vld [vmem:[%s1752_s1 + $0x40] sm:$0xff]   ;;  %v1329_v22 = vld [vmem:[%s1485_s28 + $0x114] ss:$8 sps:$4 sm:$0xff]  }
  0x12   : > { %701 = vmatprep.subr.bf16.mxu0 %v1425_v1  ;;  %1266 = vmatprep.subr.bf16.mxu1 %v1425_v1  ;;  %v1324_v20 = vld [vmem:[%s1485_s28 + $0x100] ss:$8 sps:$4 sm:$0xff]   ;;  %v1331_v23 = vld [vmem:[%s1485_s28 + $0x10] ss:$8 sps:$4 sm:$0xff]   ;;  %v1333_v25 = vld [vmem:[%s1485_s28 + $0x24] ss:$8 sps:$4 sm:$0xff]  }
  0x13   : > { %v1332_v24 = vld [vmem:[%s1485_s28 + $0x110] ss:$8 sps:$4 sm:$0xff]   ;;  %v1335_v26 = vld [vmem:[%s1485_s28 + $0x124] ss:$8 sps:$4 sm:$0xff]   ;;  %v1337_v27 = vld [vmem:[%s1485_s28 + $0x20] ss:$8 sps:$4 sm:$0xff]  }
  0x14   : > { %v1338_v28 = vld [vmem:[%s1485_s28 + $0x120] ss:$8 sps:$4 sm:$0xff]   ;;  %v1339_v29 = vld [vmem:[%s1485_s28 + $0x34] ss:$8 sps:$4 sm:$0xff]   ;;  %v1343_v31 = vld [vmem:[%s1485_s28 + $0x30] ss:$8 sps:$4 sm:$0xff]  }
  0x15   : > { %702 = vmatpush1.bf16.msra.mxu0 %v1307_v3  ;;  %1282 = vmatpush1.bf16.msra.mxu1 %v1307_v3  ;;  %v1341_v30 = vld [vmem:[%s1485_s28 + $0x134] ss:$8 sps:$4 sm:$0xff]   ;;  %v1344_v32 = vld [vmem:[%s1485_s28 + $0x130] ss:$8 sps:$4 sm:$0xff]   ;;  %v1345_v33 = vld [vmem:[%s1485_s28 + $0x44] ss:$8 sps:$4 sm:$0xff]  }
  0x16   : > { %703 = vmatprep.subr.bf16.mxu0 %v1425_v1  ;;  %1267 = vmatprep.subr.bf16.mxu1 %v1425_v1  ;;  %v1347_v34 = vld [vmem:[%s1485_s28 + $0x144] ss:$8 sps:$4 sm:$0xff]   ;;  %v1349_v35 = vld [vmem:[%s1485_s28 + $0x40] ss:$8 sps:$4 sm:$0xff]   ;;  %v1351_v37 = vld [vmem:[%s1485_s28 + $0x54] ss:$8 sps:$4 sm:$0xff]  }
  0x17   : > { %v1350_v36 = vld [vmem:[%s1485_s28 + $0x140] ss:$8 sps:$4 sm:$0xff]   ;;  %v1353_v38 = vld [vmem:[%s1485_s28 + $0x154] ss:$8 sps:$4 sm:$0xff]   ;;  %v1355_v39 = vld [vmem:[%s1485_s28 + $0x50] ss:$8 sps:$4 sm:$0xff]  }
  0x18   : > { %v1356_v40 = vld [vmem:[%s1485_s28 + $0x150] ss:$8 sps:$4 sm:$0xff]   ;;  %v1357_v41 = vld [vmem:[%s1485_s28 + $0x64] ss:$8 sps:$4 sm:$0xff]   ;;  %v1361_v43 = vld [vmem:[%s1485_s28 + $0x60] ss:$8 sps:$4 sm:$0xff]  }
  0x19   : > { %704 = vmatpush1.bf16.msra.mxu0 %v1308_v4  ;;  %1283 = vmatpush1.bf16.msra.mxu1 %v1308_v4  ;;  %v1359_v42 = vld [vmem:[%s1485_s28 + $0x164] ss:$8 sps:$4 sm:$0xff]   ;;  %v1362_v44 = vld [vmem:[%s1485_s28 + $0x160] ss:$8 sps:$4 sm:$0xff]   ;;  %v1363_v45 = vld [vmem:[%s1485_s28 + $0x74] ss:$8 sps:$4 sm:$0xff]  }
  0x1a   : > { %705 = vmatprep.subr.bf16.mxu0 %v1425_v1  ;;  %1268 = vmatprep.subr.bf16.mxu1 %v1425_v1  ;;  %v1365_v46 = vld [vmem:[%s1485_s28 + $0x174] ss:$8 sps:$4 sm:$0xff]   ;;  %v1367_v47 = vld [vmem:[%s1485_s28 + $0x70] ss:$8 sps:$4 sm:$0xff]   ;;  %v1369_v49 = vld [vmem:[%s1485_s28 + $0x84] ss:$8 sps:$4 sm:$0xff]  }
  0x1b   : > { %v1368_v48 = vld [vmem:[%s1485_s28 + $0x170] ss:$8 sps:$4 sm:$0xff]   ;;  %v1371_v50 = vld [vmem:[%s1485_s28 + $0x184] ss:$8 sps:$4 sm:$0xff]   ;;  %v1373_v51 = vld [vmem:[%s1485_s28 + $0x80] ss:$8 sps:$4 sm:$0xff]  }
  0x1c   : > { %v1374_v52 = vld [vmem:[%s1485_s28 + $0x180] ss:$8 sps:$4 sm:$0xff]   ;;  %v1375_v53 = vld [vmem:[%s1485_s28 + $0x94] ss:$8 sps:$4 sm:$0xff]   ;;  %v1379_v55 = vld [vmem:[%s1485_s28 + $0x90] ss:$8 sps:$4 sm:$0xff]  }
  0x1d   : > { %706 = vmatpush1.bf16.msra.mxu0 %v1309_v5  ;;  %1284 = vmatpush1.bf16.msra.mxu1 %v1309_v5  ;;  %v1377_v54 = vld [vmem:[%s1485_s28 + $0x194] ss:$8 sps:$4 sm:$0xff]   ;;  %v1380_v56 = vld [vmem:[%s1485_s28 + $0x190] ss:$8 sps:$4 sm:$0xff]   ;;  %v1381_v57 = vld [vmem:[%s1485_s28 + $0xa4] ss:$8 sps:$4 sm:$0xff]  }
  0x1e   : > { %707 = vmatprep.subr.bf16.mxu0 %v1425_v1  ;;  %1269 = vmatprep.subr.bf16.mxu1 %v1425_v1  ;;  %v1383_v58 = vld [vmem:[%s1485_s28 + $0x1a4] ss:$8 sps:$4 sm:$0xff]   ;;  %v1385_v59 = vld [vmem:[%s1485_s28 + $0xa0] ss:$8 sps:$4 sm:$0xff]   ;;  %v1387_v61 = vld [vmem:[%s1485_s28 + $0xb4] ss:$8 sps:$4 sm:$0xff]  }
  0x1f   : > { %v1386_v60 = vld [vmem:[%s1485_s28 + $0x1a0] ss:$8 sps:$4 sm:$0xff]   ;;  %v1389_v62 = vld [vmem:[%s1485_s28 + $0x1b4] ss:$8 sps:$4 sm:$0xff]   ;;  %v1391_v63 = vld [vmem:[%s1485_s28 + $0xb0] ss:$8 sps:$4 sm:$0xff]  }
  0x20   : > { %v1392_v0 = vld [vmem:[%s1485_s28 + $0x1b0] ss:$8 sps:$4 sm:$0xff]   ;;  %v1395_v2 = vld [vmem:[%s1485_s28 + $0x1c4] ss:$8 sps:$4 sm:$0xff]   ;;  %v1397_v3 = vld [vmem:[%s1485_s28 + $0xc0] ss:$8 sps:$4 sm:$0xff]  }
  0x21   : > { %708 = vmatpush1.bf16.msra.mxu0 %v1310_v7  ;;  %1285 = vmatpush1.bf16.msra.mxu1 %v1310_v7  ;;  %v1398_v4 = vld [vmem:[%s1485_s28 + $0x1c0] ss:$8 sps:$4 sm:$0xff]   ;;  %v1399_v5 = vld [vmem:[%s1485_s28 + $0xd4] ss:$8 sps:$4 sm:$0xff]   ;;  %v1403_v7 = vld [vmem:[%s1485_s28 + $0xd0] ss:$8 sps:$4 sm:$0xff]  }
  0x22   : > { %709 = vmatprep.subr.bf16.mxu0 %v1425_v1  ;;  %1270 = vmatprep.subr.bf16.mxu1 %v1425_v1  ;;  %v1401_v6 = vld [vmem:[%s1485_s28 + $0x1d4] ss:$8 sps:$4 sm:$0xff]   ;;  %v1404_v8 = vld [vmem:[%s1485_s28 + $0x1d0] ss:$8 sps:$4 sm:$0xff]  }
  0x25   : > { %710 = vmatpush1.bf16.msra.mxu0 %v1311_v9  ;;  %1286 = vmatpush1.bf16.msra.mxu1 %v1311_v9  ;;  %v1405_v9 = vld [vmem:[%s1485_s28 + $0xe4] ss:$8 sps:$4 sm:$0xff]  }
  0x26   : > { %711 = vmatprep.subr.bf16.mxu0 %v1425_v1  ;;  %1271 = vmatprep.subr.bf16.mxu1 %v1425_v1 }
  0x29   : > { %712 = vmatpush1.bf16.msra.mxu0 %v1312_v10  ;;  %1287 = vmatpush1.bf16.msra.mxu1 %v1312_v10  ;;  %v1407_v10 = vld [vmem:[%s1485_s28 + $0x1e4] ss:$8 sps:$4 sm:$0xff]  }
  0x2a   : > { %713 = vmatprep.subr.bf16.mxu0 %v1425_v1  ;;  %1272 = vmatprep.subr.bf16.mxu1 %v1425_v1 }
  0x2d   : > { %714 = vmatpush2.bf16.msra.mxu0 %v1313_v11  ;;  %1288 = vmatpush2.bf16.msra.mxu1 %v1313_v11  ;;  %v1409_v11 = vld [vmem:[%s1485_s28 + $0xe0] ss:$8 sps:$4 sm:$0xff]  }
  0x2e   : > { %715 = vmatprep.subr.bf16.mxu0 %v1425_v1  ;;  %1273 = vmatprep.subr.bf16.mxu1 %v1425_v1 }
  0x31   : > { %716 = vmatpush2.bf16.msra.mxu0 %v1314_v12  ;;  %1289 = vmatpush2.bf16.msra.mxu1 %v1314_v12  ;;  %v1410_v12 = vld [vmem:[%s1485_s28 + $0x1e0] ss:$8 sps:$4 sm:$0xff]  }
  0x32   : > { %717 = vmatprep.subr.bf16.mxu0 %v1425_v1  ;;  %1274 = vmatprep.subr.bf16.mxu1 %v1425_v1 }
  0x35   : > { %718 = vmatpush2.bf16.msra.mxu0 %v1315_v13  ;;  %1290 = vmatpush2.bf16.msra.mxu1 %v1315_v13  ;;  %v1411_v13 = vld [vmem:[%s1485_s28 + $0xf4] ss:$8 sps:$4 sm:$0xff]  }
  0x36   : > { %719 = vmatprep.subr.bf16.mxu0 %v1425_v1  ;;  %1275 = vmatprep.subr.bf16.mxu1 %v1425_v1 }
  0x39   : > { %720 = vmatpush2.bf16.msra.mxu0 %v1316_v14  ;;  %1291 = vmatpush2.bf16.msra.mxu1 %v1316_v14  ;;  %v1413_v14 = vld [vmem:[%s1485_s28 + $0x1f4] ss:$8 sps:$4 sm:$0xff]  }
  0x3a   : > { %721 = vmatprep.subr.bf16.mxu0 %v1425_v1  ;;  %1276 = vmatprep.subr.bf16.mxu1 %v1425_v1 }
  0x3d   : > { %722 = vmatpush2.bf16.msra.mxu0 %v1317_v15  ;;  %1292 = vmatpush2.bf16.msra.mxu1 %v1317_v15  ;;  %v1415_v15 = vld [vmem:[%s1485_s28 + $0xf0] ss:$8 sps:$4 sm:$0xff]  }
  0x3e   : > { %723 = vmatprep.subr.bf16.mxu0 %v1425_v1  ;;  %1277 = vmatprep.subr.bf16.mxu1 %v1425_v1 }
  0x41   : > { %724 = vmatpush2.bf16.msra.mxu0 %v1318_v16  ;;  %1293 = vmatpush2.bf16.msra.mxu1 %v1318_v16  ;;  %v1416_v16 = vld [vmem:[%s1485_s28 + $0x1f0] ss:$8 sps:$4 sm:$0xff]  }
  0x42   : > { %725 = vmatprep.subr.bf16.mxu0 %v1425_v1  ;;  %1278 = vmatprep.subr.bf16.mxu1 %v1425_v1 }
  0x45   : > { %726 = vmatpush2.bf16.msra.mxu0 %v1319_v17  ;;  %1294 = vmatpush2.bf16.msra.mxu1 %v1319_v17  ;;  %v1611_v17 = vld [vmem:[%s1753_s2] ss:$0 sm:$0xff] }
  0x46   : > { %727 = vmatprep.subr.bf16.mxu0 %v1425_v1  ;;  %1279 = vmatprep.subr.bf16.mxu1 %v1425_v1  ;;  %v1393_v1 = vld [vmem:[%s1485_s28 + $0xc4] ss:$8 sps:$4 sm:$0xff]  }
  0x49   : > { %728 = vmatpush2.bf16.msra.mxu0 %v1320_v18  ;;  %1295 = vmatpush2.bf16.msra.mxu1 %v1320_v18 }
  0x4c   : > { %730 = vmatmul.mubr.bf16.vlgmr.msra.gmra.mxu0 %v1321_v19  ;;  %858 = vmatmul.mubr.bf16.vlgmr.msra.gmra.mxu1 %v1324_v20 }
  0x4d   : > { %737 = vmatprep.mubr.bf16.mxu0 %v1327_v21  ;;  %865 = vmatprep.mubr.bf16.mxu1 %v1329_v22 }
  0x54   : > { %738 = vmatmul.mubr.bf16.gmra.mxu0 %v1331_v23  ;;  %866 = vmatmul.mubr.bf16.gmra.mxu1 %v1332_v24 }
  0x55   : > { %745 = vmatprep.mubr.bf16.mxu0 %v1333_v25  ;;  %873 = vmatprep.mubr.bf16.mxu1 %v1335_v26 }
  0x5c   : > { %746 = vmatmul.mubr.bf16.gmra.mxu0 %v1337_v27  ;;  %874 = vmatmul.mubr.bf16.gmra.mxu1 %v1338_v28 }
  0x5d   : > { %753 = vmatprep.mubr.bf16.mxu0 %v1339_v29  ;;  %881 = vmatprep.mubr.bf16.mxu1 %v1341_v30 }
  0x64   : > { %754 = vmatmul.mubr.bf16.gmra.mxu0 %v1343_v31  ;;  %882 = vmatmul.mubr.bf16.gmra.mxu1 %v1344_v32 }
  0x65   : > { %761 = vmatprep.mubr.bf16.mxu0 %v1345_v33  ;;  %889 = vmatprep.mubr.bf16.mxu1 %v1347_v34 }
  0x6c   : > { %762 = vmatmul.mubr.bf16.gmra.mxu0 %v1349_v35  ;;  %890 = vmatmul.mubr.bf16.gmra.mxu1 %v1350_v36 }
  0x6d   : > { %769 = vmatprep.mubr.bf16.mxu0 %v1351_v37  ;;  %897 = vmatprep.mubr.bf16.mxu1 %v1353_v38 }
  0x74   : > { %770 = vmatmul.mubr.bf16.gmra.mxu0 %v1355_v39  ;;  %898 = vmatmul.mubr.bf16.gmra.mxu1 %v1356_v40 }
  0x75   : > { %777 = vmatprep.mubr.bf16.mxu0 %v1357_v41  ;;  %905 = vmatprep.mubr.bf16.mxu1 %v1359_v42 }
  0x7c   : > { %778 = vmatmul.mubr.bf16.gmra.mxu0 %v1361_v43  ;;  %906 = vmatmul.mubr.bf16.gmra.mxu1 %v1362_v44 }
  0x7d   : > { %785 = vmatprep.mubr.bf16.mxu0 %v1363_v45  ;;  %913 = vmatprep.mubr.bf16.mxu1 %v1365_v46 }
  0x84   : > { %786 = vmatmul.mubr.bf16.gmra.mxu0 %v1367_v47  ;;  %914 = vmatmul.mubr.bf16.gmra.mxu1 %v1368_v48 }
  0x85   : > { %793 = vmatprep.mubr.bf16.mxu0 %v1369_v49  ;;  %921 = vmatprep.mubr.bf16.mxu1 %v1371_v50 }
  0x8c   : > { %794 = vmatmul.mubr.bf16.gmra.mxu0 %v1373_v51  ;;  %922 = vmatmul.mubr.bf16.gmra.mxu1 %v1374_v52 }
  0x8d   : > { %801 = vmatprep.mubr.bf16.mxu0 %v1375_v53  ;;  %929 = vmatprep.mubr.bf16.mxu1 %v1377_v54 }
  0x94   : > { %802 = vmatmul.mubr.bf16.gmra.mxu0 %v1379_v55  ;;  %930 = vmatmul.mubr.bf16.gmra.mxu1 %v1380_v56 }
  0x95   : > { %809 = vmatprep.mubr.bf16.mxu0 %v1381_v57  ;;  %937 = vmatprep.mubr.bf16.mxu1 %v1383_v58 }
  0x9c   : > { %810 = vmatmul.mubr.bf16.gmra.mxu0 %v1385_v59  ;;  %938 = vmatmul.mubr.bf16.gmra.mxu1 %v1386_v60 }
  0x9d   : > { %817 = vmatprep.mubr.bf16.mxu0 %v1387_v61  ;;  %945 = vmatprep.mubr.bf16.mxu1 %v1389_v62 }
  0xa4   : > { %818 = vmatmul.mubr.bf16.gmra.mxu0 %v1391_v63  ;;  %946 = vmatmul.mubr.bf16.gmra.mxu1 %v1392_v0 }
  0xa5   : > { %825 = vmatprep.mubr.bf16.mxu0 %v1393_v1  ;;  %953 = vmatprep.mubr.bf16.mxu1 %v1395_v2 }
  0xac   : > { %826 = vmatmul.mubr.bf16.gmra.mxu0 %v1397_v3  ;;  %954 = vmatmul.mubr.bf16.gmra.mxu1 %v1398_v4 }
  0xad   : > { %833 = vmatprep.mubr.bf16.mxu0 %v1399_v5  ;;  %961 = vmatprep.mubr.bf16.mxu1 %v1401_v6 }
  0xb4   : > { %834 = vmatmul.mubr.bf16.gmra.mxu0 %v1403_v7  ;;  %962 = vmatmul.mubr.bf16.gmra.mxu1 %v1404_v8 }
  0xb5   : > { %841 = vmatprep.mubr.bf16.mxu0 %v1405_v9  ;;  %969 = vmatprep.mubr.bf16.mxu1 %v1407_v10 }
  0xbc   : > { %842 = vmatmul.mubr.bf16.gmra.mxu0 %v1409_v11  ;;  %970 = vmatmul.mubr.bf16.gmra.mxu1 %v1410_v12 }
  0xbd   : > { %849 = vmatprep.mubr.bf16.mxu0 %v1411_v13  ;;  %977 = vmatprep.mubr.bf16.mxu1 %v1413_v14 }
  0xc4   : > { %850 = vmatmul.mubr.bf16.gmra.mxu0 %v1415_v15  ;;  %978 = vmatmul.mubr.bf16.gmra.mxu1 %v1416_v16 }
 0x10c   : > { %v731_v18 = vpop.f32.mrf.mxu0  ;;  %v859_v19 = vpop.f32.mrf.mxu1 }
 0x10d   : > { %v732_v20 = vadd.f32 %v1611_v17, %v731_v18  ;;  %v860_v21 = vadd.f32 %v1611_v17, %v859_v19 }
 0x10e   : > { %v733_v22 = vpop.f32.mrf.mxu0  ;;  %v861_v23 = vpop.f32.mrf.mxu1 }
 0x10f   : > { %v986_v24 = vmax.f32 %v732_v20, 0.0  ;;  %v1018_v25 = vmax.f32 %v860_v21, 0.0 }
 0x110   : > { %v734_v26 = vpop.f32.mrf.mxu0  ;;  %v862_v27 = vpop.f32.mrf.mxu1 }
 0x111   : > { %1050 = vst [vmem:[%s1620_s5] sm:$0xff] %v986_v24  ;;  %1082 = vst [vmem:[%s1620_s5 + $0x100] sm:$0xff] %v1018_v25  ;;  %v735_v28 = vadd.f32 %v1611_v17, %v734_v26  ;;  %v863_v29 = vadd.f32 %v1611_v17, %v862_v27 }
 0x112   : > { %v736_v30 = vpop.f32.mrf.mxu0  ;;  %v864_v31 = vpop.f32.mrf.mxu1 }
 0x113   : > { %v987_v32 = vmax.f32 %v735_v28, 0.0  ;;  %v1019_v33 = vmax.f32 %v863_v29, 0.0 }
 0x114   : > { %v739_v34 = vpop.f32.mrf.mxu0  ;;  %v867_v35 = vpop.f32.mrf.mxu1 }
 0x115   : > { %1051 = vst [vmem:[%s1620_s5 + $0x8] sm:$0xff] %v987_v32  ;;  %1083 = vst [vmem:[%s1620_s5 + $0x108] sm:$0xff] %v1019_v33  ;;  %v740_v36 = vadd.f32 %v1611_v17, %v739_v34  ;;  %v868_v37 = vadd.f32 %v1611_v17, %v867_v35 }
 0x116   : > { %v741_v38 = vpop.f32.mrf.mxu0  ;;  %v869_v39 = vpop.f32.mrf.mxu1 }
 0x117   : > { %v988_v40 = vmax.f32 %v740_v36, 0.0  ;;  %v1020_v41 = vmax.f32 %v868_v37, 0.0 }
 0x118   : > { %v742_v42 = vpop.f32.mrf.mxu0  ;;  %v870_v43 = vpop.f32.mrf.mxu1 }
 0x119   : > { %1052 = vst [vmem:[%s1620_s5 + $0x10] sm:$0xff] %v988_v40  ;;  %1084 = vst [vmem:[%s1620_s5 + $0x110] sm:$0xff] %v1020_v41  ;;  %v743_v44 = vadd.f32 %v1611_v17, %v742_v42  ;;  %v871_v45 = vadd.f32 %v1611_v17, %v870_v43 }
 0x11a   : > { %v744_v46 = vpop.f32.mrf.mxu0  ;;  %v872_v47 = vpop.f32.mrf.mxu1 }
 0x11b   : > { %v989_v48 = vmax.f32 %v743_v44, 0.0  ;;  %v1021_v49 = vmax.f32 %v871_v45, 0.0 }
 0x11c   : > { %v747_v50 = vpop.f32.mrf.mxu0  ;;  %v875_v51 = vpop.f32.mrf.mxu1 }
 0x11d   : > { %1053 = vst [vmem:[%s1620_s5 + $0x18] sm:$0xff] %v989_v48  ;;  %1085 = vst [vmem:[%s1620_s5 + $0x118] sm:$0xff] %v1021_v49  ;;  %v748_v52 = vadd.f32 %v1611_v17, %v747_v50  ;;  %v876_v53 = vadd.f32 %v1611_v17, %v875_v51 }
 0x11e   : > { %v749_v54 = vpop.f32.mrf.mxu0  ;;  %v877_v55 = vpop.f32.mrf.mxu1 }
 0x11f   : > { %v990_v56 = vmax.f32 %v748_v52, 0.0  ;;  %v1022_v57 = vmax.f32 %v876_v53, 0.0 }
 0x120   : > { %v750_v58 = vpop.f32.mrf.mxu0  ;;  %v878_v59 = vpop.f32.mrf.mxu1 }
 0x121   : > { %1054 = vst [vmem:[%s1620_s5 + $0x20] sm:$0xff] %v990_v56  ;;  %1086 = vst [vmem:[%s1620_s5 + $0x120] sm:$0xff] %v1022_v57  ;;  %v751_v60 = vadd.f32 %v1611_v17, %v750_v58  ;;  %v879_v61 = vadd.f32 %v1611_v17, %v878_v59 }
 0x122   : > { %v752_v62 = vpop.f32.mrf.mxu0  ;;  %v880_v63 = vpop.f32.mrf.mxu1 }
 0x123   : > { %v991_v0 = vmax.f32 %v751_v60, 0.0  ;;  %v1023_v1 = vmax.f32 %v879_v61, 0.0 }
 0x124   : > { %v755_v2 = vpop.f32.mrf.mxu0  ;;  %v883_v3 = vpop.f32.mrf.mxu1 }
 0x125   : > { %1055 = vst [vmem:[%s1620_s5 + $0x28] sm:$0xff] %v991_v0  ;;  %1087 = vst [vmem:[%s1620_s5 + $0x128] sm:$0xff] %v1023_v1  ;;  %v756_v4 = vadd.f32 %v1611_v17, %v755_v2  ;;  %v884_v5 = vadd.f32 %v1611_v17, %v883_v3 }
 0x126   : > { %v757_v6 = vpop.f32.mrf.mxu0  ;;  %v885_v7 = vpop.f32.mrf.mxu1 }
 0x127   : > { %v992_v8 = vmax.f32 %v756_v4, 0.0  ;;  %v1024_v9 = vmax.f32 %v884_v5, 0.0 }
 0x128   : > { %v758_v10 = vpop.f32.mrf.mxu0  ;;  %v886_v11 = vpop.f32.mrf.mxu1 }
 0x129   : > { %1056 = vst [vmem:[%s1620_s5 + $0x30] sm:$0xff] %v992_v8  ;;  %1088 = vst [vmem:[%s1620_s5 + $0x130] sm:$0xff] %v1024_v9  ;;  %v759_v12 = vadd.f32 %v1611_v17, %v758_v10  ;;  %v887_v13 = vadd.f32 %v1611_v17, %v886_v11 }
 0x12a   : > { %v760_v14 = vpop.f32.mrf.mxu0  ;;  %v888_v15 = vpop.f32.mrf.mxu1 }
 0x12b   : > { %v993_v16 = vmax.f32 %v759_v12, 0.0  ;;  %v1025_v18 = vmax.f32 %v887_v13, 0.0 }
 0x12c   : > { %v763_v19 = vpop.f32.mrf.mxu0  ;;  %v891_v20 = vpop.f32.mrf.mxu1 }
 0x12d   : > { %1057 = vst [vmem:[%s1620_s5 + $0x38] sm:$0xff] %v993_v16  ;;  %1089 = vst [vmem:[%s1620_s5 + $0x138] sm:$0xff] %v1025_v18  ;;  %v764_v21 = vadd.f32 %v1611_v17, %v763_v19  ;;  %v892_v22 = vadd.f32 %v1611_v17, %v891_v20 }
 0x12e   : > { %v765_v23 = vpop.f32.mrf.mxu0  ;;  %v893_v24 = vpop.f32.mrf.mxu1 }
 0x12f   : > { %v994_v25 = vmax.f32 %v764_v21, 0.0  ;;  %v1026_v26 = vmax.f32 %v892_v22, 0.0 }
 0x130   : > { %v766_v27 = vpop.f32.mrf.mxu0  ;;  %v894_v28 = vpop.f32.mrf.mxu1 }
 0x131   : > { %1058 = vst [vmem:[%s1620_s5 + $0x40] sm:$0xff] %v994_v25  ;;  %1090 = vst [vmem:[%s1620_s5 + $0x140] sm:$0xff] %v1026_v26  ;;  %v767_v29 = vadd.f32 %v1611_v17, %v766_v27  ;;  %v895_v30 = vadd.f32 %v1611_v17, %v894_v28 }
 0x132   : > { %v768_v31 = vpop.f32.mrf.mxu0  ;;  %v896_v32 = vpop.f32.mrf.mxu1 }
 0x133   : > { %v995_v33 = vmax.f32 %v767_v29, 0.0  ;;  %v1027_v34 = vmax.f32 %v895_v30, 0.0 }
 0x134   : > { %v771_v35 = vpop.f32.mrf.mxu0  ;;  %v899_v36 = vpop.f32.mrf.mxu1 }
 0x135   : > { %1059 = vst [vmem:[%s1620_s5 + $0x48] sm:$0xff] %v995_v33  ;;  %1091 = vst [vmem:[%s1620_s5 + $0x148] sm:$0xff] %v1027_v34  ;;  %v772_v37 = vadd.f32 %v1611_v17, %v771_v35  ;;  %v900_v38 = vadd.f32 %v1611_v17, %v899_v36 }
 0x136   : > { %v773_v39 = vpop.f32.mrf.mxu0  ;;  %v901_v40 = vpop.f32.mrf.mxu1 }
 0x137   : > { %v996_v41 = vmax.f32 %v772_v37, 0.0  ;;  %v1028_v42 = vmax.f32 %v900_v38, 0.0 }
 0x138   : > { %v774_v43 = vpop.f32.mrf.mxu0  ;;  %v902_v44 = vpop.f32.mrf.mxu1 }
 0x139   : > { %1060 = vst [vmem:[%s1620_s5 + $0x50] sm:$0xff] %v996_v41  ;;  %1092 = vst [vmem:[%s1620_s5 + $0x150] sm:$0xff] %v1028_v42  ;;  %v775_v45 = vadd.f32 %v1611_v17, %v774_v43  ;;  %v903_v46 = vadd.f32 %v1611_v17, %v902_v44 }
 0x13a   : > { %v776_v47 = vpop.f32.mrf.mxu0  ;;  %v904_v48 = vpop.f32.mrf.mxu1 }
 0x13b   : > { %v997_v49 = vmax.f32 %v775_v45, 0.0  ;;  %v1029_v50 = vmax.f32 %v903_v46, 0.0 }
 0x13c   : > { %v779_v51 = vpop.f32.mrf.mxu0  ;;  %v907_v52 = vpop.f32.mrf.mxu1 }
 0x13d   : > { %1061 = vst [vmem:[%s1620_s5 + $0x58] sm:$0xff] %v997_v49  ;;  %1093 = vst [vmem:[%s1620_s5 + $0x158] sm:$0xff] %v1029_v50  ;;  %v780_v53 = vadd.f32 %v1611_v17, %v779_v51  ;;  %v908_v54 = vadd.f32 %v1611_v17, %v907_v52 }
 0x13e   : > { %v781_v55 = vpop.f32.mrf.mxu0  ;;  %v909_v56 = vpop.f32.mrf.mxu1 }
 0x13f   : > { %v998_v57 = vmax.f32 %v780_v53, 0.0  ;;  %v1030_v58 = vmax.f32 %v908_v54, 0.0 }
 0x140   : > { %v782_v59 = vpop.f32.mrf.mxu0  ;;  %v910_v60 = vpop.f32.mrf.mxu1 }
 0x141   : > { %1062 = vst [vmem:[%s1620_s5 + $0x60] sm:$0xff] %v998_v57  ;;  %1094 = vst [vmem:[%s1620_s5 + $0x160] sm:$0xff] %v1030_v58  ;;  %v783_v61 = vadd.f32 %v1611_v17, %v782_v59  ;;  %v911_v62 = vadd.f32 %v1611_v17, %v910_v60 }
 0x142   : > { %v784_v63 = vpop.f32.mrf.mxu0  ;;  %v912_v0 = vpop.f32.mrf.mxu1 }
 0x143   : > { %v999_v1 = vmax.f32 %v783_v61, 0.0  ;;  %v1031_v2 = vmax.f32 %v911_v62, 0.0 }
 0x144   : > { %v787_v3 = vpop.f32.mrf.mxu0  ;;  %v915_v4 = vpop.f32.mrf.mxu1 }
 0x145   : > { %1063 = vst [vmem:[%s1620_s5 + $0x68] sm:$0xff] %v999_v1  ;;  %1095 = vst [vmem:[%s1620_s5 + $0x168] sm:$0xff] %v1031_v2  ;;  %v788_v5 = vadd.f32 %v1611_v17, %v787_v3  ;;  %v916_v6 = vadd.f32 %v1611_v17, %v915_v4 }
 0x146   : > { %v789_v7 = vpop.f32.mrf.mxu0  ;;  %v917_v8 = vpop.f32.mrf.mxu1 }
 0x147   : > { %v1000_v9 = vmax.f32 %v788_v5, 0.0  ;;  %v1032_v10 = vmax.f32 %v916_v6, 0.0 }
 0x148   : > { %v790_v11 = vpop.f32.mrf.mxu0  ;;  %v918_v12 = vpop.f32.mrf.mxu1 }
 0x149   : > { %1064 = vst [vmem:[%s1620_s5 + $0x70] sm:$0xff] %v1000_v9  ;;  %1096 = vst [vmem:[%s1620_s5 + $0x170] sm:$0xff] %v1032_v10  ;;  %v791_v13 = vadd.f32 %v1611_v17, %v790_v11  ;;  %v919_v14 = vadd.f32 %v1611_v17, %v918_v12 }
 0x14a   : > { %v792_v15 = vpop.f32.mrf.mxu0  ;;  %v920_v16 = vpop.f32.mrf.mxu1 }
 0x14b   : > { %v1001_v18 = vmax.f32 %v791_v13, 0.0  ;;  %v1033_v19 = vmax.f32 %v919_v14, 0.0 }
 0x14c   : > { %v795_v20 = vpop.f32.mrf.mxu0  ;;  %v923_v21 = vpop.f32.mrf.mxu1 }
 0x14d   : > { %1065 = vst [vmem:[%s1620_s5 + $0x78] sm:$0xff] %v1001_v18  ;;  %1097 = vst [vmem:[%s1620_s5 + $0x178] sm:$0xff] %v1033_v19  ;;  %v796_v22 = vadd.f32 %v1611_v17, %v795_v20  ;;  %v924_v23 = vadd.f32 %v1611_v17, %v923_v21 }
 0x14e   : > { %v797_v24 = vpop.f32.mrf.mxu0  ;;  %v925_v25 = vpop.f32.mrf.mxu1 }
 0x14f   : > { %v1002_v26 = vmax.f32 %v796_v22, 0.0  ;;  %v1034_v27 = vmax.f32 %v924_v23, 0.0 }
 0x150   : > { %v798_v28 = vpop.f32.mrf.mxu0  ;;  %v926_v29 = vpop.f32.mrf.mxu1 }
 0x151   : > { %1066 = vst [vmem:[%s1620_s5 + $0x80] sm:$0xff] %v1002_v26  ;;  %1098 = vst [vmem:[%s1620_s5 + $0x180] sm:$0xff] %v1034_v27  ;;  %v799_v30 = vadd.f32 %v1611_v17, %v798_v28  ;;  %v927_v31 = vadd.f32 %v1611_v17, %v926_v29 }
 0x152   : > { %v800_v32 = vpop.f32.mrf.mxu0  ;;  %v928_v33 = vpop.f32.mrf.mxu1 }
 0x153   : > { %v1003_v34 = vmax.f32 %v799_v30, 0.0  ;;  %v1035_v35 = vmax.f32 %v927_v31, 0.0 }
 0x154   : > { %v803_v36 = vpop.f32.mrf.mxu0  ;;  %v931_v37 = vpop.f32.mrf.mxu1 }
 0x155   : > { %1067 = vst [vmem:[%s1620_s5 + $0x88] sm:$0xff] %v1003_v34  ;;  %1099 = vst [vmem:[%s1620_s5 + $0x188] sm:$0xff] %v1035_v35  ;;  %v804_v38 = vadd.f32 %v1611_v17, %v803_v36  ;;  %v932_v39 = vadd.f32 %v1611_v17, %v931_v37 }
 0x156   : > { %v805_v40 = vpop.f32.mrf.mxu0  ;;  %v933_v41 = vpop.f32.mrf.mxu1 }
 0x157   : > { %v1004_v42 = vmax.f32 %v804_v38, 0.0  ;;  %v1036_v43 = vmax.f32 %v932_v39, 0.0 }
 0x158   : > { %v806_v44 = vpop.f32.mrf.mxu0  ;;  %v934_v45 = vpop.f32.mrf.mxu1 }
 0x159   : > { %1068 = vst [vmem:[%s1620_s5 + $0x90] sm:$0xff] %v1004_v42  ;;  %1100 = vst [vmem:[%s1620_s5 + $0x190] sm:$0xff] %v1036_v43  ;;  %v807_v46 = vadd.f32 %v1611_v17, %v806_v44  ;;  %v935_v47 = vadd.f32 %v1611_v17, %v934_v45 }
 0x15a   : > { %v808_v48 = vpop.f32.mrf.mxu0  ;;  %v936_v49 = vpop.f32.mrf.mxu1 }
 0x15b   : > { %v1005_v50 = vmax.f32 %v807_v46, 0.0  ;;  %v1037_v51 = vmax.f32 %v935_v47, 0.0 }
 0x15c   : > { %v811_v52 = vpop.f32.mrf.mxu0  ;;  %v939_v53 = vpop.f32.mrf.mxu1 }
 0x15d   : > { %1069 = vst [vmem:[%s1620_s5 + $0x98] sm:$0xff] %v1005_v50  ;;  %1101 = vst [vmem:[%s1620_s5 + $0x198] sm:$0xff] %v1037_v51  ;;  %v812_v54 = vadd.f32 %v1611_v17, %v811_v52  ;;  %v940_v55 = vadd.f32 %v1611_v17, %v939_v53 }
 0x15e   : > { %v813_v56 = vpop.f32.mrf.mxu0  ;;  %v941_v57 = vpop.f32.mrf.mxu1 }
 0x15f   : > { %v1006_v58 = vmax.f32 %v812_v54, 0.0  ;;  %v1038_v59 = vmax.f32 %v940_v55, 0.0 }
 0x160   : > { %v814_v60 = vpop.f32.mrf.mxu0  ;;  %v942_v61 = vpop.f32.mrf.mxu1 }
 0x161   : > { %1070 = vst [vmem:[%s1620_s5 + $0xa0] sm:$0xff] %v1006_v58  ;;  %1102 = vst [vmem:[%s1620_s5 + $0x1a0] sm:$0xff] %v1038_v59  ;;  %v815_v62 = vadd.f32 %v1611_v17, %v814_v60  ;;  %v943_v63 = vadd.f32 %v1611_v17, %v942_v61 }
 0x162   : > { %v816_v0 = vpop.f32.mrf.mxu0  ;;  %v944_v1 = vpop.f32.mrf.mxu1 }
 0x163   : > { %v1007_v2 = vmax.f32 %v815_v62, 0.0  ;;  %v1039_v3 = vmax.f32 %v943_v63, 0.0 }
 0x164   : > { %v819_v4 = vpop.f32.mrf.mxu0  ;;  %v947_v5 = vpop.f32.mrf.mxu1 }
 0x165   : > { %1071 = vst [vmem:[%s1620_s5 + $0xa8] sm:$0xff] %v1007_v2  ;;  %1103 = vst [vmem:[%s1620_s5 + $0x1a8] sm:$0xff] %v1039_v3  ;;  %v820_v6 = vadd.f32 %v1611_v17, %v819_v4  ;;  %v948_v7 = vadd.f32 %v1611_v17, %v947_v5 }
 0x166   : > { %v821_v8 = vpop.f32.mrf.mxu0  ;;  %v949_v9 = vpop.f32.mrf.mxu1 }
 0x167   : > { %v1008_v10 = vmax.f32 %v820_v6, 0.0  ;;  %v1040_v11 = vmax.f32 %v948_v7, 0.0 }
 0x168   : > { %v822_v12 = vpop.f32.mrf.mxu0  ;;  %v950_v13 = vpop.f32.mrf.mxu1 }
 0x169   : > { %1072 = vst [vmem:[%s1620_s5 + $0xb0] sm:$0xff] %v1008_v10  ;;  %1104 = vst [vmem:[%s1620_s5 + $0x1b0] sm:$0xff] %v1040_v11  ;;  %v823_v14 = vadd.f32 %v1611_v17, %v822_v12  ;;  %v951_v15 = vadd.f32 %v1611_v17, %v950_v13 }
 0x16a   : > { %v824_v16 = vpop.f32.mrf.mxu0  ;;  %v952_v18 = vpop.f32.mrf.mxu1 }
 0x16b   : > { %v1009_v19 = vmax.f32 %v823_v14, 0.0  ;;  %v1041_v20 = vmax.f32 %v951_v15, 0.0 }
 0x16c   : > { %v827_v21 = vpop.f32.mrf.mxu0  ;;  %v955_v22 = vpop.f32.mrf.mxu1 }
 0x16d   : > { %1073 = vst [vmem:[%s1620_s5 + $0xb8] sm:$0xff] %v1009_v19  ;;  %1105 = vst [vmem:[%s1620_s5 + $0x1b8] sm:$0xff] %v1041_v20  ;;  %v828_v23 = vadd.f32 %v1611_v17, %v827_v21  ;;  %v956_v24 = vadd.f32 %v1611_v17, %v955_v22 }
 0x16e   : > { %v829_v25 = vpop.f32.mrf.mxu0  ;;  %v957_v26 = vpop.f32.mrf.mxu1 }
 0x16f   : > { %v1010_v27 = vmax.f32 %v828_v23, 0.0  ;;  %v1042_v28 = vmax.f32 %v956_v24, 0.0 }
 0x170   : > { %v830_v29 = vpop.f32.mrf.mxu0  ;;  %v958_v30 = vpop.f32.mrf.mxu1 }
 0x171   : > { %1074 = vst [vmem:[%s1620_s5 + $0xc0] sm:$0xff] %v1010_v27  ;;  %1106 = vst [vmem:[%s1620_s5 + $0x1c0] sm:$0xff] %v1042_v28  ;;  %v831_v31 = vadd.f32 %v1611_v17, %v830_v29  ;;  %v959_v32 = vadd.f32 %v1611_v17, %v958_v30 }
 0x172   : > { %v832_v33 = vpop.f32.mrf.mxu0  ;;  %v960_v34 = vpop.f32.mrf.mxu1 }
 0x173   : > { %v1011_v35 = vmax.f32 %v831_v31, 0.0  ;;  %v1043_v36 = vmax.f32 %v959_v32, 0.0 }
 0x174   : > { %v835_v37 = vpop.f32.mrf.mxu0  ;;  %v963_v38 = vpop.f32.mrf.mxu1 }
 0x175   : > { %1075 = vst [vmem:[%s1620_s5 + $0xc8] sm:$0xff] %v1011_v35  ;;  %1107 = vst [vmem:[%s1620_s5 + $0x1c8] sm:$0xff] %v1043_v36  ;;  %v836_v39 = vadd.f32 %v1611_v17, %v835_v37  ;;  %v964_v40 = vadd.f32 %v1611_v17, %v963_v38 }
 0x176   : > { %v837_v41 = vpop.f32.mrf.mxu0  ;;  %v965_v42 = vpop.f32.mrf.mxu1 }
 0x177   : > { %v1012_v43 = vmax.f32 %v836_v39, 0.0  ;;  %v1044_v44 = vmax.f32 %v964_v40, 0.0 }
 0x178   : > { %v838_v45 = vpop.f32.mrf.mxu0  ;;  %v966_v46 = vpop.f32.mrf.mxu1 }
 0x179   : > { %1076 = vst [vmem:[%s1620_s5 + $0xd0] sm:$0xff] %v1012_v43  ;;  %1108 = vst [vmem:[%s1620_s5 + $0x1d0] sm:$0xff] %v1044_v44  ;;  %v839_v47 = vadd.f32 %v1611_v17, %v838_v45  ;;  %v967_v48 = vadd.f32 %v1611_v17, %v966_v46 }
 0x17a   : > { %v840_v49 = vpop.f32.mrf.mxu0  ;;  %v968_v50 = vpop.f32.mrf.mxu1 }
 0x17b   : > { %v1013_v51 = vmax.f32 %v839_v47, 0.0  ;;  %v1045_v52 = vmax.f32 %v967_v48, 0.0 }
 0x17c   : > { %v843_v53 = vpop.f32.mrf.mxu0  ;;  %v971_v54 = vpop.f32.mrf.mxu1 }
 0x17d   : > { %1077 = vst [vmem:[%s1620_s5 + $0xd8] sm:$0xff] %v1013_v51  ;;  %1109 = vst [vmem:[%s1620_s5 + $0x1d8] sm:$0xff] %v1045_v52  ;;  %v844_v55 = vadd.f32 %v1611_v17, %v843_v53  ;;  %v972_v56 = vadd.f32 %v1611_v17, %v971_v54 }
 0x17e   : > { %v845_v57 = vpop.f32.mrf.mxu0  ;;  %v973_v58 = vpop.f32.mrf.mxu1 }
 0x17f   : > { %v1014_v59 = vmax.f32 %v844_v55, 0.0  ;;  %v1046_v60 = vmax.f32 %v972_v56, 0.0 }
 0x180   : > { %v846_v61 = vpop.f32.mrf.mxu0  ;;  %v974_v62 = vpop.f32.mrf.mxu1 }
 0x181   : > { %1078 = vst [vmem:[%s1620_s5 + $0xe0] sm:$0xff] %v1014_v59  ;;  %1110 = vst [vmem:[%s1620_s5 + $0x1e0] sm:$0xff] %v1046_v60  ;;  %v847_v63 = vadd.f32 %v1611_v17, %v846_v61  ;;  %v975_v0 = vadd.f32 %v1611_v17, %v974_v62 }
 0x182   : > { %v848_v1 = vpop.f32.mrf.mxu0  ;;  %v976_v2 = vpop.f32.mrf.mxu1 }
 0x183   : > { %v1015_v3 = vmax.f32 %v847_v63, 0.0  ;;  %v1047_v4 = vmax.f32 %v975_v0, 0.0 }
 0x184   : > { %v851_v5 = vpop.f32.mrf.mxu0  ;;  %v979_v6 = vpop.f32.mrf.mxu1 }
 0x185   : > { %1079 = vst [vmem:[%s1620_s5 + $0xe8] sm:$0xff] %v1015_v3  ;;  %1111 = vst [vmem:[%s1620_s5 + $0x1e8] sm:$0xff] %v1047_v4  ;;  %v852_v7 = vadd.f32 %v1611_v17, %v851_v5  ;;  %v980_v8 = vadd.f32 %v1611_v17, %v979_v6 }
 0x186   : > { %v853_v9 = vpop.f32.mrf.mxu0  ;;  %v981_v10 = vpop.f32.mrf.mxu1 }
 0x187   : > { %v1016_v11 = vmax.f32 %v852_v7, 0.0  ;;  %v1048_v12 = vmax.f32 %v980_v8, 0.0 }
 0x188   : > { %v854_v13 = vpop.f32.mrf.mxu0  ;;  %v982_v14 = vpop.f32.mrf.mxu1 }
 0x189   : > { %1080 = vst [vmem:[%s1620_s5 + $0xf0] sm:$0xff] %v1016_v11  ;;  %1112 = vst [vmem:[%s1620_s5 + $0x1f0] sm:$0xff] %v1048_v12  ;;  %v855_v15 = vadd.f32 %v1611_v17, %v854_v13  ;;  %v983_v16 = vadd.f32 %v1611_v17, %v982_v14 }
 0x18a   : > { %v856_v18 = vpop.f32.mrf.mxu0  ;;  %v984_v19 = vpop.f32.mrf.mxu1 }
 0x18b   : > { %v1017_v20 = vmax.f32 %v855_v15, 0.0  ;;  %v1049_v21 = vmax.f32 %v983_v16, 0.0 }
 0x18d   : > { %1081 = vst [vmem:[%s1620_s5 + $0xf8] sm:$0xff] %v1017_v20  ;;  %1113 = vst [vmem:[%s1620_s5 + $0x1f8] sm:$0xff] %v1049_v21 }
 0x18e PF: > { %s13_s12 = sadd.s32 1, %s1423_s12  }
 0x18f   : > { %p10_p4 = scmp.ge.s32.totalorder %s13_s12, 11  }
 0x191   :  { %12 = sbr.rel (!%p10_p4) target bundleno = 1 (0x1), region = 62 }

// kernel: imagenet_convnet_bp_forward.7
= control target key start
LH: loop header
LB: loop body
LE: loop exit
PB: predicated region body
PF: predicated region fallthrough
CT: control target
= control target key end

     0   :  { %s1765_s12 = smov 0   ;;  %s2021_s0 = inlined_call_operand.vmem [shape: bf16[1280,512], index: 0, kind: input, shape index: {}]   ;;  %s2022_s1 = inlined_call_operand.vmem [shape: bf16[512,128], index: 1, kind: input, shape index: {}]   ;;  %s2023_s2 = inlined_call_operand.vmem [shape: f32[1,128], index: 2, kind: input, shape index: {}]   ;;  %s2024_s3 = inlined_call_operand.vmem [shape: f32[1280,128], index: 3, kind: output, shape index: {}]  }
   0x1 LB: > { %s1267_s13 = sadd.s32 4294967295, %s1743_s12   ;;  %p1271_p0 = scmp.ge.s32.totalorder %s1743_s12, 1  ;;  %s1743_s12 = sphi %s1765_s12, %s13_s12  }
   0x2   : > { %p139_p1 = scmp.lt.s32.totalorder %s1743_s12, 6 }
   0x4   : > { %p140_p2 = pnand %p1271_p0, %p139_p1 }
   0x5   : > { %s1272_s21 = sshll.u32 (!%p140_p2), %s1267_s13, 5 }
   0x6   : > { %143 = sbr.rel (%p140_p2) target bundleno = 373 (0x175), region = 32  ;;  %p165_p3 = scmp.lt.s32.totalorder (!%p140_p2), %s1272_s21, 159 }
   0xb   : > { %v1609_v0 = vld [vmem:[%s2022_s1 + $0x78] sm:$0xff]   ;;  %v1613_v4 = vld [vmem:[%s2022_s1 + $0x70] sm:$0xff]   ;;  %v1617_v8 = vld [vmem:[%s2022_s1 + $0x68] sm:$0xff]   ;;  %s2026_s21 = smov (!%p165_p3, %s1272_s21), 159 }
   0xc   : > { %v1610_v1 = vld [vmem:[%s2022_s1 + $0xf8] sm:$0xff]   ;;  %1377 = vmatprep.subr.bf16.mxu0 %v1609_v0  ;;  %v1614_v5 = vld [vmem:[%s2022_s1 + $0xf0] sm:$0xff]   ;;  %v1618_v9 = vld [vmem:[%s2022_s1 + $0xe8] sm:$0xff]   ;;  %s1376_s18 = sshll.u32 %s2026_s21, 4  ;;  %s1276_s7 = sshll.u32 %s2026_s21, 3 }
   0xd   : > { %v1611_v2 = vld [vmem:[%s2022_s1 + $0x38] sm:$0xff]   ;;  %1489 = vmatprep.subr.bf16.mxu1 %v1610_v1  ;;  %v1615_v6 = vld [vmem:[%s2022_s1 + $0x30] sm:$0xff]   ;;  %v1619_v10 = vld [vmem:[%s2022_s1 + $0x28] sm:$0xff]   ;;  %s1871_s28 = scalar_lea.vmem %s2021_s0, %s1376_s18  ;;  %s1953_s10 = scalar_lea.vmem %s2024_s3, %s1276_s7 }
   0xe   : > { %v1612_v3 = vld [vmem:[%s2022_s1 + $0xb8] sm:$0xff]   ;;  %1378 = vmatpush3.bf16.msra.mxu0 %v1611_v2  ;;  %v1616_v7 = vld [vmem:[%s2022_s1 + $0xb0] sm:$0xff]   ;;  %v1620_v11 = vld [vmem:[%s2022_s1 + $0xa8] sm:$0xff]  }
   0xf   : > { %1490 = vmatpush3.bf16.msra.mxu1 %v1612_v3  ;;  %1379 = vmatprep.subr.bf16.mxu0 %v1613_v4  ;;  %v1621_v12 = vld [vmem:[%s2022_s1 + $0x60] sm:$0xff]   ;;  %v1625_v16 = vld [vmem:[%s2022_s1 + $0x58] sm:$0xff]   ;;  %v1629_v20 = vld [vmem:[%s2022_s1 + $0x50] sm:$0xff]  }
  0x10   : > { %1491 = vmatprep.subr.bf16.mxu1 %v1614_v5  ;;  %v1622_v13 = vld [vmem:[%s2022_s1 + $0xe0] sm:$0xff]   ;;  %v1626_v17 = vld [vmem:[%s2022_s1 + $0xd8] sm:$0xff]   ;;  %v1630_v21 = vld [vmem:[%s2022_s1 + $0xd0] sm:$0xff]  }
  0x11   : > { %v1623_v14 = vld [vmem:[%s2022_s1 + $0x20] sm:$0xff]   ;;  %v1627_v18 = vld [vmem:[%s2022_s1 + $0x18] sm:$0xff]   ;;  %v1631_v22 = vld [vmem:[%s2022_s1 + $0x10] sm:$0xff]  }
  0x12   : > { %1380 = vmatpush3.bf16.msra.mxu0 %v1615_v6  ;;  %v1624_v15 = vld [vmem:[%s2022_s1 + $0xa0] sm:$0xff]   ;;  %v1628_v19 = vld [vmem:[%s2022_s1 + $0x98] sm:$0xff]   ;;  %v1632_v23 = vld [vmem:[%s2022_s1 + $0x90] sm:$0xff]  }
  0x13   : > { %1492 = vmatpush3.bf16.msra.mxu1 %v1616_v7  ;;  %1381 = vmatprep.subr.bf16.mxu0 %v1617_v8  ;;  %v1633_v24 = vld [vmem:[%s2022_s1 + $0x48] sm:$0xff]   ;;  %v1637_v28 = vld [vmem:[%s2022_s1 + $0x40] sm:$0xff]  }
  0x14   : > { %1493 = vmatprep.subr.bf16.mxu1 %v1618_v9  ;;  %v1634_v25 = vld [vmem:[%s2022_s1 + $0xc8] sm:$0xff]   ;;  %v1638_v29 = vld [vmem:[%s2022_s1 + $0xc0] sm:$0xff]  }
  0x15   : > { %v1635_v26 = vld [vmem:[%s2022_s1 + $0x8] sm:$0xff]   ;;  %v1639_v30 = vld [vmem:[%s2022_s1] sm:$0xff]  }
  0x16   : > { %1382 = vmatpush3.bf16.msra.mxu0 %v1619_v10  ;;  %v1636_v27 = vld [vmem:[%s2022_s1 + $0x88] sm:$0xff]   ;;  %v1640_v31 = vld [vmem:[%s2022_s1 + $0x80] sm:$0xff]  }
  0x17   : > { %1494 = vmatpush3.bf16.msra.mxu1 %v1620_v11  ;;  %1383 = vmatprep.subr.bf16.mxu0 %v1621_v12  ;;  %v1641_v32 = vld [vmem:[%s1871_s28] ss:$16 sps:$4 sm:$0xff]   ;;  %v1643_v33 = vld [vmem:[%s1871_s28 + $0x4] ss:$16 sps:$4 sm:$0xff]   ;;  %v1644_v34 = vld [vmem:[%s1871_s28 + $0x8] ss:$16 sps:$4 sm:$0xff]  }
  0x18   : > { %1495 = vmatprep.subr.bf16.mxu1 %v1622_v13  ;;  %v1646_v35 = vld [vmem:[%s1871_s28 + $0xc] ss:$16 sps:$4 sm:$0xff]   ;;  %857 = vmatprep.mubr.bf16.mxu0 %v1643_v33  ;;  %v1647_v36 = vld [vmem:[%s1871_s28 + $0x24] ss:$16 sps:$4 sm:$0xff]   ;;  %v1651_v38 = vld [vmem:[%s1871_s28 + $0x20] ss:$16 sps:$4 sm:$0xff]  }
  0x19   : > { %1018 = vmatprep.mubr.bf16.mxu1 %v1646_v35  ;;  %v1649_v37 = vld [vmem:[%s1871_s28 + $0x2c] ss:$16 sps:$4 sm:$0xff]   ;;  %v1652_v39 = vld [vmem:[%s1871_s28 + $0x28] ss:$16 sps:$4 sm:$0xff]   ;;  %v1653_v40 = vld [vmem:[%s1871_s28 + $0x44] ss:$16 sps:$4 sm:$0xff]  }
  0x1a   : > { %1384 = vmatpush3.bf16.msra.mxu0 %v1623_v14  ;;  %v1655_v41 = vld [vmem:[%s1871_s28 + $0x4c] ss:$16 sps:$4 sm:$0xff]   ;;  %v1657_v42 = vld [vmem:[%s1871_s28 + $0x40] ss:$16 sps:$4 sm:$0xff]   ;;  %v1658_v43 = vld [vmem:[%s1871_s28 + $0x48] ss:$16 sps:$4 sm:$0xff]  }
  0x1b   : > { %1496 = vmatpush3.bf16.msra.mxu1 %v1624_v15  ;;  %1385 = vmatprep.subr.bf16.mxu0 %v1625_v16  ;;  %v1659_v44 = vld [vmem:[%s1871_s28 + $0x64] ss:$16 sps:$4 sm:$0xff]   ;;  %v1661_v45 = vld [vmem:[%s1871_s28 + $0x6c] ss:$16 sps:$4 sm:$0xff]   ;;  %v1663_v46 = vld [vmem:[%s1871_s28 + $0x60] ss:$16 sps:$4 sm:$0xff]  }
  0x1c   : > { %1497 = vmatprep.subr.bf16.mxu1 %v1626_v17  ;;  %v1664_v47 = vld [vmem:[%s1871_s28 + $0x68] ss:$16 sps:$4 sm:$0xff]   ;;  %v1665_v48 = vld [vmem:[%s1871_s28 + $0x84] ss:$16 sps:$4 sm:$0xff]   ;;  %v1667_v49 = vld [vmem:[%s1871_s28 + $0x8c] ss:$16 sps:$4 sm:$0xff]  }
  0x1d   : > { %v1669_v50 = vld [vmem:[%s1871_s28 + $0x80] ss:$16 sps:$4 sm:$0xff]   ;;  %v1670_v51 = vld [vmem:[%s1871_s28 + $0x88] ss:$16 sps:$4 sm:$0xff]   ;;  %v1671_v52 = vld [vmem:[%s1871_s28 + $0xa4] ss:$16 sps:$4 sm:$0xff]  }
  0x1e   : > { %1386 = vmatpush3.bf16.msra.mxu0 %v1627_v18  ;;  %v1673_v53 = vld [vmem:[%s1871_s28 + $0xac] ss:$16 sps:$4 sm:$0xff]   ;;  %v1675_v54 = vld [vmem:[%s1871_s28 + $0xa0] ss:$16 sps:$4 sm:$0xff]   ;;  %v1676_v55 = vld [vmem:[%s1871_s28 + $0xa8] ss:$16 sps:$4 sm:$0xff]  }
  0x1f   : > { %1498 = vmatpush3.bf16.msra.mxu1 %v1628_v19  ;;  %1387 = vmatprep.subr.bf16.mxu0 %v1629_v20  ;;  %v1677_v56 = vld [vmem:[%s1871_s28 + $0xc4] ss:$16 sps:$4 sm:$0xff]   ;;  %v1679_v57 = vld [vmem:[%s1871_s28 + $0xcc] ss:$16 sps:$4 sm:$0xff]   ;;  %v1681_v58 = vld [vmem:[%s1871_s28 + $0xc0] ss:$16 sps:$4 sm:$0xff]  }
  0x20   : > { %1499 = vmatprep.subr.bf16.mxu1 %v1630_v21  ;;  %v1682_v59 = vld [vmem:[%s1871_s28 + $0xc8] ss:$16 sps:$4 sm:$0xff]   ;;  %v1683_v60 = vld [vmem:[%s1871_s28 + $0xe4] ss:$16 sps:$4 sm:$0xff]   ;;  %v1685_v61 = vld [vmem:[%s1871_s28 + $0xec] ss:$16 sps:$4 sm:$0xff]  }
  0x21   : > { %v1687_v62 = vld [vmem:[%s1871_s28 + $0xe0] ss:$16 sps:$4 sm:$0xff]   ;;  %v1688_v63 = vld [vmem:[%s1871_s28 + $0xe8] ss:$16 sps:$4 sm:$0xff]   ;;  %v1689_v0 = vld [vmem:[%s1871_s28 + $0x104] ss:$16 sps:$4 sm:$0xff]  }
  0x22   : > { %1388 = vmatpush3.bf16.msra.mxu0 %v1631_v22  ;;  %v1691_v1 = vld [vmem:[%s1871_s28 + $0x10c] ss:$16 sps:$4 sm:$0xff]   ;;  %v1693_v2 = vld [vmem:[%s1871_s28 + $0x100] ss:$16 sps:$4 sm:$0xff]   ;;  %v1694_v3 = vld [vmem:[%s1871_s28 + $0x108] ss:$16 sps:$4 sm:$0xff]  }
  0x23   : > { %1500 = vmatpush3.bf16.msra.mxu1 %v1632_v23  ;;  %1389 = vmatprep.subr.bf16.mxu0 %v1633_v24  ;;  %v1695_v4 = vld [vmem:[%s1871_s28 + $0x124] ss:$16 sps:$4 sm:$0xff]   ;;  %v1697_v5 = vld [vmem:[%s1871_s28 + $0x12c] ss:$16 sps:$4 sm:$0xff]   ;;  %v1699_v6 = vld [vmem:[%s1871_s28 + $0x120] ss:$16 sps:$4 sm:$0xff]  }
  0x24   : > { %1501 = vmatprep.subr.bf16.mxu1 %v1634_v25  ;;  %v1700_v7 = vld [vmem:[%s1871_s28 + $0x128] ss:$16 sps:$4 sm:$0xff]   ;;  %v1701_v8 = vld [vmem:[%s1871_s28 + $0x144] ss:$16 sps:$4 sm:$0xff]   ;;  %v1703_v9 = vld [vmem:[%s1871_s28 + $0x14c] ss:$16 sps:$4 sm:$0xff]  }
  0x25   : > { %v1705_v10 = vld [vmem:[%s1871_s28 + $0x140] ss:$16 sps:$4 sm:$0xff]   ;;  %v1706_v11 = vld [vmem:[%s1871_s28 + $0x148] ss:$16 sps:$4 sm:$0xff]   ;;  %v1707_v12 = vld [vmem:[%s1871_s28 + $0x164] ss:$16 sps:$4 sm:$0xff]  }
  0x26   : > { %1390 = vmatpush3.bf16.msra.mxu0 %v1635_v26  ;;  %v1709_v13 = vld [vmem:[%s1871_s28 + $0x16c] ss:$16 sps:$4 sm:$0xff]   ;;  %v1711_v14 = vld [vmem:[%s1871_s28 + $0x160] ss:$16 sps:$4 sm:$0xff]   ;;  %v1712_v15 = vld [vmem:[%s1871_s28 + $0x168] ss:$16 sps:$4 sm:$0xff]  }
  0x27   : > { %1502 = vmatpush3.bf16.msra.mxu1 %v1636_v27  ;;  %1391 = vmatprep.subr.bf16.mxu0 %v1637_v28  ;;  %v1713_v16 = vld [vmem:[%s1871_s28 + $0x184] ss:$16 sps:$4 sm:$0xff]   ;;  %v1715_v17 = vld [vmem:[%s1871_s28 + $0x18c] ss:$16 sps:$4 sm:$0xff]   ;;  %v1717_v18 = vld [vmem:[%s1871_s28 + $0x180] ss:$16 sps:$4 sm:$0xff]  }
  0x28   : > { %1503 = vmatprep.subr.bf16.mxu1 %v1638_v29  ;;  %v1718_v19 = vld [vmem:[%s1871_s28 + $0x188] ss:$16 sps:$4 sm:$0xff]   ;;  %v1719_v20 = vld [vmem:[%s1871_s28 + $0x1a4] ss:$16 sps:$4 sm:$0xff]   ;;  %v1721_v21 = vld [vmem:[%s1871_s28 + $0x1ac] ss:$16 sps:$4 sm:$0xff]  }
  0x29   : > { %v1723_v22 = vld [vmem:[%s1871_s28 + $0x1a0] ss:$16 sps:$4 sm:$0xff]   ;;  %v1724_v23 = vld [vmem:[%s1871_s28 + $0x1a8] ss:$16 sps:$4 sm:$0xff]   ;;  %v1725_v24 = vld [vmem:[%s1871_s28 + $0x1c4] ss:$16 sps:$4 sm:$0xff]  }
  0x2a   : > { %1392 = vmatpush3.bf16.msra.mxu0 %v1639_v30  ;;  %v1727_v25 = vld [vmem:[%s1871_s28 + $0x1cc] ss:$16 sps:$4 sm:$0xff]   ;;  %v1729_v26 = vld [vmem:[%s1871_s28 + $0x1c0] ss:$16 sps:$4 sm:$0xff]   ;;  %v1730_v27 = vld [vmem:[%s1871_s28 + $0x1c8] ss:$16 sps:$4 sm:$0xff]  }
  0x2b   : > { %1504 = vmatpush3.bf16.msra.mxu1 %v1640_v31  ;;  %v1731_v28 = vld [vmem:[%s1871_s28 + $0x1e4] ss:$16 sps:$4 sm:$0xff]   ;;  %v1733_v29 = vld [vmem:[%s1871_s28 + $0x1ec] ss:$16 sps:$4 sm:$0xff]   ;;  %v1735_v30 = vld [vmem:[%s1871_s28 + $0x1e0] ss:$16 sps:$4 sm:$0xff]  }
  0x2c   : > { %v1736_v31 = vld [vmem:[%s1871_s28 + $0x1e8] ss:$16 sps:$4 sm:$0xff]  }
  0x2d   : > { %858 = vmatmul.mubr.bf16.vlgmr.msra.gmra.mxu0 %v1641_v32 }
  0x2e   : > { %1019 = vmatmul.mubr.bf16.vlgmr.msra.gmra.mxu1 %v1644_v34  ;;  %865 = vmatprep.mubr.bf16.mxu0 %v1647_v36  ;;  %v1946_v34 = vld [vmem:[%s2023_s2] ss:$0 sm:$0xff] }
  0x2f   : > { %1026 = vmatprep.mubr.bf16.mxu1 %v1649_v37 }
  0x35   : > { %866 = vmatmul.mubr.bf16.gmra.mxu0 %v1651_v38 }
  0x36   : > { %1027 = vmatmul.mubr.bf16.gmra.mxu1 %v1652_v39  ;;  %873 = vmatprep.mubr.bf16.mxu0 %v1653_v40 }
  0x37   : > { %1034 = vmatprep.mubr.bf16.mxu1 %v1655_v41 }
  0x3d   : > { %874 = vmatmul.mubr.bf16.gmra.mxu0 %v1657_v42 }
  0x3e   : > { %1035 = vmatmul.mubr.bf16.gmra.mxu1 %v1658_v43  ;;  %881 = vmatprep.mubr.bf16.mxu0 %v1659_v44 }
  0x3f   : > { %1042 = vmatprep.mubr.bf16.mxu1 %v1661_v45 }
  0x45   : > { %882 = vmatmul.mubr.bf16.gmra.mxu0 %v1663_v46 }
  0x46   : > { %1043 = vmatmul.mubr.bf16.gmra.mxu1 %v1664_v47  ;;  %889 = vmatprep.mubr.bf16.mxu0 %v1665_v48 }
  0x47   : > { %1050 = vmatprep.mubr.bf16.mxu1 %v1667_v49 }
  0x4d   : > { %890 = vmatmul.mubr.bf16.gmra.mxu0 %v1669_v50 }
  0x4e   : > { %1051 = vmatmul.mubr.bf16.gmra.mxu1 %v1670_v51  ;;  %897 = vmatprep.mubr.bf16.mxu0 %v1671_v52 }
  0x4f   : > { %1058 = vmatprep.mubr.bf16.mxu1 %v1673_v53 }
  0x55   : > { %898 = vmatmul.mubr.bf16.gmra.mxu0 %v1675_v54 }
  0x56   : > { %1059 = vmatmul.mubr.bf16.gmra.mxu1 %v1676_v55  ;;  %905 = vmatprep.mubr.bf16.mxu0 %v1677_v56 }
  0x57   : > { %1066 = vmatprep.mubr.bf16.mxu1 %v1679_v57 }
  0x5d   : > { %906 = vmatmul.mubr.bf16.gmra.mxu0 %v1681_v58 }
  0x5e   : > { %1067 = vmatmul.mubr.bf16.gmra.mxu1 %v1682_v59  ;;  %913 = vmatprep.mubr.bf16.mxu0 %v1683_v60 }
  0x5f   : > { %1074 = vmatprep.mubr.bf16.mxu1 %v1685_v61 }
  0x65   : > { %914 = vmatmul.mubr.bf16.gmra.mxu0 %v1687_v62 }
  0x66   : > { %1075 = vmatmul.mubr.bf16.gmra.mxu1 %v1688_v63  ;;  %921 = vmatprep.mubr.bf16.mxu0 %v1689_v0 }
  0x67   : > { %1082 = vmatprep.mubr.bf16.mxu1 %v1691_v1 }
  0x6d   : > { %922 = vmatmul.mubr.bf16.gmra.mxu0 %v1693_v2 }
  0x6e   : > { %1083 = vmatmul.mubr.bf16.gmra.mxu1 %v1694_v3  ;;  %929 = vmatprep.mubr.bf16.mxu0 %v1695_v4 }
  0x6f   : > { %1090 = vmatprep.mubr.bf16.mxu1 %v1697_v5 }
  0x75   : > { %930 = vmatmul.mubr.bf16.gmra.mxu0 %v1699_v6 }
  0x76   : > { %1091 = vmatmul.mubr.bf16.gmra.mxu1 %v1700_v7  ;;  %937 = vmatprep.mubr.bf16.mxu0 %v1701_v8 }
  0x77   : > { %1098 = vmatprep.mubr.bf16.mxu1 %v1703_v9 }
  0x7d   : > { %938 = vmatmul.mubr.bf16.gmra.mxu0 %v1705_v10 }
  0x7e   : > { %1099 = vmatmul.mubr.bf16.gmra.mxu1 %v1706_v11  ;;  %945 = vmatprep.mubr.bf16.mxu0 %v1707_v12 }
  0x7f   : > { %1106 = vmatprep.mubr.bf16.mxu1 %v1709_v13 }
  0x85   : > { %946 = vmatmul.mubr.bf16.gmra.mxu0 %v1711_v14 }
  0x86   : > { %1107 = vmatmul.mubr.bf16.gmra.mxu1 %v1712_v15  ;;  %953 = vmatprep.mubr.bf16.mxu0 %v1713_v16 }
  0x87   : > { %1114 = vmatprep.mubr.bf16.mxu1 %v1715_v17 }
  0x8d   : > { %954 = vmatmul.mubr.bf16.gmra.mxu0 %v1717_v18 }
  0x8e   : > { %1115 = vmatmul.mubr.bf16.gmra.mxu1 %v1718_v19  ;;  %961 = vmatprep.mubr.bf16.mxu0 %v1719_v20 }
  0x8f   : > { %1122 = vmatprep.mubr.bf16.mxu1 %v1721_v21 }
  0x95   : > { %962 = vmatmul.mubr.bf16.gmra.mxu0 %v1723_v22 }
  0x96   : > { %1123 = vmatmul.mubr.bf16.gmra.mxu1 %v1724_v23  ;;  %969 = vmatprep.mubr.bf16.mxu0 %v1725_v24 }
  0x97   : > { %1130 = vmatprep.mubr.bf16.mxu1 %v1727_v25 }
  0x9d   : > { %970 = vmatmul.mubr.bf16.gmra.mxu0 %v1729_v26 }
  0x9e   : > { %1131 = vmatmul.mubr.bf16.gmra.mxu1 %v1730_v27  ;;  %977 = vmatprep.mubr.bf16.mxu0 %v1731_v28 }
  0x9f   : > { %1138 = vmatprep.mubr.bf16.mxu1 %v1733_v29 }
  0xa5   : > { %978 = vmatmul.mubr.bf16.gmra.mxu0 %v1735_v30 }
  0xa6   : > { %1139 = vmatmul.mubr.bf16.gmra.mxu1 %v1736_v31 }
  0xed   : > { %v1393_v32 = vpop.f32.mrf.mxu0 }
  0xee   : > { %v1505_v33 = vpop.f32.mrf.mxu1 }
  0xef   : > { %v1394_v35 = vpop.f32.mrf.mxu0 }
  0xf0   : > { %v1395_v36 = vadd.f32 %v1394_v35, %v1393_v32  ;;  %v1506_v37 = vpop.f32.mrf.mxu1 }
  0xf1   : > { %v1396_v38 = vpop.f32.mrf.mxu0  ;;  %v1507_v40 = vadd.f32 %v1506_v37, %v1505_v33 }
  0xf2   : > { %v860_v39 = vadd.f32 %v1395_v36, %v1946_v34  ;;  %v1508_v41 = vpop.f32.mrf.mxu1 }
  0xf3   : > { %v1397_v42 = vpop.f32.mrf.mxu0 }
  0xf4   : > { %v1021_v43 = vadd.f32 %v1507_v40, %v860_v39  ;;  %v1398_v44 = vadd.f32 %v1397_v42, %v1396_v38  ;;  %v1509_v45 = vpop.f32.mrf.mxu1 }
  0xf5   : > { %v1399_v46 = vpop.f32.mrf.mxu0  ;;  %v1510_v49 = vadd.f32 %v1509_v45, %v1508_v41 }
  0xf6   : > { %v1147_v47 = vmax.f32 %v1021_v43, 0.0  ;;  %v863_v48 = vadd.f32 %v1398_v44, %v1946_v34  ;;  %v1511_v50 = vpop.f32.mrf.mxu1 }
  0xf7   : > { %v1400_v51 = vpop.f32.mrf.mxu0 }
  0xf8   : > { %1179 = vst [vmem:[%s1953_s10] sm:$0xff] %v1147_v47  ;;  %v1024_v52 = vadd.f32 %v1510_v49, %v863_v48  ;;  %v1401_v53 = vadd.f32 %v1400_v51, %v1399_v46  ;;  %v1512_v54 = vpop.f32.mrf.mxu1 }
  0xf9   : > { %v1402_v55 = vpop.f32.mrf.mxu0  ;;  %v1513_v58 = vadd.f32 %v1512_v54, %v1511_v50 }
  0xfa   : > { %v1148_v56 = vmax.f32 %v1024_v52, 0.0  ;;  %v868_v57 = vadd.f32 %v1401_v53, %v1946_v34  ;;  %v1514_v59 = vpop.f32.mrf.mxu1 }
  0xfb   : > { %v1403_v60 = vpop.f32.mrf.mxu0 }
  0xfc   : > { %1180 = vst [vmem:[%s1953_s10 + $0x8] sm:$0xff] %v1148_v56  ;;  %v1029_v61 = vadd.f32 %v1513_v58, %v868_v57  ;;  %v1404_v62 = vadd.f32 %v1403_v60, %v1402_v55  ;;  %v1515_v63 = vpop.f32.mrf.mxu1 }
  0xfd   : > { %v1405_v0 = vpop.f32.mrf.mxu0  ;;  %v1516_v3 = vadd.f32 %v1515_v63, %v1514_v59 }
  0xfe   : > { %v1149_v1 = vmax.f32 %v1029_v61, 0.0  ;;  %v871_v2 = vadd.f32 %v1404_v62, %v1946_v34  ;;  %v1517_v4 = vpop.f32.mrf.mxu1 }
  0xff   : > { %v1406_v5 = vpop.f32.mrf.mxu0 }
 0x100   : > { %1181 = vst [vmem:[%s1953_s10 + $0x10] sm:$0xff] %v1149_v1  ;;  %v1032_v6 = vadd.f32 %v1516_v3, %v871_v2  ;;  %v1407_v7 = vadd.f32 %v1406_v5, %v1405_v0  ;;  %v1518_v8 = vpop.f32.mrf.mxu1 }
 0x101   : > { %v1408_v9 = vpop.f32.mrf.mxu0  ;;  %v1519_v12 = vadd.f32 %v1518_v8, %v1517_v4 }
 0x102   : > { %v1150_v10 = vmax.f32 %v1032_v6, 0.0  ;;  %v876_v11 = vadd.f32 %v1407_v7, %v1946_v34  ;;  %v1520_v13 = vpop.f32.mrf.mxu1 }
 0x103   : > { %v1409_v14 = vpop.f32.mrf.mxu0 }
 0x104   : > { %1182 = vst [vmem:[%s1953_s10 + $0x18] sm:$0xff] %v1150_v10  ;;  %v1037_v15 = vadd.f32 %v1519_v12, %v876_v11  ;;  %v1410_v16 = vadd.f32 %v1409_v14, %v1408_v9  ;;  %v1521_v17 = vpop.f32.mrf.mxu1 }
 0x105   : > { %v1411_v18 = vpop.f32.mrf.mxu0  ;;  %v1522_v21 = vadd.f32 %v1521_v17, %v1520_v13 }
 0x106   : > { %v1151_v19 = vmax.f32 %v1037_v15, 0.0  ;;  %v879_v20 = vadd.f32 %v1410_v16, %v1946_v34  ;;  %v1523_v22 = vpop.f32.mrf.mxu1 }
 0x107   : > { %v1412_v23 = vpop.f32.mrf.mxu0 }
 0x108   : > { %1183 = vst [vmem:[%s1953_s10 + $0x20] sm:$0xff] %v1151_v19  ;;  %v1040_v24 = vadd.f32 %v1522_v21, %v879_v20  ;;  %v1413_v25 = vadd.f32 %v1412_v23, %v1411_v18  ;;  %v1524_v26 = vpop.f32.mrf.mxu1 }
 0x109   : > { %v1414_v27 = vpop.f32.mrf.mxu0  ;;  %v1525_v30 = vadd.f32 %v1524_v26, %v1523_v22 }
 0x10a   : > { %v1152_v28 = vmax.f32 %v1040_v24, 0.0  ;;  %v884_v29 = vadd.f32 %v1413_v25, %v1946_v34  ;;  %v1526_v31 = vpop.f32.mrf.mxu1 }
 0x10b   : > { %v1415_v32 = vpop.f32.mrf.mxu0 }
 0x10c   : > { %1184 = vst [vmem:[%s1953_s10 + $0x28] sm:$0xff] %v1152_v28  ;;  %v1045_v33 = vadd.f32 %v1525_v30, %v884_v29  ;;  %v1416_v35 = vadd.f32 %v1415_v32, %v1414_v27  ;;  %v1527_v36 = vpop.f32.mrf.mxu1 }
 0x10d   : > { %v1417_v37 = vpop.f32.mrf.mxu0  ;;  %v1528_v40 = vadd.f32 %v1527_v36, %v1526_v31 }
 0x10e   : > { %v1153_v38 = vmax.f32 %v1045_v33, 0.0  ;;  %v887_v39 = vadd.f32 %v1416_v35, %v1946_v34  ;;  %v1529_v41 = vpop.f32.mrf.mxu1 }
 0x10f   : > { %v1418_v42 = vpop.f32.mrf.mxu0 }
 0x110   : > { %1185 = vst [vmem:[%s1953_s10 + $0x30] sm:$0xff] %v1153_v38  ;;  %v1048_v43 = vadd.f32 %v1528_v40, %v887_v39  ;;  %v1419_v44 = vadd.f32 %v1418_v42, %v1417_v37  ;;  %v1530_v45 = vpop.f32.mrf.mxu1 }
 0x111   : > { %v1420_v46 = vpop.f32.mrf.mxu0  ;;  %v1531_v49 = vadd.f32 %v1530_v45, %v1529_v41 }
 0x112   : > { %v1154_v47 = vmax.f32 %v1048_v43, 0.0  ;;  %v892_v48 = vadd.f32 %v1419_v44, %v1946_v34  ;;  %v1532_v50 = vpop.f32.mrf.mxu1 }
 0x113   : > { %v1421_v51 = vpop.f32.mrf.mxu0 }
 0x114   : > { %1186 = vst [vmem:[%s1953_s10 + $0x38] sm:$0xff] %v1154_v47  ;;  %v1053_v52 = vadd.f32 %v1531_v49, %v892_v48  ;;  %v1422_v53 = vadd.f32 %v1421_v51, %v1420_v46  ;;  %v1533_v54 = vpop.f32.mrf.mxu1 }
 0x115   : > { %v1423_v55 = vpop.f32.mrf.mxu0  ;;  %v1534_v58 = vadd.f32 %v1533_v54, %v1532_v50 }
 0x116   : > { %v1155_v56 = vmax.f32 %v1053_v52, 0.0  ;;  %v895_v57 = vadd.f32 %v1422_v53, %v1946_v34  ;;  %v1535_v59 = vpop.f32.mrf.mxu1 }
 0x117   : > { %v1424_v60 = vpop.f32.mrf.mxu0 }
 0x118   : > { %1187 = vst [vmem:[%s1953_s10 + $0x40] sm:$0xff] %v1155_v56  ;;  %v1056_v61 = vadd.f32 %v1534_v58, %v895_v57  ;;  %v1425_v62 = vadd.f32 %v1424_v60, %v1423_v55  ;;  %v1536_v63 = vpop.f32.mrf.mxu1 }
 0x119   : > { %v1426_v0 = vpop.f32.mrf.mxu0  ;;  %v1537_v3 = vadd.f32 %v1536_v63, %v1535_v59 }
 0x11a   : > { %v1156_v1 = vmax.f32 %v1056_v61, 0.0  ;;  %v900_v2 = vadd.f32 %v1425_v62, %v1946_v34  ;;  %v1538_v4 = vpop.f32.mrf.mxu1 }
 0x11b   : > { %v1427_v5 = vpop.f32.mrf.mxu0 }
 0x11c   : > { %1188 = vst [vmem:[%s1953_s10 + $0x48] sm:$0xff] %v1156_v1  ;;  %v1061_v6 = vadd.f32 %v1537_v3, %v900_v2  ;;  %v1428_v7 = vadd.f32 %v1427_v5, %v1426_v0  ;;  %v1539_v8 = vpop.f32.mrf.mxu1 }
 0x11d   : > { %v1429_v9 = vpop.f32.mrf.mxu0  ;;  %v1540_v12 = vadd.f32 %v1539_v8, %v1538_v4 }
 0x11e   : > { %v1157_v10 = vmax.f32 %v1061_v6, 0.0  ;;  %v903_v11 = vadd.f32 %v1428_v7, %v1946_v34  ;;  %v1541_v13 = vpop.f32.mrf.mxu1 }
 0x11f   : > { %v1430_v14 = vpop.f32.mrf.mxu0 }
 0x120   : > { %1189 = vst [vmem:[%s1953_s10 + $0x50] sm:$0xff] %v1157_v10  ;;  %v1064_v15 = vadd.f32 %v1540_v12, %v903_v11  ;;  %v1431_v16 = vadd.f32 %v1430_v14, %v1429_v9  ;;  %v1542_v17 = vpop.f32.mrf.mxu1 }
 0x121   : > { %v1432_v18 = vpop.f32.mrf.mxu0  ;;  %v1543_v21 = vadd.f32 %v1542_v17, %v1541_v13 }
 0x122   : > { %v1158_v19 = vmax.f32 %v1064_v15, 0.0  ;;  %v908_v20 = vadd.f32 %v1431_v16, %v1946_v34  ;;  %v1544_v22 = vpop.f32.mrf.mxu1 }
 0x123   : > { %v1433_v23 = vpop.f32.mrf.mxu0 }
 0x124   : > { %1190 = vst [vmem:[%s1953_s10 + $0x58] sm:$0xff] %v1158_v19  ;;  %v1069_v24 = vadd.f32 %v1543_v21, %v908_v20  ;;  %v1434_v25 = vadd.f32 %v1433_v23, %v1432_v18  ;;  %v1545_v26 = vpop.f32.mrf.mxu1 }
 0x125   : > { %v1435_v27 = vpop.f32.mrf.mxu0  ;;  %v1546_v30 = vadd.f32 %v1545_v26, %v1544_v22 }
 0x126   : > { %v1159_v28 = vmax.f32 %v1069_v24, 0.0  ;;  %v911_v29 = vadd.f32 %v1434_v25, %v1946_v34  ;;  %v1547_v31 = vpop.f32.mrf.mxu1 }
 0x127   : > { %v1436_v32 = vpop.f32.mrf.mxu0 }
 0x128   : > { %1191 = vst [vmem:[%s1953_s10 + $0x60] sm:$0xff] %v1159_v28  ;;  %v1072_v33 = vadd.f32 %v1546_v30, %v911_v29  ;;  %v1437_v35 = vadd.f32 %v1436_v32, %v1435_v27  ;;  %v1548_v36 = vpop.f32.mrf.mxu1 }
 0x129   : > { %v1438_v37 = vpop.f32.mrf.mxu0  ;;  %v1549_v40 = vadd.f32 %v1548_v36, %v1547_v31 }
 0x12a   : > { %v1160_v38 = vmax.f32 %v1072_v33, 0.0  ;;  %v916_v39 = vadd.f32 %v1437_v35, %v1946_v34  ;;  %v1550_v41 = vpop.f32.mrf.mxu1 }
 0x12b   : > { %v1439_v42 = vpop.f32.mrf.mxu0 }
 0x12c   : > { %1192 = vst [vmem:[%s1953_s10 + $0x68] sm:$0xff] %v1160_v38  ;;  %v1077_v43 = vadd.f32 %v1549_v40, %v916_v39  ;;  %v1440_v44 = vadd.f32 %v1439_v42, %v1438_v37  ;;  %v1551_v45 = vpop.f32.mrf.mxu1 }
 0x12d   : > { %v1441_v46 = vpop.f32.mrf.mxu0  ;;  %v1552_v49 = vadd.f32 %v1551_v45, %v1550_v41 }
 0x12e   : > { %v1161_v47 = vmax.f32 %v1077_v43, 0.0  ;;  %v919_v48 = vadd.f32 %v1440_v44, %v1946_v34  ;;  %v1553_v50 = vpop.f32.mrf.mxu1 }
 0x12f   : > { %v1442_v51 = vpop.f32.mrf.mxu0 }
 0x130   : > { %1193 = vst [vmem:[%s1953_s10 + $0x70] sm:$0xff] %v1161_v47  ;;  %v1080_v52 = vadd.f32 %v1552_v49, %v919_v48  ;;  %v1443_v53 = vadd.f32 %v1442_v51, %v1441_v46  ;;  %v1554_v54 = vpop.f32.mrf.mxu1 }
 0x131   : > { %v1444_v55 = vpop.f32.mrf.mxu0  ;;  %v1555_v58 = vadd.f32 %v1554_v54, %v1553_v50 }
 0x132   : > { %v1162_v56 = vmax.f32 %v1080_v52, 0.0  ;;  %v924_v57 = vadd.f32 %v1443_v53, %v1946_v34  ;;  %v1556_v59 = vpop.f32.mrf.mxu1 }
 0x133   : > { %v1445_v60 = vpop.f32.mrf.mxu0 }
 0x134   : > { %1194 = vst [vmem:[%s1953_s10 + $0x78] sm:$0xff] %v1162_v56  ;;  %v1085_v61 = vadd.f32 %v1555_v58, %v924_v57  ;;  %v1446_v62 = vadd.f32 %v1445_v60, %v1444_v55  ;;  %v1557_v63 = vpop.f32.mrf.mxu1 }
 0x135   : > { %v1447_v0 = vpop.f32.mrf.mxu0  ;;  %v1558_v3 = vadd.f32 %v1557_v63, %v1556_v59 }
 0x136   : > { %v1163_v1 = vmax.f32 %v1085_v61, 0.0  ;;  %v927_v2 = vadd.f32 %v1446_v62, %v1946_v34  ;;  %v1559_v4 = vpop.f32.mrf.mxu1 }
 0x137   : > { %v1448_v5 = vpop.f32.mrf.mxu0 }
 0x138   : > { %1195 = vst [vmem:[%s1953_s10 + $0x80] sm:$0xff] %v1163_v1  ;;  %v1088_v6 = vadd.f32 %v1558_v3, %v927_v2  ;;  %v1449_v7 = vadd.f32 %v1448_v5, %v1447_v0  ;;  %v1560_v8 = vpop.f32.mrf.mxu1 }
 0x139   : > { %v1450_v9 = vpop.f32.mrf.mxu0  ;;  %v1561_v12 = vadd.f32 %v1560_v8, %v1559_v4 }
 0x13a   : > { %v1164_v10 = vmax.f32 %v1088_v6, 0.0  ;;  %v932_v11 = vadd.f32 %v1449_v7, %v1946_v34  ;;  %v1562_v13 = vpop.f32.mrf.mxu1 }
 0x13b   : > { %v1451_v14 = vpop.f32.mrf.mxu0 }
 0x13c   : > { %1196 = vst [vmem:[%s1953_s10 + $0x88] sm:$0xff] %v1164_v10  ;;  %v1093_v15 = vadd.f32 %v1561_v12, %v932_v11  ;;  %v1452_v16 = vadd.f32 %v1451_v14, %v1450_v9  ;;  %v1563_v17 = vpop.f32.mrf.mxu1 }
 0x13d   : > { %v1453_v18 = vpop.f32.mrf.mxu0  ;;  %v1564_v21 = vadd.f32 %v1563_v17, %v1562_v13 }
 0x13e   : > { %v1165_v19 = vmax.f32 %v1093_v15, 0.0  ;;  %v935_v20 = vadd.f32 %v1452_v16, %v1946_v34  ;;  %v1565_v22 = vpop.f32.mrf.mxu1 }
 0x13f   : > { %v1454_v23 = vpop.f32.mrf.mxu0 }
 0x140   : > { %1197 = vst [vmem:[%s1953_s10 + $0x90] sm:$0xff] %v1165_v19  ;;  %v1096_v24 = vadd.f32 %v1564_v21, %v935_v20  ;;  %v1455_v25 = vadd.f32 %v1454_v23, %v1453_v18  ;;  %v1566_v26 = vpop.f32.mrf.mxu1 }
 0x141   : > { %v1456_v27 = vpop.f32.mrf.mxu0  ;;  %v1567_v30 = vadd.f32 %v1566_v26, %v1565_v22 }
 0x142   : > { %v1166_v28 = vmax.f32 %v1096_v24, 0.0  ;;  %v940_v29 = vadd.f32 %v1455_v25, %v1946_v34  ;;  %v1568_v31 = vpop.f32.mrf.mxu1 }
 0x143   : > { %v1457_v32 = vpop.f32.mrf.mxu0 }
 0x144   : > { %1198 = vst [vmem:[%s1953_s10 + $0x98] sm:$0xff] %v1166_v28  ;;  %v1101_v33 = vadd.f32 %v1567_v30, %v940_v29  ;;  %v1458_v35 = vadd.f32 %v1457_v32, %v1456_v27  ;;  %v1569_v36 = vpop.f32.mrf.mxu1 }
 0x145   : > { %v1459_v37 = vpop.f32.mrf.mxu0  ;;  %v1570_v40 = vadd.f32 %v1569_v36, %v1568_v31 }
 0x146   : > { %v1167_v38 = vmax.f32 %v1101_v33, 0.0  ;;  %v943_v39 = vadd.f32 %v1458_v35, %v1946_v34  ;;  %v1571_v41 = vpop.f32.mrf.mxu1 }
 0x147   : > { %v1460_v42 = vpop.f32.mrf.mxu0 }
 0x148   : > { %1199 = vst [vmem:[%s1953_s10 + $0xa0] sm:$0xff] %v1167_v38  ;;  %v1104_v43 = vadd.f32 %v1570_v40, %v943_v39  ;;  %v1461_v44 = vadd.f32 %v1460_v42, %v1459_v37  ;;  %v1572_v45 = vpop.f32.mrf.mxu1 }
 0x149   : > { %v1462_v46 = vpop.f32.mrf.mxu0  ;;  %v1573_v49 = vadd.f32 %v1572_v45, %v1571_v41 }
 0x14a   : > { %v1168_v47 = vmax.f32 %v1104_v43, 0.0  ;;  %v948_v48 = vadd.f32 %v1461_v44, %v1946_v34  ;;  %v1574_v50 = vpop.f32.mrf.mxu1 }
 0x14b   : > { %v1463_v51 = vpop.f32.mrf.mxu0 }
 0x14c   : > { %1200 = vst [vmem:[%s1953_s10 + $0xa8] sm:$0xff] %v1168_v47  ;;  %v1109_v52 = vadd.f32 %v1573_v49, %v948_v48  ;;  %v1464_v53 = vadd.f32 %v1463_v51, %v1462_v46  ;;  %v1575_v54 = vpop.f32.mrf.mxu1 }
 0x14d   : > { %v1465_v55 = vpop.f32.mrf.mxu0  ;;  %v1576_v58 = vadd.f32 %v1575_v54, %v1574_v50 }
 0x14e   : > { %v1169_v56 = vmax.f32 %v1109_v52, 0.0  ;;  %v951_v57 = vadd.f32 %v1464_v53, %v1946_v34  ;;  %v1577_v59 = vpop.f32.mrf.mxu1 }
 0x14f   : > { %v1466_v60 = vpop.f32.mrf.mxu0 }
 0x150   : > { %1201 = vst [vmem:[%s1953_s10 + $0xb0] sm:$0xff] %v1169_v56  ;;  %v1112_v61 = vadd.f32 %v1576_v58, %v951_v57  ;;  %v1467_v62 = vadd.f32 %v1466_v60, %v1465_v55  ;;  %v1578_v63 = vpop.f32.mrf.mxu1 }
 0x151   : > { %v1468_v0 = vpop.f32.mrf.mxu0  ;;  %v1579_v3 = vadd.f32 %v1578_v63, %v1577_v59 }
 0x152   : > { %v1170_v1 = vmax.f32 %v1112_v61, 0.0  ;;  %v956_v2 = vadd.f32 %v1467_v62, %v1946_v34  ;;  %v1580_v4 = vpop.f32.mrf.mxu1 }
 0x153   : > { %v1469_v5 = vpop.f32.mrf.mxu0 }
 0x154   : > { %1202 = vst [vmem:[%s1953_s10 + $0xb8] sm:$0xff] %v1170_v1  ;;  %v1117_v6 = vadd.f32 %v1579_v3, %v956_v2  ;;  %v1470_v7 = vadd.f32 %v1469_v5, %v1468_v0  ;;  %v1581_v8 = vpop.f32.mrf.mxu1 }
 0x155   : > { %v1471_v9 = vpop.f32.mrf.mxu0  ;;  %v1582_v12 = vadd.f32 %v1581_v8, %v1580_v4 }
 0x156   : > { %v1171_v10 = vmax.f32 %v1117_v6, 0.0  ;;  %v959_v11 = vadd.f32 %v1470_v7, %v1946_v34  ;;  %v1583_v13 = vpop.f32.mrf.mxu1 }
 0x157   : > { %v1472_v14 = vpop.f32.mrf.mxu0 }
 0x158   : > { %1203 = vst [vmem:[%s1953_s10 + $0xc0] sm:$0xff] %v1171_v10  ;;  %v1120_v15 = vadd.f32 %v1582_v12, %v959_v11  ;;  %v1473_v16 = vadd.f32 %v1472_v14, %v1471_v9  ;;  %v1584_v17 = vpop.f32.mrf.mxu1 }
 0x159   : > { %v1474_v18 = vpop.f32.mrf.mxu0  ;;  %v1585_v21 = vadd.f32 %v1584_v17, %v1583_v13 }
 0x15a   : > { %v1172_v19 = vmax.f32 %v1120_v15, 0.0  ;;  %v964_v20 = vadd.f32 %v1473_v16, %v1946_v34  ;;  %v1586_v22 = vpop.f32.mrf.mxu1 }
 0x15b   : > { %v1475_v23 = vpop.f32.mrf.mxu0 }
 0x15c   : > { %1204 = vst [vmem:[%s1953_s10 + $0xc8] sm:$0xff] %v1172_v19  ;;  %v1125_v24 = vadd.f32 %v1585_v21, %v964_v20  ;;  %v1476_v25 = vadd.f32 %v1475_v23, %v1474_v18  ;;  %v1587_v26 = vpop.f32.mrf.mxu1 }
 0x15d   : > { %v1477_v27 = vpop.f32.mrf.mxu0  ;;  %v1588_v30 = vadd.f32 %v1587_v26, %v1586_v22 }
 0x15e   : > { %v1173_v28 = vmax.f32 %v1125_v24, 0.0  ;;  %v967_v29 = vadd.f32 %v1476_v25, %v1946_v34  ;;  %v1589_v31 = vpop.f32.mrf.mxu1 }
 0x15f   : > { %v1478_v32 = vpop.f32.mrf.mxu0 }
 0x160   : > { %1205 = vst [vmem:[%s1953_s10 + $0xd0] sm:$0xff] %v1173_v28  ;;  %v1128_v33 = vadd.f32 %v1588_v30, %v967_v29  ;;  %v1479_v35 = vadd.f32 %v1478_v32, %v1477_v27  ;;  %v1590_v36 = vpop.f32.mrf.mxu1 }
 0x161   : > { %v1480_v37 = vpop.f32.mrf.mxu0  ;;  %v1591_v40 = vadd.f32 %v1590_v36, %v1589_v31 }
 0x162   : > { %v1174_v38 = vmax.f32 %v1128_v33, 0.0  ;;  %v972_v39 = vadd.f32 %v1479_v35, %v1946_v34  ;;  %v1592_v41 = vpop.f32.mrf.mxu1 }
 0x163   : > { %v1481_v42 = vpop.f32.mrf.mxu0 }
 0x164   : > { %1206 = vst [vmem:[%s1953_s10 + $0xd8] sm:$0xff] %v1174_v38  ;;  %v1133_v43 = vadd.f32 %v1591_v40, %v972_v39  ;;  %v1482_v44 = vadd.f32 %v1481_v42, %v1480_v37  ;;  %v1593_v45 = vpop.f32.mrf.mxu1 }
 0x165   : > { %v1483_v46 = vpop.f32.mrf.mxu0  ;;  %v1594_v49 = vadd.f32 %v1593_v45, %v1592_v41 }
 0x166   : > { %v1175_v47 = vmax.f32 %v1133_v43, 0.0  ;;  %v975_v48 = vadd.f32 %v1482_v44, %v1946_v34  ;;  %v1595_v50 = vpop.f32.mrf.mxu1 }
 0x167   : > { %v1484_v51 = vpop.f32.mrf.mxu0 }
 0x168   : > { %1207 = vst [vmem:[%s1953_s10 + $0xe0] sm:$0xff] %v1175_v47  ;;  %v1136_v52 = vadd.f32 %v1594_v49, %v975_v48  ;;  %v1485_v53 = vadd.f32 %v1484_v51, %v1483_v46  ;;  %v1596_v54 = vpop.f32.mrf.mxu1 }
 0x169   : > { %v1486_v55 = vpop.f32.mrf.mxu0  ;;  %v1597_v58 = vadd.f32 %v1596_v54, %v1595_v50 }
 0x16a   : > { %v1176_v56 = vmax.f32 %v1136_v52, 0.0  ;;  %v980_v57 = vadd.f32 %v1485_v53, %v1946_v34  ;;  %v1598_v59 = vpop.f32.mrf.mxu1 }
 0x16b   : > { %v1487_v60 = vpop.f32.mrf.mxu0 }
 0x16c   : > { %1208 = vst [vmem:[%s1953_s10 + $0xe8] sm:$0xff] %v1176_v56  ;;  %v1141_v61 = vadd.f32 %v1597_v58, %v980_v57  ;;  %v1488_v62 = vadd.f32 %v1487_v60, %v1486_v55  ;;  %v1599_v63 = vpop.f32.mrf.mxu1 }
 0x16d   : > { %v1600_v2 = vadd.f32 %v1599_v63, %v1598_v59 }
 0x16e   : > { %v1177_v0 = vmax.f32 %v1141_v61, 0.0  ;;  %v983_v1 = vadd.f32 %v1488_v62, %v1946_v34 }
 0x170   : > { %1209 = vst [vmem:[%s1953_s10 + $0xf0] sm:$0xff] %v1177_v0  ;;  %v1144_v3 = vadd.f32 %v1600_v2, %v983_v1 }
 0x172   : > { %v1178_v4 = vmax.f32 %v1144_v3, 0.0 }
 0x174   : > { %1210 = vst [vmem:[%s1953_s10 + $0xf8] sm:$0xff] %v1178_v4 }
 0x175 PF: > { %s13_s12 = sadd.s32 1, %s1743_s12  }
 0x176   : > { %p10_p4 = scmp.ge.s32.totalorder %s13_s12, 7  }
 0x178   :  { %12 = sbr.rel (!%p10_p4) target bundleno = 1 (0x1), region = 62 }

// kernel: imagenet_convnet_bp_forward.8
= control target key start
LH: loop header
LB: loop body
LE: loop exit
PB: predicated region body
PF: predicated region fallthrough
CT: control target
= control target key end

     0   :  { %s3895_s12 = smov 0   ;;  %s4581_s0 = inlined_call_operand.vmem [shape: bf16[768,1280], index: 0, kind: input, shape index: {}]   ;;  %s4582_s1 = inlined_call_operand.vmem [shape: bf16[1280,128], index: 1, kind: input, shape index: {}]   ;;  %s4583_s2 = inlined_call_operand.vmem [shape: f32[1,128], index: 2, kind: input, shape index: {}]   ;;  %s4584_s3 = inlined_call_operand.vmem [shape: f32[768,128], index: 3, kind: output, shape index: {}]  }
   0x1 LB: > { %s2710_s13 = sadd.s32 4294967295, %s3873_s12   ;;  %p2714_p0 = scmp.ge.s32.totalorder %s3873_s12, 1  ;;  %s3873_s12 = sphi %s3895_s12, %s13_s12  }
   0x2   : > { %p139_p1 = scmp.lt.s32.totalorder %s3873_s12, 4 }
   0x4   : > { %p140_p2 = pnand %p2714_p0, %p139_p1 }
   0x5   : > { %s2715_s16 = sshll.u32 (!%p140_p2), %s2710_s13, 5 }
   0x6   : > { %143 = sbr.rel (%p140_p2) target bundleno = 564 (0x234), region = 32  ;;  %p165_p3 = scmp.lt.s32.totalorder (!%p140_p2), %s2715_s16, 95 }
   0xb   : > { %v3547_v0 = vld [vmem:[%s4582_s1 + $0x78] sm:$0xff]   ;;  %v3549_v2 = vld [vmem:[%s4582_s1 + $0x70] sm:$0xff]   ;;  %v3551_v4 = vld [vmem:[%s4582_s1 + $0x68] sm:$0xff]   ;;  %s4586_s16 = smov (!%p165_p3, %s2715_s16), 95 }
   0xc   : > { %v3548_v1 = vld [vmem:[%s4582_s1 + $0x38] sm:$0xff]   ;;  %2962 = vmatprep.subr.bf16.mxu0 %v3547_v0  ;;  %3522 = vmatprep.subr.bf16.mxu1 %v3547_v0  ;;  %v3550_v3 = vld [vmem:[%s4582_s1 + $0x30] sm:$0xff]   ;;  %v3552_v5 = vld [vmem:[%s4582_s1 + $0x28] sm:$0xff]   ;;  %s3538_s29 = smul.u32 40, %s4586_s16 }
   0xd   : > { %2963 = vmatpush3.bf16.msra.mxu0 %v3548_v1  ;;  %3530 = vmatpush3.bf16.msra.mxu1 %v3548_v1  ;;  %v3553_v6 = vld [vmem:[%s4582_s1 + $0x60] sm:$0xff]   ;;  %v3555_v8 = vld [vmem:[%s4582_s1 + $0x58] sm:$0xff]   ;;  %v3557_v10 = vld [vmem:[%s4582_s1 + $0x50] sm:$0xff]  }
   0xe   : > { %2964 = vmatprep.subr.bf16.mxu0 %v3549_v2  ;;  %3523 = vmatprep.subr.bf16.mxu1 %v3549_v2  ;;  %v3554_v7 = vld [vmem:[%s4582_s1 + $0x20] sm:$0xff]   ;;  %s3936_s9 = scalar_lea.vmem %s4581_s0, %s3538_s29  ;;  %v3556_v9 = vld [vmem:[%s4582_s1 + $0x18] sm:$0xff]   ;;  %v3558_v13 = vld [vmem:[%s4582_s1 + $0x10] sm:$0xff]  }
   0xf   : > { %v3565_v11 = vld [vmem:[%s3936_s9 + $0x4] ss:$40 sps:$4 sm:$0xff]   ;;  %v3569_v18 = vld [vmem:[%s4582_s1 + $0xf8] sm:$0xff]   ;;  %v3563_v19 = vld [vmem:[%s3936_s9] ss:$40 sps:$4 sm:$0xff]  }
  0x10   : > { %v3568_v12 = vld [vmem:[%s3936_s9 + $0x284] ss:$40 sps:$4 sm:$0xff]   ;;  %1817 = vmatprep.mubr.bf16.mxu0 %v3565_v11  ;;  %v3571_v20 = vld [vmem:[%s4582_s1 + $0x178] sm:$0xff]   ;;  %v3566_v21 = vld [vmem:[%s3936_s9 + $0x280] ss:$40 sps:$4 sm:$0xff]  }
  0x11   : > { %2965 = vmatpush3.bf16.msra.mxu0 %v3550_v3  ;;  %3531 = vmatpush3.bf16.msra.mxu1 %v3550_v3  ;;  %v3559_v14 = vld [vmem:[%s4582_s1 + $0x48] sm:$0xff]   ;;  %v3561_v16 = vld [vmem:[%s4582_s1 + $0x40] sm:$0xff]   ;;  %v3570_v22 = vld [vmem:[%s4582_s1 + $0xb8] sm:$0xff]  }
  0x12   : > { %2966 = vmatprep.subr.bf16.mxu0 %v3551_v4  ;;  %3524 = vmatprep.subr.bf16.mxu1 %v3551_v4  ;;  %v3560_v15 = vld [vmem:[%s4582_s1 + $0x8] sm:$0xff]   ;;  %v3562_v17 = vld [vmem:[%s4582_s1] sm:$0xff]   ;;  %v3572_v23 = vld [vmem:[%s4582_s1 + $0x138] sm:$0xff]  }
  0x13   : > { %1881 = vmatprep.mubr.bf16.mxu1 %v3568_v12  ;;  %v3573_v24 = vld [vmem:[%s3936_s9 + $0x54] ss:$40 sps:$4 sm:$0xff]   ;;  %v3589_v30 = vld [vmem:[%s4582_s1 + $0xe8] sm:$0xff]   ;;  %v3577_v31 = vld [vmem:[%s3936_s9 + $0x50] ss:$40 sps:$4 sm:$0xff]  }
  0x14   : > { %v3575_v25 = vld [vmem:[%s3936_s9 + $0x2d4] ss:$40 sps:$4 sm:$0xff]   ;;  %v3578_v32 = vld [vmem:[%s3936_s9 + $0x2d0] ss:$40 sps:$4 sm:$0xff]   ;;  %v3591_v33 = vld [vmem:[%s4582_s1 + $0x168] sm:$0xff]  }
  0x15   : > { %2967 = vmatpush3.bf16.msra.mxu0 %v3552_v5  ;;  %3532 = vmatpush3.bf16.msra.mxu1 %v3552_v5  ;;  %v3579_v26 = vld [vmem:[%s4582_s1 + $0xf0] sm:$0xff]   ;;  %v3583_v34 = vld [vmem:[%s3936_s9 + $0xa4] ss:$40 sps:$4 sm:$0xff]   ;;  %v3587_v40 = vld [vmem:[%s3936_s9 + $0xa0] ss:$40 sps:$4 sm:$0xff]  }
  0x16   : > { %2968 = vmatprep.subr.bf16.mxu0 %v3553_v6  ;;  %3525 = vmatprep.subr.bf16.mxu1 %v3553_v6  ;;  %v3580_v27 = vld [vmem:[%s4582_s1 + $0xb0] sm:$0xff]   ;;  %v3585_v35 = vld [vmem:[%s3936_s9 + $0x324] ss:$40 sps:$4 sm:$0xff]   ;;  %v3588_v41 = vld [vmem:[%s3936_s9 + $0x320] ss:$40 sps:$4 sm:$0xff]  }
  0x17   : > { %v3581_v28 = vld [vmem:[%s4582_s1 + $0x170] sm:$0xff]   ;;  %v3590_v36 = vld [vmem:[%s4582_s1 + $0xa8] sm:$0xff]   ;;  %v3599_v38 = vld [vmem:[%s4582_s1 + $0xe0] sm:$0xff]  }
  0x18   : > { %v3582_v29 = vld [vmem:[%s4582_s1 + $0x130] sm:$0xff]   ;;  %v3592_v37 = vld [vmem:[%s4582_s1 + $0x128] sm:$0xff]   ;;  %v3601_v39 = vld [vmem:[%s4582_s1 + $0x160] sm:$0xff]  }
  0x19   : > { %2969 = vmatpush3.bf16.msra.mxu0 %v3554_v7  ;;  %3533 = vmatpush3.bf16.msra.mxu1 %v3554_v7  ;;  %v3600_v42 = vld [vmem:[%s4582_s1 + $0xa0] sm:$0xff]   ;;  %v3593_v44 = vld [vmem:[%s3936_s9 + $0xf4] ss:$40 sps:$4 sm:$0xff]   ;;  %v3597_v50 = vld [vmem:[%s3936_s9 + $0xf0] ss:$40 sps:$4 sm:$0xff]  }
  0x1a   : > { %2970 = vmatprep.subr.bf16.mxu0 %v3555_v8  ;;  %3526 = vmatprep.subr.bf16.mxu1 %v3555_v8  ;;  %v3602_v43 = vld [vmem:[%s4582_s1 + $0x120] sm:$0xff]   ;;  %v3595_v45 = vld [vmem:[%s3936_s9 + $0x374] ss:$40 sps:$4 sm:$0xff]   ;;  %v3598_v51 = vld [vmem:[%s3936_s9 + $0x370] ss:$40 sps:$4 sm:$0xff]  }
  0x1b   : > { %v3609_v46 = vld [vmem:[%s4582_s1 + $0xd8] sm:$0xff]   ;;  %v3619_v52 = vld [vmem:[%s4582_s1 + $0xd0] sm:$0xff]   ;;  %v3603_v53 = vld [vmem:[%s3936_s9 + $0x144] ss:$40 sps:$4 sm:$0xff]  }
  0x1c   : > { %v3610_v47 = vld [vmem:[%s4582_s1 + $0x98] sm:$0xff]   ;;  %v3605_v54 = vld [vmem:[%s3936_s9 + $0x3c4] ss:$40 sps:$4 sm:$0xff]   ;;  %v3620_v55 = vld [vmem:[%s4582_s1 + $0x90] sm:$0xff]  }
  0x1d   : > { %2971 = vmatpush3.bf16.msra.mxu0 %v3556_v9  ;;  %3534 = vmatpush3.bf16.msra.mxu1 %v3556_v9  ;;  %v3611_v48 = vld [vmem:[%s4582_s1 + $0x158] sm:$0xff]   ;;  %v3621_v56 = vld [vmem:[%s4582_s1 + $0x150] sm:$0xff]   ;;  %v3629_v58 = vld [vmem:[%s4582_s1 + $0xc8] sm:$0xff]  }
  0x1e   : > { %2972 = vmatprep.subr.bf16.mxu0 %v3557_v10  ;;  %3527 = vmatprep.subr.bf16.mxu1 %v3557_v10  ;;  %v3612_v49 = vld [vmem:[%s4582_s1 + $0x118] sm:$0xff]   ;;  %v3622_v57 = vld [vmem:[%s4582_s1 + $0x110] sm:$0xff]   ;;  %v3607_v59 = vld [vmem:[%s3936_s9 + $0x140] ss:$40 sps:$4 sm:$0xff]  }
  0x1f   : > { %v3608_v60 = vld [vmem:[%s3936_s9 + $0x3c0] ss:$40 sps:$4 sm:$0xff]   ;;  %v3613_v62 = vld [vmem:[%s3936_s9 + $0x194] ss:$40 sps:$4 sm:$0xff]   ;;  %v3617_v6 = vld [vmem:[%s3936_s9 + $0x190] ss:$40 sps:$4 sm:$0xff]  }
  0x20   : > { %v3630_v61 = vld [vmem:[%s4582_s1 + $0x88] sm:$0xff]   ;;  %v3615_v1 = vld [vmem:[%s3936_s9 + $0x414] ss:$40 sps:$4 sm:$0xff]   ;;  %v3639_v2 = vld [vmem:[%s4582_s1 + $0xc0] sm:$0xff]  }
  0x21   : > { %2973 = vmatpush3.bf16.msra.mxu0 %v3558_v13  ;;  %3535 = vmatpush3.bf16.msra.mxu1 %v3558_v13  ;;  %v3631_v63 = vld [vmem:[%s4582_s1 + $0x148] sm:$0xff]   ;;  %v3640_v3 = vld [vmem:[%s4582_s1 + $0x80] sm:$0xff]   ;;  %v3618_v7 = vld [vmem:[%s3936_s9 + $0x410] ss:$40 sps:$4 sm:$0xff]  }
  0x22   : > { %2974 = vmatprep.subr.bf16.mxu0 %v3559_v14  ;;  %3528 = vmatprep.subr.bf16.mxu1 %v3559_v14  ;;  %v3632_v0 = vld [vmem:[%s4582_s1 + $0x108] sm:$0xff]   ;;  %v3641_v4 = vld [vmem:[%s4582_s1 + $0x140] sm:$0xff]   ;;  %v3649_v10 = vld [vmem:[%s4582_s1 + $0x1f8] sm:$0xff]  }
  0x23   : > { %v3642_v5 = vld [vmem:[%s4582_s1 + $0x100] sm:$0xff]   ;;  %v3651_v11 = vld [vmem:[%s4582_s1 + $0x278] sm:$0xff]  }
  0x24   : > { %v3623_v8 = vld [vmem:[%s3936_s9 + $0x1e4] ss:$40 sps:$4 sm:$0xff]   ;;  %v3627_v12 = vld [vmem:[%s3936_s9 + $0x1e0] ss:$40 sps:$4 sm:$0xff]   ;;  %v3633_v14 = vld [vmem:[%s3936_s9 + $0x234] ss:$40 sps:$4 sm:$0xff]  }
  0x25   : > { %2975 = vmatpush3.bf16.msra.mxu0 %v3560_v15  ;;  %3536 = vmatpush3.bf16.msra.mxu1 %v3560_v15  ;;  %v3625_v9 = vld [vmem:[%s3936_s9 + $0x464] ss:$40 sps:$4 sm:$0xff]   ;;  %v3628_v13 = vld [vmem:[%s3936_s9 + $0x460] ss:$40 sps:$4 sm:$0xff]   ;;  %v3635_v15 = vld [vmem:[%s3936_s9 + $0x4b4] ss:$40 sps:$4 sm:$0xff]  }
  0x26   : > { %2976 = vmatprep.subr.bf16.mxu0 %v3561_v16  ;;  %3529 = vmatprep.subr.bf16.mxu1 %v3561_v16  ;;  %v3637_v16 = vld [vmem:[%s3936_s9 + $0x230] ss:$40 sps:$4 sm:$0xff]  }
  0x29   : > { %2977 = vmatpush3.bf16.msra.mxu0 %v3562_v17  ;;  %3537 = vmatpush3.bf16.msra.mxu1 %v3562_v17  ;;  %v3638_v17 = vld [vmem:[%s3936_s9 + $0x4b0] ss:$40 sps:$4 sm:$0xff]  }
  0x2a   : > { %3074 = vmatprep.subr.bf16.mxu1 %v3569_v18  ;;  %3186 = vmatprep.subr.bf16.mxu0 %v3571_v20  ;;  %v3645_v18 = vld [vmem:[%s3936_s9 + $0xc] ss:$40 sps:$4 sm:$0xff]   ;;  %v3643_v20 = vld [vmem:[%s3936_s9 + $0x8] ss:$40 sps:$4 sm:$0xff]  }
  0x2c   : > { %1818 = vmatmul.mubr.bf16.vlgmr.msra.gmra.mxu0 %v3563_v19  ;;  %1882 = vmatmul.mubr.bf16.vlgmr.msra.gmra.mxu1 %v3566_v21  ;;  %v3648_v19 = vld [vmem:[%s3936_s9 + $0x14] ss:$40 sps:$4 sm:$0xff]   ;;  %v3646_v21 = vld [vmem:[%s3936_s9 + $0x10] ss:$40 sps:$4 sm:$0xff]  }
  0x2d   : > { %3075 = vmatpush3.bf16.msra.mxu1 %v3570_v22  ;;  %3187 = vmatpush3.bf16.msra.mxu0 %v3572_v23  ;;  %v3650_v22 = vld [vmem:[%s4582_s1 + $0x1b8] sm:$0xff]  }
  0x2e   : > { %1825 = vmatprep.mubr.bf16.mxu0 %v3573_v24  ;;  %1889 = vmatprep.mubr.bf16.mxu1 %v3575_v25  ;;  %v3652_v23 = vld [vmem:[%s4582_s1 + $0x238] sm:$0xff]   ;;  %v3655_v25 = vld [vmem:[%s3936_s9 + $0x64] ss:$40 sps:$4 sm:$0xff]  }
  0x2f   : > { %3076 = vmatprep.subr.bf16.mxu1 %v3579_v26  ;;  %3188 = vmatprep.subr.bf16.mxu0 %v3581_v28  ;;  %v3653_v24 = vld [vmem:[%s3936_s9 + $0x5c] ss:$40 sps:$4 sm:$0xff]   ;;  %v3665_v26 = vld [vmem:[%s4582_s1 + $0x1f0] sm:$0xff]  }
  0x30   : > { %v3666_v28 = vld [vmem:[%s4582_s1 + $0x1b0] sm:$0xff]  }
  0x31   : > { %3077 = vmatpush3.bf16.msra.mxu1 %v3580_v27  ;;  %3189 = vmatpush3.bf16.msra.mxu0 %v3582_v29  ;;  %v3667_v27 = vld [vmem:[%s4582_s1 + $0x270] sm:$0xff]  }
  0x32   : > { %3078 = vmatprep.subr.bf16.mxu1 %v3589_v30  ;;  %3190 = vmatprep.subr.bf16.mxu0 %v3591_v33  ;;  %v3668_v29 = vld [vmem:[%s4582_s1 + $0x230] sm:$0xff]   ;;  %v3681_v30 = vld [vmem:[%s4582_s1 + $0x1e8] sm:$0xff]  }
  0x33   : > { %v3683_v33 = vld [vmem:[%s4582_s1 + $0x268] sm:$0xff]  }
  0x34   : > { %1826 = vmatmul.mubr.bf16.gmra.mxu0 %v3577_v31  ;;  %1890 = vmatmul.mubr.bf16.gmra.mxu1 %v3578_v32  ;;  %v3657_v31 = vld [vmem:[%s3936_s9 + $0x58] ss:$40 sps:$4 sm:$0xff]  }
  0x35   : > { %1833 = vmatprep.mubr.bf16.mxu0 %v3583_v34  ;;  %1897 = vmatprep.mubr.bf16.mxu1 %v3585_v35  ;;  %v3658_v32 = vld [vmem:[%s3936_s9 + $0x60] ss:$40 sps:$4 sm:$0xff]   ;;  %v3659_v34 = vld [vmem:[%s3936_s9 + $0xac] ss:$40 sps:$4 sm:$0xff]  }
  0x36   : > { %3079 = vmatpush3.bf16.msra.mxu1 %v3590_v36  ;;  %3191 = vmatpush3.bf16.msra.mxu0 %v3592_v37  ;;  %v3661_v35 = vld [vmem:[%s3936_s9 + $0xb4] ss:$40 sps:$4 sm:$0xff]   ;;  %v3682_v36 = vld [vmem:[%s4582_s1 + $0x1a8] sm:$0xff]  }
  0x37   : > { %3080 = vmatprep.subr.bf16.mxu1 %v3599_v38  ;;  %3192 = vmatprep.subr.bf16.mxu0 %v3601_v39  ;;  %v3684_v37 = vld [vmem:[%s4582_s1 + $0x228] sm:$0xff]   ;;  %v3697_v38 = vld [vmem:[%s4582_s1 + $0x1e0] sm:$0xff]  }
  0x38   : > { %v3699_v39 = vld [vmem:[%s4582_s1 + $0x260] sm:$0xff]  }
  0x3a   : > { %3081 = vmatpush3.bf16.msra.mxu1 %v3600_v42  ;;  %3193 = vmatpush3.bf16.msra.mxu0 %v3602_v43  ;;  %v3698_v42 = vld [vmem:[%s4582_s1 + $0x1a0] sm:$0xff]  }
  0x3b   : > { %3082 = vmatprep.subr.bf16.mxu1 %v3609_v46  ;;  %3194 = vmatprep.subr.bf16.mxu0 %v3611_v48  ;;  %v3700_v43 = vld [vmem:[%s4582_s1 + $0x220] sm:$0xff]   ;;  %v3713_v46 = vld [vmem:[%s4582_s1 + $0x1d8] sm:$0xff]  }
  0x3c   : > { %1834 = vmatmul.mubr.bf16.gmra.mxu0 %v3587_v40  ;;  %1898 = vmatmul.mubr.bf16.gmra.mxu1 %v3588_v41  ;;  %v3663_v40 = vld [vmem:[%s3936_s9 + $0xa8] ss:$40 sps:$4 sm:$0xff]   ;;  %v3715_v48 = vld [vmem:[%s4582_s1 + $0x258] sm:$0xff]  }
  0x3d   : > { %1841 = vmatprep.mubr.bf16.mxu0 %v3593_v44  ;;  %1905 = vmatprep.mubr.bf16.mxu1 %v3595_v45  ;;  %v3664_v41 = vld [vmem:[%s3936_s9 + $0xb0] ss:$40 sps:$4 sm:$0xff]   ;;  %v3669_v44 = vld [vmem:[%s3936_s9 + $0xfc] ss:$40 sps:$4 sm:$0xff]  }
  0x3e   : > { %3083 = vmatpush3.bf16.msra.mxu1 %v3610_v47  ;;  %3195 = vmatpush3.bf16.msra.mxu0 %v3612_v49  ;;  %v3671_v45 = vld [vmem:[%s3936_s9 + $0x104] ss:$40 sps:$4 sm:$0xff]   ;;  %v3714_v47 = vld [vmem:[%s4582_s1 + $0x198] sm:$0xff]  }
  0x3f   : > { %3084 = vmatprep.subr.bf16.mxu1 %v3619_v52  ;;  %3196 = vmatprep.subr.bf16.mxu0 %v3621_v56  ;;  %v3716_v49 = vld [vmem:[%s4582_s1 + $0x218] sm:$0xff]   ;;  %v3675_v52 = vld [vmem:[%s3936_s9 + $0x14c] ss:$40 sps:$4 sm:$0xff]  }
  0x40   : > { %v3731_v56 = vld [vmem:[%s4582_s1 + $0x250] sm:$0xff]  }
  0x42   : > { %3085 = vmatpush3.bf16.msra.mxu1 %v3620_v55  ;;  %3197 = vmatpush3.bf16.msra.mxu0 %v3622_v57  ;;  %v3730_v55 = vld [vmem:[%s4582_s1 + $0x190] sm:$0xff]  }
  0x43   : > { %3086 = vmatprep.subr.bf16.mxu1 %v3629_v58  ;;  %3198 = vmatprep.subr.bf16.mxu0 %v3631_v63  ;;  %v3732_v57 = vld [vmem:[%s4582_s1 + $0x210] sm:$0xff]   ;;  %v3746_v63 = vld [vmem:[%s4582_s1 + $0x188] sm:$0xff]  }
  0x44   : > { %1842 = vmatmul.mubr.bf16.gmra.mxu0 %v3597_v50  ;;  %1906 = vmatmul.mubr.bf16.gmra.mxu1 %v3598_v51  ;;  %v3673_v50 = vld [vmem:[%s3936_s9 + $0xf8] ss:$40 sps:$4 sm:$0xff]   ;;  %v3679_v58 = vld [vmem:[%s3936_s9 + $0x148] ss:$40 sps:$4 sm:$0xff]  }
  0x45   : > { %1849 = vmatprep.mubr.bf16.mxu0 %v3603_v53  ;;  %1913 = vmatprep.mubr.bf16.mxu1 %v3605_v54  ;;  %v3674_v51 = vld [vmem:[%s3936_s9 + $0x100] ss:$40 sps:$4 sm:$0xff]   ;;  %v3677_v53 = vld [vmem:[%s3936_s9 + $0x154] ss:$40 sps:$4 sm:$0xff]  }
  0x46   : > { %3087 = vmatpush3.bf16.msra.mxu1 %v3630_v61  ;;  %3199 = vmatpush3.bf16.msra.mxu0 %v3632_v0  ;;  %v3729_v54 = vld [vmem:[%s4582_s1 + $0x1d0] sm:$0xff]   ;;  %v3687_v61 = vld [vmem:[%s3936_s9 + $0x1a4] ss:$40 sps:$4 sm:$0xff]  }
  0x47   : > { %3088 = vmatprep.subr.bf16.mxu1 %v3639_v2  ;;  %3200 = vmatprep.subr.bf16.mxu0 %v3641_v4  ;;  %v3747_v0 = vld [vmem:[%s4582_s1 + $0x248] sm:$0xff]   ;;  %v3689_v2 = vld [vmem:[%s3936_s9 + $0x198] ss:$40 sps:$4 sm:$0xff]  }
  0x48   : > { %v3691_v4 = vld [vmem:[%s3936_s9 + $0x1ec] ss:$40 sps:$4 sm:$0xff]  }
  0x4a   : > { %3089 = vmatpush3.bf16.msra.mxu1 %v3640_v3  ;;  %3201 = vmatpush3.bf16.msra.mxu0 %v3642_v5  ;;  %v3690_v3 = vld [vmem:[%s3936_s9 + $0x1a0] ss:$40 sps:$4 sm:$0xff]   ;;  %v3693_v5 = vld [vmem:[%s3936_s9 + $0x1f4] ss:$40 sps:$4 sm:$0xff]  }
  0x4b   : > { %3298 = vmatprep.subr.bf16.mxu1 %v3649_v10  ;;  %3410 = vmatprep.subr.bf16.mxu0 %v3651_v11  ;;  %v3764_v10 = vld [vmem:[%s4582_s1 + $0x200] sm:$0xff]   ;;  %v3696_v11 = vld [vmem:[%s3936_s9 + $0x1f0] ss:$40 sps:$4 sm:$0xff]  }
  0x4c   : > { %1850 = vmatmul.mubr.bf16.gmra.mxu0 %v3607_v59  ;;  %1914 = vmatmul.mubr.bf16.gmra.mxu1 %v3608_v60  ;;  %v3680_v59 = vld [vmem:[%s3936_s9 + $0x150] ss:$40 sps:$4 sm:$0xff]   ;;  %v3685_v60 = vld [vmem:[%s3936_s9 + $0x19c] ss:$40 sps:$4 sm:$0xff]  }
  0x4d   : > { %1857 = vmatprep.mubr.bf16.mxu0 %v3613_v62  ;;  %1921 = vmatprep.mubr.bf16.mxu1 %v3615_v1  ;;  %v3745_v62 = vld [vmem:[%s4582_s1 + $0x1c8] sm:$0xff]  }
  0x4e   : > { %v3748_v1 = vld [vmem:[%s4582_s1 + $0x208] sm:$0xff]  }
  0x54   : > { %1858 = vmatmul.mubr.bf16.gmra.mxu0 %v3617_v6  ;;  %1922 = vmatmul.mubr.bf16.gmra.mxu1 %v3618_v7  ;;  %v3761_v6 = vld [vmem:[%s4582_s1 + $0x1c0] sm:$0xff]  }
  0x55   : > { %1865 = vmatprep.mubr.bf16.mxu0 %v3623_v8  ;;  %1929 = vmatprep.mubr.bf16.mxu1 %v3625_v9  ;;  %v3762_v7 = vld [vmem:[%s4582_s1 + $0x180] sm:$0xff]   ;;  %v3695_v8 = vld [vmem:[%s3936_s9 + $0x1e8] ss:$40 sps:$4 sm:$0xff]  }
  0x56   : > { %v3763_v9 = vld [vmem:[%s4582_s1 + $0x240] sm:$0xff]  }
  0x5c   : > { %1866 = vmatmul.mubr.bf16.gmra.mxu0 %v3627_v12  ;;  %1930 = vmatmul.mubr.bf16.gmra.mxu1 %v3628_v13  ;;  %v3701_v12 = vld [vmem:[%s3936_s9 + $0x23c] ss:$40 sps:$4 sm:$0xff]  }
  0x5d   : > { %1873 = vmatprep.mubr.bf16.mxu0 %v3633_v14  ;;  %1937 = vmatprep.mubr.bf16.mxu1 %v3635_v15  ;;  %v3703_v13 = vld [vmem:[%s3936_s9 + $0x244] ss:$40 sps:$4 sm:$0xff]   ;;  %v3705_v14 = vld [vmem:[%s3936_s9 + $0x238] ss:$40 sps:$4 sm:$0xff]  }
  0x5e   : > { %v3706_v15 = vld [vmem:[%s3936_s9 + $0x240] ss:$40 sps:$4 sm:$0xff]  }
  0x64   : > { %1874 = vmatmul.mubr.bf16.gmra.mxu0 %v3637_v16  ;;  %1938 = vmatmul.mubr.bf16.gmra.mxu1 %v3638_v17  ;;  %v3707_v16 = vld [vmem:[%s3936_s9 + $0x28c] ss:$40 sps:$4 sm:$0xff]  }
  0x65   : > { %1978 = vmatprep.mubr.bf16.mxu1 %v3645_v18  ;;  %2139 = vmatprep.mubr.bf16.mxu0 %v3648_v19  ;;  %v3709_v17 = vld [vmem:[%s3936_s9 + $0x294] ss:$40 sps:$4 sm:$0xff]   ;;  %v3711_v18 = vld [vmem:[%s3936_s9 + $0x288] ss:$40 sps:$4 sm:$0xff]  }
  0x66   : > { %v3712_v19 = vld [vmem:[%s3936_s9 + $0x290] ss:$40 sps:$4 sm:$0xff]  }
  0x6c   : > { %1979 = vmatmul.mubr.bf16.vlgmr.msra.gmra.mxu1 %v3643_v20  ;;  %2140 = vmatmul.mubr.bf16.vlgmr.msra.gmra.mxu0 %v3646_v21  ;;  %v3717_v20 = vld [vmem:[%s3936_s9 + $0x2dc] ss:$40 sps:$4 sm:$0xff]  }
  0x6d   : > { %3299 = vmatpush3.bf16.msra.mxu1 %v3650_v22  ;;  %3411 = vmatpush3.bf16.msra.mxu0 %v3652_v23  ;;  %v3719_v21 = vld [vmem:[%s3936_s9 + $0x2e4] ss:$40 sps:$4 sm:$0xff]   ;;  %v3721_v22 = vld [vmem:[%s3936_s9 + $0x2d8] ss:$40 sps:$4 sm:$0xff]  }
  0x6e   : > { %1986 = vmatprep.mubr.bf16.mxu1 %v3653_v24  ;;  %2147 = vmatprep.mubr.bf16.mxu0 %v3655_v25  ;;  %v3722_v23 = vld [vmem:[%s3936_s9 + $0x2e0] ss:$40 sps:$4 sm:$0xff]   ;;  %v3723_v24 = vld [vmem:[%s3936_s9 + $0x32c] ss:$40 sps:$4 sm:$0xff]  }
  0x6f   : > { %3300 = vmatprep.subr.bf16.mxu1 %v3665_v26  ;;  %3412 = vmatprep.subr.bf16.mxu0 %v3667_v27  ;;  %v3725_v25 = vld [vmem:[%s3936_s9 + $0x334] ss:$40 sps:$4 sm:$0xff]   ;;  %v3727_v26 = vld [vmem:[%s3936_s9 + $0x328] ss:$40 sps:$4 sm:$0xff]  }
  0x70   : > { %v3728_v27 = vld [vmem:[%s3936_s9 + $0x330] ss:$40 sps:$4 sm:$0xff]  }
  0x71   : > { %3301 = vmatpush3.bf16.msra.mxu1 %v3666_v28  ;;  %3413 = vmatpush3.bf16.msra.mxu0 %v3668_v29  ;;  %v3733_v28 = vld [vmem:[%s3936_s9 + $0x37c] ss:$40 sps:$4 sm:$0xff]  }
  0x72   : > { %3302 = vmatprep.subr.bf16.mxu1 %v3681_v30  ;;  %3414 = vmatprep.subr.bf16.mxu0 %v3683_v33  ;;  %v3735_v29 = vld [vmem:[%s3936_s9 + $0x384] ss:$40 sps:$4 sm:$0xff]   ;;  %v3737_v30 = vld [vmem:[%s3936_s9 + $0x378] ss:$40 sps:$4 sm:$0xff]   ;;  %v3741_v33 = vld [vmem:[%s3936_s9 + $0x3d4] ss:$40 sps:$4 sm:$0xff]  }
  0x74   : > { %1987 = vmatmul.mubr.bf16.gmra.mxu1 %v3657_v31  ;;  %2148 = vmatmul.mubr.bf16.gmra.mxu0 %v3658_v32  ;;  %v3738_v31 = vld [vmem:[%s3936_s9 + $0x380] ss:$40 sps:$4 sm:$0xff]   ;;  %v3739_v32 = vld [vmem:[%s3936_s9 + $0x3cc] ss:$40 sps:$4 sm:$0xff]  }
  0x75   : > { %1994 = vmatprep.mubr.bf16.mxu1 %v3659_v34  ;;  %2155 = vmatprep.mubr.bf16.mxu0 %v3661_v35  ;;  %v3743_v34 = vld [vmem:[%s3936_s9 + $0x3c8] ss:$40 sps:$4 sm:$0xff]  }
  0x76   : > { %3303 = vmatpush3.bf16.msra.mxu1 %v3682_v36  ;;  %3415 = vmatpush3.bf16.msra.mxu0 %v3684_v37  ;;  %v3744_v35 = vld [vmem:[%s3936_s9 + $0x3d0] ss:$40 sps:$4 sm:$0xff]   ;;  %v3749_v36 = vld [vmem:[%s3936_s9 + $0x41c] ss:$40 sps:$4 sm:$0xff]  }
  0x77   : > { %3304 = vmatprep.subr.bf16.mxu1 %v3697_v38  ;;  %3416 = vmatprep.subr.bf16.mxu0 %v3699_v39  ;;  %v3751_v37 = vld [vmem:[%s3936_s9 + $0x424] ss:$40 sps:$4 sm:$0xff]   ;;  %v3753_v38 = vld [vmem:[%s3936_s9 + $0x418] ss:$40 sps:$4 sm:$0xff]  }
  0x78   : > { %v3754_v39 = vld [vmem:[%s3936_s9 + $0x420] ss:$40 sps:$4 sm:$0xff]  }
  0x7a   : > { %3305 = vmatpush3.bf16.msra.mxu1 %v3698_v42  ;;  %3417 = vmatpush3.bf16.msra.mxu0 %v3700_v43  ;;  %v3759_v42 = vld [vmem:[%s3936_s9 + $0x468] ss:$40 sps:$4 sm:$0xff]  }
  0x7b   : > { %3306 = vmatprep.subr.bf16.mxu1 %v3713_v46  ;;  %3418 = vmatprep.subr.bf16.mxu0 %v3715_v48  ;;  %v3760_v43 = vld [vmem:[%s3936_s9 + $0x470] ss:$40 sps:$4 sm:$0xff]   ;;  %v3773_v48 = vld [vmem:[%s3936_s9 + $0x1c] ss:$40 sps:$4 sm:$0xff]  }
  0x7c   : > { %1995 = vmatmul.mubr.bf16.gmra.mxu1 %v3663_v40  ;;  %2156 = vmatmul.mubr.bf16.gmra.mxu0 %v3664_v41  ;;  %v3755_v40 = vld [vmem:[%s3936_s9 + $0x46c] ss:$40 sps:$4 sm:$0xff]   ;;  %v3769_v46 = vld [vmem:[%s3936_s9 + $0x4b8] ss:$40 sps:$4 sm:$0xff]  }
  0x7d   : > { %2002 = vmatprep.mubr.bf16.mxu1 %v3669_v44  ;;  %2163 = vmatprep.mubr.bf16.mxu0 %v3671_v45  ;;  %v3757_v41 = vld [vmem:[%s3936_s9 + $0x474] ss:$40 sps:$4 sm:$0xff]   ;;  %v3767_v45 = vld [vmem:[%s3936_s9 + $0x4c4] ss:$40 sps:$4 sm:$0xff]  }
  0x7e   : > { %3307 = vmatpush3.bf16.msra.mxu1 %v3714_v47  ;;  %3419 = vmatpush3.bf16.msra.mxu0 %v3716_v49  ;;  %v3765_v44 = vld [vmem:[%s3936_s9 + $0x4bc] ss:$40 sps:$4 sm:$0xff]   ;;  %v3770_v47 = vld [vmem:[%s3936_s9 + $0x4c0] ss:$40 sps:$4 sm:$0xff]  }
  0x7f   : > { %3308 = vmatprep.subr.bf16.mxu1 %v3729_v54  ;;  %3420 = vmatprep.subr.bf16.mxu0 %v3731_v56  ;;  %v3776_v49 = vld [vmem:[%s3936_s9 + $0x24] ss:$40 sps:$4 sm:$0xff]   ;;  %v4256_v56 = vld [vmem:[%s4583_s2] ss:$0 sm:$0xff] }
  0x82   : > { %3309 = vmatpush3.bf16.msra.mxu1 %v3730_v55  ;;  %3421 = vmatpush3.bf16.msra.mxu0 %v3732_v57 }
  0x83   : > { %3310 = vmatprep.subr.bf16.mxu1 %v3745_v62  ;;  %3422 = vmatprep.subr.bf16.mxu0 %v3747_v0  ;;  %v3782_v0 = vld [vmem:[%s3936_s9 + $0x70] ss:$40 sps:$4 sm:$0xff]  }
  0x84   : > { %2003 = vmatmul.mubr.bf16.gmra.mxu1 %v3673_v50  ;;  %2164 = vmatmul.mubr.bf16.gmra.mxu0 %v3674_v51  ;;  %v3771_v50 = vld [vmem:[%s3936_s9 + $0x18] ss:$40 sps:$4 sm:$0xff]  }
  0x85   : > { %2010 = vmatprep.mubr.bf16.mxu1 %v3675_v52  ;;  %2171 = vmatprep.mubr.bf16.mxu0 %v3677_v53  ;;  %v3774_v51 = vld [vmem:[%s3936_s9 + $0x20] ss:$40 sps:$4 sm:$0xff]   ;;  %v3777_v52 = vld [vmem:[%s3936_s9 + $0x6c] ss:$40 sps:$4 sm:$0xff]  }
  0x86   : > { %3311 = vmatpush3.bf16.msra.mxu1 %v3746_v63  ;;  %3423 = vmatpush3.bf16.msra.mxu0 %v3748_v1  ;;  %v3779_v53 = vld [vmem:[%s3936_s9 + $0x74] ss:$40 sps:$4 sm:$0xff]   ;;  %v3781_v63 = vld [vmem:[%s3936_s9 + $0x68] ss:$40 sps:$4 sm:$0xff]  }
  0x87   : > { %3312 = vmatprep.subr.bf16.mxu1 %v3761_v6  ;;  %3424 = vmatprep.subr.bf16.mxu0 %v3763_v9 }
  0x8a   : > { %3313 = vmatpush3.bf16.msra.mxu1 %v3762_v7  ;;  %3425 = vmatpush3.bf16.msra.mxu0 %v3764_v10 }
  0x8c   : > { %2011 = vmatmul.mubr.bf16.gmra.mxu1 %v3679_v58  ;;  %2172 = vmatmul.mubr.bf16.gmra.mxu0 %v3680_v59 }
  0x8d   : > { %2018 = vmatprep.mubr.bf16.mxu1 %v3685_v60  ;;  %2179 = vmatprep.mubr.bf16.mxu0 %v3687_v61 }
  0x94   : > { %2019 = vmatmul.mubr.bf16.gmra.mxu1 %v3689_v2  ;;  %2180 = vmatmul.mubr.bf16.gmra.mxu0 %v3690_v3  ;;  %v3783_v2 = vld [vmem:[%s3936_s9 + $0xbc] ss:$40 sps:$4 sm:$0xff]  }
  0x95   : > { %2026 = vmatprep.mubr.bf16.mxu1 %v3691_v4  ;;  %2187 = vmatprep.mubr.bf16.mxu0 %v3693_v5  ;;  %v3785_v3 = vld [vmem:[%s3936_s9 + $0xc4] ss:$40 sps:$4 sm:$0xff]  }
  0x9c   : > { %2027 = vmatmul.mubr.bf16.gmra.mxu1 %v3695_v8  ;;  %2188 = vmatmul.mubr.bf16.gmra.mxu0 %v3696_v11 }
  0x9d   : > { %2034 = vmatprep.mubr.bf16.mxu1 %v3701_v12  ;;  %2195 = vmatprep.mubr.bf16.mxu0 %v3703_v13 }
  0xa4   : > { %2035 = vmatmul.mubr.bf16.gmra.mxu1 %v3705_v14  ;;  %2196 = vmatmul.mubr.bf16.gmra.mxu0 %v3706_v15 }
  0xa5   : > { %2042 = vmatprep.mubr.bf16.mxu1 %v3707_v16  ;;  %2203 = vmatprep.mubr.bf16.mxu0 %v3709_v17  ;;  %v3787_v17 = vld [vmem:[%s3936_s9 + $0xb8] ss:$40 sps:$4 sm:$0xff]  }
  0xac   : > { %2043 = vmatmul.mubr.bf16.gmra.mxu1 %v3711_v18  ;;  %2204 = vmatmul.mubr.bf16.gmra.mxu0 %v3712_v19  ;;  %v3788_v18 = vld [vmem:[%s3936_s9 + $0xc0] ss:$40 sps:$4 sm:$0xff]  }
  0xad   : > { %2050 = vmatprep.mubr.bf16.mxu1 %v3717_v20  ;;  %2211 = vmatprep.mubr.bf16.mxu0 %v3719_v21  ;;  %v3789_v20 = vld [vmem:[%s3936_s9 + $0x10c] ss:$40 sps:$4 sm:$0xff]  }
  0xae   : > { %v3791_v21 = vld [vmem:[%s3936_s9 + $0x114] ss:$40 sps:$4 sm:$0xff]  }
  0xb4   : > { %2051 = vmatmul.mubr.bf16.gmra.mxu1 %v3721_v22  ;;  %2212 = vmatmul.mubr.bf16.gmra.mxu0 %v3722_v23 }
  0xb5   : > { %2058 = vmatprep.mubr.bf16.mxu1 %v3723_v24  ;;  %2219 = vmatprep.mubr.bf16.mxu0 %v3725_v25 }
  0xbc   : > { %2059 = vmatmul.mubr.bf16.gmra.mxu1 %v3727_v26  ;;  %2220 = vmatmul.mubr.bf16.gmra.mxu0 %v3728_v27 }
  0xbd   : > { %2066 = vmatprep.mubr.bf16.mxu1 %v3733_v28  ;;  %2227 = vmatprep.mubr.bf16.mxu0 %v3735_v29 }
  0xc4   : > { %2067 = vmatmul.mubr.bf16.gmra.mxu1 %v3737_v30  ;;  %2228 = vmatmul.mubr.bf16.gmra.mxu0 %v3738_v31 }
  0xc5   : > { %2074 = vmatprep.mubr.bf16.mxu1 %v3739_v32  ;;  %2235 = vmatprep.mubr.bf16.mxu0 %v3741_v33 }
  0xcc   : > { %2075 = vmatmul.mubr.bf16.gmra.mxu1 %v3743_v34  ;;  %2236 = vmatmul.mubr.bf16.gmra.mxu0 %v3744_v35  ;;  %v3793_v35 = vld [vmem:[%s3936_s9 + $0x108] ss:$40 sps:$4 sm:$0xff]  }
  0xcd   : > { %2082 = vmatprep.mubr.bf16.mxu1 %v3749_v36  ;;  %2243 = vmatprep.mubr.bf16.mxu0 %v3751_v37  ;;  %v3794_v36 = vld [vmem:[%s3936_s9 + $0x110] ss:$40 sps:$4 sm:$0xff]  }
  0xd4   : > { %2083 = vmatmul.mubr.bf16.gmra.mxu1 %v3753_v38  ;;  %2244 = vmatmul.mubr.bf16.gmra.mxu0 %v3754_v39  ;;  %v3797_v38 = vld [vmem:[%s3936_s9 + $0x15c] ss:$40 sps:$4 sm:$0xff]  }
  0xd5   : > { %2090 = vmatprep.mubr.bf16.mxu1 %v3755_v40  ;;  %2251 = vmatprep.mubr.bf16.mxu0 %v3757_v41  ;;  %v3800_v39 = vld [vmem:[%s3936_s9 + $0x164] ss:$40 sps:$4 sm:$0xff]  }
  0xdc   : > { %2091 = vmatmul.mubr.bf16.gmra.mxu1 %v3759_v42  ;;  %2252 = vmatmul.mubr.bf16.gmra.mxu0 %v3760_v43 }
  0xdd   : > { %2098 = vmatprep.mubr.bf16.mxu1 %v3765_v44  ;;  %2259 = vmatprep.mubr.bf16.mxu0 %v3767_v45 }
  0xe4   : > { %2099 = vmatmul.mubr.bf16.gmra.mxu1 %v3769_v46  ;;  %2260 = vmatmul.mubr.bf16.gmra.mxu0 %v3770_v47 }
  0xe5   : > { %2300 = vmatprep.mubr.bf16.mxu1 %v3773_v48  ;;  %2461 = vmatprep.mubr.bf16.mxu0 %v3776_v49 }
  0xec   : > { %v2978_v54 = vpop.f32.mrf.mxu0  ;;  %v3026_v55 = vpop.f32.mrf.mxu1  ;;  %2301 = vmatmul.mubr.bf16.vlgmr.msra.gmra.mxu1 %v3771_v50  ;;  %2462 = vmatmul.mubr.bf16.vlgmr.msra.gmra.mxu0 %v3774_v51 }
  0xed   : > { %2308 = vmatprep.mubr.bf16.mxu1 %v3777_v52  ;;  %2469 = vmatprep.mubr.bf16.mxu0 %v3779_v53  ;;  %v3795_v53 = vld [vmem:[%s3936_s9 + $0x158] ss:$40 sps:$4 sm:$0xff]  }
  0xee   : > { %v2979_v57 = vpop.f32.mrf.mxu0  ;;  %v3027_v58 = vpop.f32.mrf.mxu1 }
  0xef   : > { %v4258_v59 = vadd.f32 %v2979_v57, %v2978_v54  ;;  %v3028_v60 = vadd.f32 %v3027_v58, %v3026_v55  ;;  %v3798_v54 = vld [vmem:[%s3936_s9 + $0x160] ss:$40 sps:$4 sm:$0xff]   ;;  %v3803_v57 = vld [vmem:[%s3936_s9 + $0x1ac] ss:$40 sps:$4 sm:$0xff]  }
  0xf0   : > { %v2981_v61 = vpop.f32.mrf.mxu0  ;;  %v3029_v62 = vpop.f32.mrf.mxu1  ;;  %v3806_v58 = vld [vmem:[%s3936_s9 + $0x1b4] ss:$40 sps:$4 sm:$0xff]  }
  0xf1   : > { %v4263_v1 = vadd.f32 %v3028_v60, %v4256_v56 }
  0xf2   : > { %v2982_v4 = vpop.f32.mrf.mxu0  ;;  %v3030_v5 = vpop.f32.mrf.mxu1 }
  0xf3   : > { %v4267_v6 = vadd.f32 %v2982_v4, %v2981_v61  ;;  %v3031_v7 = vadd.f32 %v3030_v5, %v3029_v62 }
  0xf4   : > { %v2984_v8 = vpop.f32.mrf.mxu0  ;;  %v3032_v9 = vpop.f32.mrf.mxu1  ;;  %2309 = vmatmul.mubr.bf16.gmra.mxu1 %v3781_v63  ;;  %2470 = vmatmul.mubr.bf16.gmra.mxu0 %v3782_v0 }
  0xf5   : > { %v4270_v10 = vadd.f32 %v3031_v7, %v4256_v56  ;;  %2316 = vmatprep.mubr.bf16.mxu1 %v3783_v2  ;;  %2477 = vmatprep.mubr.bf16.mxu0 %v3785_v3 }
  0xf6   : > { %v2985_v11 = vpop.f32.mrf.mxu0  ;;  %v3033_v12 = vpop.f32.mrf.mxu1 }
  0xf7   : > { %v4272_v13 = vadd.f32 %v2985_v11, %v2984_v8  ;;  %v3034_v14 = vadd.f32 %v3033_v12, %v3032_v9  ;;  %v3801_v12 = vld [vmem:[%s3936_s9 + $0x1a8] ss:$40 sps:$4 sm:$0xff]  }
  0xf8   : > { %v2987_v15 = vpop.f32.mrf.mxu0  ;;  %v3035_v16 = vpop.f32.mrf.mxu1 }
  0xf9   : > { %v4277_v19 = vadd.f32 %v3034_v14, %v4256_v56  ;;  %v3804_v14 = vld [vmem:[%s3936_s9 + $0x1b0] ss:$40 sps:$4 sm:$0xff]  }
  0xfa   : > { %v2988_v22 = vpop.f32.mrf.mxu0  ;;  %v3036_v23 = vpop.f32.mrf.mxu1 }
  0xfb   : > { %v4281_v24 = vadd.f32 %v2988_v22, %v2987_v15  ;;  %v3037_v25 = vadd.f32 %v3036_v23, %v3035_v16  ;;  %v3809_v16 = vld [vmem:[%s3936_s9 + $0x1fc] ss:$40 sps:$4 sm:$0xff]  }
  0xfc   : > { %v2990_v26 = vpop.f32.mrf.mxu0  ;;  %v3038_v27 = vpop.f32.mrf.mxu1  ;;  %2317 = vmatmul.mubr.bf16.gmra.mxu1 %v3787_v17  ;;  %2478 = vmatmul.mubr.bf16.gmra.mxu0 %v3788_v18  ;;  %v3812_v17 = vld [vmem:[%s3936_s9 + $0x204] ss:$40 sps:$4 sm:$0xff]  }
  0xfd   : > { %v4284_v28 = vadd.f32 %v3037_v25, %v4256_v56  ;;  %2324 = vmatprep.mubr.bf16.mxu1 %v3789_v20  ;;  %2485 = vmatprep.mubr.bf16.mxu0 %v3791_v21 }
  0xfe   : > { %v2991_v29 = vpop.f32.mrf.mxu0  ;;  %v3039_v30 = vpop.f32.mrf.mxu1 }
  0xff   : > { %v4286_v31 = vadd.f32 %v2991_v29, %v2990_v26  ;;  %v3040_v32 = vadd.f32 %v3039_v30, %v3038_v27 }
 0x100   : > { %v2993_v33 = vpop.f32.mrf.mxu0  ;;  %v3041_v34 = vpop.f32.mrf.mxu1 }
 0x101   : > { %v4291_v37 = vadd.f32 %v3040_v32, %v4256_v56 }
 0x102   : > { %v2994_v40 = vpop.f32.mrf.mxu0  ;;  %v3042_v41 = vpop.f32.mrf.mxu1 }
 0x103   : > { %v4295_v42 = vadd.f32 %v2994_v40, %v2993_v33  ;;  %v3043_v43 = vadd.f32 %v3042_v41, %v3041_v34  ;;  %v3818_v40 = vld [vmem:[%s3936_s9 + $0x254] ss:$40 sps:$4 sm:$0xff]  }
 0x104   : > { %v2996_v44 = vpop.f32.mrf.mxu0  ;;  %v3044_v45 = vpop.f32.mrf.mxu1  ;;  %2325 = vmatmul.mubr.bf16.gmra.mxu1 %v3793_v35  ;;  %2486 = vmatmul.mubr.bf16.gmra.mxu0 %v3794_v36  ;;  %v3807_v35 = vld [vmem:[%s3936_s9 + $0x1f8] ss:$40 sps:$4 sm:$0xff]  }
 0x105   : > { %v4298_v46 = vadd.f32 %v3043_v43, %v4256_v56  ;;  %2332 = vmatprep.mubr.bf16.mxu1 %v3797_v38  ;;  %2493 = vmatprep.mubr.bf16.mxu0 %v3800_v39  ;;  %v3810_v36 = vld [vmem:[%s3936_s9 + $0x200] ss:$40 sps:$4 sm:$0xff]   ;;  %v3815_v39 = vld [vmem:[%s3936_s9 + $0x24c] ss:$40 sps:$4 sm:$0xff]  }
 0x106   : > { %v2997_v47 = vpop.f32.mrf.mxu0  ;;  %v3045_v48 = vpop.f32.mrf.mxu1 }
 0x107   : > { %v4300_v49 = vadd.f32 %v2997_v47, %v2996_v44  ;;  %v3046_v50 = vadd.f32 %v3045_v48, %v3044_v45 }
 0x108   : > { %v2999_v51 = vpop.f32.mrf.mxu0  ;;  %v3047_v52 = vpop.f32.mrf.mxu1 }
 0x109   : > { %v4305_v55 = vadd.f32 %v3046_v50, %v4256_v56 }
 0x10a   : > { %v3000_v60 = vpop.f32.mrf.mxu0  ;;  %v3048_v61 = vpop.f32.mrf.mxu1 }
 0x10b   : > { %v4309_v62 = vadd.f32 %v3000_v60, %v2999_v51  ;;  %v3049_v63 = vadd.f32 %v3048_v61, %v3047_v52  ;;  %v3813_v60 = vld [vmem:[%s3936_s9 + $0x248] ss:$40 sps:$4 sm:$0xff]  }
 0x10c   : > { %v3002_v0 = vpop.f32.mrf.mxu0  ;;  %v3050_v2 = vpop.f32.mrf.mxu1  ;;  %2333 = vmatmul.mubr.bf16.gmra.mxu1 %v3795_v53  ;;  %2494 = vmatmul.mubr.bf16.gmra.mxu0 %v3798_v54  ;;  %v3816_v61 = vld [vmem:[%s3936_s9 + $0x250] ss:$40 sps:$4 sm:$0xff]  }
 0x10d   : > { %v4312_v3 = vadd.f32 %v3049_v63, %v4256_v56  ;;  %2340 = vmatprep.mubr.bf16.mxu1 %v3803_v57  ;;  %2501 = vmatprep.mubr.bf16.mxu0 %v3806_v58 }
 0x10e   : > { %v3003_v4 = vpop.f32.mrf.mxu0  ;;  %v3051_v5 = vpop.f32.mrf.mxu1 }
 0x10f   : > { %v4314_v7 = vadd.f32 %v3003_v4, %v3002_v0  ;;  %v3052_v8 = vadd.f32 %v3051_v5, %v3050_v2  ;;  %v3821_v0 = vld [vmem:[%s3936_s9 + $0x29c] ss:$40 sps:$4 sm:$0xff]  }
 0x110   : > { %v3005_v9 = vpop.f32.mrf.mxu0  ;;  %v3053_v11 = vpop.f32.mrf.mxu1  ;;  %v3824_v2 = vld [vmem:[%s3936_s9 + $0x2a4] ss:$40 sps:$4 sm:$0xff]  }
 0x111   : > { %v4319_v15 = vadd.f32 %v3052_v8, %v4256_v56 }
 0x112   : > { %v3006_v18 = vpop.f32.mrf.mxu0  ;;  %v3054_v20 = vpop.f32.mrf.mxu1 }
 0x113   : > { %v4323_v21 = vadd.f32 %v3006_v18, %v3005_v9  ;;  %v3055_v22 = vadd.f32 %v3054_v20, %v3053_v11 }
 0x114   : > { %v3008_v23 = vpop.f32.mrf.mxu0  ;;  %v3056_v25 = vpop.f32.mrf.mxu1  ;;  %2341 = vmatmul.mubr.bf16.gmra.mxu1 %v3801_v12  ;;  %2502 = vmatmul.mubr.bf16.gmra.mxu0 %v3804_v14 }
 0x115   : > { %v4326_v26 = vadd.f32 %v3055_v22, %v4256_v56  ;;  %2348 = vmatprep.mubr.bf16.mxu1 %v3809_v16  ;;  %2509 = vmatprep.mubr.bf16.mxu0 %v3812_v17 }
 0x116   : > { %v3009_v27 = vpop.f32.mrf.mxu0  ;;  %v3057_v29 = vpop.f32.mrf.mxu1 }
 0x117   : > { %v4328_v30 = vadd.f32 %v3009_v27, %v3008_v23  ;;  %v3058_v32 = vadd.f32 %v3057_v29, %v3056_v25  ;;  %v3819_v25 = vld [vmem:[%s3936_s9 + $0x298] ss:$40 sps:$4 sm:$0xff]  }
 0x118   : > { %v3011_v33 = vpop.f32.mrf.mxu0  ;;  %v3059_v34 = vpop.f32.mrf.mxu1  ;;  %v3822_v27 = vld [vmem:[%s3936_s9 + $0x2a0] ss:$40 sps:$4 sm:$0xff]  }
 0x119   : > { %v4333_v38 = vadd.f32 %v3058_v32, %v4256_v56  ;;  %v3827_v32 = vld [vmem:[%s3936_s9 + $0x2ec] ss:$40 sps:$4 sm:$0xff]  }
 0x11a   : > { %v3012_v41 = vpop.f32.mrf.mxu0  ;;  %v3060_v43 = vpop.f32.mrf.mxu1 }
 0x11b   : > { %v4337_v44 = vadd.f32 %v3012_v41, %v3011_v33  ;;  %v3061_v45 = vadd.f32 %v3060_v43, %v3059_v34  ;;  %v3830_v33 = vld [vmem:[%s3936_s9 + $0x2f4] ss:$40 sps:$4 sm:$0xff]  }
 0x11c   : > { %v3014_v47 = vpop.f32.mrf.mxu0  ;;  %v3062_v48 = vpop.f32.mrf.mxu1  ;;  %2349 = vmatmul.mubr.bf16.gmra.mxu1 %v3807_v35  ;;  %2510 = vmatmul.mubr.bf16.gmra.mxu0 %v3810_v36 }
 0x11d   : > { %v4340_v50 = vadd.f32 %v3061_v45, %v4256_v56  ;;  %2356 = vmatprep.mubr.bf16.mxu1 %v3815_v39  ;;  %2517 = vmatprep.mubr.bf16.mxu0 %v3818_v40 }
 0x11e   : > { %v3015_v51 = vpop.f32.mrf.mxu0  ;;  %v3063_v52 = vpop.f32.mrf.mxu1 }
 0x11f   : > { %v4342_v53 = vadd.f32 %v3015_v51, %v3014_v47  ;;  %v3064_v54 = vadd.f32 %v3063_v52, %v3062_v48  ;;  %v1820_v48 = vadd.f32 %v4258_v59, %v4256_v56 }
 0x120   : > { %v3017_v57 = vpop.f32.mrf.mxu0  ;;  %v3065_v58 = vpop.f32.mrf.mxu1 }
 0x121   : > { %v4347_v63 = vadd.f32 %v3064_v54, %v4256_v56 }
 0x122   : > { %v3018_v4 = vpop.f32.mrf.mxu0  ;;  %v3066_v5 = vpop.f32.mrf.mxu1 }
 0x123   : > { %v4351_v8 = vadd.f32 %v3018_v4, %v3017_v57  ;;  %v3067_v9 = vadd.f32 %v3066_v5, %v3065_v58  ;;  %v3825_v58 = vld [vmem:[%s3936_s9 + $0x2e8] ss:$40 sps:$4 sm:$0xff]  }
 0x124   : > { %v3020_v11 = vpop.f32.mrf.mxu0  ;;  %v3068_v12 = vpop.f32.mrf.mxu1  ;;  %2357 = vmatmul.mubr.bf16.gmra.mxu1 %v3813_v60  ;;  %2518 = vmatmul.mubr.bf16.gmra.mxu0 %v3816_v61  ;;  %v3828_v60 = vld [vmem:[%s3936_s9 + $0x2f0] ss:$40 sps:$4 sm:$0xff]  }
 0x125   : > { %v4354_v14 = vadd.f32 %v3067_v9, %v4256_v56  ;;  %2364 = vmatprep.mubr.bf16.mxu1 %v3821_v0  ;;  %2525 = vmatprep.mubr.bf16.mxu0 %v3824_v2  ;;  %v3833_v0 = vld [vmem:[%s3936_s9 + $0x33c] ss:$40 sps:$4 sm:$0xff]   ;;  %v1823_v9 = vadd.f32 %v4267_v6, %v4256_v56  ;;  %v1828_v6 = vadd.f32 %v4272_v13, %v4256_v56 }
 0x126   : > { %v3021_v16 = vpop.f32.mrf.mxu0  ;;  %v3069_v17 = vpop.f32.mrf.mxu1  ;;  %v3836_v2 = vld [vmem:[%s3936_s9 + $0x344] ss:$40 sps:$4 sm:$0xff]  }
 0x127   : > { %v4356_v18 = vadd.f32 %v3021_v16, %v3020_v11  ;;  %v3070_v20 = vadd.f32 %v3069_v17, %v3068_v12 }
 0x128   : > { %v3023_v22 = vpop.f32.mrf.mxu0  ;;  %v3071_v23 = vpop.f32.mrf.mxu1 }
 0x129   : > { %v4361_v29 = vadd.f32 %v3070_v20, %v4256_v56 }
 0x12a   : > { %v3024_v34 = vpop.f32.mrf.mxu0  ;;  %v3072_v35 = vpop.f32.mrf.mxu1 }
 0x12b   : > { %v4365_v36 = vadd.f32 %v3024_v34, %v3023_v22  ;;  %v3073_v39 = vadd.f32 %v3072_v35, %v3071_v23  ;;  %v3831_v35 = vld [vmem:[%s3936_s9 + $0x338] ss:$40 sps:$4 sm:$0xff]  }
 0x12c   : > { %v3090_v40 = vpop.f32.mrf.mxu1  ;;  %v3202_v41 = vpop.f32.mrf.mxu0  ;;  %2365 = vmatmul.mubr.bf16.gmra.mxu1 %v3819_v25  ;;  %2526 = vmatmul.mubr.bf16.gmra.mxu0 %v3822_v27 }
 0x12d   : > { %v4368_v43 = vadd.f32 %v3073_v39, %v4256_v56  ;;  %2372 = vmatprep.mubr.bf16.mxu1 %v3827_v32  ;;  %2533 = vmatprep.mubr.bf16.mxu0 %v3830_v33  ;;  %v3834_v39 = vld [vmem:[%s3936_s9 + $0x340] ss:$40 sps:$4 sm:$0xff]  }
 0x12e   : > { %v3091_v45 = vpop.f32.mrf.mxu1  ;;  %v3203_v47 = vpop.f32.mrf.mxu0 }
 0x12f   : > { %v3092_v51 = vadd.f32 %v3091_v45, %v3090_v40  ;;  %v3204_v52 = vadd.f32 %v3203_v47, %v3202_v41  ;;  %v3839_v41 = vld [vmem:[%s3936_s9 + $0x38c] ss:$40 sps:$4 sm:$0xff]  }
 0x130   : > { %v3093_v54 = vpop.f32.mrf.mxu1  ;;  %v3205_v57 = vpop.f32.mrf.mxu0  ;;  %v3842_v45 = vld [vmem:[%s3936_s9 + $0x394] ss:$40 sps:$4 sm:$0xff]  }
 0x131   : > { %v1981_v61 = vadd.f32 %v3092_v51, %v1820_v48  ;;  %v1831_v51 = vadd.f32 %v4281_v24, %v4256_v56  ;;  %v1836_v24 = vadd.f32 %v4286_v31, %v4256_v56 }
 0x132   : > { %v3094_v4 = vpop.f32.mrf.mxu1  ;;  %v3206_v5 = vpop.f32.mrf.mxu0 }
 0x133   : > { %v4378_v11 = vadd.f32 %v3204_v52, %v1981_v61  ;;  %v3095_v12 = vadd.f32 %v3094_v4, %v3093_v54  ;;  %v3207_v16 = vadd.f32 %v3206_v5, %v3205_v57 }
 0x134   : > { %v3096_v59 = vpop.f32.mrf.mxu1  ;;  %v3208_v17 = vpop.f32.mrf.mxu0  ;;  %2373 = vmatmul.mubr.bf16.gmra.mxu1 %v3825_v58  ;;  %2534 = vmatmul.mubr.bf16.gmra.mxu0 %v3828_v60 }
 0x135   : > { %v1984_v20 = vadd.f32 %v3095_v12, %v1823_v9  ;;  %2380 = vmatprep.mubr.bf16.mxu1 %v3833_v0  ;;  %2541 = vmatprep.mubr.bf16.mxu0 %v3836_v2 }
 0x136   : > { %v3097_v22 = vpop.f32.mrf.mxu1  ;;  %v3209_v23 = vpop.f32.mrf.mxu0 }
 0x137   : > { %v4382_v25 = vadd.f32 %v3207_v16, %v1984_v20  ;;  %v3098_v27 = vadd.f32 %v3097_v22, %v3096_v59  ;;  %v3210_v32 = vadd.f32 %v3209_v23, %v3208_v17  ;;  %v3837_v16 = vld [vmem:[%s3936_s9 + $0x388] ss:$40 sps:$4 sm:$0xff]   ;;  %v3845_v20 = vld [vmem:[%s3936_s9 + $0x3dc] ss:$40 sps:$4 sm:$0xff]  }
 0x138   : > { %v3099_v33 = vpop.f32.mrf.mxu1  ;;  %v3211_v34 = vpop.f32.mrf.mxu0  ;;  %v3840_v59 = vld [vmem:[%s3936_s9 + $0x390] ss:$40 sps:$4 sm:$0xff]   ;;  %v3848_v22 = vld [vmem:[%s3936_s9 + $0x3e4] ss:$40 sps:$4 sm:$0xff]  }
 0x139   : > { %v1989_v40 = vadd.f32 %v3098_v27, %v1828_v6  ;;  %v1839_v27 = vadd.f32 %v4295_v42, %v4256_v56  ;;  %v1844_v42 = vadd.f32 %v4300_v49, %v4256_v56 }
 0x13a   : > { %v3100_v47 = vpop.f32.mrf.mxu1  ;;  %v3212_v48 = vpop.f32.mrf.mxu0 }
 0x13b   : > { %v4390_v52 = vadd.f32 %v3210_v32, %v1989_v40  ;;  %v3101_v54 = vadd.f32 %v3100_v47, %v3099_v33  ;;  %v3213_v13 = vadd.f32 %v3212_v48, %v3211_v34 }
 0x13c   : > { %v3102_v57 = vpop.f32.mrf.mxu1  ;;  %v3214_v58 = vpop.f32.mrf.mxu0  ;;  %2381 = vmatmul.mubr.bf16.gmra.mxu1 %v3831_v35  ;;  %2542 = vmatmul.mubr.bf16.gmra.mxu0 %v3834_v39 }
 0x13d   : > { %v1992_v60 = vadd.f32 %v3101_v54, %v1831_v51  ;;  %2388 = vmatprep.mubr.bf16.mxu1 %v3839_v41  ;;  %2549 = vmatprep.mubr.bf16.mxu0 %v3842_v45 }
 0x13e   : > { %v3103_v61 = vpop.f32.mrf.mxu1  ;;  %v3215_v0 = vpop.f32.mrf.mxu0 }
 0x13f   : > { %v4394_v2 = vadd.f32 %v3213_v13, %v1992_v60  ;;  %v3104_v4 = vadd.f32 %v3103_v61, %v3102_v57  ;;  %v3216_v5 = vadd.f32 %v3215_v0, %v3214_v58  ;;  %v3843_v13 = vld [vmem:[%s3936_s9 + $0x3d8] ss:$40 sps:$4 sm:$0xff]   ;;  %v3851_v60 = vld [vmem:[%s3936_s9 + $0x42c] ss:$40 sps:$4 sm:$0xff]  }
 0x140   : > { %v3105_v9 = vpop.f32.mrf.mxu1  ;;  %v3217_v12 = vpop.f32.mrf.mxu0  ;;  %v3846_v57 = vld [vmem:[%s3936_s9 + $0x3e0] ss:$40 sps:$4 sm:$0xff]   ;;  %v3854_v61 = vld [vmem:[%s3936_s9 + $0x434] ss:$40 sps:$4 sm:$0xff]  }
 0x141   : > { %v1997_v17 = vadd.f32 %v3104_v4, %v1836_v24  ;;  %v1847_v4 = vadd.f32 %v4309_v62, %v4256_v56  ;;  %v1852_v62 = vadd.f32 %v4314_v7, %v4256_v56 }
 0x142   : > { %v3106_v23 = vpop.f32.mrf.mxu1  ;;  %v3218_v6 = vpop.f32.mrf.mxu0 }
 0x143   : > { %v4402_v32 = vadd.f32 %v3216_v5, %v1997_v17  ;;  %v3107_v33 = vadd.f32 %v3106_v23, %v3105_v9  ;;  %v3219_v31 = vadd.f32 %v3218_v6, %v3217_v12 }
 0x144   : > { %v3108_v34 = vpop.f32.mrf.mxu1  ;;  %v3220_v35 = vpop.f32.mrf.mxu0  ;;  %2389 = vmatmul.mubr.bf16.gmra.mxu1 %v3837_v16  ;;  %2550 = vmatmul.mubr.bf16.gmra.mxu0 %v3840_v59 }
 0x145   : > { %v2000_v39 = vadd.f32 %v3107_v33, %v1839_v27  ;;  %2396 = vmatprep.mubr.bf16.mxu1 %v3845_v20  ;;  %2557 = vmatprep.mubr.bf16.mxu0 %v3848_v22 }
 0x146   : > { %v3109_v40 = vpop.f32.mrf.mxu1  ;;  %v3221_v41 = vpop.f32.mrf.mxu0 }
 0x147   : > { %v4406_v45 = vadd.f32 %v3219_v31, %v2000_v39  ;;  %v3110_v47 = vadd.f32 %v3109_v40, %v3108_v34  ;;  %v3222_v48 = vadd.f32 %v3221_v41, %v3220_v35  ;;  %v3849_v31 = vld [vmem:[%s3936_s9 + $0x428] ss:$40 sps:$4 sm:$0xff]   ;;  %v3857_v39 = vld [vmem:[%s3936_s9 + $0x47c] ss:$40 sps:$4 sm:$0xff]  }
 0x148   : > { %v3111_v51 = vpop.f32.mrf.mxu1  ;;  %v3223_v54 = vpop.f32.mrf.mxu0  ;;  %v3852_v34 = vld [vmem:[%s3936_s9 + $0x430] ss:$40 sps:$4 sm:$0xff]   ;;  %v3860_v40 = vld [vmem:[%s3936_s9 + $0x484] ss:$40 sps:$4 sm:$0xff]  }
 0x149   : > { %v2005_v58 = vadd.f32 %v3110_v47, %v1844_v42  ;;  %v1855_v47 = vadd.f32 %v4323_v21, %v4256_v56  ;;  %v1860_v21 = vadd.f32 %v4328_v30, %v4256_v56 }
 0x14a   : > { %v3112_v0 = vpop.f32.mrf.mxu1  ;;  %v3224_v24 = vpop.f32.mrf.mxu0 }
 0x14b   : > { %v4414_v5 = vadd.f32 %v3222_v48, %v2005_v58  ;;  %v3113_v9 = vadd.f32 %v3112_v0, %v3111_v51  ;;  %v3225_v49 = vadd.f32 %v3224_v24, %v3223_v54 }
 0x14c   : > { %v3114_v12 = vpop.f32.mrf.mxu1  ;;  %v3226_v16 = vpop.f32.mrf.mxu0  ;;  %2397 = vmatmul.mubr.bf16.gmra.mxu1 %v3843_v13  ;;  %2558 = vmatmul.mubr.bf16.gmra.mxu0 %v3846_v57 }
 0x14d   : > { %v2008_v59 = vadd.f32 %v3113_v9, %v1847_v4  ;;  %2404 = vmatprep.mubr.bf16.mxu1 %v3851_v60  ;;  %2565 = vmatprep.mubr.bf16.mxu0 %v3854_v61 }
 0x14e   : > { %v3115_v17 = vpop.f32.mrf.mxu1  ;;  %v3227_v20 = vpop.f32.mrf.mxu0 }
 0x14f   : > { %v4418_v22 = vadd.f32 %v3225_v49, %v2008_v59  ;;  %v3116_v23 = vadd.f32 %v3115_v17, %v3114_v12  ;;  %v3228_v6 = vadd.f32 %v3227_v20, %v3226_v16  ;;  %v3855_v49 = vld [vmem:[%s3936_s9 + $0x478] ss:$40 sps:$4 sm:$0xff]   ;;  %v3863_v59 = vld [vmem:[%s3936_s9 + $0x4cc] ss:$40 sps:$4 sm:$0xff]  }
 0x150   : > { %v3117_v27 = vpop.f32.mrf.mxu1  ;;  %v3229_v33 = vpop.f32.mrf.mxu0  ;;  %v3858_v12 = vld [vmem:[%s3936_s9 + $0x480] ss:$40 sps:$4 sm:$0xff]   ;;  %v3866_v17 = vld [vmem:[%s3936_s9 + $0x4d4] ss:$40 sps:$4 sm:$0xff]  }
 0x151   : > { %v2013_v35 = vadd.f32 %v3116_v23, %v1852_v62  ;;  %v1863_v23 = vadd.f32 %v4337_v44, %v4256_v56 }
 0x152   : > { %v3118_v41 = vpop.f32.mrf.mxu1  ;;  %v3230_v42 = vpop.f32.mrf.mxu0 }
 0x153   : > { %v4426_v48 = vadd.f32 %v3228_v6, %v2013_v35  ;;  %v3119_v51 = vadd.f32 %v3118_v41, %v3117_v27  ;;  %v3231_v7 = vadd.f32 %v3230_v42, %v3229_v33 }
 0x154   : > { %v3120_v54 = vpop.f32.mrf.mxu1  ;;  %v3232_v13 = vpop.f32.mrf.mxu0  ;;  %2405 = vmatmul.mubr.bf16.gmra.mxu1 %v3849_v31  ;;  %2566 = vmatmul.mubr.bf16.gmra.mxu0 %v3852_v34 }
 0x155   : > { %v2016_v57 = vadd.f32 %v3119_v51, %v1855_v47  ;;  %2412 = vmatprep.mubr.bf16.mxu1 %v3857_v39  ;;  %2573 = vmatprep.mubr.bf16.mxu0 %v3860_v40  ;;  %v1868_v40 = vadd.f32 %v4342_v53, %v4256_v56 }
 0x156   : > { %v3121_v58 = vpop.f32.mrf.mxu1  ;;  %v3233_v60 = vpop.f32.mrf.mxu0 }
 0x157   : > { %v4430_v61 = vadd.f32 %v3231_v7, %v2016_v57  ;;  %v3122_v0 = vadd.f32 %v3121_v58, %v3120_v54  ;;  %v3234_v24 = vadd.f32 %v3233_v60, %v3232_v13  ;;  %v3861_v7 = vld [vmem:[%s3936_s9 + $0x4c8] ss:$40 sps:$4 sm:$0xff]   ;;  %v1871_v60 = vadd.f32 %v4351_v8, %v4256_v56 }
 0x158   : > { %v3123_v4 = vpop.f32.mrf.mxu1  ;;  %v3235_v9 = vpop.f32.mrf.mxu0  ;;  %v3864_v54 = vld [vmem:[%s3936_s9 + $0x4d0] ss:$40 sps:$4 sm:$0xff]   ;;  %s2718_s9 = sshll.u32 %s4586_s16, 3 }
 0x159   : > { %v2021_v16 = vadd.f32 %v3122_v0, %v1860_v21  ;;  %s4513_s13 = scalar_lea.vmem %s4584_s3, %s2718_s9 }
 0x15a   : > { %v3124_v20 = vpop.f32.mrf.mxu1  ;;  %v3236_v62 = vpop.f32.mrf.mxu0 }
 0x15b   : > { %v4438_v6 = vadd.f32 %v3234_v24, %v2021_v16  ;;  %v3125_v27 = vadd.f32 %v3124_v20, %v3123_v4  ;;  %v3237_v30 = vadd.f32 %v3236_v62, %v3235_v9  ;;  %v1876_v16 = vadd.f32 %v4356_v18, %v4256_v56 }
 0x15c   : > { %v3126_v33 = vpop.f32.mrf.mxu1  ;;  %v3238_v31 = vpop.f32.mrf.mxu0  ;;  %2413 = vmatmul.mubr.bf16.gmra.mxu1 %v3855_v49  ;;  %2574 = vmatmul.mubr.bf16.gmra.mxu0 %v3858_v12 }
 0x15d   : > { %v2024_v34 = vadd.f32 %v3125_v27, %v1863_v23  ;;  %2420 = vmatprep.mubr.bf16.mxu1 %v3863_v59  ;;  %2581 = vmatprep.mubr.bf16.mxu0 %v3866_v17 }
 0x15e   : > { %v3127_v35 = vpop.f32.mrf.mxu1  ;;  %v3239_v39 = vpop.f32.mrf.mxu0 }
 0x15f   : > { %v4442_v41 = vadd.f32 %v3237_v30, %v2024_v34  ;;  %v3128_v44 = vadd.f32 %v3127_v35, %v3126_v33  ;;  %v3240_v42 = vadd.f32 %v3239_v39, %v3238_v31  ;;  %v1879_v33 = vadd.f32 %v4365_v36, %v4256_v56 }
 0x160   : > { %v3129_v47 = vpop.f32.mrf.mxu1  ;;  %v3241_v51 = vpop.f32.mrf.mxu0 }
 0x161   : > { %v2029_v13 = vadd.f32 %v3128_v44, %v1868_v40 }
 0x162   : > { %v3130_v57 = vpop.f32.mrf.mxu1  ;;  %v3242_v58 = vpop.f32.mrf.mxu0 }
 0x163   : > { %v4448_v21 = vadd.f32 %v3240_v42, %v2029_v13  ;;  %v3131_v0 = vadd.f32 %v3130_v57, %v3129_v47  ;;  %v3243_v24 = vadd.f32 %v3242_v58, %v3241_v51 }
 0x164   : > { %v3132_v4 = vpop.f32.mrf.mxu1  ;;  %v3244_v53 = vpop.f32.mrf.mxu0  ;;  %2421 = vmatmul.mubr.bf16.gmra.mxu1 %v3861_v7  ;;  %2582 = vmatmul.mubr.bf16.gmra.mxu0 %v3864_v54 }
 0x165   : > { %v2032_v9 = vadd.f32 %v3131_v0, %v1871_v60 }
 0x166   : > { %v3133_v49 = vpop.f32.mrf.mxu1  ;;  %v3245_v12 = vpop.f32.mrf.mxu0 }
 0x167   : > { %v4452_v59 = vadd.f32 %v3243_v24, %v2032_v9  ;;  %v3134_v17 = vadd.f32 %v3133_v49, %v3132_v4  ;;  %v3246_v20 = vadd.f32 %v3245_v12, %v3244_v53 }
 0x168   : > { %v3135_v62 = vpop.f32.mrf.mxu1  ;;  %v3247_v8 = vpop.f32.mrf.mxu0 }
 0x169   : > { %v2037_v23 = vadd.f32 %v3134_v17, %v1876_v16 }
 0x16a   : > { %v3136_v27 = vpop.f32.mrf.mxu1  ;;  %v3248_v30 = vpop.f32.mrf.mxu0 }
 0x16b   : > { %v4456_v31 = vadd.f32 %v3246_v20, %v2037_v23  ;;  %v3137_v34 = vadd.f32 %v3136_v27, %v3135_v62  ;;  %v3249_v35 = vadd.f32 %v3248_v30, %v3247_v8 }
 0x16c   : > { %v3138_v39 = vpop.f32.mrf.mxu1  ;;  %v3250_v40 = vpop.f32.mrf.mxu0 }
 0x16d   : > { %v2040_v44 = vadd.f32 %v3137_v34, %v1879_v33 }
 0x16e   : > { %v3139_v18 = vpop.f32.mrf.mxu1  ;;  %v3251_v42 = vpop.f32.mrf.mxu0 }
 0x16f   : > { %v4458_v47 = vadd.f32 %v3249_v35, %v2040_v44  ;;  %v3140_v51 = vadd.f32 %v3139_v18, %v3138_v39  ;;  %v3252_v7 = vadd.f32 %v3251_v42, %v3250_v40 }
 0x170   : > { %v3141_v54 = vpop.f32.mrf.mxu1  ;;  %v3253_v13 = vpop.f32.mrf.mxu0 }
 0x171   : > { %v2045_v57 = vadd.f32 %v3140_v51, %v4263_v1 }
 0x172   : > { %v3142_v58 = vpop.f32.mrf.mxu1  ;;  %v3254_v60 = vpop.f32.mrf.mxu0 }
 0x173   : > { %v4461_v56 = vadd.f32 %v3252_v7, %v2045_v57  ;;  %v3143_v36 = vadd.f32 %v3142_v58, %v3141_v54  ;;  %v3255_v0 = vadd.f32 %v3254_v60, %v3253_v13 }
 0x174   : > { %v3144_v24 = vpop.f32.mrf.mxu1  ;;  %v3256_v4 = vpop.f32.mrf.mxu0 }
 0x175   : > { %v2048_v53 = vadd.f32 %v3143_v36, %v4270_v10 }
 0x176   : > { %v3145_v9 = vpop.f32.mrf.mxu1  ;;  %v3257_v49 = vpop.f32.mrf.mxu0 }
 0x177   : > { %v4464_v12 = vadd.f32 %v3255_v0, %v2048_v53  ;;  %v3146_v16 = vadd.f32 %v3145_v9, %v3144_v24  ;;  %v3258_v17 = vadd.f32 %v3257_v49, %v3256_v4 }
 0x178   : > { %v3147_v20 = vpop.f32.mrf.mxu1  ;;  %v3259_v62 = vpop.f32.mrf.mxu0 }
 0x179   : > { %v2053_v1 = vadd.f32 %v3146_v16, %v4277_v19 }
 0x17a   : > { %v3148_v8 = vpop.f32.mrf.mxu1  ;;  %v3260_v23 = vpop.f32.mrf.mxu0 }
 0x17b   : > { %v4467_v27 = vadd.f32 %v3258_v17, %v2053_v1  ;;  %v3149_v30 = vadd.f32 %v3148_v8, %v3147_v20  ;;  %v3261_v33 = vadd.f32 %v3260_v23, %v3259_v62 }
 0x17c   : > { %v3150_v34 = vpop.f32.mrf.mxu1  ;;  %v3262_v35 = vpop.f32.mrf.mxu0 }
 0x17d   : > { %v2056_v10 = vadd.f32 %v3149_v30, %v4284_v28 }
 0x17e   : > { %v3151_v39 = vpop.f32.mrf.mxu1  ;;  %v3263_v40 = vpop.f32.mrf.mxu0 }
 0x17f   : > { %v4470_v44 = vadd.f32 %v3261_v33, %v2056_v10  ;;  %v3152_v18 = vadd.f32 %v3151_v39, %v3150_v34  ;;  %v3264_v42 = vadd.f32 %v3263_v40, %v3262_v35 }
 0x180   : > { %v3153_v51 = vpop.f32.mrf.mxu1  ;;  %v3265_v7 = vpop.f32.mrf.mxu0 }
 0x181   : > { %v2061_v19 = vadd.f32 %v3152_v18, %v4291_v37 }
 0x182   : > { %v3154_v54 = vpop.f32.mrf.mxu1  ;;  %v3266_v13 = vpop.f32.mrf.mxu0 }
 0x183   : > { %v4473_v57 = vadd.f32 %v3264_v42, %v2061_v19  ;;  %v3155_v58 = vadd.f32 %v3154_v54, %v3153_v51  ;;  %v3267_v60 = vadd.f32 %v3266_v13, %v3265_v7 }
 0x184   : > { %v3156_v36 = vpop.f32.mrf.mxu1  ;;  %v3268_v0 = vpop.f32.mrf.mxu0 }
 0x185   : > { %v2064_v28 = vadd.f32 %v3155_v58, %v4298_v46 }
 0x186   : > { %v3157_v24 = vpop.f32.mrf.mxu1  ;;  %v3269_v4 = vpop.f32.mrf.mxu0 }
 0x187   : > { %v4476_v53 = vadd.f32 %v3267_v60, %v2064_v28  ;;  %v3158_v9 = vadd.f32 %v3157_v24, %v3156_v36  ;;  %v3270_v49 = vadd.f32 %v3269_v4, %v3268_v0 }
 0x188   : > { %v3159_v16 = vpop.f32.mrf.mxu1  ;;  %v3271_v17 = vpop.f32.mrf.mxu0 }
 0x189   : > { %v2069_v37 = vadd.f32 %v3158_v9, %v4305_v55 }
 0x18a   : > { %v3160_v20 = vpop.f32.mrf.mxu1  ;;  %v3272_v62 = vpop.f32.mrf.mxu0 }
 0x18b   : > { %v4479_v1 = vadd.f32 %v3270_v49, %v2069_v37  ;;  %v3161_v8 = vadd.f32 %v3160_v20, %v3159_v16  ;;  %v3273_v23 = vadd.f32 %v3272_v62, %v3271_v17 }
 0x18c   : > { %v3162_v30 = vpop.f32.mrf.mxu1  ;;  %v3274_v33 = vpop.f32.mrf.mxu0 }
 0x18d   : > { %v2072_v46 = vadd.f32 %v3161_v8, %v4312_v3 }
 0x18e   : > { %v3163_v34 = vpop.f32.mrf.mxu1  ;;  %v3275_v35 = vpop.f32.mrf.mxu0 }
 0x18f   : > { %v4482_v10 = vadd.f32 %v3273_v23, %v2072_v46  ;;  %v3164_v39 = vadd.f32 %v3163_v34, %v3162_v30  ;;  %v3276_v40 = vadd.f32 %v3275_v35, %v3274_v33 }
 0x190   : > { %v3165_v18 = vpop.f32.mrf.mxu1  ;;  %v3277_v42 = vpop.f32.mrf.mxu0 }
 0x191   : > { %v2077_v55 = vadd.f32 %v3164_v39, %v4319_v15 }
 0x192   : > { %v3166_v51 = vpop.f32.mrf.mxu1  ;;  %v3278_v7 = vpop.f32.mrf.mxu0 }
 0x193   : > { %v4485_v19 = vadd.f32 %v3276_v40, %v2077_v55  ;;  %v3167_v54 = vadd.f32 %v3166_v51, %v3165_v18  ;;  %v3279_v13 = vadd.f32 %v3278_v7, %v3277_v42 }
 0x194   : > { %v3168_v58 = vpop.f32.mrf.mxu1  ;;  %v3280_v60 = vpop.f32.mrf.mxu0 }
 0x195   : > { %v2080_v3 = vadd.f32 %v3167_v54, %v4326_v26 }
 0x196   : > { %v3169_v36 = vpop.f32.mrf.mxu1  ;;  %v3281_v0 = vpop.f32.mrf.mxu0 }
 0x197   : > { %v4488_v28 = vadd.f32 %v3279_v13, %v2080_v3  ;;  %v3170_v24 = vadd.f32 %v3169_v36, %v3168_v58  ;;  %v3282_v4 = vadd.f32 %v3281_v0, %v3280_v60 }
 0x198   : > { %v3171_v9 = vpop.f32.mrf.mxu1  ;;  %v3283_v49 = vpop.f32.mrf.mxu0 }
 0x199   : > { %v2085_v15 = vadd.f32 %v3170_v24, %v4333_v38 }
 0x19a   : > { %v3172_v16 = vpop.f32.mrf.mxu1  ;;  %v3284_v17 = vpop.f32.mrf.mxu0 }
 0x19b   : > { %v4491_v37 = vadd.f32 %v3282_v4, %v2085_v15  ;;  %v3173_v20 = vadd.f32 %v3172_v16, %v3171_v9  ;;  %v3285_v62 = vadd.f32 %v3284_v17, %v3283_v49 }
 0x19c   : > { %v3174_v8 = vpop.f32.mrf.mxu1  ;;  %v3286_v23 = vpop.f32.mrf.mxu0 }
 0x19d   : > { %v2088_v26 = vadd.f32 %v3173_v20, %v4340_v50 }
 0x19e   : > { %v3175_v30 = vpop.f32.mrf.mxu1  ;;  %v3287_v33 = vpop.f32.mrf.mxu0 }
 0x19f   : > { %v4494_v46 = vadd.f32 %v3285_v62, %v2088_v26  ;;  %v3176_v34 = vadd.f32 %v3175_v30, %v3174_v8  ;;  %v3288_v35 = vadd.f32 %v3287_v33, %v3286_v23 }
 0x1a0   : > { %v3177_v39 = vpop.f32.mrf.mxu1  ;;  %v3289_v40 = vpop.f32.mrf.mxu0 }
 0x1a1   : > { %v2093_v38 = vadd.f32 %v3176_v34, %v4347_v63 }
 0x1a2   : > { %v3178_v18 = vpop.f32.mrf.mxu1  ;;  %v3290_v42 = vpop.f32.mrf.mxu0 }
 0x1a3   : > { %v4497_v55 = vadd.f32 %v3288_v35, %v2093_v38  ;;  %v3179_v51 = vadd.f32 %v3178_v18, %v3177_v39  ;;  %v3291_v7 = vadd.f32 %v3290_v42, %v3289_v40 }
 0x1a4   : > { %v3180_v54 = vpop.f32.mrf.mxu1  ;;  %v3292_v13 = vpop.f32.mrf.mxu0 }
 0x1a5   : > { %v2096_v50 = vadd.f32 %v3179_v51, %v4354_v14 }
 0x1a6   : > { %v3181_v58 = vpop.f32.mrf.mxu1  ;;  %v3293_v60 = vpop.f32.mrf.mxu0 }
 0x1a7   : > { %v4500_v3 = vadd.f32 %v3291_v7, %v2096_v50  ;;  %v3182_v36 = vadd.f32 %v3181_v58, %v3180_v54  ;;  %v3294_v0 = vadd.f32 %v3293_v60, %v3292_v13 }
 0x1a8   : > { %v3183_v24 = vpop.f32.mrf.mxu1  ;;  %v3295_v4 = vpop.f32.mrf.mxu0 }
 0x1a9   : > { %v2101_v63 = vadd.f32 %v3182_v36, %v4361_v29 }
 0x1aa   : > { %v3184_v9 = vpop.f32.mrf.mxu1  ;;  %v3296_v49 = vpop.f32.mrf.mxu0 }
 0x1ab   : > { %v4503_v15 = vadd.f32 %v3294_v0, %v2101_v63  ;;  %v3185_v16 = vadd.f32 %v3184_v9, %v3183_v24  ;;  %v3297_v17 = vadd.f32 %v3296_v49, %v3295_v4 }
 0x1ac   : > { %v3314_v20 = vpop.f32.mrf.mxu1  ;;  %v3426_v62 = vpop.f32.mrf.mxu0 }
 0x1ad   : > { %v2104_v14 = vadd.f32 %v3185_v16, %v4368_v43 }
 0x1ae   : > { %v3315_v8 = vpop.f32.mrf.mxu1  ;;  %v3427_v23 = vpop.f32.mrf.mxu0 }
 0x1af   : > { %v4506_v26 = vadd.f32 %v3297_v17, %v2104_v14  ;;  %v3316_v30 = vadd.f32 %v3315_v8, %v3314_v20  ;;  %v3428_v35 = vadd.f32 %v3427_v23, %v3426_v62 }
 0x1b0   : > { %v3317_v33 = vpop.f32.mrf.mxu1  ;;  %v3429_v34 = vpop.f32.mrf.mxu0 }
 0x1b1   : > { %v2303_v29 = vadd.f32 %v3316_v30, %v4378_v11 }
 0x1b2   : > { %v3318_v39 = vpop.f32.mrf.mxu1  ;;  %v3430_v40 = vpop.f32.mrf.mxu0 }
 0x1b3   : > { %v2464_v38 = vadd.f32 %v3428_v35, %v2303_v29  ;;  %v3319_v18 = vadd.f32 %v3318_v39, %v3317_v33  ;;  %v3431_v54 = vadd.f32 %v3430_v40, %v3429_v34 }
 0x1b4   : > { %v3320_v43 = vpop.f32.mrf.mxu1  ;;  %v3432_v42 = vpop.f32.mrf.mxu0 }
 0x1b5   : > { %v2590_v51 = vmax.f32 %v2464_v38, 0.0  ;;  %v2306_v7 = vadd.f32 %v3319_v18, %v4382_v25 }
 0x1b6   : > { %v3321_v11 = vpop.f32.mrf.mxu1  ;;  %v3433_v13 = vpop.f32.mrf.mxu0 }
 0x1b7   : > { %2622 = vst [vmem:[%s4513_s13] sm:$0xff] %v2590_v51  ;;  %v2467_v50 = vadd.f32 %v3431_v54, %v2306_v7  ;;  %v3322_v58 = vadd.f32 %v3321_v11, %v3320_v43  ;;  %v3434_v4 = vadd.f32 %v3433_v13, %v3432_v42 }
 0x1b8   : > { %v3323_v60 = vpop.f32.mrf.mxu1  ;;  %v3435_v36 = vpop.f32.mrf.mxu0 }
 0x1b9   : > { %v2591_v0 = vmax.f32 %v2467_v50, 0.0  ;;  %v2311_v24 = vadd.f32 %v3322_v58, %v4390_v52 }
 0x1ba   : > { %v3324_v63 = vpop.f32.mrf.mxu1  ;;  %v3436_v9 = vpop.f32.mrf.mxu0 }
 0x1bb   : > { %2623 = vst [vmem:[%s4513_s13 + $0x8] sm:$0xff] %v2591_v0  ;;  %v2472_v49 = vadd.f32 %v3434_v4, %v2311_v24  ;;  %v3325_v16 = vadd.f32 %v3324_v63, %v3323_v60  ;;  %v3437_v14 = vadd.f32 %v3436_v9, %v3435_v36 }
 0x1bc   : > { %v3326_v17 = vpop.f32.mrf.mxu1  ;;  %v3438_v25 = vpop.f32.mrf.mxu0 }
 0x1bd   : > { %v2592_v20 = vmax.f32 %v2472_v49, 0.0  ;;  %v2314_v62 = vadd.f32 %v3325_v16, %v4394_v2 }
 0x1be   : > { %v3327_v8 = vpop.f32.mrf.mxu1  ;;  %v3439_v23 = vpop.f32.mrf.mxu0 }
 0x1bf   : > { %2624 = vst [vmem:[%s4513_s13 + $0x10] sm:$0xff] %v2592_v20  ;;  %v2475_v30 = vadd.f32 %v3437_v14, %v2314_v62  ;;  %v3328_v33 = vadd.f32 %v3327_v8, %v3326_v17  ;;  %v3440_v39 = vadd.f32 %v3439_v23, %v3438_v25 }
 0x1c0   : > { %v3329_v34 = vpop.f32.mrf.mxu1  ;;  %v3441_v52 = vpop.f32.mrf.mxu0 }
 0x1c1   : > { %v2593_v29 = vmax.f32 %v2475_v30, 0.0  ;;  %v2319_v35 = vadd.f32 %v3328_v33, %v4402_v32 }
 0x1c2   : > { %v3330_v40 = vpop.f32.mrf.mxu1  ;;  %v3442_v38 = vpop.f32.mrf.mxu0 }
 0x1c3   : > { %2625 = vst [vmem:[%s4513_s13 + $0x18] sm:$0xff] %v2593_v29  ;;  %v2480_v18 = vadd.f32 %v3440_v39, %v2319_v35  ;;  %v3331_v43 = vadd.f32 %v3330_v40, %v3329_v34  ;;  %v3443_v54 = vadd.f32 %v3442_v38, %v3441_v52 }
 0x1c4   : > { %v3332_v42 = vpop.f32.mrf.mxu1  ;;  %v3444_v2 = vpop.f32.mrf.mxu0 }
 0x1c5   : > { %v2594_v51 = vmax.f32 %v2480_v18, 0.0  ;;  %v2322_v7 = vadd.f32 %v3331_v43, %v4406_v45 }
 0x1c6   : > { %v3333_v11 = vpop.f32.mrf.mxu1  ;;  %v3445_v13 = vpop.f32.mrf.mxu0 }
 0x1c7   : > { %2626 = vst [vmem:[%s4513_s13 + $0x20] sm:$0xff] %v2594_v51  ;;  %v2483_v50 = vadd.f32 %v3443_v54, %v2322_v7  ;;  %v3334_v58 = vadd.f32 %v3333_v11, %v3332_v42  ;;  %v3446_v24 = vadd.f32 %v3445_v13, %v3444_v2 }
 0x1c8   : > { %v3335_v60 = vpop.f32.mrf.mxu1  ;;  %v3447_v32 = vpop.f32.mrf.mxu0 }
 0x1c9   : > { %v2595_v36 = vmax.f32 %v2483_v50, 0.0  ;;  %v2327_v0 = vadd.f32 %v3334_v58, %v4414_v5 }
 0x1ca   : > { %v3336_v4 = vpop.f32.mrf.mxu1  ;;  %v3448_v63 = vpop.f32.mrf.mxu0 }
 0x1cb   : > { %2627 = vst [vmem:[%s4513_s13 + $0x28] sm:$0xff] %v2595_v36  ;;  %v2488_v9 = vadd.f32 %v3446_v24, %v2327_v0  ;;  %v3337_v49 = vadd.f32 %v3336_v4, %v3335_v60  ;;  %v3449_v20 = vadd.f32 %v3448_v63, %v3447_v32 }
 0x1cc   : > { %v3338_v16 = vpop.f32.mrf.mxu1  ;;  %v3450_v45 = vpop.f32.mrf.mxu0 }
 0x1cd   : > { %v2596_v17 = vmax.f32 %v2488_v9, 0.0  ;;  %v2330_v25 = vadd.f32 %v3337_v49, %v4418_v22 }
 0x1ce   : > { %v3339_v62 = vpop.f32.mrf.mxu1  ;;  %v3451_v14 = vpop.f32.mrf.mxu0 }
 0x1cf   : > { %2628 = vst [vmem:[%s4513_s13 + $0x30] sm:$0xff] %v2596_v17  ;;  %v2491_v8 = vadd.f32 %v3449_v20, %v2330_v25  ;;  %v3340_v23 = vadd.f32 %v3339_v62, %v3338_v16  ;;  %v3452_v52 = vadd.f32 %v3451_v14, %v3450_v45 }
 0x1d0   : > { %v3341_v30 = vpop.f32.mrf.mxu1  ;;  %v3453_v5 = vpop.f32.mrf.mxu0 }
 0x1d1   : > { %v2597_v33 = vmax.f32 %v2491_v8, 0.0  ;;  %v2335_v34 = vadd.f32 %v3340_v23, %v4426_v48 }
 0x1d2   : > { %v3342_v29 = vpop.f32.mrf.mxu1  ;;  %v3454_v35 = vpop.f32.mrf.mxu0 }
 0x1d3   : > { %2629 = vst [vmem:[%s4513_s13 + $0x38] sm:$0xff] %v2597_v33  ;;  %v2496_v39 = vadd.f32 %v3452_v52, %v2335_v34  ;;  %v3343_v40 = vadd.f32 %v3342_v29, %v3341_v30  ;;  %v3455_v42 = vadd.f32 %v3454_v35, %v3453_v5 }
 0x1d4   : > { %v3344_v38 = vpop.f32.mrf.mxu1  ;;  %v3456_v22 = vpop.f32.mrf.mxu0 }
 0x1d5   : > { %v2598_v18 = vmax.f32 %v2496_v39, 0.0  ;;  %v2338_v43 = vadd.f32 %v3343_v40, %v4430_v61 }
 0x1d6   : > { %v3345_v2 = vpop.f32.mrf.mxu1  ;;  %v3457_v51 = vpop.f32.mrf.mxu0 }
 0x1d7   : > { %2630 = vst [vmem:[%s4513_s13 + $0x40] sm:$0xff] %v2598_v18  ;;  %v2499_v7 = vadd.f32 %v3455_v42, %v2338_v43  ;;  %v3346_v54 = vadd.f32 %v3345_v2, %v3344_v38  ;;  %v3458_v58 = vadd.f32 %v3457_v51, %v3456_v22 }
 0x1d8   : > { %v3347_v11 = vpop.f32.mrf.mxu1  ;;  %v3459_v48 = vpop.f32.mrf.mxu0 }
 0x1d9   : > { %v2599_v13 = vmax.f32 %v2499_v7, 0.0  ;;  %v2343_v50 = vadd.f32 %v3346_v54, %v4438_v6 }
 0x1da   : > { %v3348_v60 = vpop.f32.mrf.mxu1  ;;  %v3460_v32 = vpop.f32.mrf.mxu0 }
 0x1db   : > { %2631 = vst [vmem:[%s4513_s13 + $0x48] sm:$0xff] %v2599_v13  ;;  %v2504_v36 = vadd.f32 %v3458_v58, %v2343_v50  ;;  %v3349_v0 = vadd.f32 %v3348_v60, %v3347_v11  ;;  %v3461_v9 = vadd.f32 %v3460_v32, %v3459_v48 }
 0x1dc   : > { %v3350_v24 = vpop.f32.mrf.mxu1  ;;  %v3462_v61 = vpop.f32.mrf.mxu0 }
 0x1dd   : > { %v2600_v4 = vmax.f32 %v2504_v36, 0.0  ;;  %v2346_v63 = vadd.f32 %v3349_v0, %v4442_v41 }
 0x1de   : > { %v3351_v49 = vpop.f32.mrf.mxu1  ;;  %v3463_v16 = vpop.f32.mrf.mxu0 }
 0x1df   : > { %2632 = vst [vmem:[%s4513_s13 + $0x50] sm:$0xff] %v2600_v4  ;;  %v2507_v45 = vadd.f32 %v3461_v9, %v2346_v63  ;;  %v3352_v17 = vadd.f32 %v3351_v49, %v3350_v24  ;;  %v3464_v14 = vadd.f32 %v3463_v16, %v3462_v61 }
 0x1e0   : > { %v3353_v25 = vpop.f32.mrf.mxu1  ;;  %v3465_v6 = vpop.f32.mrf.mxu0 }
 0x1e1   : > { %v2601_v20 = vmax.f32 %v2507_v45, 0.0  ;;  %v2351_v62 = vadd.f32 %v3352_v17, %v4448_v21 }
 0x1e2   : > { %v3354_v8 = vpop.f32.mrf.mxu1  ;;  %v3466_v23 = vpop.f32.mrf.mxu0 }
 0x1e3   : > { %2633 = vst [vmem:[%s4513_s13 + $0x58] sm:$0xff] %v2601_v20  ;;  %v2512_v30 = vadd.f32 %v3464_v14, %v2351_v62  ;;  %v3355_v5 = vadd.f32 %v3354_v8, %v3353_v25  ;;  %v3467_v29 = vadd.f32 %v3466_v23, %v3465_v6 }
 0x1e4   : > { %v3356_v33 = vpop.f32.mrf.mxu1  ;;  %v3468_v41 = vpop.f32.mrf.mxu0 }
 0x1e5   : > { %v2602_v34 = vmax.f32 %v2512_v30, 0.0  ;;  %v2354_v52 = vadd.f32 %v3355_v5, %v4452_v59 }
 0x1e6   : > { %v3357_v35 = vpop.f32.mrf.mxu1  ;;  %v3469_v39 = vpop.f32.mrf.mxu0 }
 0x1e7   : > { %2634 = vst [vmem:[%s4513_s13 + $0x60] sm:$0xff] %v2602_v34  ;;  %v2515_v40 = vadd.f32 %v3467_v29, %v2354_v52  ;;  %v3358_v38 = vadd.f32 %v3357_v35, %v3356_v33  ;;  %v3470_v42 = vadd.f32 %v3469_v39, %v3468_v41 }
 0x1e8   : > { %v3359_v22 = vpop.f32.mrf.mxu1  ;;  %v3471_v21 = vpop.f32.mrf.mxu0 }
 0x1e9   : > { %v2603_v18 = vmax.f32 %v2515_v40, 0.0  ;;  %v2359_v43 = vadd.f32 %v3358_v38, %v4456_v31 }
 0x1ea   : > { %v3360_v2 = vpop.f32.mrf.mxu1  ;;  %v3472_v51 = vpop.f32.mrf.mxu0 }
 0x1eb   : > { %2635 = vst [vmem:[%s4513_s13 + $0x68] sm:$0xff] %v2603_v18  ;;  %v2520_v7 = vadd.f32 %v3470_v42, %v2359_v43  ;;  %v3361_v54 = vadd.f32 %v3360_v2, %v3359_v22  ;;  %v3473_v50 = vadd.f32 %v3472_v51, %v3471_v21 }
 0x1ec   : > { %v3362_v11 = vpop.f32.mrf.mxu1  ;;  %v3474_v59 = vpop.f32.mrf.mxu0 }
 0x1ed   : > { %v2604_v48 = vmax.f32 %v2520_v7, 0.0  ;;  %v2362_v13 = vadd.f32 %v3361_v54, %v4458_v47 }
 0x1ee   : > { %v3363_v58 = vpop.f32.mrf.mxu1  ;;  %v3475_v60 = vpop.f32.mrf.mxu0 }
 0x1ef   : > { %2636 = vst [vmem:[%s4513_s13 + $0x70] sm:$0xff] %v2604_v48  ;;  %v2523_v32 = vadd.f32 %v3473_v50, %v2362_v13  ;;  %v3364_v36 = vadd.f32 %v3363_v58, %v3362_v11  ;;  %v3476_v4 = vadd.f32 %v3475_v60, %v3474_v59 }
 0x1f0   : > { %v3365_v0 = vpop.f32.mrf.mxu1  ;;  %v3477_v31 = vpop.f32.mrf.mxu0 }
 0x1f1   : > { %v2605_v24 = vmax.f32 %v2523_v32, 0.0  ;;  %v2367_v61 = vadd.f32 %v3364_v36, %v4461_v56 }
 0x1f2   : > { %v3366_v63 = vpop.f32.mrf.mxu1  ;;  %v3478_v9 = vpop.f32.mrf.mxu0 }
 0x1f3   : > { %2637 = vst [vmem:[%s4513_s13 + $0x78] sm:$0xff] %v2605_v24  ;;  %v2528_v49 = vadd.f32 %v3476_v4, %v2367_v61  ;;  %v3367_v16 = vadd.f32 %v3366_v63, %v3365_v0  ;;  %v3479_v6 = vadd.f32 %v3478_v9, %v3477_v31 }
 0x1f4   : > { %v3368_v45 = vpop.f32.mrf.mxu1  ;;  %v3480_v47 = vpop.f32.mrf.mxu0 }
 0x1f5   : > { %v2606_v17 = vmax.f32 %v2528_v49, 0.0  ;;  %v2370_v25 = vadd.f32 %v3367_v16, %v4464_v12 }
 0x1f6   : > { %v3369_v20 = vpop.f32.mrf.mxu1  ;;  %v3481_v62 = vpop.f32.mrf.mxu0 }
 0x1f7   : > { %2638 = vst [vmem:[%s4513_s13 + $0x80] sm:$0xff] %v2606_v17  ;;  %v2531_v14 = vadd.f32 %v3479_v6, %v2370_v25  ;;  %v3370_v8 = vadd.f32 %v3369_v20, %v3368_v45  ;;  %v3482_v33 = vadd.f32 %v3481_v62, %v3480_v47 }
 0x1f8   : > { %v3371_v23 = vpop.f32.mrf.mxu1  ;;  %v3483_v56 = vpop.f32.mrf.mxu0 }
 0x1f9   : > { %v2607_v30 = vmax.f32 %v2531_v14, 0.0  ;;  %v2375_v5 = vadd.f32 %v3370_v8, %v4467_v27 }
 0x1fa   : > { %v3372_v41 = vpop.f32.mrf.mxu1  ;;  %v3484_v34 = vpop.f32.mrf.mxu0 }
 0x1fb   : > { %2639 = vst [vmem:[%s4513_s13 + $0x88] sm:$0xff] %v2607_v30  ;;  %v2536_v52 = vadd.f32 %v3482_v33, %v2375_v5  ;;  %v3373_v29 = vadd.f32 %v3372_v41, %v3371_v23  ;;  %v3485_v38 = vadd.f32 %v3484_v34, %v3483_v56 }
 0x1fc   : > { %v3374_v35 = vpop.f32.mrf.mxu1  ;;  %v3486_v12 = vpop.f32.mrf.mxu0 }
 0x1fd   : > { %v2608_v39 = vmax.f32 %v2536_v52, 0.0  ;;  %v2378_v40 = vadd.f32 %v3373_v29, %v4470_v44 }
 0x1fe   : > { %v3375_v22 = vpop.f32.mrf.mxu1  ;;  %v3487_v21 = vpop.f32.mrf.mxu0 }
 0x1ff   : > { %2640 = vst [vmem:[%s4513_s13 + $0x90] sm:$0xff] %v2608_v39  ;;  %v2539_v18 = vadd.f32 %v3485_v38, %v2378_v40  ;;  %v3376_v43 = vadd.f32 %v3375_v22, %v3374_v35  ;;  %v3488_v7 = vadd.f32 %v3487_v21, %v3486_v12 }
 0x200   : > { %v3377_v42 = vpop.f32.mrf.mxu1  ;;  %v3489_v27 = vpop.f32.mrf.mxu0 }
 0x201   : > { %v2609_v2 = vmax.f32 %v2539_v18, 0.0  ;;  %v2383_v51 = vadd.f32 %v3376_v43, %v4473_v57 }
 0x202   : > { %v3378_v54 = vpop.f32.mrf.mxu1  ;;  %v3490_v11 = vpop.f32.mrf.mxu0 }
 0x203   : > { %2641 = vst [vmem:[%s4513_s13 + $0x98] sm:$0xff] %v2609_v2  ;;  %v2544_v59 = vadd.f32 %v3488_v7, %v2383_v51  ;;  %v3379_v48 = vadd.f32 %v3378_v54, %v3377_v42  ;;  %v3491_v60 = vadd.f32 %v3490_v11, %v3489_v27 }
 0x204   : > { %v3380_v13 = vpop.f32.mrf.mxu1  ;;  %v3492_v44 = vpop.f32.mrf.mxu0 }
 0x205   : > { %v2610_v50 = vmax.f32 %v2544_v59, 0.0  ;;  %v2386_v58 = vadd.f32 %v3379_v48, %v4476_v53 }
 0x206   : > { %v3381_v32 = vpop.f32.mrf.mxu1  ;;  %v3493_v36 = vpop.f32.mrf.mxu0 }
 0x207   : > { %2642 = vst [vmem:[%s4513_s13 + $0xa0] sm:$0xff] %v2610_v50  ;;  %v2547_v0 = vadd.f32 %v3491_v60, %v2386_v58  ;;  %v3382_v31 = vadd.f32 %v3381_v32, %v3380_v13  ;;  %v3494_v63 = vadd.f32 %v3493_v36, %v3492_v44 }
 0x208   : > { %v3383_v24 = vpop.f32.mrf.mxu1  ;;  %v3495_v57 = vpop.f32.mrf.mxu0 }
 0x209   : > { %v2611_v61 = vmax.f32 %v2547_v0, 0.0  ;;  %v2391_v4 = vadd.f32 %v3382_v31, %v4479_v1 }
 0x20a   : > { %v3384_v9 = vpop.f32.mrf.mxu1  ;;  %v3496_v49 = vpop.f32.mrf.mxu0 }
 0x20b   : > { %2643 = vst [vmem:[%s4513_s13 + $0xa8] sm:$0xff] %v2611_v61  ;;  %v2552_v16 = vadd.f32 %v3494_v63, %v2391_v4  ;;  %v3385_v45 = vadd.f32 %v3384_v9, %v3383_v24  ;;  %v3497_v6 = vadd.f32 %v3496_v49, %v3495_v57 }
 0x20c   : > { %v3386_v47 = vpop.f32.mrf.mxu1  ;;  %v3498_v53 = vpop.f32.mrf.mxu0 }
 0x20d   : > { %v2612_v17 = vmax.f32 %v2552_v16, 0.0  ;;  %v2394_v25 = vadd.f32 %v3385_v45, %v4482_v10 }
 0x20e   : > { %v3387_v20 = vpop.f32.mrf.mxu1  ;;  %v3499_v62 = vpop.f32.mrf.mxu0 }
 0x20f   : > { %2644 = vst [vmem:[%s4513_s13 + $0xb0] sm:$0xff] %v2612_v17  ;;  %v2555_v14 = vadd.f32 %v3497_v6, %v2394_v25  ;;  %v3388_v8 = vadd.f32 %v3387_v20, %v3386_v47  ;;  %v3500_v5 = vadd.f32 %v3499_v62, %v3498_v53 }
 0x210   : > { %v3389_v23 = vpop.f32.mrf.mxu1  ;;  %v3501_v1 = vpop.f32.mrf.mxu0 }
 0x211   : > { %v2613_v56 = vmax.f32 %v2555_v14, 0.0  ;;  %v2399_v30 = vadd.f32 %v3388_v8, %v4485_v19 }
 0x212   : > { %v3390_v33 = vpop.f32.mrf.mxu1  ;;  %v3502_v41 = vpop.f32.mrf.mxu0 }
 0x213   : > { %2645 = vst [vmem:[%s4513_s13 + $0xb8] sm:$0xff] %v2613_v56  ;;  %v2560_v34 = vadd.f32 %v3500_v5, %v2399_v30  ;;  %v3391_v52 = vadd.f32 %v3390_v33, %v3389_v23  ;;  %v3503_v39 = vadd.f32 %v3502_v41, %v3501_v1 }
 0x214   : > { %v3392_v29 = vpop.f32.mrf.mxu1  ;;  %v3504_v10 = vpop.f32.mrf.mxu0 }
 0x215   : > { %v2614_v35 = vmax.f32 %v2560_v34, 0.0  ;;  %v2402_v12 = vadd.f32 %v3391_v52, %v4488_v28 }
 0x216   : > { %v3393_v40 = vpop.f32.mrf.mxu1  ;;  %v3505_v38 = vpop.f32.mrf.mxu0 }
 0x217   : > { %2646 = vst [vmem:[%s4513_s13 + $0xc0] sm:$0xff] %v2614_v35  ;;  %v2563_v22 = vadd.f32 %v3503_v39, %v2402_v12  ;;  %v3394_v21 = vadd.f32 %v3393_v40, %v3392_v29  ;;  %v3506_v27 = vadd.f32 %v3505_v38, %v3504_v10 }
 0x218   : > { %v3395_v18 = vpop.f32.mrf.mxu1  ;;  %v3507_v19 = vpop.f32.mrf.mxu0 }
 0x219   : > { %v2615_v43 = vmax.f32 %v2563_v22, 0.0  ;;  %v2407_v42 = vadd.f32 %v3394_v21, %v4491_v37 }
 0x21a   : > { %v3396_v2 = vpop.f32.mrf.mxu1  ;;  %v3508_v51 = vpop.f32.mrf.mxu0 }
 0x21b   : > { %2647 = vst [vmem:[%s4513_s13 + $0xc8] sm:$0xff] %v2615_v43  ;;  %v2568_v7 = vadd.f32 %v3506_v27, %v2407_v42  ;;  %v3397_v54 = vadd.f32 %v3396_v2, %v3395_v18  ;;  %v3509_v13 = vadd.f32 %v3508_v51, %v3507_v19 }
 0x21c   : > { %v3398_v11 = vpop.f32.mrf.mxu1  ;;  %v3510_v28 = vpop.f32.mrf.mxu0 }
 0x21d   : > { %v2616_v59 = vmax.f32 %v2568_v7, 0.0  ;;  %v2410_v48 = vadd.f32 %v3397_v54, %v4494_v46 }
 0x21e   : > { %v3399_v44 = vpop.f32.mrf.mxu1  ;;  %v3511_v50 = vpop.f32.mrf.mxu0 }
 0x21f   : > { %2648 = vst [vmem:[%s4513_s13 + $0xd0] sm:$0xff] %v2616_v59  ;;  %v2571_v58 = vadd.f32 %v3509_v13, %v2410_v48  ;;  %v3400_v60 = vadd.f32 %v3399_v44, %v3398_v11  ;;  %v3512_v31 = vadd.f32 %v3511_v50, %v3510_v28 }
 0x220   : > { %v3401_v32 = vpop.f32.mrf.mxu1  ;;  %v3513_v37 = vpop.f32.mrf.mxu0 }
 0x221   : > { %v2617_v36 = vmax.f32 %v2571_v58, 0.0  ;;  %v2415_v0 = vadd.f32 %v3400_v60, %v4497_v55 }
 0x222   : > { %v3402_v24 = vpop.f32.mrf.mxu1  ;;  %v3514_v57 = vpop.f32.mrf.mxu0 }
 0x223   : > { %2649 = vst [vmem:[%s4513_s13 + $0xd8] sm:$0xff] %v2617_v36  ;;  %v2576_v61 = vadd.f32 %v3512_v31, %v2415_v0  ;;  %v3403_v4 = vadd.f32 %v3402_v24, %v3401_v32  ;;  %v3515_v16 = vadd.f32 %v3514_v57, %v3513_v37 }
 0x224   : > { %v3404_v63 = vpop.f32.mrf.mxu1  ;;  %v3516_v46 = vpop.f32.mrf.mxu0 }
 0x225   : > { %v2618_v9 = vmax.f32 %v2576_v61, 0.0  ;;  %v2418_v49 = vadd.f32 %v3403_v4, %v4500_v3 }
 0x226   : > { %v3405_v45 = vpop.f32.mrf.mxu1  ;;  %v3517_v47 = vpop.f32.mrf.mxu0 }
 0x227   : > { %2650 = vst [vmem:[%s4513_s13 + $0xe0] sm:$0xff] %v2618_v9  ;;  %v2579_v53 = vadd.f32 %v3515_v16, %v2418_v49  ;;  %v3406_v17 = vadd.f32 %v3405_v45, %v3404_v63  ;;  %v3518_v62 = vadd.f32 %v3517_v47, %v3516_v46 }
 0x228   : > { %v3407_v55 = vpop.f32.mrf.mxu1  ;;  %v3519_v25 = vpop.f32.mrf.mxu0 }
 0x229   : > { %v2619_v6 = vmax.f32 %v2579_v53, 0.0  ;;  %v2423_v20 = vadd.f32 %v3406_v17, %v4503_v15 }
 0x22a   : > { %v3408_v14 = vpop.f32.mrf.mxu1  ;;  %v3520_v8 = vpop.f32.mrf.mxu0 }
 0x22b   : > { %2651 = vst [vmem:[%s4513_s13 + $0xe8] sm:$0xff] %v2619_v6  ;;  %v2584_v23 = vadd.f32 %v3518_v62, %v2423_v20  ;;  %v3409_v1 = vadd.f32 %v3408_v14, %v3407_v55  ;;  %v3521_v30 = vadd.f32 %v3520_v8, %v3519_v25 }
 0x22d   : > { %v2620_v3 = vmax.f32 %v2584_v23, 0.0  ;;  %v2426_v56 = vadd.f32 %v3409_v1, %v4506_v26 }
 0x22f   : > { %2652 = vst [vmem:[%s4513_s13 + $0xf0] sm:$0xff] %v2620_v3  ;;  %v2587_v5 = vadd.f32 %v3521_v30, %v2426_v56 }
 0x231   : > { %v2621_v33 = vmax.f32 %v2587_v5, 0.0 }
 0x233   : > { %2653 = vst [vmem:[%s4513_s13 + $0xf8] sm:$0xff] %v2621_v33 }
 0x234 PF: > { %s13_s12 = sadd.s32 1, %s3873_s12  }
 0x235   : > { %p10_p4 = scmp.ge.s32.totalorder %s13_s12, 5  }
 0x237   :  { %12 = sbr.rel (!%p10_p4) target bundleno = 1 (0x1), region = 62 }

// kernel: imagenet_convnet_bp_forward.9
= control target key start
LH: loop header
LB: loop body
LE: loop exit
PB: predicated region body
PF: predicated region fallthrough
CT: control target
= control target key end

     0   :  { %v2113_v36 = vmov 0.0   ;;  %vm2114_vm0 = vmmov 0   ;;  %s2723_s1 = inlined_call_operand.vmem [shape: bf16[896,128], index: 1, kind: input, shape index: {}]   ;;  %s2724_s0 = inlined_call_operand.vmem [shape: bf16[176,896], index: 0, kind: input, shape index: {}]   ;;  %s2725_s2 = inlined_call_operand.vmem [shape: f32[1,128], index: 2, kind: input, shape index: {}]   ;;  %s2726_s3 = inlined_call_operand.vmem [shape: f32[176,128], index: 3, kind: output, shape index: {}]  }
   0x1   :  { %v1947_v0 = vld [vmem:[%s2723_s1 + $0x78] sm:$0xff]   ;;  %v1951_v4 = vld [vmem:[%s2723_s1 + $0x70] sm:$0xff]   ;;  %v1955_v8 = vld [vmem:[%s2723_s1 + $0x68] sm:$0xff]  }
   0x2   :  { %v1948_v1 = vld [vmem:[%s2723_s1 + $0x38] sm:$0xff]   ;;  %1620 = vmatprep.subr.bf16.mxu0 %v1947_v0  ;;  %v1952_v5 = vld [vmem:[%s2723_s1 + $0x30] sm:$0xff]   ;;  %v1956_v9 = vld [vmem:[%s2723_s1 + $0x28] sm:$0xff]  }
   0x3   :  { %v1949_v2 = vld [vmem:[%s2723_s1 + $0xf8] sm:$0xff]   ;;  %1621 = vmatpush3.bf16.msra.mxu0 %v1948_v1  ;;  %v1953_v6 = vld [vmem:[%s2723_s1 + $0xf0] sm:$0xff]   ;;  %v1957_v10 = vld [vmem:[%s2723_s1 + $0xe8] sm:$0xff]  }
   0x4   :  { %v1950_v3 = vld [vmem:[%s2723_s1 + $0xb8] sm:$0xff]   ;;  %1702 = vmatprep.subr.bf16.mxu1 %v1949_v2  ;;  %1622 = vmatprep.subr.bf16.mxu0 %v1951_v4  ;;  %v1954_v7 = vld [vmem:[%s2723_s1 + $0xb0] sm:$0xff]   ;;  %v1958_v11 = vld [vmem:[%s2723_s1 + $0xa8] sm:$0xff]  }
   0x5   :  { %1703 = vmatpush3.bf16.msra.mxu1 %v1950_v3  ;;  %v1959_v12 = vld [vmem:[%s2723_s1 + $0x60] sm:$0xff]   ;;  %v1963_v16 = vld [vmem:[%s2723_s1 + $0x58] sm:$0xff]   ;;  %v1967_v20 = vld [vmem:[%s2723_s1 + $0x50] sm:$0xff]  }
   0x6   :  { %1704 = vmatprep.subr.bf16.mxu1 %v1953_v6  ;;  %v1960_v13 = vld [vmem:[%s2723_s1 + $0x20] sm:$0xff]   ;;  %v1964_v17 = vld [vmem:[%s2723_s1 + $0x18] sm:$0xff]   ;;  %v1968_v21 = vld [vmem:[%s2723_s1 + $0x10] sm:$0xff]  }
   0x7   :  { %1623 = vmatpush3.bf16.msra.mxu0 %v1952_v5  ;;  %v1961_v14 = vld [vmem:[%s2723_s1 + $0xe0] sm:$0xff]   ;;  %v1965_v18 = vld [vmem:[%s2723_s1 + $0xd8] sm:$0xff]   ;;  %v1969_v22 = vld [vmem:[%s2723_s1 + $0xd0] sm:$0xff]  }
   0x8   :  { %1624 = vmatprep.subr.bf16.mxu0 %v1955_v8  ;;  %v1962_v15 = vld [vmem:[%s2723_s1 + $0xa0] sm:$0xff]   ;;  %v1966_v19 = vld [vmem:[%s2723_s1 + $0x98] sm:$0xff]   ;;  %v1970_v23 = vld [vmem:[%s2723_s1 + $0x90] sm:$0xff]  }
   0x9   :  { %1705 = vmatpush3.bf16.msra.mxu1 %v1954_v7  ;;  %v1971_v24 = vld [vmem:[%s2723_s1 + $0x48] sm:$0xff]   ;;  %v1975_v28 = vld [vmem:[%s2723_s1 + $0x40] sm:$0xff]   ;;  %v1985_v37 = vld [vmem:[%s2723_s1 + $0x178] sm:$0xff]  }
   0xa   :  { %1706 = vmatprep.subr.bf16.mxu1 %v1957_v10  ;;  %v1972_v25 = vld [vmem:[%s2723_s1 + $0x8] sm:$0xff]   ;;  %v1976_v29 = vld [vmem:[%s2723_s1] sm:$0xff]   ;;  %v1986_v38 = vld [vmem:[%s2723_s1 + $0x138] sm:$0xff]  }
   0xb   :  { %1625 = vmatpush3.bf16.msra.mxu0 %v1956_v9  ;;  %v1973_v26 = vld [vmem:[%s2723_s1 + $0xc8] sm:$0xff]   ;;  %v1977_v30 = vld [vmem:[%s2723_s1 + $0xc0] sm:$0xff]   ;;  %v1987_v39 = vld [vmem:[%s2724_s0 + $0x3c] ss:$28 sps:$4 sm:$0xff]  }
   0xc   :  { %1626 = vmatprep.subr.bf16.mxu0 %v1959_v12  ;;  %v1974_v27 = vld [vmem:[%s2723_s1 + $0x88] sm:$0xff]   ;;  %v1978_v31 = vld [vmem:[%s2723_s1 + $0x80] sm:$0xff]   ;;  %v1989_v40 = vld [vmem:[%s2723_s1 + $0x1b8] sm:$0xff]  }
   0xd   :  { %1707 = vmatpush3.bf16.msra.mxu1 %v1958_v11  ;;  %v1979_v32 = vld [vmem:[%s2724_s0] ss:$28 sps:$4 sm:$0xff]   ;;  %v1982_v34 = vld [vmem:[%s2724_s0 + $0x8] ss:$28 sps:$4 sm:$0xff]   ;;  %v1990_v41 = vld [vmem:[%s2724_s0 + $0x38] ss:$28 sps:$4 sm:$0xff]  }
   0xe   :  { %1708 = vmatprep.subr.bf16.mxu1 %v1961_v14  ;;  %v1981_v33 = vld [vmem:[%s2724_s0 + $0x4] ss:$28 sps:$4 sm:$0xff]   ;;  %v1984_v35 = vld [vmem:[%s2724_s0 + $0xc] ss:$28 sps:$4 sm:$0xff]   ;;  %v1994_v44 = vld [vmem:[%s2723_s1 + $0x170] sm:$0xff]  }
   0xf   :  { %1627 = vmatpush3.bf16.msra.mxu0 %v1960_v13  ;;  %986 = vmatprep.mubr.bf16.mxu0 %v1981_v33  ;;  %v1991_v42 = vld [vmem:[%s2724_s0 + $0x44] ss:$28 sps:$4 sm:$0xff]   ;;  %v1995_v45 = vld [vmem:[%s2723_s1 + $0x130] sm:$0xff]   ;;  %v1999_v47 = vld [vmem:[%s2724_s0 + $0x7c] ss:$28 sps:$4 sm:$0xff]  }
  0x10   :  { %1628 = vmatprep.subr.bf16.mxu0 %v1963_v16  ;;  %1107 = vmatprep.mubr.bf16.mxu1 %v1984_v35  ;;  %v1993_v43 = vld [vmem:[%s2724_s0 + $0x40] ss:$28 sps:$4 sm:$0xff]   ;;  %v1996_v46 = vld [vmem:[%s2724_s0 + $0x74] ss:$28 sps:$4 sm:$0xff]   ;;  %v2003_v50 = vld [vmem:[%s2723_s1 + $0x168] sm:$0xff]  }
  0x11   :  { %1709 = vmatpush3.bf16.msra.mxu1 %v1962_v15  ;;  %v2002_v48 = vld [vmem:[%s2723_s1 + $0x1b0] sm:$0xff]   ;;  %v2006_v52 = vld [vmem:[%s2723_s1 + $0x128] sm:$0xff]   ;;  %v2018_v57 = vld [vmem:[%s2723_s1 + $0x160] sm:$0xff]  }
  0x12   :  { %1710 = vmatprep.subr.bf16.mxu1 %v1965_v18  ;;  %v1998_v49 = vld [vmem:[%s2724_s0 + $0x70] ss:$28 sps:$4 sm:$0xff]   ;;  %v2001_v51 = vld [vmem:[%s2724_s0 + $0x78] ss:$28 sps:$4 sm:$0xff]   ;;  %v2007_v56 = vld [vmem:[%s2724_s0 + $0xa8] ss:$28 sps:$4 sm:$0xff]  }
  0x13   :  { %1629 = vmatpush3.bf16.msra.mxu0 %v1964_v17  ;;  %v2004_v53 = vld [vmem:[%s2724_s0 + $0xac] ss:$28 sps:$4 sm:$0xff]   ;;  %v2008_v54 = vld [vmem:[%s2724_s0 + $0xb4] ss:$28 sps:$4 sm:$0xff]   ;;  %v2019_v58 = vld [vmem:[%s2723_s1 + $0x120] sm:$0xff]  }
  0x14   :  { %1630 = vmatprep.subr.bf16.mxu0 %v1967_v20  ;;  %v2011_v55 = vld [vmem:[%s2723_s1 + $0x1a8] sm:$0xff]   ;;  %v2012_v60 = vld [vmem:[%s2724_s0 + $0xe4] ss:$28 sps:$4 sm:$0xff]   ;;  %v2027_v63 = vld [vmem:[%s2723_s1 + $0x158] sm:$0xff]  }
  0x15   :  { %1711 = vmatpush3.bf16.msra.mxu1 %v1966_v19  ;;  %v2010_v59 = vld [vmem:[%s2724_s0 + $0xb0] ss:$28 sps:$4 sm:$0xff]   ;;  %v2025_v62 = vld [vmem:[%s2723_s1 + $0x1a0] sm:$0xff]   ;;  %v2028_v0 = vld [vmem:[%s2723_s1 + $0x118] sm:$0xff]  }
  0x16   :  { %1712 = vmatprep.subr.bf16.mxu1 %v1969_v22  ;;  %v2015_v61 = vld [vmem:[%s2724_s0 + $0xec] ss:$28 sps:$4 sm:$0xff]   ;;  %v2014_v1 = vld [vmem:[%s2724_s0 + $0xe0] ss:$28 sps:$4 sm:$0xff]   ;;  %v2038_v6 = vld [vmem:[%s2723_s1 + $0x150] sm:$0xff]  }
  0x17   :  { %1631 = vmatpush3.bf16.msra.mxu0 %v1968_v21  ;;  %v2017_v2 = vld [vmem:[%s2724_s0 + $0xe8] ss:$28 sps:$4 sm:$0xff]   ;;  %v2020_v3 = vld [vmem:[%s2724_s0 + $0x11c] ss:$28 sps:$4 sm:$0xff]   ;;  %v2042_v7 = vld [vmem:[%s2723_s1 + $0x110] sm:$0xff]  }
  0x18   :  { %1632 = vmatprep.subr.bf16.mxu0 %v1971_v24  ;;  %v2035_v4 = vld [vmem:[%s2723_s1 + $0x198] sm:$0xff]   ;;  %v2023_v5 = vld [vmem:[%s2724_s0 + $0x124] ss:$28 sps:$4 sm:$0xff]   ;;  %v2044_v8 = vld [vmem:[%s2723_s1 + $0x190] sm:$0xff]  }
  0x19   :  { %1713 = vmatpush3.bf16.msra.mxu1 %v1970_v23  ;;  %v2022_v9 = vld [vmem:[%s2724_s0 + $0x118] ss:$28 sps:$4 sm:$0xff]   ;;  %v2026_v10 = vld [vmem:[%s2724_s0 + $0x120] ss:$28 sps:$4 sm:$0xff]   ;;  %v2051_v13 = vld [vmem:[%s2723_s1 + $0x148] sm:$0xff]  }
  0x1a   :  { %1714 = vmatprep.subr.bf16.mxu1 %v1973_v26  ;;  %v2029_v11 = vld [vmem:[%s2724_s0 + $0x154] ss:$28 sps:$4 sm:$0xff]   ;;  %v2032_v12 = vld [vmem:[%s2724_s0 + $0x15c] ss:$28 sps:$4 sm:$0xff]   ;;  %v2052_v14 = vld [vmem:[%s2723_s1 + $0x108] sm:$0xff]  }
  0x1b   :  { %1633 = vmatpush3.bf16.msra.mxu0 %v1972_v25  ;;  %v2031_v15 = vld [vmem:[%s2724_s0 + $0x150] ss:$28 sps:$4 sm:$0xff]   ;;  %v2034_v16 = vld [vmem:[%s2724_s0 + $0x158] ss:$28 sps:$4 sm:$0xff]   ;;  %v2060_v19 = vld [vmem:[%s2723_s1 + $0x140] sm:$0xff]  }
  0x1c   :  { %1634 = vmatprep.subr.bf16.mxu0 %v1975_v28  ;;  %v2036_v17 = vld [vmem:[%s2724_s0 + $0x18c] ss:$28 sps:$4 sm:$0xff]   ;;  %v2061_v20 = vld [vmem:[%s2723_s1 + $0x100] sm:$0xff]   ;;  %v2040_v21 = vld [vmem:[%s2724_s0 + $0x194] ss:$28 sps:$4 sm:$0xff]  }
  0x1d   :  { %1715 = vmatpush3.bf16.msra.mxu1 %v1974_v27  ;;  %v2059_v18 = vld [vmem:[%s2723_s1 + $0x188] sm:$0xff]   ;;  %v2068_v22 = vld [vmem:[%s2723_s1 + $0x180] sm:$0xff]   ;;  %v2062_v33 = vld [vmem:[%s2724_s0 + $0x234] ss:$28 sps:$4 sm:$0xff]  }
  0x1e   :  { %1716 = vmatprep.subr.bf16.mxu1 %v1977_v30  ;;  %v2039_v23 = vld [vmem:[%s2724_s0 + $0x188] ss:$28 sps:$4 sm:$0xff]   ;;  %v2043_v24 = vld [vmem:[%s2724_s0 + $0x190] ss:$28 sps:$4 sm:$0xff]   ;;  %v2047_v27 = vld [vmem:[%s2724_s0 + $0x1c0] ss:$28 sps:$4 sm:$0xff]  }
  0x1f   :  { %1635 = vmatpush3.bf16.msra.mxu0 %v1976_v29  ;;  %v2045_v25 = vld [vmem:[%s2724_s0 + $0x1c4] ss:$28 sps:$4 sm:$0xff]   ;;  %v2048_v26 = vld [vmem:[%s2724_s0 + $0x1cc] ss:$28 sps:$4 sm:$0xff]   ;;  %v2053_v29 = vld [vmem:[%s2724_s0 + $0x1fc] ss:$28 sps:$4 sm:$0xff]  }
  0x20   :  { %1784 = vmatprep.subr.bf16.mxu0 %v1985_v37  ;;  %v2050_v28 = vld [vmem:[%s2724_s0 + $0x1c8] ss:$28 sps:$4 sm:$0xff]   ;;  %v2064_v35 = vld [vmem:[%s2724_s0 + $0x230] ss:$28 sps:$4 sm:$0xff]   ;;  %v2067_v37 = vld [vmem:[%s2724_s0 + $0x238] ss:$28 sps:$4 sm:$0xff]  }
  0x21   :  { %1717 = vmatpush3.bf16.msra.mxu1 %v1978_v31  ;;  %v2056_v30 = vld [vmem:[%s2724_s0 + $0x204] ss:$28 sps:$4 sm:$0xff]   ;;  %v2055_v31 = vld [vmem:[%s2724_s0 + $0x1f8] ss:$28 sps:$4 sm:$0xff]  }
  0x22   :  { %1885 = vmatprep.subr.bf16.mxu1 %v2113_v36  ;;  %987 = vmatmul.mubr.bf16.vlgmr.msra.gmra.mxu0 %v1979_v32  ;;  %v2058_v32 = vld [vmem:[%s2724_s0 + $0x200] ss:$28 sps:$4 sm:$0xff]  }
  0x23   :  { %1785 = vmatpush3.bf16.msra.mxu0 %v1986_v38  ;;  %994 = vmatprep.mubr.bf16.mxu0 %v1987_v39  ;;  %v2071_v38 = vld [vmem:[%s2724_s0 + $0x14] ss:$28 sps:$4 sm:$0xff]  }
  0x24   :  { %1108 = vmatmul.mubr.bf16.vlgmr.msra.gmra.mxu1 %v1982_v34  ;;  %1786 = vmatprep.subr.bf16.mxu0 %v1994_v44  ;;  %v2065_v34 = vld [vmem:[%s2724_s0 + $0x23c] ss:$28 sps:$4 sm:$0xff]   ;;  %v2069_v39 = vld [vmem:[%s2724_s0 + $0x10] ss:$28 sps:$4 sm:$0xff]   ;;  %v2077_v44 = vld [vmem:[%s2724_s0 + $0x84] ss:$28 sps:$4 sm:$0xff]  }
  0x25   :  { %1886 = vmatpush3.bf16.msra.mxu1 %v1989_v40  ;;  %1115 = vmatprep.mubr.bf16.mxu1 %v1991_v42  ;;  %v2072_v40 = vld [vmem:[%s2724_s0 + $0x18] ss:$28 sps:$4 sm:$0xff]   ;;  %v2075_v42 = vld [vmem:[%s2724_s0 + $0x48] ss:$28 sps:$4 sm:$0xff]  }
  0x26   :  { %1887 = vmatprep.subr.bf16.mxu1 %v2113_v36 }
  0x27   :  { %1787 = vmatpush3.bf16.msra.mxu0 %v1995_v45  ;;  %v2079_v45 = vld [vmem:[%s2724_s0 + $0x80] ss:$28 sps:$4 sm:$0xff]  }
  0x28   :  { %1788 = vmatprep.subr.bf16.mxu0 %v2003_v50  ;;  %v2085_v50 = vld [vmem:[%s2724_s0 + $0xf4] ss:$28 sps:$4 sm:$0xff]  }
  0x29   :  { %1888 = vmatpush3.bf16.msra.mxu1 %v2002_v48  ;;  %v2083_v48 = vld [vmem:[%s2724_s0 + $0xb8] ss:$28 sps:$4 sm:$0xff]  }
  0x2a   :  { %995 = vmatmul.mubr.bf16.gmra.mxu0 %v1990_v41  ;;  %1889 = vmatprep.subr.bf16.mxu1 %v2113_v36  ;;  %v2073_v41 = vld [vmem:[%s2724_s0 + $0x4c] ss:$28 sps:$4 sm:$0xff]  }
  0x2b   :  { %1002 = vmatprep.mubr.bf16.mxu0 %v1996_v46  ;;  %1789 = vmatpush3.bf16.msra.mxu0 %v2006_v52  ;;  %v2080_v46 = vld [vmem:[%s2724_s0 + $0x88] ss:$28 sps:$4 sm:$0xff]   ;;  %v2088_v52 = vld [vmem:[%s2724_s0 + $0xf8] ss:$28 sps:$4 sm:$0xff]  }
  0x2c   :  { %1116 = vmatmul.mubr.bf16.gmra.mxu1 %v1993_v43  ;;  %1790 = vmatprep.subr.bf16.mxu0 %v2018_v57  ;;  %v2076_v43 = vld [vmem:[%s2724_s0 + $0x50] ss:$28 sps:$4 sm:$0xff]   ;;  %v2095_v57 = vld [vmem:[%s2724_s0 + $0x160] ss:$28 sps:$4 sm:$0xff]  }
  0x2d   :  { %1123 = vmatprep.mubr.bf16.mxu1 %v1999_v47  ;;  %1890 = vmatpush3.bf16.msra.mxu1 %v2011_v55  ;;  %v2081_v47 = vld [vmem:[%s2724_s0 + $0xbc] ss:$28 sps:$4 sm:$0xff]   ;;  %v2092_v55 = vld [vmem:[%s2724_s0 + $0x130] ss:$28 sps:$4 sm:$0xff]  }
  0x2e   :  { %1891 = vmatprep.subr.bf16.mxu1 %v2113_v36 }
  0x2f   :  { %1791 = vmatpush3.bf16.msra.mxu0 %v2019_v58  ;;  %v2096_v58 = vld [vmem:[%s2724_s0 + $0x168] ss:$28 sps:$4 sm:$0xff]  }
  0x30   :  { %1792 = vmatprep.subr.bf16.mxu0 %v2027_v63  ;;  %v2103_v63 = vld [vmem:[%s2724_s0 + $0x1d0] ss:$28 sps:$4 sm:$0xff]  }
  0x31   :  { %1892 = vmatpush3.bf16.msra.mxu1 %v2025_v62  ;;  %v2101_v62 = vld [vmem:[%s2724_s0 + $0x1d4] ss:$28 sps:$4 sm:$0xff]  }
  0x32   :  { %1003 = vmatmul.mubr.bf16.gmra.mxu0 %v1998_v49  ;;  %1893 = vmatprep.subr.bf16.mxu1 %v2113_v36  ;;  %v2084_v49 = vld [vmem:[%s2724_s0 + $0xc0] ss:$28 sps:$4 sm:$0xff]  }
  0x33   :  { %1010 = vmatprep.mubr.bf16.mxu0 %v2004_v53  ;;  %1793 = vmatpush3.bf16.msra.mxu0 %v2028_v0  ;;  %v2089_v53 = vld [vmem:[%s2724_s0 + $0x12c] ss:$28 sps:$4 sm:$0xff]   ;;  %v2104_v0 = vld [vmem:[%s2724_s0 + $0x1d8] ss:$28 sps:$4 sm:$0xff]  }
  0x34   :  { %1124 = vmatmul.mubr.bf16.gmra.mxu1 %v2001_v51  ;;  %1794 = vmatprep.subr.bf16.mxu0 %v2038_v6  ;;  %v2087_v51 = vld [vmem:[%s2724_s0 + $0xf0] ss:$28 sps:$4 sm:$0xff]   ;;  %v2112_v6 = vld [vmem:[%s2724_s0 + $0x248] ss:$28 sps:$4 sm:$0xff]  }
  0x35   :  { %1131 = vmatprep.mubr.bf16.mxu1 %v2008_v54  ;;  %1894 = vmatpush3.bf16.msra.mxu1 %v2035_v4  ;;  %v2091_v54 = vld [vmem:[%s2724_s0 + $0x128] ss:$28 sps:$4 sm:$0xff]  }
  0x36   :  { %1895 = vmatprep.subr.bf16.mxu1 %v2113_v36  ;;  %v2109_v4 = vld [vmem:[%s2724_s0 + $0x244] ss:$28 sps:$4 sm:$0xff]  }
  0x37   :  { %1795 = vmatpush3.bf16.msra.mxu0 %v2042_v7 }
  0x38   :  { %1796 = vmatprep.subr.bf16.mxu0 %v2051_v13 }
  0x39   :  { %1896 = vmatpush3.bf16.msra.mxu1 %v2044_v8 }
  0x3a   :  { %1011 = vmatmul.mubr.bf16.gmra.mxu0 %v2007_v56  ;;  %1897 = vmatprep.subr.bf16.mxu1 %v2113_v36  ;;  %v2093_v56 = vld [vmem:[%s2724_s0 + $0x164] ss:$28 sps:$4 sm:$0xff]  }
  0x3b   :  { %1018 = vmatprep.mubr.bf16.mxu0 %v2012_v60  ;;  %1797 = vmatpush3.bf16.msra.mxu0 %v2052_v14  ;;  %v2099_v60 = vld [vmem:[%s2724_s0 + $0x198] ss:$28 sps:$4 sm:$0xff]  }
  0x3c   :  { %1132 = vmatmul.mubr.bf16.gmra.mxu1 %v2010_v59  ;;  %1798 = vmatprep.subr.bf16.mxu0 %v2060_v19  ;;  %v2097_v59 = vld [vmem:[%s2724_s0 + $0x19c] ss:$28 sps:$4 sm:$0xff]  }
  0x3d   :  { %1139 = vmatprep.mubr.bf16.mxu1 %v2015_v61  ;;  %1898 = vmatpush3.bf16.msra.mxu1 %v2059_v18  ;;  %v2100_v61 = vld [vmem:[%s2724_s0 + $0x1a0] ss:$28 sps:$4 sm:$0xff]  }
  0x3e   :  { %1899 = vmatprep.subr.bf16.mxu1 %v2113_v36 }
  0x3f   :  { %1799 = vmatpush3.bf16.msra.mxu0 %v2061_v20 }
  0x41   :  { %1900 = vmatpush3.bf16.msra.mxu1 %v2068_v22 }
  0x42   :  { %1019 = vmatmul.mubr.bf16.gmra.mxu0 %v2014_v1  ;;  %v2105_v1 = vld [vmem:[%s2724_s0 + $0x20c] ss:$28 sps:$4 sm:$0xff]  }
  0x43   :  { %1026 = vmatprep.mubr.bf16.mxu0 %v2020_v3  ;;  %v2108_v3 = vld [vmem:[%s2724_s0 + $0x210] ss:$28 sps:$4 sm:$0xff]  }
  0x44   :  { %1140 = vmatmul.mubr.bf16.gmra.mxu1 %v2017_v2  ;;  %v2107_v2 = vld [vmem:[%s2724_s0 + $0x208] ss:$28 sps:$4 sm:$0xff]  }
  0x45   :  { %1147 = vmatprep.mubr.bf16.mxu1 %v2023_v5  ;;  %v2111_v5 = vld [vmem:[%s2724_s0 + $0x240] ss:$28 sps:$4 sm:$0xff]  }
  0x4a   :  { %1027 = vmatmul.mubr.bf16.gmra.mxu0 %v2022_v9  ;;  %v2567_v9 = vld [vmem:[%s2725_s2] ss:$0 sm:$0xff] }
  0x4b   :  { %1034 = vmatprep.mubr.bf16.mxu0 %v2029_v11 }
  0x4c   :  { %1148 = vmatmul.mubr.bf16.gmra.mxu1 %v2026_v10 }
  0x4d   :  { %1155 = vmatprep.mubr.bf16.mxu1 %v2032_v12 }
  0x52   :  { %1035 = vmatmul.mubr.bf16.gmra.mxu0 %v2031_v15 }
  0x53   :  { %1042 = vmatprep.mubr.bf16.mxu0 %v2036_v17 }
  0x54   :  { %1156 = vmatmul.mubr.bf16.gmra.mxu1 %v2034_v16 }
  0x55   :  { %1163 = vmatprep.mubr.bf16.mxu1 %v2040_v21 }
  0x5a   :  { %1043 = vmatmul.mubr.bf16.gmra.mxu0 %v2039_v23 }
  0x5b   :  { %1050 = vmatprep.mubr.bf16.mxu0 %v2045_v25 }
  0x5c   :  { %1164 = vmatmul.mubr.bf16.gmra.mxu1 %v2043_v24 }
  0x5d   :  { %1171 = vmatprep.mubr.bf16.mxu1 %v2048_v26 }
  0x62   :  { %1051 = vmatmul.mubr.bf16.gmra.mxu0 %v2047_v27 }
  0x63   :  { %1058 = vmatprep.mubr.bf16.mxu0 %v2053_v29 }
  0x64   :  { %1172 = vmatmul.mubr.bf16.gmra.mxu1 %v2050_v28 }
  0x65   :  { %1179 = vmatprep.mubr.bf16.mxu1 %v2056_v30 }
  0x6a   :  { %1059 = vmatmul.mubr.bf16.gmra.mxu0 %v2055_v31 }
  0x6b   :  { %1066 = vmatprep.mubr.bf16.mxu0 %v2062_v33 }
  0x6c   :  { %1180 = vmatmul.mubr.bf16.gmra.mxu1 %v2058_v32 }
  0x6d   :  { %1187 = vmatprep.mubr.bf16.mxu1 %v2065_v34 }
  0x72   :  { %1067 = vmatmul.mubr.bf16.gmra.mxu0 %v2064_v35 }
  0x73   :  { %1228 = vmatprep.mubr.bf16.mxu0 %v2071_v38 }
  0x74   :  { %1188 = vmatmul.mubr.bf16.gmra.mxu1 %v2067_v37 }
  0x75   :  { %1901 = vmatprep.mubr.msk.bf16.mxu1 %vm2114_vm0, %v2113_v36 }
  0x7a   :  { %1229 = vmatmul.mubr.bf16.vlgmr.msra.gmra.mxu0 %v2069_v39 }
  0x7b   :  { %1236 = vmatprep.mubr.bf16.mxu0 %v2073_v41 }
  0x7c   :  { %1902 = vmatmul.mubr.bf16.vlgmr.msra.gmra.mxu1 %v2072_v40 }
  0x7d   :  { %1905 = vmatprep.mubr.msk.bf16.mxu1 %vm2114_vm0, %v2113_v36 }
  0x82   :  { %1237 = vmatmul.mubr.bf16.gmra.mxu0 %v2075_v42 }
  0x83   :  { %1244 = vmatprep.mubr.bf16.mxu0 %v2077_v44 }
  0x84   :  { %1906 = vmatmul.mubr.bf16.gmra.mxu1 %v2076_v43 }
  0x85   :  { %1909 = vmatprep.mubr.msk.bf16.mxu1 %vm2114_vm0, %v2113_v36 }
  0x8a   :  { %1245 = vmatmul.mubr.bf16.gmra.mxu0 %v2079_v45 }
  0x8b   :  { %1252 = vmatprep.mubr.bf16.mxu0 %v2081_v47 }
  0x8c   :  { %1910 = vmatmul.mubr.bf16.gmra.mxu1 %v2080_v46 }
  0x8d   :  { %1913 = vmatprep.mubr.msk.bf16.mxu1 %vm2114_vm0, %v2113_v36 }
  0x92   :  { %1253 = vmatmul.mubr.bf16.gmra.mxu0 %v2083_v48 }
  0x93   :  { %1260 = vmatprep.mubr.bf16.mxu0 %v2085_v50 }
  0x94   :  { %1914 = vmatmul.mubr.bf16.gmra.mxu1 %v2084_v49 }
  0x95   :  { %1917 = vmatprep.mubr.msk.bf16.mxu1 %vm2114_vm0, %v2113_v36 }
  0x9a   :  { %1261 = vmatmul.mubr.bf16.gmra.mxu0 %v2087_v51 }
  0x9b   :  { %1268 = vmatprep.mubr.bf16.mxu0 %v2089_v53 }
  0x9c   :  { %1918 = vmatmul.mubr.bf16.gmra.mxu1 %v2088_v52 }
  0x9d   :  { %1921 = vmatprep.mubr.msk.bf16.mxu1 %vm2114_vm0, %v2113_v36 }
  0xa2   :  { %1269 = vmatmul.mubr.bf16.gmra.mxu0 %v2091_v54 }
  0xa3   :  { %1276 = vmatprep.mubr.bf16.mxu0 %v2093_v56 }
  0xa4   :  { %1922 = vmatmul.mubr.bf16.gmra.mxu1 %v2092_v55 }
  0xa5   :  { %1925 = vmatprep.mubr.msk.bf16.mxu1 %vm2114_vm0, %v2113_v36 }
  0xaa   :  { %1277 = vmatmul.mubr.bf16.gmra.mxu0 %v2095_v57 }
  0xab   :  { %1284 = vmatprep.mubr.bf16.mxu0 %v2097_v59 }
  0xac   :  { %1926 = vmatmul.mubr.bf16.gmra.mxu1 %v2096_v58 }
  0xad   :  { %1929 = vmatprep.mubr.msk.bf16.mxu1 %vm2114_vm0, %v2113_v36 }
  0xb2   :  { %1285 = vmatmul.mubr.bf16.gmra.mxu0 %v2099_v60 }
  0xb3   :  { %1292 = vmatprep.mubr.bf16.mxu0 %v2101_v62 }
  0xb4   :  { %1930 = vmatmul.mubr.bf16.gmra.mxu1 %v2100_v61 }
  0xb5   :  { %1933 = vmatprep.mubr.msk.bf16.mxu1 %vm2114_vm0, %v2113_v36 }
  0xba   :  { %1293 = vmatmul.mubr.bf16.gmra.mxu0 %v2103_v63 }
  0xbb   :  { %1300 = vmatprep.mubr.bf16.mxu0 %v2105_v1 }
  0xbc   :  { %1934 = vmatmul.mubr.bf16.gmra.mxu1 %v2104_v0 }
  0xbd   :  { %1937 = vmatprep.mubr.msk.bf16.mxu1 %vm2114_vm0, %v2113_v36 }
  0xc2   :  { %1301 = vmatmul.mubr.bf16.gmra.mxu0 %v2107_v2 }
  0xc3   :  { %1308 = vmatprep.mubr.bf16.mxu0 %v2109_v4 }
  0xc4   :  { %1938 = vmatmul.mubr.bf16.gmra.mxu1 %v2108_v3 }
  0xc5   :  { %1941 = vmatprep.mubr.msk.bf16.mxu1 %vm2114_vm0, %v2113_v36 }
  0xca   :  { %1309 = vmatmul.mubr.bf16.gmra.mxu0 %v2111_v5 }
  0xcc   :  { %1942 = vmatmul.mubr.bf16.gmra.mxu1 %v2112_v6 }
  0xe2   :  { %v1636_v7 = vpop.f32.mrf.mxu0 }
  0xe4   :  { %v1718_v8 = vpop.f32.mrf.mxu1  ;;  %v1637_v10 = vpop.f32.mrf.mxu0 }
  0xe5   :  { %v1638_v11 = vadd.f32 %v1637_v10, %v1636_v7 }
  0xe6   :  { %v1719_v36 = vpop.f32.mrf.mxu1  ;;  %v1639_v13 = vpop.f32.mrf.mxu0 }
  0xe7   :  { %v1720_v12 = vadd.f32 %v1719_v36, %v1718_v8  ;;  %v989_v14 = vadd.f32 %v1638_v11, %v2567_v9 }
  0xe8   :  { %v1721_v15 = vpop.f32.mrf.mxu1  ;;  %v1640_v16 = vpop.f32.mrf.mxu0 }
  0xe9   :  { %v2570_v17 = vadd.f32 %v1720_v12, %v989_v14  ;;  %v1641_v18 = vadd.f32 %v1640_v16, %v1639_v13 }
  0xea   :  { %v1722_v19 = vpop.f32.mrf.mxu1  ;;  %v1642_v21 = vpop.f32.mrf.mxu0 }
  0xeb   :  { %v1723_v20 = vadd.f32 %v1722_v19, %v1721_v15  ;;  %v992_v22 = vadd.f32 %v1641_v18, %v2567_v9 }
  0xec   :  { %v1724_v23 = vpop.f32.mrf.mxu1  ;;  %v1643_v24 = vpop.f32.mrf.mxu0 }
  0xed   :  { %v2573_v25 = vadd.f32 %v1723_v20, %v992_v22  ;;  %v1644_v26 = vadd.f32 %v1643_v24, %v1642_v21 }
  0xee   :  { %v1725_v27 = vpop.f32.mrf.mxu1  ;;  %v1645_v29 = vpop.f32.mrf.mxu0 }
  0xef   :  { %v1726_v28 = vadd.f32 %v1725_v27, %v1724_v23  ;;  %v997_v30 = vadd.f32 %v1644_v26, %v2567_v9 }
  0xf0   :  { %v1727_v31 = vpop.f32.mrf.mxu1  ;;  %v1646_v32 = vpop.f32.mrf.mxu0 }
  0xf1   :  { %v2576_v33 = vadd.f32 %v1726_v28, %v997_v30  ;;  %v1647_v34 = vadd.f32 %v1646_v32, %v1645_v29 }
  0xf2   :  { %v1728_v35 = vpop.f32.mrf.mxu1  ;;  %v1648_v38 = vpop.f32.mrf.mxu0 }
  0xf3   :  { %v1729_v37 = vadd.f32 %v1728_v35, %v1727_v31  ;;  %v1000_v39 = vadd.f32 %v1647_v34, %v2567_v9 }
  0xf4   :  { %v1730_v40 = vpop.f32.mrf.mxu1  ;;  %v1649_v41 = vpop.f32.mrf.mxu0 }
  0xf5   :  { %v2579_v42 = vadd.f32 %v1729_v37, %v1000_v39  ;;  %v1650_v43 = vadd.f32 %v1649_v41, %v1648_v38 }
  0xf6   :  { %v1731_v44 = vpop.f32.mrf.mxu1  ;;  %v1651_v46 = vpop.f32.mrf.mxu0 }
  0xf7   :  { %v1732_v45 = vadd.f32 %v1731_v44, %v1730_v40  ;;  %v1005_v47 = vadd.f32 %v1650_v43, %v2567_v9 }
  0xf8   :  { %v1733_v48 = vpop.f32.mrf.mxu1  ;;  %v1652_v49 = vpop.f32.mrf.mxu0 }
  0xf9   :  { %v2582_v50 = vadd.f32 %v1732_v45, %v1005_v47  ;;  %v1653_v51 = vadd.f32 %v1652_v49, %v1651_v46 }
  0xfa   :  { %v1734_v52 = vpop.f32.mrf.mxu1  ;;  %v1654_v54 = vpop.f32.mrf.mxu0 }
  0xfb   :  { %v1735_v53 = vadd.f32 %v1734_v52, %v1733_v48  ;;  %v1008_v55 = vadd.f32 %v1653_v51, %v2567_v9 }
  0xfc   :  { %v1736_v56 = vpop.f32.mrf.mxu1  ;;  %v1655_v57 = vpop.f32.mrf.mxu0 }
  0xfd   :  { %v2585_v58 = vadd.f32 %v1735_v53, %v1008_v55  ;;  %v1656_v59 = vadd.f32 %v1655_v57, %v1654_v54 }
  0xfe   :  { %v1737_v60 = vpop.f32.mrf.mxu1  ;;  %v1657_v62 = vpop.f32.mrf.mxu0 }
  0xff   :  { %v1738_v61 = vadd.f32 %v1737_v60, %v1736_v56  ;;  %v1013_v63 = vadd.f32 %v1656_v59, %v2567_v9 }
 0x100   :  { %v1739_v0 = vpop.f32.mrf.mxu1  ;;  %v1658_v1 = vpop.f32.mrf.mxu0 }
 0x101   :  { %v2588_v2 = vadd.f32 %v1738_v61, %v1013_v63  ;;  %v1659_v3 = vadd.f32 %v1658_v1, %v1657_v62 }
 0x102   :  { %v1740_v4 = vpop.f32.mrf.mxu1  ;;  %v1660_v6 = vpop.f32.mrf.mxu0 }
 0x103   :  { %v1741_v5 = vadd.f32 %v1740_v4, %v1739_v0  ;;  %v1016_v7 = vadd.f32 %v1659_v3, %v2567_v9 }
 0x104   :  { %v1742_v8 = vpop.f32.mrf.mxu1  ;;  %v1661_v10 = vpop.f32.mrf.mxu0 }
 0x105   :  { %v2591_v11 = vadd.f32 %v1741_v5, %v1016_v7  ;;  %v1662_v36 = vadd.f32 %v1661_v10, %v1660_v6 }
 0x106   :  { %v1743_v12 = vpop.f32.mrf.mxu1  ;;  %v1663_v14 = vpop.f32.mrf.mxu0 }
 0x107   :  { %v1744_v13 = vadd.f32 %v1743_v12, %v1742_v8  ;;  %v1021_v15 = vadd.f32 %v1662_v36, %v2567_v9 }
 0x108   :  { %v1745_v16 = vpop.f32.mrf.mxu1  ;;  %v1664_v18 = vpop.f32.mrf.mxu0 }
 0x109   :  { %v2594_v19 = vadd.f32 %v1744_v13, %v1021_v15  ;;  %v1665_v20 = vadd.f32 %v1664_v18, %v1663_v14 }
 0x10a   :  { %v1746_v21 = vpop.f32.mrf.mxu1  ;;  %v1666_v23 = vpop.f32.mrf.mxu0 }
 0x10b   :  { %v1747_v22 = vadd.f32 %v1746_v21, %v1745_v16  ;;  %v1024_v24 = vadd.f32 %v1665_v20, %v2567_v9 }
 0x10c   :  { %v1748_v26 = vpop.f32.mrf.mxu1  ;;  %v1667_v27 = vpop.f32.mrf.mxu0 }
 0x10d   :  { %v2597_v28 = vadd.f32 %v1747_v22, %v1024_v24  ;;  %v1668_v29 = vadd.f32 %v1667_v27, %v1666_v23 }
 0x10e   :  { %v1749_v30 = vpop.f32.mrf.mxu1  ;;  %v1669_v32 = vpop.f32.mrf.mxu0 }
 0x10f   :  { %v1750_v31 = vadd.f32 %v1749_v30, %v1748_v26  ;;  %v1029_v34 = vadd.f32 %v1668_v29, %v2567_v9 }
 0x110   :  { %v1751_v35 = vpop.f32.mrf.mxu1  ;;  %v1670_v37 = vpop.f32.mrf.mxu0 }
 0x111   :  { %v2600_v38 = vadd.f32 %v1750_v31, %v1029_v34  ;;  %v1671_v39 = vadd.f32 %v1670_v37, %v1669_v32 }
 0x112   :  { %v1752_v40 = vpop.f32.mrf.mxu1  ;;  %v1672_v43 = vpop.f32.mrf.mxu0 }
 0x113   :  { %v1753_v41 = vadd.f32 %v1752_v40, %v1751_v35  ;;  %v1032_v44 = vadd.f32 %v1671_v39, %v2567_v9 }
 0x114   :  { %v1754_v45 = vpop.f32.mrf.mxu1  ;;  %v1673_v46 = vpop.f32.mrf.mxu0 }
 0x115   :  { %v2603_v47 = vadd.f32 %v1753_v41, %v1032_v44  ;;  %v1674_v48 = vadd.f32 %v1673_v46, %v1672_v43 }
 0x116   :  { %v1755_v49 = vpop.f32.mrf.mxu1  ;;  %v1675_v52 = vpop.f32.mrf.mxu0 }
 0x117   :  { %v1756_v51 = vadd.f32 %v1755_v49, %v1754_v45  ;;  %v1037_v53 = vadd.f32 %v1674_v48, %v2567_v9 }
 0x118   :  { %v1757_v54 = vpop.f32.mrf.mxu1  ;;  %v1676_v55 = vpop.f32.mrf.mxu0 }
 0x119   :  { %v2606_v56 = vadd.f32 %v1756_v51, %v1037_v53  ;;  %v1677_v57 = vadd.f32 %v1676_v55, %v1675_v52 }
 0x11a   :  { %v1758_v59 = vpop.f32.mrf.mxu1  ;;  %v1678_v61 = vpop.f32.mrf.mxu0 }
 0x11b   :  { %v1759_v60 = vadd.f32 %v1758_v59, %v1757_v54  ;;  %v1040_v62 = vadd.f32 %v1677_v57, %v2567_v9 }
 0x11c   :  { %v1760_v63 = vpop.f32.mrf.mxu1  ;;  %v1679_v0 = vpop.f32.mrf.mxu0 }
 0x11d   :  { %v2609_v1 = vadd.f32 %v1759_v60, %v1040_v62  ;;  %v1680_v3 = vadd.f32 %v1679_v0, %v1678_v61 }
 0x11e   :  { %v1761_v4 = vpop.f32.mrf.mxu1  ;;  %v1681_v6 = vpop.f32.mrf.mxu0 }
 0x11f   :  { %v1762_v5 = vadd.f32 %v1761_v4, %v1760_v63  ;;  %v1045_v7 = vadd.f32 %v1680_v3, %v2567_v9 }
 0x120   :  { %v1763_v8 = vpop.f32.mrf.mxu1  ;;  %v1682_v10 = vpop.f32.mrf.mxu0 }
 0x121   :  { %v2612_v36 = vadd.f32 %v1762_v5, %v1045_v7  ;;  %v1683_v12 = vadd.f32 %v1682_v10, %v1681_v6 }
 0x122   :  { %v1764_v13 = vpop.f32.mrf.mxu1  ;;  %v1684_v15 = vpop.f32.mrf.mxu0 }
 0x123   :  { %v1765_v14 = vadd.f32 %v1764_v13, %v1763_v8  ;;  %v1048_v16 = vadd.f32 %v1683_v12, %v2567_v9 }
 0x124   :  { %v1766_v18 = vpop.f32.mrf.mxu1  ;;  %v1685_v20 = vpop.f32.mrf.mxu0 }
 0x125   :  { %v2615_v21 = vadd.f32 %v1765_v14, %v1048_v16  ;;  %v1686_v22 = vadd.f32 %v1685_v20, %v1684_v15 }
 0x126   :  { %v1767_v23 = vpop.f32.mrf.mxu1  ;;  %v1687_v26 = vpop.f32.mrf.mxu0 }
 0x127   :  { %v1768_v24 = vadd.f32 %v1767_v23, %v1766_v18  ;;  %v1053_v27 = vadd.f32 %v1686_v22, %v2567_v9 }
 0x128   :  { %v1769_v29 = vpop.f32.mrf.mxu1  ;;  %v1688_v30 = vpop.f32.mrf.mxu0 }
 0x129   :  { %v2618_v31 = vadd.f32 %v1768_v24, %v1053_v27  ;;  %v1689_v32 = vadd.f32 %v1688_v30, %v1687_v26 }
 0x12a   :  { %v1770_v34 = vpop.f32.mrf.mxu1  ;;  %v1690_v37 = vpop.f32.mrf.mxu0 }
 0x12b   :  { %v1771_v35 = vadd.f32 %v1770_v34, %v1769_v29  ;;  %v1056_v39 = vadd.f32 %v1689_v32, %v2567_v9 }
 0x12c   :  { %v1772_v40 = vpop.f32.mrf.mxu1  ;;  %v1691_v41 = vpop.f32.mrf.mxu0 }
 0x12d   :  { %v2621_v43 = vadd.f32 %v1771_v35, %v1056_v39  ;;  %v1692_v44 = vadd.f32 %v1691_v41, %v1690_v37 }
 0x12e   :  { %v1773_v45 = vpop.f32.mrf.mxu1  ;;  %v1693_v48 = vpop.f32.mrf.mxu0 }
 0x12f   :  { %v1774_v46 = vadd.f32 %v1773_v45, %v1772_v40  ;;  %v1061_v49 = vadd.f32 %v1692_v44, %v2567_v9 }
 0x130   :  { %v1775_v51 = vpop.f32.mrf.mxu1  ;;  %v1694_v52 = vpop.f32.mrf.mxu0 }
 0x131   :  { %v2624_v53 = vadd.f32 %v1774_v46, %v1061_v49  ;;  %v1695_v54 = vadd.f32 %v1694_v52, %v1693_v48 }
 0x132   :  { %v1776_v55 = vpop.f32.mrf.mxu1  ;;  %v1696_v59 = vpop.f32.mrf.mxu0 }
 0x133   :  { %v1777_v57 = vadd.f32 %v1776_v55, %v1775_v51  ;;  %v1064_v60 = vadd.f32 %v1695_v54, %v2567_v9 }
 0x134   :  { %v1778_v61 = vpop.f32.mrf.mxu1  ;;  %v1697_v62 = vpop.f32.mrf.mxu0 }
 0x135   :  { %v2627_v63 = vadd.f32 %v1777_v57, %v1064_v60  ;;  %v1698_v0 = vadd.f32 %v1697_v62, %v1696_v59 }
 0x136   :  { %v1779_v3 = vpop.f32.mrf.mxu1  ;;  %v1699_v5 = vpop.f32.mrf.mxu0 }
 0x137   :  { %v1780_v4 = vadd.f32 %v1779_v3, %v1778_v61  ;;  %v1069_v6 = vadd.f32 %v1698_v0, %v2567_v9 }
 0x138   :  { %v1781_v7 = vpop.f32.mrf.mxu1  ;;  %v1700_v8 = vpop.f32.mrf.mxu0 }
 0x139   :  { %v2630_v10 = vadd.f32 %v1780_v4, %v1069_v6  ;;  %v1701_v12 = vadd.f32 %v1700_v8, %v1699_v5 }
 0x13a   :  { %v1782_v13 = vpop.f32.mrf.mxu1  ;;  %v1800_v15 = vpop.f32.mrf.mxu0 }
 0x13b   :  { %v1783_v14 = vadd.f32 %v1782_v13, %v1781_v7  ;;  %v1072_v16 = vadd.f32 %v1701_v12, %v2567_v9 }
 0x13c   :  { %v1351_v18 = vpop.f32.mrf.mxu1  ;;  %v1801_v20 = vpop.f32.mrf.mxu0 }
 0x13d   :  { %v2633_v22 = vadd.f32 %v1783_v14, %v1072_v16  ;;  %v1802_v23 = vadd.f32 %v1801_v20, %v1800_v15 }
 0x13e   :  { %v1903_v24 = vpop.f32.mrf.mxu1  ;;  %v1803_v26 = vpop.f32.mrf.mxu0 }
 0x13f   :  { %v1231_v27 = vadd.f32 %v1802_v23, %v2570_v17 }
 0x140   :  { %v1354_v29 = vpop.f32.mrf.mxu1  ;;  %v1804_v30 = vpop.f32.mrf.mxu0 }
 0x141   :  { %v1352_v32 = vadd.f32 %v1351_v18, %v1231_v27  ;;  %v1805_v34 = vadd.f32 %v1804_v30, %v1803_v26 }
 0x142   :  { %v1904_v35 = vpop.f32.mrf.mxu1  ;;  %v1806_v37 = vpop.f32.mrf.mxu0 }
 0x143   :  { %v1438_v39 = vmax.f32 %v1352_v32, 0.0  ;;  %v1234_v40 = vadd.f32 %v1805_v34, %v2573_v25 }
 0x144   :  { %v1359_v41 = vpop.f32.mrf.mxu1  ;;  %v1807_v9 = vpop.f32.mrf.mxu0 }
 0x145   :  { %1460 = vst [vmem:[%s2726_s3] sm:$0xff] %v1438_v39  ;;  %v1355_v44 = vadd.f32 %v1354_v29, %v1234_v40  ;;  %v1808_v45 = vadd.f32 %v1807_v9, %v1806_v37 }
 0x146   :  { %v1907_v46 = vpop.f32.mrf.mxu1  ;;  %v1809_v48 = vpop.f32.mrf.mxu0 }
 0x147   :  { %v1439_v17 = vmax.f32 %v1355_v44, 0.0  ;;  %v1239_v49 = vadd.f32 %v1808_v45, %v2576_v33 }
 0x148   :  { %v1362_v51 = vpop.f32.mrf.mxu1  ;;  %v1810_v52 = vpop.f32.mrf.mxu0 }
 0x149   :  { %1461 = vst [vmem:[%s2726_s3 + $0x8] sm:$0xff] %v1439_v17  ;;  %v1360_v25 = vadd.f32 %v1359_v41, %v1239_v49  ;;  %v1811_v54 = vadd.f32 %v1810_v52, %v1809_v48 }
 0x14a   :  { %v1908_v55 = vpop.f32.mrf.mxu1  ;;  %v1812_v57 = vpop.f32.mrf.mxu0 }
 0x14b   :  { %v1440_v59 = vmax.f32 %v1360_v25, 0.0  ;;  %v1242_v60 = vadd.f32 %v1811_v54, %v2579_v42 }
 0x14c   :  { %v1367_v61 = vpop.f32.mrf.mxu1  ;;  %v1813_v62 = vpop.f32.mrf.mxu0 }
 0x14d   :  { %1462 = vst [vmem:[%s2726_s3 + $0x10] sm:$0xff] %v1440_v59  ;;  %v1363_v33 = vadd.f32 %v1362_v51, %v1242_v60  ;;  %v1814_v0 = vadd.f32 %v1813_v62, %v1812_v57 }
 0x14e   :  { %v1911_v3 = vpop.f32.mrf.mxu1  ;;  %v1815_v4 = vpop.f32.mrf.mxu0 }
 0x14f   :  { %v1441_v5 = vmax.f32 %v1363_v33, 0.0  ;;  %v1247_v6 = vadd.f32 %v1814_v0, %v2582_v50 }
 0x150   :  { %v1370_v7 = vpop.f32.mrf.mxu1  ;;  %v1816_v8 = vpop.f32.mrf.mxu0 }
 0x151   :  { %1463 = vst [vmem:[%s2726_s3 + $0x18] sm:$0xff] %v1441_v5  ;;  %v1368_v42 = vadd.f32 %v1367_v61, %v1247_v6  ;;  %v1817_v12 = vadd.f32 %v1816_v8, %v1815_v4 }
 0x152   :  { %v1912_v13 = vpop.f32.mrf.mxu1  ;;  %v1818_v14 = vpop.f32.mrf.mxu0 }
 0x153   :  { %v1442_v15 = vmax.f32 %v1368_v42, 0.0  ;;  %v1250_v16 = vadd.f32 %v1817_v12, %v2585_v58 }
 0x154   :  { %v1375_v18 = vpop.f32.mrf.mxu1  ;;  %v1819_v20 = vpop.f32.mrf.mxu0 }
 0x155   :  { %1464 = vst [vmem:[%s2726_s3 + $0x20] sm:$0xff] %v1442_v15  ;;  %v1371_v50 = vadd.f32 %v1370_v7, %v1250_v16  ;;  %v1820_v23 = vadd.f32 %v1819_v20, %v1818_v14 }
 0x156   :  { %v1915_v24 = vpop.f32.mrf.mxu1  ;;  %v1821_v26 = vpop.f32.mrf.mxu0 }
 0x157   :  { %v1443_v27 = vmax.f32 %v1371_v50, 0.0  ;;  %v1255_v29 = vadd.f32 %v1820_v23, %v2588_v2 }
 0x158   :  { %v1378_v30 = vpop.f32.mrf.mxu1  ;;  %v1822_v32 = vpop.f32.mrf.mxu0 }
 0x159   :  { %1465 = vst [vmem:[%s2726_s3 + $0x28] sm:$0xff] %v1443_v27  ;;  %v1376_v58 = vadd.f32 %v1375_v18, %v1255_v29  ;;  %v1823_v34 = vadd.f32 %v1822_v32, %v1821_v26 }
 0x15a   :  { %v1916_v35 = vpop.f32.mrf.mxu1  ;;  %v1824_v37 = vpop.f32.mrf.mxu0 }
 0x15b   :  { %v1444_v39 = vmax.f32 %v1376_v58, 0.0  ;;  %v1258_v40 = vadd.f32 %v1823_v34, %v2591_v11 }
 0x15c   :  { %v1383_v41 = vpop.f32.mrf.mxu1  ;;  %v1825_v9 = vpop.f32.mrf.mxu0 }
 0x15d   :  { %1466 = vst [vmem:[%s2726_s3 + $0x30] sm:$0xff] %v1444_v39  ;;  %v1379_v2 = vadd.f32 %v1378_v30, %v1258_v40  ;;  %v1826_v44 = vadd.f32 %v1825_v9, %v1824_v37 }
 0x15e   :  { %v1919_v45 = vpop.f32.mrf.mxu1  ;;  %v1827_v46 = vpop.f32.mrf.mxu0 }
 0x15f   :  { %v1445_v48 = vmax.f32 %v1379_v2, 0.0  ;;  %v1263_v17 = vadd.f32 %v1826_v44, %v2594_v19 }
 0x160   :  { %v1386_v49 = vpop.f32.mrf.mxu1  ;;  %v1828_v51 = vpop.f32.mrf.mxu0 }
 0x161   :  { %1467 = vst [vmem:[%s2726_s3 + $0x38] sm:$0xff] %v1445_v48  ;;  %v1384_v11 = vadd.f32 %v1383_v41, %v1263_v17  ;;  %v1829_v52 = vadd.f32 %v1828_v51, %v1827_v46 }
 0x162   :  { %v1920_v25 = vpop.f32.mrf.mxu1  ;;  %v1830_v54 = vpop.f32.mrf.mxu0 }
 0x163   :  { %v1446_v55 = vmax.f32 %v1384_v11, 0.0  ;;  %v1266_v57 = vadd.f32 %v1829_v52, %v2597_v28 }
 0x164   :  { %v1391_v59 = vpop.f32.mrf.mxu1  ;;  %v1831_v60 = vpop.f32.mrf.mxu0 }
 0x165   :  { %1468 = vst [vmem:[%s2726_s3 + $0x40] sm:$0xff] %v1446_v55  ;;  %v1387_v19 = vadd.f32 %v1386_v49, %v1266_v57  ;;  %v1832_v61 = vadd.f32 %v1831_v60, %v1830_v54 }
 0x166   :  { %v1923_v62 = vpop.f32.mrf.mxu1  ;;  %v1833_v33 = vpop.f32.mrf.mxu0 }
 0x167   :  { %v1447_v0 = vmax.f32 %v1387_v19, 0.0  ;;  %v1271_v3 = vadd.f32 %v1832_v61, %v2600_v38 }
 0x168   :  { %v1394_v4 = vpop.f32.mrf.mxu1  ;;  %v1834_v5 = vpop.f32.mrf.mxu0 }
 0x169   :  { %1469 = vst [vmem:[%s2726_s3 + $0x48] sm:$0xff] %v1447_v0  ;;  %v1392_v28 = vadd.f32 %v1391_v59, %v1271_v3  ;;  %v1835_v6 = vadd.f32 %v1834_v5, %v1833_v33 }
 0x16a   :  { %v1924_v7 = vpop.f32.mrf.mxu1  ;;  %v1836_v8 = vpop.f32.mrf.mxu0 }
 0x16b   :  { %v1448_v42 = vmax.f32 %v1392_v28, 0.0  ;;  %v1274_v12 = vadd.f32 %v1835_v6, %v2603_v47 }
 0x16c   :  { %v1399_v13 = vpop.f32.mrf.mxu1  ;;  %v1837_v14 = vpop.f32.mrf.mxu0 }
 0x16d   :  { %1470 = vst [vmem:[%s2726_s3 + $0x50] sm:$0xff] %v1448_v42  ;;  %v1395_v38 = vadd.f32 %v1394_v4, %v1274_v12  ;;  %v1838_v15 = vadd.f32 %v1837_v14, %v1836_v8 }
 0x16e   :  { %v1927_v16 = vpop.f32.mrf.mxu1  ;;  %v1839_v18 = vpop.f32.mrf.mxu0 }
 0x16f   :  { %v1449_v20 = vmax.f32 %v1395_v38, 0.0  ;;  %v1279_v50 = vadd.f32 %v1838_v15, %v2606_v56 }
 0x170   :  { %v1402_v23 = vpop.f32.mrf.mxu1  ;;  %v1840_v24 = vpop.f32.mrf.mxu0 }
 0x171   :  { %1471 = vst [vmem:[%s2726_s3 + $0x58] sm:$0xff] %v1449_v20  ;;  %v1400_v47 = vadd.f32 %v1399_v13, %v1279_v50  ;;  %v1841_v26 = vadd.f32 %v1840_v24, %v1839_v18 }
 0x172   :  { %v1928_v27 = vpop.f32.mrf.mxu1  ;;  %v1842_v29 = vpop.f32.mrf.mxu0 }
 0x173   :  { %v1450_v30 = vmax.f32 %v1400_v47, 0.0  ;;  %v1282_v32 = vadd.f32 %v1841_v26, %v2609_v1 }
 0x174   :  { %v1407_v58 = vpop.f32.mrf.mxu1  ;;  %v1843_v34 = vpop.f32.mrf.mxu0 }
 0x175   :  { %1472 = vst [vmem:[%s2726_s3 + $0x60] sm:$0xff] %v1450_v30  ;;  %v1403_v56 = vadd.f32 %v1402_v23, %v1282_v32  ;;  %v1844_v35 = vadd.f32 %v1843_v34, %v1842_v29 }
 0x176   :  { %v1931_v37 = vpop.f32.mrf.mxu1  ;;  %v1845_v39 = vpop.f32.mrf.mxu0 }
 0x177   :  { %v1451_v40 = vmax.f32 %v1403_v56, 0.0  ;;  %v1287_v41 = vadd.f32 %v1844_v35, %v2612_v36 }
 0x178   :  { %v1410_v9 = vpop.f32.mrf.mxu1  ;;  %v1846_v2 = vpop.f32.mrf.mxu0 }
 0x179   :  { %1473 = vst [vmem:[%s2726_s3 + $0x68] sm:$0xff] %v1451_v40  ;;  %v1408_v1 = vadd.f32 %v1407_v58, %v1287_v41  ;;  %v1847_v44 = vadd.f32 %v1846_v2, %v1845_v39 }
 0x17a   :  { %v1932_v45 = vpop.f32.mrf.mxu1  ;;  %v1848_v46 = vpop.f32.mrf.mxu0 }
 0x17b   :  { %v1452_v48 = vmax.f32 %v1408_v1, 0.0  ;;  %v1290_v17 = vadd.f32 %v1847_v44, %v2615_v21 }
 0x17c   :  { %v1415_v49 = vpop.f32.mrf.mxu1  ;;  %v1849_v51 = vpop.f32.mrf.mxu0 }
 0x17d   :  { %1474 = vst [vmem:[%s2726_s3 + $0x70] sm:$0xff] %v1452_v48  ;;  %v1411_v36 = vadd.f32 %v1410_v9, %v1290_v17  ;;  %v1850_v11 = vadd.f32 %v1849_v51, %v1848_v46 }
 0x17e   :  { %v1935_v52 = vpop.f32.mrf.mxu1  ;;  %v1851_v25 = vpop.f32.mrf.mxu0 }
 0x17f   :  { %v1453_v54 = vmax.f32 %v1411_v36, 0.0  ;;  %v1295_v55 = vadd.f32 %v1850_v11, %v2618_v31 }
 0x180   :  { %v1418_v57 = vpop.f32.mrf.mxu1  ;;  %v1852_v59 = vpop.f32.mrf.mxu0 }
 0x181   :  { %1475 = vst [vmem:[%s2726_s3 + $0x78] sm:$0xff] %v1453_v54  ;;  %v1416_v21 = vadd.f32 %v1415_v49, %v1295_v55  ;;  %v1853_v60 = vadd.f32 %v1852_v59, %v1851_v25 }
 0x182   :  { %v1936_v19 = vpop.f32.mrf.mxu1  ;;  %v1854_v61 = vpop.f32.mrf.mxu0 }
 0x183   :  { %v1454_v62 = vmax.f32 %v1416_v21, 0.0  ;;  %v1298_v33 = vadd.f32 %v1853_v60, %v2621_v43 }
 0x184   :  { %v1423_v0 = vpop.f32.mrf.mxu1  ;;  %v1855_v3 = vpop.f32.mrf.mxu0 }
 0x185   :  { %1476 = vst [vmem:[%s2726_s3 + $0x80] sm:$0xff] %v1454_v62  ;;  %v1419_v31 = vadd.f32 %v1418_v57, %v1298_v33  ;;  %v1856_v4 = vadd.f32 %v1855_v3, %v1854_v61 }
 0x186   :  { %v1939_v5 = vpop.f32.mrf.mxu1  ;;  %v1857_v28 = vpop.f32.mrf.mxu0 }
 0x187   :  { %v1455_v6 = vmax.f32 %v1419_v31, 0.0  ;;  %v1303_v7 = vadd.f32 %v1856_v4, %v2624_v53 }
 0x188   :  { %v1426_v8 = vpop.f32.mrf.mxu1  ;;  %v1858_v42 = vpop.f32.mrf.mxu0 }
 0x189   :  { %1477 = vst [vmem:[%s2726_s3 + $0x88] sm:$0xff] %v1455_v6  ;;  %v1424_v43 = vadd.f32 %v1423_v0, %v1303_v7  ;;  %v1859_v12 = vadd.f32 %v1858_v42, %v1857_v28 }
 0x18a   :  { %v1940_v13 = vpop.f32.mrf.mxu1  ;;  %v1860_v14 = vpop.f32.mrf.mxu0 }
 0x18b   :  { %v1456_v38 = vmax.f32 %v1424_v43, 0.0  ;;  %v1306_v15 = vadd.f32 %v1859_v12, %v2627_v63 }
 0x18c   :  { %v1431_v16 = vpop.f32.mrf.mxu1  ;;  %v1861_v18 = vpop.f32.mrf.mxu0 }
 0x18d   :  { %1478 = vst [vmem:[%s2726_s3 + $0x90] sm:$0xff] %v1456_v38  ;;  %v1427_v53 = vadd.f32 %v1426_v8, %v1306_v15  ;;  %v1862_v20 = vadd.f32 %v1861_v18, %v1860_v14 }
 0x18e   :  { %v1943_v50 = vpop.f32.mrf.mxu1  ;;  %v1863_v23 = vpop.f32.mrf.mxu0 }
 0x18f   :  { %v1457_v24 = vmax.f32 %v1427_v53, 0.0  ;;  %v1311_v47 = vadd.f32 %v1862_v20, %v2630_v10 }
 0x190   :  { %v1434_v26 = vpop.f32.mrf.mxu1  ;;  %v1864_v27 = vpop.f32.mrf.mxu0 }
 0x191   :  { %1479 = vst [vmem:[%s2726_s3 + $0x98] sm:$0xff] %v1457_v24  ;;  %v1432_v63 = vadd.f32 %v1431_v16, %v1311_v47  ;;  %v1865_v29 = vadd.f32 %v1864_v27, %v1863_v23 }
 0x192   :  { %v1944_v30 = vpop.f32.mrf.mxu1 }
 0x193   :  { %v1458_v32 = vmax.f32 %v1432_v63, 0.0  ;;  %v1314_v58 = vadd.f32 %v1865_v29, %v2633_v22 }
 0x195   :  { %1480 = vst [vmem:[%s2726_s3 + $0xa0] sm:$0xff] %v1458_v32  ;;  %v1435_v34 = vadd.f32 %v1434_v26, %v1314_v58 }
 0x197   :  { %v1459_v56 = vmax.f32 %v1435_v34, 0.0 }
 0x199   :  { %1481 = vst [vmem:[%s2726_s3 + $0xa8] sm:$0xff] %v1459_v56 }

// kernel: imagenet_convnet_bp_forward.10
= control target key start
LH: loop header
LB: loop body
LE: loop exit
PB: predicated region body
PF: predicated region fallthrough
CT: control target
= control target key end

     0   :  { %s2670_s1 = inlined_call_operand.vmem [shape: bf16[896,256], index: 1, kind: input, shape index: {}]   ;;  %s2671_s0 = inlined_call_operand.vmem [shape: bf16[112,896], index: 0, kind: input, shape index: {}]   ;;  %s2672_s2 = inlined_call_operand.vmem [shape: f32[1,256], index: 2, kind: input, shape index: {}]   ;;  %s2673_s3 = inlined_call_operand.vmem [shape: f32[112,256], index: 3, kind: output, shape index: {}]  }
   0x1   :  { %v1641_v0 = vld [vmem:[%s2670_s1 + $0x74] ss:$8 sps:$4 sm:$0xff]   ;;  %v1643_v1 = vld [vmem:[%s2670_s1 + $0x70] ss:$8 sps:$4 sm:$0xff]   ;;  %v1647_v4 = vld [vmem:[%s2670_s1 + $0x64] ss:$8 sps:$4 sm:$0xff]  }
   0x2   :  { %1007 = vmatprep.subr.bf16.mxu0 %v1641_v0  ;;  %v1644_v2 = vld [vmem:[%s2670_s1 + $0x174] ss:$8 sps:$4 sm:$0xff]   ;;  %v1646_v3 = vld [vmem:[%s2670_s1 + $0x170] ss:$8 sps:$4 sm:$0xff]   ;;  %v1649_v5 = vld [vmem:[%s2670_s1 + $0x60] ss:$8 sps:$4 sm:$0xff]  }
   0x3   :  { %1008 = vmatpush1.bf16.msra.mxu0 %v1643_v1  ;;  %1110 = vmatprep.subr.bf16.mxu1 %v1644_v2  ;;  %v1650_v6 = vld [vmem:[%s2670_s1 + $0x164] ss:$8 sps:$4 sm:$0xff]   ;;  %v1652_v7 = vld [vmem:[%s2670_s1 + $0x160] ss:$8 sps:$4 sm:$0xff]   ;;  %v1653_v8 = vld [vmem:[%s2670_s1 + $0x54] ss:$8 sps:$4 sm:$0xff]  }
   0x4   :  { %1111 = vmatpush1.bf16.msra.mxu1 %v1646_v3  ;;  %1009 = vmatprep.subr.bf16.mxu0 %v1647_v4  ;;  %v1655_v9 = vld [vmem:[%s2670_s1 + $0x50] ss:$8 sps:$4 sm:$0xff]   ;;  %v1656_v10 = vld [vmem:[%s2670_s1 + $0x154] ss:$8 sps:$4 sm:$0xff]   ;;  %v1659_v11 = vld [vmem:[%s2670_s1 + $0x44] ss:$8 sps:$4 sm:$0xff]  }
   0x5   :  { %1112 = vmatprep.subr.bf16.mxu1 %v1650_v6  ;;  %v1658_v12 = vld [vmem:[%s2670_s1 + $0x150] ss:$8 sps:$4 sm:$0xff]   ;;  %v1662_v13 = vld [vmem:[%s2670_s1 + $0x144] ss:$8 sps:$4 sm:$0xff]   ;;  %v1661_v14 = vld [vmem:[%s2670_s1 + $0x40] ss:$8 sps:$4 sm:$0xff]  }
   0x6   :  { %v1665_v15 = vld [vmem:[%s2670_s1 + $0x34] ss:$8 sps:$4 sm:$0xff]   ;;  %v1664_v16 = vld [vmem:[%s2670_s1 + $0x140] ss:$8 sps:$4 sm:$0xff]   ;;  %v1667_v18 = vld [vmem:[%s2670_s1 + $0x30] ss:$8 sps:$4 sm:$0xff]  }
   0x7   :  { %1010 = vmatpush1.bf16.msra.mxu0 %v1649_v5  ;;  %v1668_v17 = vld [vmem:[%s2670_s1 + $0x134] ss:$8 sps:$4 sm:$0xff]   ;;  %v1671_v19 = vld [vmem:[%s2670_s1 + $0x24] ss:$8 sps:$4 sm:$0xff]   ;;  %v1670_v20 = vld [vmem:[%s2670_s1 + $0x130] ss:$8 sps:$4 sm:$0xff]  }
   0x8   :  { %1011 = vmatprep.subr.bf16.mxu0 %v1653_v8  ;;  %1113 = vmatpush1.bf16.msra.mxu1 %v1652_v7  ;;  %v1674_v21 = vld [vmem:[%s2670_s1 + $0x124] ss:$8 sps:$4 sm:$0xff]   ;;  %v1673_v22 = vld [vmem:[%s2670_s1 + $0x20] ss:$8 sps:$4 sm:$0xff]   ;;  %v1677_v23 = vld [vmem:[%s2670_s1 + $0x14] ss:$8 sps:$4 sm:$0xff]  }
   0x9   :  { %1114 = vmatprep.subr.bf16.mxu1 %v1656_v10  ;;  %v1676_v24 = vld [vmem:[%s2670_s1 + $0x120] ss:$8 sps:$4 sm:$0xff]   ;;  %v1680_v25 = vld [vmem:[%s2670_s1 + $0x114] ss:$8 sps:$4 sm:$0xff]   ;;  %v1679_v26 = vld [vmem:[%s2670_s1 + $0x10] ss:$8 sps:$4 sm:$0xff]  }
   0xa   :  { %v1683_v27 = vld [vmem:[%s2670_s1 + $0x4] ss:$8 sps:$4 sm:$0xff]   ;;  %v1682_v28 = vld [vmem:[%s2670_s1 + $0x110] ss:$8 sps:$4 sm:$0xff]   ;;  %v1685_v30 = vld [vmem:[%s2670_s1] ss:$8 sps:$4 sm:$0xff]  }
   0xb   :  { %1012 = vmatpush1.bf16.msra.mxu0 %v1655_v9  ;;  %v1686_v29 = vld [vmem:[%s2670_s1 + $0x104] ss:$8 sps:$4 sm:$0xff]   ;;  %v1689_v31 = vld [vmem:[%s2670_s1 + $0xf4] ss:$8 sps:$4 sm:$0xff]   ;;  %v1688_v32 = vld [vmem:[%s2670_s1 + $0x100] ss:$8 sps:$4 sm:$0xff]  }
   0xc   :  { %1013 = vmatprep.subr.bf16.mxu0 %v1659_v11  ;;  %1115 = vmatpush1.bf16.msra.mxu1 %v1658_v12  ;;  %v1692_v33 = vld [vmem:[%s2670_s1 + $0x1f4] ss:$8 sps:$4 sm:$0xff]   ;;  %v1691_v34 = vld [vmem:[%s2670_s1 + $0xf0] ss:$8 sps:$4 sm:$0xff]   ;;  %v1695_v35 = vld [vmem:[%s2670_s1 + $0xe4] ss:$8 sps:$4 sm:$0xff]  }
   0xd   :  { %1116 = vmatprep.subr.bf16.mxu1 %v1662_v13  ;;  %v1694_v36 = vld [vmem:[%s2670_s1 + $0x1f0] ss:$8 sps:$4 sm:$0xff]   ;;  %v1698_v37 = vld [vmem:[%s2670_s1 + $0x1e4] ss:$8 sps:$4 sm:$0xff]   ;;  %v1697_v38 = vld [vmem:[%s2670_s1 + $0xe0] ss:$8 sps:$4 sm:$0xff]  }
   0xe   :  { %v1701_v39 = vld [vmem:[%s2670_s1 + $0xd4] ss:$8 sps:$4 sm:$0xff]   ;;  %v1700_v40 = vld [vmem:[%s2670_s1 + $0x1e0] ss:$8 sps:$4 sm:$0xff]   ;;  %v1703_v42 = vld [vmem:[%s2670_s1 + $0xd0] ss:$8 sps:$4 sm:$0xff]  }
   0xf   :  { %1014 = vmatpush1.bf16.msra.mxu0 %v1661_v14  ;;  %v1704_v41 = vld [vmem:[%s2670_s1 + $0x1d4] ss:$8 sps:$4 sm:$0xff]   ;;  %v1707_v43 = vld [vmem:[%s2670_s1 + $0xc4] ss:$8 sps:$4 sm:$0xff]   ;;  %v1706_v44 = vld [vmem:[%s2670_s1 + $0x1d0] ss:$8 sps:$4 sm:$0xff]  }
  0x10   :  { %1015 = vmatprep.subr.bf16.mxu0 %v1665_v15  ;;  %1117 = vmatpush1.bf16.msra.mxu1 %v1664_v16  ;;  %v1710_v45 = vld [vmem:[%s2670_s1 + $0x1c4] ss:$8 sps:$4 sm:$0xff]   ;;  %v1709_v46 = vld [vmem:[%s2670_s1 + $0xc0] ss:$8 sps:$4 sm:$0xff]   ;;  %v1713_v48 = vld [vmem:[%s2670_s1 + $0xb4] ss:$8 sps:$4 sm:$0xff]  }
  0x11   :  { %1118 = vmatprep.subr.bf16.mxu1 %v1668_v17  ;;  %v1738_v47 = vld [vmem:[%s2671_s0 + $0x4] ss:$28 sps:$4 sm:$0xff]   ;;  %v1716_v50 = vld [vmem:[%s2670_s1 + $0x1b4] ss:$8 sps:$4 sm:$0xff]   ;;  %v1745_v51 = vld [vmem:[%s2671_s0 + $0xc] ss:$28 sps:$4 sm:$0xff]  }
  0x12   :  { %v1712_v49 = vld [vmem:[%s2670_s1 + $0x1c0] ss:$8 sps:$4 sm:$0xff]   ;;  %1039 = vmatprep.mubr.bf16.mxu0 %v1738_v47  ;;  %v1715_v52 = vld [vmem:[%s2670_s1 + $0xb0] ss:$8 sps:$4 sm:$0xff]   ;;  %v1719_v53 = vld [vmem:[%s2670_s1 + $0xa4] ss:$8 sps:$4 sm:$0xff]   ;;  %1142 = vmatprep.mubr.bf16.mxu1 %v1745_v51 }
  0x13   :  { %1016 = vmatpush1.bf16.msra.mxu0 %v1667_v18  ;;  %v1718_v54 = vld [vmem:[%s2670_s1 + $0x1b0] ss:$8 sps:$4 sm:$0xff]   ;;  %v1722_v55 = vld [vmem:[%s2670_s1 + $0x1a4] ss:$8 sps:$4 sm:$0xff]   ;;  %v1721_v56 = vld [vmem:[%s2670_s1 + $0xa0] ss:$8 sps:$4 sm:$0xff]  }
  0x14   :  { %1017 = vmatprep.subr.bf16.mxu0 %v1671_v19  ;;  %1119 = vmatpush1.bf16.msra.mxu1 %v1670_v20  ;;  %v1725_v57 = vld [vmem:[%s2670_s1 + $0x94] ss:$8 sps:$4 sm:$0xff]   ;;  %v1724_v58 = vld [vmem:[%s2670_s1 + $0x1a0] ss:$8 sps:$4 sm:$0xff]   ;;  %v1727_v60 = vld [vmem:[%s2670_s1 + $0x90] ss:$8 sps:$4 sm:$0xff]  }
  0x15   :  { %1120 = vmatprep.subr.bf16.mxu1 %v1674_v21  ;;  %v1728_v59 = vld [vmem:[%s2670_s1 + $0x194] ss:$8 sps:$4 sm:$0xff]   ;;  %v1731_v61 = vld [vmem:[%s2670_s1 + $0x84] ss:$8 sps:$4 sm:$0xff]   ;;  %v1730_v62 = vld [vmem:[%s2670_s1 + $0x190] ss:$8 sps:$4 sm:$0xff]  }
  0x16   :  { %v1734_v63 = vld [vmem:[%s2670_s1 + $0x184] ss:$8 sps:$4 sm:$0xff]   ;;  %v1733_v0 = vld [vmem:[%s2670_s1 + $0x80] ss:$8 sps:$4 sm:$0xff]   ;;  %v1742_v3 = vld [vmem:[%s2670_s1 + $0x274] ss:$8 sps:$4 sm:$0xff]  }
  0x17   :  { %1018 = vmatpush1.bf16.msra.mxu0 %v1673_v22  ;;  %v1739_v1 = vld [vmem:[%s2670_s1 + $0x180] ss:$8 sps:$4 sm:$0xff]   ;;  %v1740_v4 = vld [vmem:[%s2670_s1 + $0x270] ss:$8 sps:$4 sm:$0xff]   ;;  %v1756_v6 = vld [vmem:[%s2670_s1 + $0x374] ss:$8 sps:$4 sm:$0xff]  }
  0x18   :  { %1019 = vmatprep.subr.bf16.mxu0 %v1677_v23  ;;  %1121 = vmatpush1.bf16.msra.mxu1 %v1676_v24  ;;  %v1736_v2 = vld [vmem:[%s2671_s0] ss:$28 sps:$4 sm:$0xff]   ;;  %v1743_v5 = vld [vmem:[%s2671_s0 + $0x8] ss:$28 sps:$4 sm:$0xff]   ;;  %v1754_v9 = vld [vmem:[%s2670_s1 + $0x370] ss:$8 sps:$4 sm:$0xff]  }
  0x19   :  { %1122 = vmatprep.subr.bf16.mxu1 %v1680_v25  ;;  %v1748_v7 = vld [vmem:[%s2670_s1 + $0x264] ss:$8 sps:$4 sm:$0xff]   ;;  %v1752_v8 = vld [vmem:[%s2671_s0 + $0x3c] ss:$28 sps:$4 sm:$0xff]   ;;  %v1746_v12 = vld [vmem:[%s2670_s1 + $0x260] ss:$8 sps:$4 sm:$0xff]  }
  0x1a   :  { %v1758_v10 = vld [vmem:[%s2671_s0 + $0x44] ss:$28 sps:$4 sm:$0xff]   ;;  %v1751_v13 = vld [vmem:[%s2670_s1 + $0x254] ss:$8 sps:$4 sm:$0xff]   ;;  %v1749_v15 = vld [vmem:[%s2670_s1 + $0x250] ss:$8 sps:$4 sm:$0xff]  }
  0x1b   :  { %1020 = vmatpush1.bf16.msra.mxu0 %v1679_v26  ;;  %v1769_v11 = vld [vmem:[%s2670_s1 + $0x364] ss:$8 sps:$4 sm:$0xff]   ;;  %v1757_v14 = vld [vmem:[%s2671_s0 + $0x38] ss:$28 sps:$4 sm:$0xff]   ;;  %v1767_v16 = vld [vmem:[%s2670_s1 + $0x360] ss:$8 sps:$4 sm:$0xff]  }
  0x1c   :  { %1021 = vmatprep.subr.bf16.mxu0 %v1683_v27  ;;  %1123 = vmatpush1.bf16.msra.mxu1 %v1682_v28  ;;  %v1760_v17 = vld [vmem:[%s2671_s0 + $0x40] ss:$28 sps:$4 sm:$0xff]   ;;  %v1763_v19 = vld [vmem:[%s2670_s1 + $0x244] ss:$8 sps:$4 sm:$0xff]   ;;  %v1770_v20 = vld [vmem:[%s2671_s0 + $0x74] ss:$28 sps:$4 sm:$0xff]  }
  0x1d   :  { %1124 = vmatprep.subr.bf16.mxu1 %v1686_v29  ;;  %v1781_v18 = vld [vmem:[%s2670_s1 + $0x354] ss:$8 sps:$4 sm:$0xff]   ;;  %v1779_v22 = vld [vmem:[%s2670_s1 + $0x350] ss:$8 sps:$4 sm:$0xff]   ;;  %v1796_v23 = vld [vmem:[%s2670_s1 + $0x344] ss:$8 sps:$4 sm:$0xff]  }
  0x1e   :  { %v1773_v21 = vld [vmem:[%s2671_s0 + $0x7c] ss:$28 sps:$4 sm:$0xff]   ;;  %v1761_v24 = vld [vmem:[%s2670_s1 + $0x240] ss:$8 sps:$4 sm:$0xff]   ;;  %v1772_v26 = vld [vmem:[%s2671_s0 + $0x70] ss:$28 sps:$4 sm:$0xff]  }
  0x1f   :  { %1022 = vmatpush1.bf16.msra.mxu0 %v1685_v30  ;;  %v1766_v25 = vld [vmem:[%s2670_s1 + $0x234] ss:$8 sps:$4 sm:$0xff]   ;;  %v1764_v27 = vld [vmem:[%s2670_s1 + $0x230] ss:$8 sps:$4 sm:$0xff]   ;;  %v1794_v28 = vld [vmem:[%s2670_s1 + $0x340] ss:$8 sps:$4 sm:$0xff]  }
  0x20   :  { %1023 = vmatprep.subr.bf16.mxu0 %v1689_v31  ;;  %1125 = vmatpush1.bf16.msra.mxu1 %v1688_v32  ;;  %v1775_v29 = vld [vmem:[%s2671_s0 + $0x78] ss:$28 sps:$4 sm:$0xff]   ;;  %v1778_v31 = vld [vmem:[%s2670_s1 + $0x224] ss:$8 sps:$4 sm:$0xff]   ;;  %v1791_v47 = vld [vmem:[%s2670_s1 + $0x200] ss:$8 sps:$4 sm:$0xff]  }
  0x21   :  { %1126 = vmatprep.subr.bf16.mxu1 %v1692_v33  ;;  %v1811_v30 = vld [vmem:[%s2670_s1 + $0x334] ss:$8 sps:$4 sm:$0xff]   ;;  %v1785_v32 = vld [vmem:[%s2671_s0 + $0xac] ss:$28 sps:$4 sm:$0xff]  }
  0x22   :  { %v1788_v33 = vld [vmem:[%s2671_s0 + $0xb4] ss:$28 sps:$4 sm:$0xff]   ;;  %v1845_v51 = vld [vmem:[%s2670_s1 + $0x300] ss:$8 sps:$4 sm:$0xff]  }
  0x23   :  { %1024 = vmatpush2.bf16.msra.mxu0 %v1691_v34  ;;  %v1809_v34 = vld [vmem:[%s2670_s1 + $0x330] ss:$8 sps:$4 sm:$0xff]  }
  0x24   :  { %1025 = vmatprep.subr.bf16.mxu0 %v1695_v35  ;;  %1127 = vmatpush2.bf16.msra.mxu1 %v1694_v36  ;;  %v1826_v35 = vld [vmem:[%s2670_s1 + $0x324] ss:$8 sps:$4 sm:$0xff]   ;;  %v1776_v36 = vld [vmem:[%s2670_s1 + $0x220] ss:$8 sps:$4 sm:$0xff]  }
  0x25   :  { %1128 = vmatprep.subr.bf16.mxu1 %v1698_v37  ;;  %v1784_v37 = vld [vmem:[%s2670_s1 + $0x214] ss:$8 sps:$4 sm:$0xff]  }
  0x27   :  { %1026 = vmatpush2.bf16.msra.mxu0 %v1697_v38  ;;  %v1787_v38 = vld [vmem:[%s2671_s0 + $0xa8] ss:$28 sps:$4 sm:$0xff]  }
  0x28   :  { %1027 = vmatprep.subr.bf16.mxu0 %v1701_v39  ;;  %1129 = vmatpush2.bf16.msra.mxu1 %v1700_v40  ;;  %v1782_v39 = vld [vmem:[%s2670_s1 + $0x210] ss:$8 sps:$4 sm:$0xff]   ;;  %v1824_v40 = vld [vmem:[%s2670_s1 + $0x320] ss:$8 sps:$4 sm:$0xff]  }
  0x29   :  { %1130 = vmatprep.subr.bf16.mxu1 %v1704_v41  ;;  %v1790_v41 = vld [vmem:[%s2671_s0 + $0xb0] ss:$28 sps:$4 sm:$0xff]  }
  0x2b   :  { %1028 = vmatpush2.bf16.msra.mxu0 %v1703_v42  ;;  %v1793_v42 = vld [vmem:[%s2670_s1 + $0x204] ss:$8 sps:$4 sm:$0xff]  }
  0x2c   :  { %1029 = vmatprep.subr.bf16.mxu0 %v1707_v43  ;;  %1131 = vmatpush2.bf16.msra.mxu1 %v1706_v44  ;;  %v1800_v43 = vld [vmem:[%s2671_s0 + $0xe4] ss:$28 sps:$4 sm:$0xff]   ;;  %v1837_v44 = vld [vmem:[%s2670_s1 + $0x314] ss:$8 sps:$4 sm:$0xff]  }
  0x2d   :  { %1132 = vmatprep.subr.bf16.mxu1 %v1710_v45  ;;  %v1803_v45 = vld [vmem:[%s2671_s0 + $0xec] ss:$28 sps:$4 sm:$0xff]  }
  0x2f   :  { %1030 = vmatpush2.bf16.msra.mxu0 %v1709_v46  ;;  %v1835_v46 = vld [vmem:[%s2670_s1 + $0x310] ss:$8 sps:$4 sm:$0xff]  }
  0x30   :  { %1031 = vmatprep.subr.bf16.mxu0 %v1713_v48  ;;  %1133 = vmatpush2.bf16.msra.mxu1 %v1712_v49  ;;  %v1847_v48 = vld [vmem:[%s2670_s1 + $0x304] ss:$8 sps:$4 sm:$0xff]   ;;  %v1799_v49 = vld [vmem:[%s2670_s1 + $0x2f4] ss:$8 sps:$4 sm:$0xff]  }
  0x31   :  { %1134 = vmatprep.subr.bf16.mxu1 %v1716_v50  ;;  %v1797_v50 = vld [vmem:[%s2670_s1 + $0x2f0] ss:$8 sps:$4 sm:$0xff]  }
  0x33   :  { %1032 = vmatpush2.bf16.msra.mxu0 %v1715_v52  ;;  %v1802_v52 = vld [vmem:[%s2671_s0 + $0xe0] ss:$28 sps:$4 sm:$0xff]  }
  0x34   :  { %1033 = vmatprep.subr.bf16.mxu0 %v1719_v53  ;;  %1135 = vmatpush2.bf16.msra.mxu1 %v1718_v54  ;;  %v1805_v53 = vld [vmem:[%s2671_s0 + $0xe8] ss:$28 sps:$4 sm:$0xff]   ;;  %v1815_v54 = vld [vmem:[%s2671_s0 + $0x11c] ss:$28 sps:$4 sm:$0xff]  }
  0x35   :  { %1136 = vmatprep.subr.bf16.mxu1 %v1722_v55  ;;  %v1808_v55 = vld [vmem:[%s2670_s1 + $0x2e4] ss:$8 sps:$4 sm:$0xff]  }
  0x37   :  { %1034 = vmatpush2.bf16.msra.mxu0 %v1721_v56  ;;  %v1818_v56 = vld [vmem:[%s2671_s0 + $0x124] ss:$28 sps:$4 sm:$0xff]  }
  0x38   :  { %1035 = vmatprep.subr.bf16.mxu0 %v1725_v57  ;;  %1137 = vmatpush2.bf16.msra.mxu1 %v1724_v58  ;;  %v1806_v57 = vld [vmem:[%s2670_s1 + $0x2e0] ss:$8 sps:$4 sm:$0xff]   ;;  %v1814_v58 = vld [vmem:[%s2670_s1 + $0x2d4] ss:$8 sps:$4 sm:$0xff]  }
  0x39   :  { %1138 = vmatprep.subr.bf16.mxu1 %v1728_v59  ;;  %v1812_v59 = vld [vmem:[%s2670_s1 + $0x2d0] ss:$8 sps:$4 sm:$0xff]  }
  0x3b   :  { %1036 = vmatpush2.bf16.msra.mxu0 %v1727_v60  ;;  %v1817_v60 = vld [vmem:[%s2671_s0 + $0x118] ss:$28 sps:$4 sm:$0xff]  }
  0x3c   :  { %1037 = vmatprep.subr.bf16.mxu0 %v1731_v61  ;;  %1139 = vmatpush2.bf16.msra.mxu1 %v1730_v62  ;;  %v1830_v61 = vld [vmem:[%s2671_s0 + $0x154] ss:$28 sps:$4 sm:$0xff]   ;;  %v1820_v62 = vld [vmem:[%s2671_s0 + $0x120] ss:$28 sps:$4 sm:$0xff]  }
  0x3d   :  { %1140 = vmatprep.subr.bf16.mxu1 %v1734_v63  ;;  %v1823_v63 = vld [vmem:[%s2670_s1 + $0x2c4] ss:$8 sps:$4 sm:$0xff]  }
  0x3f   :  { %1038 = vmatpush2.bf16.msra.mxu0 %v1733_v0  ;;  %v1833_v0 = vld [vmem:[%s2671_s0 + $0x15c] ss:$28 sps:$4 sm:$0xff]  }
  0x40   :  { %1213 = vmatprep.subr.bf16.mxu0 %v1742_v3  ;;  %1141 = vmatpush2.bf16.msra.mxu1 %v1739_v1  ;;  %v1821_v1 = vld [vmem:[%s2670_s1 + $0x2c0] ss:$8 sps:$4 sm:$0xff]   ;;  %v1832_v3 = vld [vmem:[%s2671_s0 + $0x150] ss:$28 sps:$4 sm:$0xff]  }
  0x41   :  { %1316 = vmatprep.subr.bf16.mxu1 %v1756_v6  ;;  %v1838_v6 = vld [vmem:[%s2671_s0 + $0x158] ss:$28 sps:$4 sm:$0xff]  }
  0x42   :  { %1040 = vmatmul.mubr.bf16.vlgmr.msra.gmra.mxu0 %v1736_v2  ;;  %v1829_v2 = vld [vmem:[%s2670_s1 + $0x2b4] ss:$8 sps:$4 sm:$0xff]  }
  0x43   :  { %1214 = vmatpush1.bf16.msra.mxu0 %v1740_v4  ;;  %1049 = vmatprep.mubr.bf16.mxu0 %v1752_v8  ;;  %v1827_v4 = vld [vmem:[%s2670_s1 + $0x2b0] ss:$8 sps:$4 sm:$0xff]   ;;  %v1839_v8 = vld [vmem:[%s2670_s1 + $0x2a0] ss:$8 sps:$4 sm:$0xff]  }
  0x44   :  { %1143 = vmatmul.mubr.bf16.vlgmr.msra.gmra.mxu1 %v1743_v5  ;;  %1215 = vmatprep.subr.bf16.mxu0 %v1748_v7  ;;  %v1854_v5 = vld [vmem:[%s2671_s0 + $0x14] ss:$28 sps:$4 sm:$0xff]   ;;  %v1841_v7 = vld [vmem:[%s2670_s1 + $0x2a4] ss:$8 sps:$4 sm:$0xff]  }
  0x45   :  { %1317 = vmatpush1.bf16.msra.mxu1 %v1754_v9  ;;  %1152 = vmatprep.mubr.bf16.mxu1 %v1758_v10  ;;  %v1844_v9 = vld [vmem:[%s2670_s1 + $0x294] ss:$8 sps:$4 sm:$0xff]   ;;  %v1879_v10 = vmov 0  }
  0x46   :  { %1318 = vmatprep.subr.bf16.mxu1 %v1769_v11  ;;  %v1842_v11 = vld [vmem:[%s2670_s1 + $0x290] ss:$8 sps:$4 sm:$0xff]  }
  0x47   :  { %1216 = vmatpush1.bf16.msra.mxu0 %v1746_v12  ;;  %v1850_v12 = vld [vmem:[%s2670_s1 + $0x284] ss:$8 sps:$4 sm:$0xff]  }
  0x48   :  { %1217 = vmatprep.subr.bf16.mxu0 %v1751_v13  ;;  %v1851_v13 = vld [vmem:[%s2671_s0 + $0x18] ss:$28 sps:$4 sm:$0xff]  }
  0x49   :  { %1319 = vmatpush1.bf16.msra.mxu1 %v1767_v16  ;;  %v1856_v16 = vld [vmem:[%s2671_s0 + $0x4c] ss:$28 sps:$4 sm:$0xff]  }
  0x4a   :  { %1050 = vmatmul.mubr.bf16.gmra.mxu0 %v1757_v14  ;;  %1320 = vmatprep.subr.bf16.mxu1 %v1781_v18  ;;  %v1848_v14 = vld [vmem:[%s2670_s1 + $0x280] ss:$8 sps:$4 sm:$0xff]  }
  0x4b   :  { %1218 = vmatpush1.bf16.msra.mxu0 %v1749_v15  ;;  %1059 = vmatprep.mubr.bf16.mxu0 %v1770_v20  ;;  %v1852_v15 = vld [vmem:[%s2671_s0 + $0x10] ss:$28 sps:$4 sm:$0xff]   ;;  %v1858_v18 = vld [vmem:[%s2671_s0 + $0x48] ss:$28 sps:$4 sm:$0xff]  }
  0x4c   :  { %1153 = vmatmul.mubr.bf16.gmra.mxu1 %v1760_v17  ;;  %1219 = vmatprep.subr.bf16.mxu0 %v1763_v19  ;;  %v1855_v17 = vld [vmem:[%s2671_s0 + $0x50] ss:$28 sps:$4 sm:$0xff]   ;;  %v1860_v19 = vld [vmem:[%s2671_s0 + $0x84] ss:$28 sps:$4 sm:$0xff]  }
  0x4d   :  { %1162 = vmatprep.mubr.bf16.mxu1 %v1773_v21  ;;  %1321 = vmatpush1.bf16.msra.mxu1 %v1779_v22  ;;  %v1859_v20 = vld [vmem:[%s2671_s0 + $0x88] ss:$28 sps:$4 sm:$0xff]   ;;  %v1862_v21 = vld [vmem:[%s2671_s0 + $0x80] ss:$28 sps:$4 sm:$0xff]  }
  0x4e   :  { %1322 = vmatprep.subr.bf16.mxu1 %v1796_v23  ;;  %v1864_v22 = vld [vmem:[%s2671_s0 + $0xbc] ss:$28 sps:$4 sm:$0xff]  }
  0x4f   :  { %1220 = vmatpush1.bf16.msra.mxu0 %v1761_v24  ;;  %v1863_v23 = vld [vmem:[%s2671_s0 + $0xc0] ss:$28 sps:$4 sm:$0xff]   ;;  %v1866_v24 = vld [vmem:[%s2671_s0 + $0xb8] ss:$28 sps:$4 sm:$0xff]  }
  0x50   :  { %1221 = vmatprep.subr.bf16.mxu0 %v1766_v25  ;;  %v1868_v25 = vld [vmem:[%s2671_s0 + $0xf4] ss:$28 sps:$4 sm:$0xff]  }
  0x51   :  { %1323 = vmatpush1.bf16.msra.mxu1 %v1794_v28  ;;  %v1872_v28 = vld [vmem:[%s2671_s0 + $0x12c] ss:$28 sps:$4 sm:$0xff]  }
  0x52   :  { %1060 = vmatmul.mubr.bf16.gmra.mxu0 %v1772_v26  ;;  %1324 = vmatprep.subr.bf16.mxu1 %v1811_v30  ;;  %v1867_v26 = vld [vmem:[%s2671_s0 + $0xf8] ss:$28 sps:$4 sm:$0xff]   ;;  %v1874_v30 = vld [vmem:[%s2671_s0 + $0x128] ss:$28 sps:$4 sm:$0xff]  }
  0x53   :  { %1222 = vmatpush1.bf16.msra.mxu0 %v1764_v27  ;;  %1069 = vmatprep.mubr.bf16.mxu0 %v1785_v32  ;;  %v1870_v27 = vld [vmem:[%s2671_s0 + $0xf0] ss:$28 sps:$4 sm:$0xff]   ;;  %v1875_v32 = vld [vmem:[%s2671_s0 + $0x168] ss:$28 sps:$4 sm:$0xff]  }
  0x54   :  { %1163 = vmatmul.mubr.bf16.gmra.mxu1 %v1775_v29  ;;  %1223 = vmatprep.subr.bf16.mxu0 %v1778_v31  ;;  %v1871_v29 = vld [vmem:[%s2671_s0 + $0x130] ss:$28 sps:$4 sm:$0xff]   ;;  %v1876_v31 = vld [vmem:[%s2671_s0 + $0x164] ss:$28 sps:$4 sm:$0xff]  }
  0x55   :  { %1172 = vmatprep.mubr.bf16.mxu1 %v1788_v33  ;;  %1325 = vmatpush1.bf16.msra.mxu1 %v1809_v34  ;;  %v1878_v33 = vld [vmem:[%s2671_s0 + $0x160] ss:$28 sps:$4 sm:$0xff]  }
  0x56   :  { %1326 = vmatprep.subr.bf16.mxu1 %v1826_v35 }
  0x57   :  { %1224 = vmatpush1.bf16.msra.mxu0 %v1776_v36 }
  0x58   :  { %1225 = vmatprep.subr.bf16.mxu0 %v1784_v37 }
  0x59   :  { %1327 = vmatpush1.bf16.msra.mxu1 %v1824_v40 }
  0x5a   :  { %1070 = vmatmul.mubr.bf16.gmra.mxu0 %v1787_v38  ;;  %1328 = vmatprep.subr.bf16.mxu1 %v1837_v44 }
  0x5b   :  { %1226 = vmatpush1.bf16.msra.mxu0 %v1782_v39  ;;  %1079 = vmatprep.mubr.bf16.mxu0 %v1800_v43 }
  0x5c   :  { %1173 = vmatmul.mubr.bf16.gmra.mxu1 %v1790_v41  ;;  %1227 = vmatprep.subr.bf16.mxu0 %v1793_v42 }
  0x5d   :  { %1182 = vmatprep.mubr.bf16.mxu1 %v1803_v45  ;;  %1329 = vmatpush1.bf16.msra.mxu1 %v1835_v46 }
  0x5e   :  { %1330 = vmatprep.subr.bf16.mxu1 %v1847_v48 }
  0x5f   :  { %1228 = vmatpush1.bf16.msra.mxu0 %v1791_v47 }
  0x60   :  { %1229 = vmatprep.subr.bf16.mxu0 %v1799_v49 }
  0x61   :  { %1331 = vmatpush1.bf16.msra.mxu1 %v1845_v51 }
  0x62   :  { %1080 = vmatmul.mubr.bf16.gmra.mxu0 %v1802_v52 }
  0x63   :  { %1230 = vmatpush2.bf16.msra.mxu0 %v1797_v50  ;;  %1089 = vmatprep.mubr.bf16.mxu0 %v1815_v54 }
  0x64   :  { %1183 = vmatmul.mubr.bf16.gmra.mxu1 %v1805_v53  ;;  %1231 = vmatprep.subr.bf16.mxu0 %v1808_v55 }
  0x65   :  { %1192 = vmatprep.mubr.bf16.mxu1 %v1818_v56 }
  0x67   :  { %1232 = vmatpush2.bf16.msra.mxu0 %v1806_v57 }
  0x68   :  { %1233 = vmatprep.subr.bf16.mxu0 %v1814_v58 }
  0x6a   :  { %1090 = vmatmul.mubr.bf16.gmra.mxu0 %v1817_v60 }
  0x6b   :  { %1234 = vmatpush2.bf16.msra.mxu0 %v1812_v59  ;;  %1099 = vmatprep.mubr.bf16.mxu0 %v1830_v61 }
  0x6c   :  { %1193 = vmatmul.mubr.bf16.gmra.mxu1 %v1820_v62  ;;  %1235 = vmatprep.subr.bf16.mxu0 %v1823_v63 }
  0x6d   :  { %1202 = vmatprep.mubr.bf16.mxu1 %v1833_v0 }
  0x6f   :  { %1236 = vmatpush2.bf16.msra.mxu0 %v1821_v1 }
  0x70   :  { %1237 = vmatprep.subr.bf16.mxu0 %v1829_v2 }
  0x72   :  { %1100 = vmatmul.mubr.bf16.gmra.mxu0 %v1832_v3 }
  0x73   :  { %1238 = vmatpush2.bf16.msra.mxu0 %v1827_v4  ;;  %1245 = vmatprep.mubr.bf16.mxu0 %v1854_v5 }
  0x74   :  { %1203 = vmatmul.mubr.bf16.gmra.mxu1 %v1838_v6  ;;  %1239 = vmatprep.subr.bf16.mxu0 %v1841_v7 }
  0x75   :  { %1348 = vmatprep.mubr.bf16.mxu1 %v1879_v10 }
  0x77   :  { %1240 = vmatpush2.bf16.msra.mxu0 %v1839_v8 }
  0x78   :  { %1241 = vmatprep.subr.bf16.mxu0 %v1844_v9 }
  0x7b   :  { %1242 = vmatpush2.bf16.msra.mxu0 %v1842_v11 }
  0x7c   :  { %1243 = vmatprep.subr.bf16.mxu0 %v1850_v12  ;;  %1349 = vmatmul.mubr.bf16.vlgmr.msra.gmra.mxu1 %v1851_v13  ;;  %v185_v13 = vlaneseq }
  0x7d   :  { %1358 = vmatprep.mubr.bf16.mxu1 %v1879_v10 }
  0x7f   :  { %1244 = vmatpush2.bf16.msra.mxu0 %v1848_v14 }
  0x82   :  { %1246 = vmatmul.mubr.bf16.vlgmr.msra.gmra.mxu0 %v1852_v15 }
  0x83   :  { %1255 = vmatprep.mubr.bf16.mxu0 %v1856_v16 }
  0x84   :  { %1359 = vmatmul.mubr.bf16.gmra.mxu1 %v1855_v17 }
  0x85   :  { %1368 = vmatprep.mubr.bf16.mxu1 %v1879_v10 }
  0x8a   :  { %1256 = vmatmul.mubr.bf16.gmra.mxu0 %v1858_v18  ;;  %v186_v18 = vshrl.u32 %v185_v13, 7 }
  0x8b   :  { %1265 = vmatprep.mubr.bf16.mxu0 %v1860_v19 }
  0x8c   :  { %1369 = vmatmul.mubr.bf16.gmra.mxu1 %v1859_v20 }
  0x8d   :  { %1378 = vmatprep.mubr.bf16.mxu1 %v1879_v10 }
  0x92   :  { %1266 = vmatmul.mubr.bf16.gmra.mxu0 %v1862_v21 }
  0x93   :  { %1275 = vmatprep.mubr.bf16.mxu0 %v1864_v22  ;;  %v187_v22 = vsub.s32 0, %v186_v18 }
  0x94   :  { %1379 = vmatmul.mubr.bf16.gmra.mxu1 %v1863_v23  ;;  %v183_v23 = vld [vmem:[%s2672_s2] sm:$0x3] }
  0x95   :  { %1388 = vmatprep.mubr.bf16.mxu1 %v1879_v10 }
  0x9a   :  { %1276 = vmatmul.mubr.bf16.gmra.mxu0 %v1866_v24 }
  0x9b   :  { %1285 = vmatprep.mubr.bf16.mxu0 %v1868_v25  ;;  %v191_v25 = vsub.s32 1, %v186_v18 }
  0x9c   :  { %1389 = vmatmul.mubr.bf16.gmra.mxu1 %v1867_v26 }
  0x9d   :  { %1398 = vmatprep.mubr.bf16.mxu1 %v1879_v10 }
  0xa2   :  { %1286 = vmatmul.mubr.bf16.gmra.mxu0 %v1870_v27 }
  0xa3   :  { %1295 = vmatprep.mubr.bf16.mxu0 %v1872_v28  ;;  %v2492_v28 = vrot.slane %v183_v23, %v187_v22 }
  0xa4   :  { %1399 = vmatmul.mubr.bf16.gmra.mxu1 %v1871_v29 }
  0xa5   :  { %1408 = vmatprep.mubr.bf16.mxu1 %v1879_v10 }
  0xaa   :  { %1296 = vmatmul.mubr.bf16.gmra.mxu0 %v1874_v30  ;;  %v2496_v30 = vrot.slane %v183_v23, %v191_v25 }
  0xab   :  { %1305 = vmatprep.mubr.bf16.mxu0 %v1876_v31 }
  0xac   :  { %1409 = vmatmul.mubr.bf16.gmra.mxu1 %v1875_v32 }
  0xb2   :  { %1306 = vmatmul.mubr.bf16.gmra.mxu0 %v1878_v33 }
 0x102   :  { %v2383_v34 = vpop.f32.mrf.mxu0 }
 0x103   :  { %v1042_v33 = vadd.f32 %v2383_v34, %v2492_v28 }
 0x104   :  { %v2385_v35 = vpop.f32.mrf.mxu0  ;;  %v2387_v36 = vpop.f32.mrf.mxu1 }
 0x105   :  { %v1044_v18 = vadd.f32 %v2385_v35, %v2496_v30  ;;  %v1145_v22 = vadd.f32 %v2387_v36, %v1042_v33 }
 0x106   :  { %v2389_v37 = vpop.f32.mrf.mxu0  ;;  %v2391_v38 = vpop.f32.mrf.mxu1 }
 0x108   :  { %v2393_v39 = vpop.f32.mrf.mxu0  ;;  %v2395_v40 = vpop.f32.mrf.mxu1 }
 0x10a   :  { %v2397_v41 = vpop.f32.mrf.mxu1  ;;  %v2399_v42 = vpop.f32.mrf.mxu0 }
 0x10c   :  { %v2401_v43 = vpop.f32.mrf.mxu0  ;;  %v2403_v44 = vpop.f32.mrf.mxu1 }
 0x10e   :  { %v2405_v45 = vpop.f32.mrf.mxu0  ;;  %v2407_v46 = vpop.f32.mrf.mxu1 }
 0x110   :  { %v2409_v47 = vpop.f32.mrf.mxu0  ;;  %v2411_v48 = vpop.f32.mrf.mxu1 }
 0x112   :  { %v2413_v49 = vpop.f32.mrf.mxu0  ;;  %v2415_v50 = vpop.f32.mrf.mxu1 }
 0x114   :  { %v2417_v51 = vpop.f32.mrf.mxu0  ;;  %v2419_v52 = vpop.f32.mrf.mxu1 }
 0x116   :  { %v2421_v53 = vpop.f32.mrf.mxu0  ;;  %v2423_v54 = vpop.f32.mrf.mxu1 }
 0x118   :  { %v2425_v55 = vpop.f32.mrf.mxu0  ;;  %v2427_v56 = vpop.f32.mrf.mxu1 }
 0x11a   :  { %v2429_v57 = vpop.f32.mrf.mxu0  ;;  %v2431_v58 = vpop.f32.mrf.mxu1 }
 0x11c   :  { %v2433_v59 = vpop.f32.mrf.mxu0  ;;  %v2435_v60 = vpop.f32.mrf.mxu1 }
 0x11e   :  { %v2437_v61 = vpop.f32.mrf.mxu0  ;;  %v2439_v62 = vpop.f32.mrf.mxu1 }
 0x120   :  { %v2441_v63 = vpop.f32.mrf.mxu0  ;;  %v2443_v0 = vpop.f32.mrf.mxu1 }
 0x122   :  { %v2445_v1 = vpop.f32.mrf.mxu0  ;;  %v2447_v2 = vpop.f32.mrf.mxu1 }
 0x124   :  { %v2449_v3 = vpop.f32.mrf.mxu0  ;;  %v2451_v4 = vpop.f32.mrf.mxu1 }
 0x126   :  { %v2453_v5 = vpop.f32.mrf.mxu0  ;;  %v2455_v6 = vpop.f32.mrf.mxu1 }
 0x128   :  { %v2457_v7 = vpop.f32.mrf.mxu0  ;;  %v2459_v8 = vpop.f32.mrf.mxu1 }
 0x12a   :  { %v2461_v9 = vpop.f32.mrf.mxu0  ;;  %v2463_v10 = vpop.f32.mrf.mxu1 }
 0x12c   :  { %v2465_v11 = vpop.f32.mrf.mxu0  ;;  %v2467_v12 = vpop.f32.mrf.mxu1 }
 0x12e   :  { %v2469_v14 = vpop.f32.mrf.mxu0  ;;  %v2471_v15 = vpop.f32.mrf.mxu1 }
 0x12f   :  { %2674 = vst [vmem:[#allocation2_spill] sm:$0xff] %v2471_v15  ;;  %v1056_v15 = vadd.f32 %v2405_v45, %v2492_v28 }
 0x130   :  { %v2473_v16 = vpop.f32.mrf.mxu0  ;;  %v2475_v17 = vpop.f32.mrf.mxu1 }
 0x131   :  { %2675 = vst [vmem:[#allocation3_spill] sm:$0xff] %v2473_v16  ;;  %2676 = vst [vmem:[#allocation4_spill] sm:$0xff] %v2475_v17 }
 0x132   :  { %v2477_v19 = vpop.f32.mrf.mxu1  ;;  %v2479_v20 = vpop.f32.mrf.mxu0 }
 0x133   :  { %2677 = vst [vmem:[#allocation5_spill] sm:$0xff] %v2477_v19  ;;  %2678 = vst [vmem:[#allocation6_spill] sm:$0xff] %v2479_v20  ;;  %v1052_v19 = vadd.f32 %v2399_v42, %v2492_v28 }
 0x134   :  { %v2481_v21 = vpop.f32.mrf.mxu1  ;;  %v2488_v26 = vpop.f32.mrf.mxu0 }
 0x135   :  { %2679 = vst [vmem:[#allocation7_spill] sm:$0xff] %v2481_v21  ;;  %2681 = vst [vmem:[#allocation9_spill] sm:$0xff] %v2488_v26 }
 0x136   :  { %v2486_v24 = vpop.f32.mrf.mxu1  ;;  %v2498_v31 = vpop.f32.mrf.mxu0 }
 0x137   :  { %2680 = vst [vmem:[#allocation8_spill] sm:$0xff] %v2486_v24  ;;  %2684 = vst [vmem:[#allocation12_spill] sm:$0xff] %v2498_v31  ;;  %v1048_v31 = vadd.f32 %v2393_v39, %v2496_v30 }
 0x138   :  { %v2490_v27 = vpop.f32.mrf.mxu1  ;;  %v2504_v24 = vpop.f32.mrf.mxu0 }
 0x139   :  { %2682 = vst [vmem:[#allocation10_spill] sm:$0xff] %v2490_v27  ;;  %2685 = vst [vmem:[#allocation13_spill] sm:$0xff] %v2504_v24  ;;  %v1147_v27 = vadd.f32 %v2391_v38, %v1044_v18  ;;  %v1151_v38 = vadd.f32 %v2397_v41, %v1048_v31  ;;  %v1062_v31 = vadd.f32 %v2413_v49, %v2492_v28 }
 0x13a   :  { %v2494_v29 = vpop.f32.mrf.mxu1 }
 0x13b   :  { %2683 = vst [vmem:[#allocation11_spill] sm:$0xff] %v2494_v29  ;;  %v1046_v29 = vadd.f32 %v2389_v37, %v2492_v28  ;;  %v1054_v37 = vadd.f32 %v2401_v43, %v2496_v30 }
 0x13c   :  { %v1350_v32 = vpop.f32.mrf.mxu1 }
 0x13d   :  { %v1149_v24 = vadd.f32 %v2395_v40, %v1046_v29  ;;  %v1157_v29 = vadd.f32 %v2407_v46, %v1054_v37  ;;  %v1165_v37 = vadd.f32 %v2419_v52, %v1062_v31 }
 0x13e   :  { %v1352_v13 = vpop.f32.mrf.mxu1 }
 0x140   :  { %v1354_v21 = vpop.f32.mrf.mxu1 }
 0x142   :  { %v1247_v23 = vpop.f32.mrf.mxu0  ;;  %v1356_v25 = vpop.f32.mrf.mxu1 }
 0x143   :  { %v1248_v34 = vadd.f32 %v1247_v23, %v1145_v22  ;;  %v1155_v22 = vadd.f32 %v2403_v44, %v1052_v19 }
 0x144   :  { %v1249_v35 = vpop.f32.mrf.mxu0  ;;  %v1360_v26 = vpop.f32.mrf.mxu1 }
 0x145   :  { %v1351_v17 = vadd.f32 %v1350_v32, %v1248_v34  ;;  %v1250_v36 = vadd.f32 %v1249_v35, %v1147_v27  ;;  %v1159_v32 = vadd.f32 %v2411_v48, %v1056_v15  ;;  %v1064_v34 = vadd.f32 %v2417_v51, %v2496_v30 }
 0x146   :  { %v1251_v33 = vpop.f32.mrf.mxu0  ;;  %v1362_v20 = vpop.f32.mrf.mxu1 }
 0x147   :  { %v1419_v18 = vmax.f32 %v1351_v17, 0.0  ;;  %v1353_v16 = vadd.f32 %v1352_v13, %v1250_v36  ;;  %v1252_v39 = vadd.f32 %v1251_v33, %v1149_v24  ;;  %v1058_v24 = vadd.f32 %v2409_v47, %v2496_v30 }
 0x148   :  { %v1253_v23 = vpop.f32.mrf.mxu0  ;;  %v1364_v42 = vpop.f32.mrf.mxu1 }
 0x149   :  { %1447 = vst [vmem:[%s2673_s3] sm:$0xff] %v1419_v18  ;;  %v1420_v40 = vmax.f32 %v1353_v16, 0.0  ;;  %v1355_v43 = vadd.f32 %v1354_v21, %v1252_v39  ;;  %v1254_v27 = vadd.f32 %v1253_v23, %v1151_v38  ;;  %v1161_v36 = vadd.f32 %v2415_v50, %v1058_v24 }
 0x14a   :  { %v1257_v41 = vpop.f32.mrf.mxu0  ;;  %v1366_v17 = vpop.f32.mrf.mxu1  ;;  %v1167_v39 = vadd.f32 %v2423_v54, %v1064_v34  ;;  %v1074_v24 = vadd.f32 %v2433_v59, %v2496_v30 }
 0x14b   :  { %1448 = vst [vmem:[%s2673_s3 + $0x8] sm:$0xff] %v1420_v40  ;;  %v1421_v44 = vmax.f32 %v1355_v43, 0.0  ;;  %v1357_v45 = vadd.f32 %v1356_v25, %v1254_v27  ;;  %v1258_v19 = vadd.f32 %v1257_v41, %v1155_v22  ;;  %v1072_v43 = vadd.f32 %v2429_v57, %v2492_v28 }
 0x14c   :  { %v1259_v16 = vpop.f32.mrf.mxu0  ;;  %v1370_v21 = vpop.f32.mrf.mxu1 }
 0x14d   :  { %1449 = vst [vmem:[%s2673_s3 + $0x10] sm:$0xff] %v1421_v44  ;;  %v1422_v46 = vmax.f32 %v1357_v45, 0.0  ;;  %v1361_v47 = vadd.f32 %v1360_v26, %v1258_v19  ;;  %v1260_v13 = vadd.f32 %v1259_v16, %v1157_v29  ;;  %v1066_v26 = vadd.f32 %v2421_v53, %v2492_v28 }
 0x14e   :  { %v1261_v35 = vpop.f32.mrf.mxu0  ;;  %v1372_v25 = vpop.f32.mrf.mxu1  ;;  %v1175_v31 = vadd.f32 %v2435_v60, %v1072_v43  ;;  %v1088_v43 = vadd.f32 %v2457_v7, %v2496_v30 }
 0x14f   :  { %1450 = vst [vmem:[%s2673_s3 + $0x18] sm:$0xff] %v1422_v46  ;;  %v1423_v49 = vmax.f32 %v1361_v47, 0.0  ;;  %v1363_v48 = vadd.f32 %v1362_v20, %v1260_v13  ;;  %v1262_v15 = vadd.f32 %v1261_v35, %v1159_v32  ;;  %v1068_v20 = vadd.f32 %v2425_v55, %v2496_v30 }
 0x150   :  { %v1263_v33 = vpop.f32.mrf.mxu0  ;;  %v1374_v38 = vpop.f32.mrf.mxu1  ;;  %v1169_v29 = vadd.f32 %v2427_v56, %v1066_v26  ;;  %v1177_v47 = vadd.f32 %v2439_v62, %v1074_v24  ;;  %v1078_v35 = vadd.f32 %v2441_v63, %v2496_v30  ;;  %v1094_v24 = vadd.f32 %v2465_v11, %v2496_v30 }
 0x151   :  { %1451 = vst [vmem:[%s2673_s3 + $0x20] sm:$0xff] %v1423_v49  ;;  %v1424_v51 = vmax.f32 %v1363_v48, 0.0  ;;  %v1365_v50 = vadd.f32 %v1364_v42, %v1262_v15  ;;  %v1264_v18 = vadd.f32 %v1263_v33, %v1161_v36  ;;  %v1171_v45 = vadd.f32 %v2431_v58, %v1068_v20 }
 0x152   :  { %v1267_v22 = vpop.f32.mrf.mxu0  ;;  %v1376_v23 = vpop.f32.mrf.mxu1  ;;  %v1082_v36 = vadd.f32 %v2445_v1, %v2492_v28  ;;  %v1084_v33 = vadd.f32 %v2449_v3, %v2496_v30 }
 0x153   :  { %1452 = vst [vmem:[%s2673_s3 + $0x28] sm:$0xff] %v1424_v51  ;;  %v1425_v52 = vmax.f32 %v1365_v50, 0.0  ;;  %v1367_v53 = vadd.f32 %v1366_v17, %v1264_v18  ;;  %v1268_v40 = vadd.f32 %v1267_v22, %v1165_v37  ;;  %v1181_v51 = vadd.f32 %v2447_v2, %v1078_v35  ;;  %v2688_v35 = vld [vmem:[#allocation6_spill] sm:$0xff] }
 0x154   :  { %v1269_v27 = vpop.f32.mrf.mxu0  ;;  %v1380_v42 = vpop.f32.mrf.mxu1  ;;  %v1185_v18 = vadd.f32 %v2451_v4, %v1082_v36 }
 0x155   :  { %1453 = vst [vmem:[%s2673_s3 + $0x30] sm:$0xff] %v1425_v52  ;;  %v1426_v54 = vmax.f32 %v1367_v53, 0.0  ;;  %v1371_v55 = vadd.f32 %v1370_v21, %v1268_v40  ;;  %v1270_v41 = vadd.f32 %v1269_v27, %v1167_v39  ;;  %v1076_v21 = vadd.f32 %v2437_v61, %v2492_v28 }
 0x156   :  { %v1271_v44 = vpop.f32.mrf.mxu0  ;;  %v1382_v17 = vpop.f32.mrf.mxu1  ;;  %v1187_v52 = vadd.f32 %v2455_v6, %v1084_v33 }
 0x157   :  { %1454 = vst [vmem:[%s2673_s3 + $0x38] sm:$0xff] %v1426_v54  ;;  %v1427_v57 = vmax.f32 %v1371_v55, 0.0  ;;  %v1373_v56 = vadd.f32 %v1372_v25, %v1270_v41  ;;  %v1272_v19 = vadd.f32 %v1271_v44, %v1169_v29  ;;  %v1179_v15 = vadd.f32 %v2443_v0, %v1076_v21  ;;  %v2686_v21 = vld [vmem:[#allocation2_spill] sm:$0xff] }
 0x158   :  { %v1273_v16 = vpop.f32.mrf.mxu0  ;;  %v1384_v32 = vpop.f32.mrf.mxu1 }
 0x159   :  { %1455 = vst [vmem:[%s2673_s3 + $0x40] sm:$0xff] %v1427_v57  ;;  %v1428_v59 = vmax.f32 %v1373_v56, 0.0  ;;  %v1375_v58 = vadd.f32 %v1374_v38, %v1272_v19  ;;  %v1274_v46 = vadd.f32 %v1273_v16, %v1171_v45  ;;  %v1191_v45 = vadd.f32 %v2463_v10, %v1088_v43 }
 0x15a   :  { %v1277_v13 = vpop.f32.mrf.mxu0  ;;  %v1386_v34 = vpop.f32.mrf.mxu1  ;;  %v1096_v16 = vadd.f32 %v2469_v14, %v2492_v28 }
 0x15b   :  { %1456 = vst [vmem:[%s2673_s3 + $0x48] sm:$0xff] %v1428_v59  ;;  %v1429_v60 = vmax.f32 %v1375_v58, 0.0  ;;  %v1377_v61 = vadd.f32 %v1376_v23, %v1274_v46  ;;  %v1278_v25 = vadd.f32 %v1277_v13, %v1175_v31  ;;  %v1086_v23 = vadd.f32 %v2453_v5, %v2492_v28 }
 0x15c   :  { %v1279_v49 = vpop.f32.mrf.mxu0  ;;  %v1390_v48 = vpop.f32.mrf.mxu1  ;;  %v1197_v59 = vadd.f32 %v2686_v21, %v1094_v24 }
 0x15d   :  { %1457 = vst [vmem:[%s2673_s3 + $0x50] sm:$0xff] %v1429_v60  ;;  %v1430_v62 = vmax.f32 %v1377_v61, 0.0  ;;  %v1381_v63 = vadd.f32 %v1380_v42, %v1278_v25  ;;  %v1280_v37 = vadd.f32 %v1279_v49, %v1177_v47  ;;  %v1092_v42 = vadd.f32 %v2461_v9, %v2492_v28  ;;  %v2687_v47 = vld [vmem:[#allocation3_spill] sm:$0xff]  ;;  %v2689_v25 = vld [vmem:[#allocation4_spill] sm:$0xff] }
 0x15e   :  { %v1281_v38 = vpop.f32.mrf.mxu0  ;;  %v1392_v26 = vpop.f32.mrf.mxu1  ;;  %v1189_v55 = vadd.f32 %v2459_v8, %v1086_v23  ;;  %v1098_v13 = vadd.f32 %v2687_v47, %v2496_v30  ;;  %v1102_v60 = vadd.f32 %v2688_v35, %v2492_v28  ;;  %v1199_v36 = vadd.f32 %v2689_v25, %v1096_v16 }
 0x15f   :  { %1458 = vst [vmem:[%s2673_s3 + $0x58] sm:$0xff] %v1430_v62  ;;  %v1431_v1 = vmax.f32 %v1381_v63, 0.0  ;;  %v1383_v0 = vadd.f32 %v1382_v17, %v1280_v37  ;;  %v1282_v50 = vadd.f32 %v1281_v38, %v1179_v15  ;;  %v1195_v56 = vadd.f32 %v2467_v12, %v1092_v42  ;;  %v2690_v62 = vld [vmem:[#allocation9_spill] sm:$0xff] }
 0x160   :  { %v1283_v39 = vpop.f32.mrf.mxu0  ;;  %v1394_v22 = vpop.f32.mrf.mxu1  ;;  %v1104_v63 = vadd.f32 %v2690_v62, %v2496_v30  ;;  %v2691_v38 = vld [vmem:[#allocation5_spill] sm:$0xff] }
 0x161   :  { %1459 = vst [vmem:[%s2673_s3 + $0x60] sm:$0xff] %v1431_v1  ;;  %v1432_v3 = vmax.f32 %v1383_v0, 0.0  ;;  %v1385_v2 = vadd.f32 %v1384_v32, %v1282_v50  ;;  %v1284_v20 = vadd.f32 %v1283_v39, %v1181_v51  ;;  %v2692_v50 = vld [vmem:[#allocation7_spill] sm:$0xff] }
 0x162   :  { %v1287_v53 = vpop.f32.mrf.mxu0  ;;  %v1396_v40 = vpop.f32.mrf.mxu1 }
 0x163   :  { %1460 = vst [vmem:[%s2673_s3 + $0x68] sm:$0xff] %v1432_v3  ;;  %v1433_v4 = vmax.f32 %v1385_v2, 0.0  ;;  %v1387_v5 = vadd.f32 %v1386_v34, %v1284_v20  ;;  %v1288_v27 = vadd.f32 %v1287_v53, %v1185_v18  ;;  %v1205_v18 = vadd.f32 %v2692_v50, %v1102_v60 }
 0x164   :  { %v1289_v29 = vpop.f32.mrf.mxu0  ;;  %v1400_v54 = vpop.f32.mrf.mxu1 }
 0x165   :  { %1461 = vst [vmem:[%s2673_s3 + $0x70] sm:$0xff] %v1433_v4  ;;  %v1434_v6 = vmax.f32 %v1387_v5, 0.0  ;;  %v1391_v7 = vadd.f32 %v1390_v48, %v1288_v27  ;;  %v1290_v41 = vadd.f32 %v1289_v29, %v1187_v52  ;;  %v2694_v52 = vld [vmem:[#allocation8_spill] sm:$0xff]  ;;  %v2695_v4 = vld [vmem:[#allocation13_spill] sm:$0xff] }
 0x166   :  { %v1291_v44 = vpop.f32.mrf.mxu0  ;;  %v1402_v17 = vpop.f32.mrf.mxu1  ;;  %v1207_v53 = vadd.f32 %v2694_v52, %v1104_v63  ;;  %v1108_v5 = vadd.f32 %v2695_v4, %v2496_v30  ;;  %v2697_v30 = vld [vmem:[#allocation11_spill] sm:$0xff] }
 0x167   :  { %1462 = vst [vmem:[%s2673_s3 + $0x78] sm:$0xff] %v1434_v6  ;;  %v1435_v9 = vmax.f32 %v1391_v7, 0.0  ;;  %v1393_v8 = vadd.f32 %v1392_v26, %v1290_v41  ;;  %v1292_v57 = vadd.f32 %v1291_v44, %v1189_v55  ;;  %v1201_v26 = vadd.f32 %v2691_v38, %v1098_v13 }
 0x168   :  { %v1293_v19 = vpop.f32.mrf.mxu0  ;;  %v1404_v31 = vpop.f32.mrf.mxu1 }
 0x169   :  { %1463 = vst [vmem:[%s2673_s3 + $0x80] sm:$0xff] %v1435_v9  ;;  %v1436_v11 = vmax.f32 %v1393_v8, 0.0  ;;  %v1395_v10 = vadd.f32 %v1394_v22, %v1292_v57  ;;  %v1294_v32 = vadd.f32 %v1293_v19, %v1191_v45  ;;  %v2693_v22 = vld [vmem:[#allocation12_spill] sm:$0xff] }
 0x16a   :  { %v1297_v58 = vpop.f32.mrf.mxu0  ;;  %v1406_v46 = vpop.f32.mrf.mxu1  ;;  %v1106_v23 = vadd.f32 %v2693_v22, %v2492_v28 }
 0x16b   :  { %1464 = vst [vmem:[%s2673_s3 + $0x88] sm:$0xff] %v1436_v11  ;;  %v1437_v12 = vmax.f32 %v1395_v10, 0.0  ;;  %v1397_v14 = vadd.f32 %v1396_v40, %v1294_v32  ;;  %v1298_v34 = vadd.f32 %v1297_v58, %v1195_v56 }
 0x16c   :  { %v1299_v61 = vpop.f32.mrf.mxu0  ;;  %v1410_v33 = vpop.f32.mrf.mxu1 }
 0x16d   :  { %1465 = vst [vmem:[%s2673_s3 + $0x90] sm:$0xff] %v1437_v12  ;;  %v1438_v49 = vmax.f32 %v1397_v14, 0.0  ;;  %v1401_v48 = vadd.f32 %v1400_v54, %v1298_v34  ;;  %v1300_v15 = vadd.f32 %v1299_v61, %v1197_v59  ;;  %v2696_v54 = vld [vmem:[#allocation10_spill] sm:$0xff] }
 0x16e   :  { %v1301_v37 = vpop.f32.mrf.mxu0  ;;  %v1412_v40 = vpop.f32.mrf.mxu1  ;;  %v1209_v55 = vadd.f32 %v2696_v54, %v1106_v23 }
 0x16f   :  { %1466 = vst [vmem:[%s2673_s3 + $0x98] sm:$0xff] %v1438_v49  ;;  %v1439_v51 = vmax.f32 %v1401_v48, 0.0  ;;  %v1403_v1 = vadd.f32 %v1402_v17, %v1300_v15  ;;  %v1302_v0 = vadd.f32 %v1301_v37, %v1199_v36  ;;  %v1211_v17 = vadd.f32 %v2697_v30, %v1108_v5 }
 0x170   :  { %v1303_v39 = vpop.f32.mrf.mxu0  ;;  %v1414_v24 = vpop.f32.mrf.mxu1 }
 0x171   :  { %1467 = vst [vmem:[%s2673_s3 + $0xa0] sm:$0xff] %v1439_v51  ;;  %v1440_v3 = vmax.f32 %v1403_v1, 0.0  ;;  %v1405_v2 = vadd.f32 %v1404_v31, %v1302_v0  ;;  %v1304_v20 = vadd.f32 %v1303_v39, %v1201_v26 }
 0x172   :  { %v1307_v43 = vpop.f32.mrf.mxu0  ;;  %v1416_v16 = vpop.f32.mrf.mxu1 }
 0x173   :  { %1468 = vst [vmem:[%s2673_s3 + $0xa8] sm:$0xff] %v1440_v3  ;;  %v1441_v27 = vmax.f32 %v1405_v2, 0.0  ;;  %v1407_v28 = vadd.f32 %v1406_v46, %v1304_v20  ;;  %v1308_v42 = vadd.f32 %v1307_v43, %v1205_v18 }
 0x174   :  { %v1309_v29 = vpop.f32.mrf.mxu0 }
 0x175   :  { %1469 = vst [vmem:[%s2673_s3 + $0xb0] sm:$0xff] %v1441_v27  ;;  %v1442_v6 = vmax.f32 %v1407_v28, 0.0  ;;  %v1411_v7 = vadd.f32 %v1410_v33, %v1308_v42  ;;  %v1310_v41 = vadd.f32 %v1309_v29, %v1207_v53 }
 0x176   :  { %v1311_v44 = vpop.f32.mrf.mxu0 }
 0x177   :  { %1470 = vst [vmem:[%s2673_s3 + $0xb8] sm:$0xff] %v1442_v6  ;;  %v1443_v45 = vmax.f32 %v1411_v7, 0.0  ;;  %v1413_v9 = vadd.f32 %v1412_v40, %v1310_v41  ;;  %v1312_v8 = vadd.f32 %v1311_v44, %v1209_v55 }
 0x178   :  { %v1313_v57 = vpop.f32.mrf.mxu0 }
 0x179   :  { %1471 = vst [vmem:[%s2673_s3 + $0xc0] sm:$0xff] %v1443_v45  ;;  %v1444_v56 = vmax.f32 %v1413_v9, 0.0  ;;  %v1415_v19 = vadd.f32 %v1414_v24, %v1312_v8  ;;  %v1314_v31 = vadd.f32 %v1313_v57, %v1211_v17 }
 0x17b   :  { %1472 = vst [vmem:[%s2673_s3 + $0xc8] sm:$0xff] %v1444_v56  ;;  %v1445_v11 = vmax.f32 %v1415_v19, 0.0  ;;  %v1417_v10 = vadd.f32 %v1416_v16, %v1314_v31 }
 0x17d   :  { %1473 = vst [vmem:[%s2673_s3 + $0xd0] sm:$0xff] %v1445_v11  ;;  %v1446_v32 = vmax.f32 %v1417_v10, 0.0 }
 0x17f   :  { %1474 = vst [vmem:[%s2673_s3 + $0xd8] sm:$0xff] %v1446_v32 }

// kernel: imagenet_convnet_bp_forward.11
= control target key start
LH: loop header
LB: loop body
LE: loop exit
PB: predicated region body
PF: predicated region fallthrough
CT: control target
= control target key end

     0   :  { %s12349_s1 = inlined_call_operand.vmem [shape: bf16[1792,256], index: 1, kind: input, shape index: {}]   ;;  %s12350_s0 = inlined_call_operand.vmem [shape: bf16[32,1792], index: 0, kind: input, shape index: {}]   ;;  %s12351_s2 = inlined_call_operand.vmem [shape: f32[1,256], index: 2, kind: input, shape index: {}]   ;;  %s12352_s3 = inlined_call_operand.vmem [shape: bf16[2304,384], index: 3, kind: input, shape index: {}]   ;;  %s12353_s4 = inlined_call_operand.vmem [shape: f32[1,384], index: 4, kind: input, shape index: {}]   ;;  %s12354_s5 = inlined_call_operand.vmem [shape: bf16[384,1024], index: 5, kind: input, shape index: {}]   ;;  %s12355_s6 = inlined_call_operand.vmem [shape: f32[1,1024], index: 6, kind: input, shape index: {}]   ;;  %s12356_s7 = inlined_call_operand.vmem [shape: f32[8,1024], index: 7, kind: output, shape index: {}]  }
   0x1   :  { %v8415_v0 = vld [vmem:[%s12349_s1 + $0x74] ss:$8 sps:$4 sm:$0xff]   ;;  %v8417_v1 = vld [vmem:[%s12349_s1 + $0x70] ss:$8 sps:$4 sm:$0xff]   ;;  %v8421_v4 = vld [vmem:[%s12349_s1 + $0x64] ss:$8 sps:$4 sm:$0xff]  }
   0x2   :  { %1551 = vmatprep.subr.bf16.mxu0 %v8415_v0  ;;  %v8418_v2 = vld [vmem:[%s12349_s1 + $0x174] ss:$8 sps:$4 sm:$0xff]   ;;  %v8420_v3 = vld [vmem:[%s12349_s1 + $0x170] ss:$8 sps:$4 sm:$0xff]   ;;  %v8423_v5 = vld [vmem:[%s12349_s1 + $0x60] ss:$8 sps:$4 sm:$0xff]  }
   0x3   :  { %1552 = vmatpush1.bf16.msra.mxu0 %v8417_v1  ;;  %1602 = vmatprep.subr.bf16.mxu1 %v8418_v2  ;;  %v8424_v6 = vld [vmem:[%s12349_s1 + $0x164] ss:$8 sps:$4 sm:$0xff]   ;;  %v8426_v7 = vld [vmem:[%s12349_s1 + $0x160] ss:$8 sps:$4 sm:$0xff]   ;;  %v8427_v8 = vld [vmem:[%s12349_s1 + $0x54] ss:$8 sps:$4 sm:$0xff]  }
   0x4   :  { %1603 = vmatpush1.bf16.msra.mxu1 %v8420_v3  ;;  %1553 = vmatprep.subr.bf16.mxu0 %v8421_v4  ;;  %v8429_v9 = vld [vmem:[%s12349_s1 + $0x50] ss:$8 sps:$4 sm:$0xff]   ;;  %v8430_v10 = vld [vmem:[%s12349_s1 + $0x154] ss:$8 sps:$4 sm:$0xff]   ;;  %v8433_v11 = vld [vmem:[%s12349_s1 + $0x44] ss:$8 sps:$4 sm:$0xff]  }
   0x5   :  { %1604 = vmatprep.subr.bf16.mxu1 %v8424_v6  ;;  %v8432_v12 = vld [vmem:[%s12349_s1 + $0x150] ss:$8 sps:$4 sm:$0xff]   ;;  %v8436_v13 = vld [vmem:[%s12349_s1 + $0x144] ss:$8 sps:$4 sm:$0xff]   ;;  %v8435_v14 = vld [vmem:[%s12349_s1 + $0x40] ss:$8 sps:$4 sm:$0xff]  }
   0x6   :  { %v8439_v15 = vld [vmem:[%s12349_s1 + $0x34] ss:$8 sps:$4 sm:$0xff]   ;;  %v8438_v16 = vld [vmem:[%s12349_s1 + $0x140] ss:$8 sps:$4 sm:$0xff]   ;;  %v8441_v18 = vld [vmem:[%s12349_s1 + $0x30] ss:$8 sps:$4 sm:$0xff]  }
   0x7   :  { %1554 = vmatpush1.bf16.msra.mxu0 %v8423_v5  ;;  %v8442_v17 = vld [vmem:[%s12349_s1 + $0x134] ss:$8 sps:$4 sm:$0xff]   ;;  %v8445_v19 = vld [vmem:[%s12349_s1 + $0x24] ss:$8 sps:$4 sm:$0xff]   ;;  %v8444_v20 = vld [vmem:[%s12349_s1 + $0x130] ss:$8 sps:$4 sm:$0xff]  }
   0x8   :  { %1555 = vmatprep.subr.bf16.mxu0 %v8427_v8  ;;  %1605 = vmatpush1.bf16.msra.mxu1 %v8426_v7  ;;  %v8448_v21 = vld [vmem:[%s12349_s1 + $0x124] ss:$8 sps:$4 sm:$0xff]   ;;  %v8447_v22 = vld [vmem:[%s12349_s1 + $0x20] ss:$8 sps:$4 sm:$0xff]   ;;  %v8451_v23 = vld [vmem:[%s12349_s1 + $0x14] ss:$8 sps:$4 sm:$0xff]  }
   0x9   :  { %1606 = vmatprep.subr.bf16.mxu1 %v8430_v10  ;;  %v8450_v24 = vld [vmem:[%s12349_s1 + $0x120] ss:$8 sps:$4 sm:$0xff]   ;;  %v8454_v25 = vld [vmem:[%s12349_s1 + $0x114] ss:$8 sps:$4 sm:$0xff]   ;;  %v8453_v26 = vld [vmem:[%s12349_s1 + $0x10] ss:$8 sps:$4 sm:$0xff]  }
   0xa   :  { %v8457_v27 = vld [vmem:[%s12349_s1 + $0x4] ss:$8 sps:$4 sm:$0xff]   ;;  %v8456_v28 = vld [vmem:[%s12349_s1 + $0x110] ss:$8 sps:$4 sm:$0xff]   ;;  %v8459_v30 = vld [vmem:[%s12349_s1] ss:$8 sps:$4 sm:$0xff]  }
   0xb   :  { %1556 = vmatpush1.bf16.msra.mxu0 %v8429_v9  ;;  %v8460_v29 = vld [vmem:[%s12349_s1 + $0x104] ss:$8 sps:$4 sm:$0xff]   ;;  %v8463_v31 = vld [vmem:[%s12349_s1 + $0xf4] ss:$8 sps:$4 sm:$0xff]   ;;  %v8462_v32 = vld [vmem:[%s12349_s1 + $0x100] ss:$8 sps:$4 sm:$0xff]  }
   0xc   :  { %1557 = vmatprep.subr.bf16.mxu0 %v8433_v11  ;;  %1607 = vmatpush1.bf16.msra.mxu1 %v8432_v12  ;;  %v8466_v33 = vld [vmem:[%s12349_s1 + $0x1f4] ss:$8 sps:$4 sm:$0xff]   ;;  %v8465_v34 = vld [vmem:[%s12349_s1 + $0xf0] ss:$8 sps:$4 sm:$0xff]   ;;  %v8469_v35 = vld [vmem:[%s12349_s1 + $0xe4] ss:$8 sps:$4 sm:$0xff]  }
   0xd   :  { %1608 = vmatprep.subr.bf16.mxu1 %v8436_v13  ;;  %v8468_v36 = vld [vmem:[%s12349_s1 + $0x1f0] ss:$8 sps:$4 sm:$0xff]   ;;  %v8472_v37 = vld [vmem:[%s12349_s1 + $0x1e4] ss:$8 sps:$4 sm:$0xff]   ;;  %v8471_v38 = vld [vmem:[%s12349_s1 + $0xe0] ss:$8 sps:$4 sm:$0xff]  }
   0xe   :  { %v8475_v39 = vld [vmem:[%s12349_s1 + $0xd4] ss:$8 sps:$4 sm:$0xff]   ;;  %v8474_v40 = vld [vmem:[%s12349_s1 + $0x1e0] ss:$8 sps:$4 sm:$0xff]   ;;  %v8477_v42 = vld [vmem:[%s12349_s1 + $0xd0] ss:$8 sps:$4 sm:$0xff]  }
   0xf   :  { %1558 = vmatpush1.bf16.msra.mxu0 %v8435_v14  ;;  %v8478_v41 = vld [vmem:[%s12349_s1 + $0x1d4] ss:$8 sps:$4 sm:$0xff]   ;;  %v8481_v43 = vld [vmem:[%s12349_s1 + $0xc4] ss:$8 sps:$4 sm:$0xff]   ;;  %v8480_v44 = vld [vmem:[%s12349_s1 + $0x1d0] ss:$8 sps:$4 sm:$0xff]  }
  0x10   :  { %1559 = vmatprep.subr.bf16.mxu0 %v8439_v15  ;;  %1609 = vmatpush1.bf16.msra.mxu1 %v8438_v16  ;;  %v8484_v45 = vld [vmem:[%s12349_s1 + $0x1c4] ss:$8 sps:$4 sm:$0xff]   ;;  %v8483_v46 = vld [vmem:[%s12349_s1 + $0xc0] ss:$8 sps:$4 sm:$0xff]   ;;  %v8487_v48 = vld [vmem:[%s12349_s1 + $0xb4] ss:$8 sps:$4 sm:$0xff]  }
  0x11   :  { %1610 = vmatprep.subr.bf16.mxu1 %v8442_v17  ;;  %v8512_v47 = vld [vmem:[%s12350_s0 + $0x4] ss:$56 sps:$4 sm:$0xff]   ;;  %v8486_v49 = vld [vmem:[%s12349_s1 + $0x1c0] ss:$8 sps:$4 sm:$0xff]   ;;  %v8489_v52 = vld [vmem:[%s12349_s1 + $0xb0] ss:$8 sps:$4 sm:$0xff]  }
  0x12   :  { %1583 = vmatprep.mubr.bf16.mxu0 %v8512_v47  ;;  %v8490_v50 = vld [vmem:[%s12349_s1 + $0x1b4] ss:$8 sps:$4 sm:$0xff]   ;;  %v8519_v51 = vld [vmem:[%s12350_s0 + $0xc] ss:$56 sps:$4 sm:$0xff]   ;;  %v8492_v54 = vld [vmem:[%s12349_s1 + $0x1b0] ss:$8 sps:$4 sm:$0xff]  }
  0x13   :  { %1560 = vmatpush1.bf16.msra.mxu0 %v8441_v18  ;;  %v8493_v53 = vld [vmem:[%s12349_s1 + $0xa4] ss:$8 sps:$4 sm:$0xff]   ;;  %1634 = vmatprep.mubr.bf16.mxu1 %v8519_v51  ;;  %v8495_v56 = vld [vmem:[%s12349_s1 + $0xa0] ss:$8 sps:$4 sm:$0xff]   ;;  %v8499_v57 = vld [vmem:[%s12349_s1 + $0x94] ss:$8 sps:$4 sm:$0xff]  }
  0x14   :  { %1561 = vmatprep.subr.bf16.mxu0 %v8445_v19  ;;  %1611 = vmatpush1.bf16.msra.mxu1 %v8444_v20  ;;  %v8496_v55 = vld [vmem:[%s12349_s1 + $0x1a4] ss:$8 sps:$4 sm:$0xff]   ;;  %v8498_v58 = vld [vmem:[%s12349_s1 + $0x1a0] ss:$8 sps:$4 sm:$0xff]   ;;  %v8502_v59 = vld [vmem:[%s12349_s1 + $0x194] ss:$8 sps:$4 sm:$0xff]  }
  0x15   :  { %1612 = vmatprep.subr.bf16.mxu1 %v8448_v21  ;;  %v8501_v60 = vld [vmem:[%s12349_s1 + $0x90] ss:$8 sps:$4 sm:$0xff]   ;;  %v8505_v61 = vld [vmem:[%s12349_s1 + $0x84] ss:$8 sps:$4 sm:$0xff]   ;;  %v8507_v0 = vld [vmem:[%s12349_s1 + $0x80] ss:$8 sps:$4 sm:$0xff]  }
  0x16   :  { %v8504_v62 = vld [vmem:[%s12349_s1 + $0x190] ss:$8 sps:$4 sm:$0xff]   ;;  %v8508_v63 = vld [vmem:[%s12349_s1 + $0x184] ss:$8 sps:$4 sm:$0xff]   ;;  %v8516_v1 = vld [vmem:[%s12349_s1 + $0x274] ss:$8 sps:$4 sm:$0xff]  }
  0x17   :  { %1562 = vmatpush1.bf16.msra.mxu0 %v8447_v22  ;;  %v8513_v2 = vld [vmem:[%s12349_s1 + $0x180] ss:$8 sps:$4 sm:$0xff]   ;;  %v8522_v4 = vld [vmem:[%s12349_s1 + $0x374] ss:$8 sps:$4 sm:$0xff]   ;;  %v8514_v5 = vld [vmem:[%s12349_s1 + $0x270] ss:$8 sps:$4 sm:$0xff]  }
  0x18   :  { %1563 = vmatprep.subr.bf16.mxu0 %v8451_v23  ;;  %1613 = vmatpush1.bf16.msra.mxu1 %v8450_v24  ;;  %v8510_v3 = vld [vmem:[%s12350_s0] ss:$56 sps:$4 sm:$0xff]   ;;  %v8525_v7 = vld [vmem:[%s12349_s1 + $0x264] ss:$8 sps:$4 sm:$0xff]   ;;  %v8531_v11 = vld [vmem:[%s12349_s1 + $0x254] ss:$8 sps:$4 sm:$0xff]  }
  0x19   :  { %1614 = vmatprep.subr.bf16.mxu1 %v8454_v25  ;;  %v8517_v6 = vld [vmem:[%s12350_s0 + $0x8] ss:$56 sps:$4 sm:$0xff]   ;;  %v8520_v8 = vld [vmem:[%s12349_s1 + $0x370] ss:$8 sps:$4 sm:$0xff]   ;;  %v8528_v9 = vld [vmem:[%s12349_s1 + $0x364] ss:$8 sps:$4 sm:$0xff]  }
  0x1a   :  { %v8523_v10 = vld [vmem:[%s12349_s1 + $0x260] ss:$8 sps:$4 sm:$0xff]   ;;  %v8534_v13 = vld [vmem:[%s12349_s1 + $0x354] ss:$8 sps:$4 sm:$0xff]   ;;  %v8529_v14 = vld [vmem:[%s12349_s1 + $0x250] ss:$8 sps:$4 sm:$0xff]  }
  0x1b   :  { %1564 = vmatpush1.bf16.msra.mxu0 %v8453_v26  ;;  %v8526_v12 = vld [vmem:[%s12349_s1 + $0x360] ss:$8 sps:$4 sm:$0xff]   ;;  %v8537_v15 = vld [vmem:[%s12349_s1 + $0x244] ss:$8 sps:$4 sm:$0xff]   ;;  %v8532_v16 = vld [vmem:[%s12349_s1 + $0x350] ss:$8 sps:$4 sm:$0xff]  }
  0x1c   :  { %1565 = vmatprep.subr.bf16.mxu0 %v8457_v27  ;;  %1615 = vmatpush1.bf16.msra.mxu1 %v8456_v28  ;;  %v8540_v17 = vld [vmem:[%s12349_s1 + $0x344] ss:$8 sps:$4 sm:$0xff]   ;;  %v8535_v18 = vld [vmem:[%s12349_s1 + $0x240] ss:$8 sps:$4 sm:$0xff]   ;;  %v8543_v19 = vld [vmem:[%s12349_s1 + $0x234] ss:$8 sps:$4 sm:$0xff]  }
  0x1d   :  { %1616 = vmatprep.subr.bf16.mxu1 %v8460_v29  ;;  %v8538_v20 = vld [vmem:[%s12349_s1 + $0x340] ss:$8 sps:$4 sm:$0xff]   ;;  %v8541_v21 = vld [vmem:[%s12349_s1 + $0x230] ss:$8 sps:$4 sm:$0xff]   ;;  %v8546_v22 = vld [vmem:[%s12349_s1 + $0x334] ss:$8 sps:$4 sm:$0xff]  }
  0x1e   :  { %v8592_v23 = vld [vmem:[%s12350_s0 + $0x74] ss:$56 sps:$4 sm:$0xff]   ;;  %v8544_v24 = vld [vmem:[%s12349_s1 + $0x330] ss:$8 sps:$4 sm:$0xff]   ;;  %v8547_v28 = vld [vmem:[%s12349_s1 + $0x220] ss:$8 sps:$4 sm:$0xff]  }
  0x1f   :  { %1566 = vmatpush1.bf16.msra.mxu0 %v8459_v30  ;;  %v8549_v25 = vld [vmem:[%s12349_s1 + $0x224] ss:$8 sps:$4 sm:$0xff]   ;;  %v8597_v26 = vld [vmem:[%s12350_s0 + $0x70] ss:$56 sps:$4 sm:$0xff]   ;;  %v8555_v29 = vld [vmem:[%s12349_s1 + $0x214] ss:$8 sps:$4 sm:$0xff]  }
  0x20   :  { %1567 = vmatprep.subr.bf16.mxu0 %v8463_v31  ;;  %1617 = vmatpush1.bf16.msra.mxu1 %v8462_v32  ;;  %v8552_v27 = vld [vmem:[%s12349_s1 + $0x324] ss:$8 sps:$4 sm:$0xff]   ;;  %v8604_v30 = vld [vmem:[%s12350_s0 + $0x7c] ss:$56 sps:$4 sm:$0xff]   ;;  %v8550_v31 = vld [vmem:[%s12349_s1 + $0x320] ss:$8 sps:$4 sm:$0xff]  }
  0x21   :  { %1618 = vmatprep.subr.bf16.mxu1 %v8466_v33  ;;  %v8558_v32 = vld [vmem:[%s12349_s1 + $0x314] ss:$8 sps:$4 sm:$0xff]   ;;  %v8609_v33 = vld [vmem:[%s12350_s0 + $0x78] ss:$56 sps:$4 sm:$0xff]   ;;  %v8576_v47 = vld [vmem:[%s12349_s1 + $0x3e4] ss:$8 sps:$4 sm:$0xff]  }
  0x22   :  { %v8582_v51 = vld [vmem:[%s12349_s1 + $0x3d4] ss:$8 sps:$4 sm:$0xff]  }
  0x23   :  { %1568 = vmatpush2.bf16.msra.mxu0 %v8465_v34  ;;  %v8553_v34 = vld [vmem:[%s12349_s1 + $0x210] ss:$8 sps:$4 sm:$0xff]  }
  0x24   :  { %1569 = vmatprep.subr.bf16.mxu0 %v8469_v35  ;;  %1619 = vmatpush2.bf16.msra.mxu1 %v8468_v36  ;;  %v8561_v35 = vld [vmem:[%s12349_s1 + $0x204] ss:$8 sps:$4 sm:$0xff]   ;;  %v8556_v36 = vld [vmem:[%s12349_s1 + $0x310] ss:$8 sps:$4 sm:$0xff]  }
  0x25   :  { %1620 = vmatprep.subr.bf16.mxu1 %v8472_v37  ;;  %v8564_v37 = vld [vmem:[%s12349_s1 + $0x304] ss:$8 sps:$4 sm:$0xff]  }
  0x27   :  { %1570 = vmatpush2.bf16.msra.mxu0 %v8471_v38  ;;  %v8559_v38 = vld [vmem:[%s12349_s1 + $0x200] ss:$8 sps:$4 sm:$0xff]  }
  0x28   :  { %1571 = vmatprep.subr.bf16.mxu0 %v8475_v39  ;;  %1621 = vmatpush2.bf16.msra.mxu1 %v8474_v40  ;;  %v8621_v39 = vld [vmem:[%s12350_s0 + $0x14] ss:$56 sps:$4 sm:$0xff]  }
  0x29   :  { %1622 = vmatprep.subr.bf16.mxu1 %v8478_v41  ;;  %v8567_v40 = vld [vmem:[%s12349_s1 + $0x2f4] ss:$8 sps:$4 sm:$0xff]   ;;  %v8562_v41 = vld [vmem:[%s12349_s1 + $0x300] ss:$8 sps:$4 sm:$0xff]  }
  0x2b   :  { %1572 = vmatpush2.bf16.msra.mxu0 %v8477_v42  ;;  %v8570_v42 = vld [vmem:[%s12349_s1 + $0x3f4] ss:$8 sps:$4 sm:$0xff]  }
  0x2c   :  { %1573 = vmatprep.subr.bf16.mxu0 %v8481_v43  ;;  %1623 = vmatpush2.bf16.msra.mxu1 %v8480_v44  ;;  %v8627_v43 = vld [vmem:[%s12350_s0 + $0x1c] ss:$56 sps:$4 sm:$0xff]   ;;  %v8565_v44 = vld [vmem:[%s12349_s1 + $0x2f0] ss:$8 sps:$4 sm:$0xff]  }
  0x2d   :  { %1624 = vmatprep.subr.bf16.mxu1 %v8484_v45  ;;  %v8573_v45 = vld [vmem:[%s12349_s1 + $0x2e4] ss:$8 sps:$4 sm:$0xff]  }
  0x2f   :  { %1574 = vmatpush2.bf16.msra.mxu0 %v8483_v46  ;;  %v8568_v46 = vld [vmem:[%s12349_s1 + $0x3f0] ss:$8 sps:$4 sm:$0xff]  }
  0x30   :  { %1575 = vmatprep.subr.bf16.mxu0 %v8487_v48  ;;  %1625 = vmatpush2.bf16.msra.mxu1 %v8486_v49  ;;  %v8571_v48 = vld [vmem:[%s12349_s1 + $0x2e0] ss:$8 sps:$4 sm:$0xff]   ;;  %v8579_v49 = vld [vmem:[%s12349_s1 + $0x2d4] ss:$8 sps:$4 sm:$0xff]  }
  0x31   :  { %1626 = vmatprep.subr.bf16.mxu1 %v8490_v50  ;;  %v8574_v50 = vld [vmem:[%s12349_s1 + $0x3e0] ss:$8 sps:$4 sm:$0xff]  }
  0x33   :  { %1576 = vmatpush2.bf16.msra.mxu0 %v8489_v52  ;;  %v8577_v52 = vld [vmem:[%s12349_s1 + $0x2d0] ss:$8 sps:$4 sm:$0xff]  }
  0x34   :  { %1577 = vmatprep.subr.bf16.mxu0 %v8493_v53  ;;  %1627 = vmatpush2.bf16.msra.mxu1 %v8492_v54  ;;  %v8585_v53 = vld [vmem:[%s12349_s1 + $0x2c4] ss:$8 sps:$4 sm:$0xff]   ;;  %v8580_v54 = vld [vmem:[%s12349_s1 + $0x3d0] ss:$8 sps:$4 sm:$0xff]  }
  0x35   :  { %1628 = vmatprep.subr.bf16.mxu1 %v8496_v55  ;;  %v8588_v55 = vld [vmem:[%s12349_s1 + $0x3c4] ss:$8 sps:$4 sm:$0xff]  }
  0x37   :  { %1578 = vmatpush2.bf16.msra.mxu0 %v8495_v56  ;;  %v8583_v56 = vld [vmem:[%s12349_s1 + $0x2c0] ss:$8 sps:$4 sm:$0xff]  }
  0x38   :  { %1579 = vmatprep.subr.bf16.mxu0 %v8499_v57  ;;  %1629 = vmatpush2.bf16.msra.mxu1 %v8498_v58  ;;  %v8591_v57 = vld [vmem:[%s12349_s1 + $0x2b4] ss:$8 sps:$4 sm:$0xff]   ;;  %v8586_v58 = vld [vmem:[%s12349_s1 + $0x3c0] ss:$8 sps:$4 sm:$0xff]  }
  0x39   :  { %1630 = vmatprep.subr.bf16.mxu1 %v8502_v59  ;;  %v8596_v59 = vld [vmem:[%s12349_s1 + $0x3b4] ss:$8 sps:$4 sm:$0xff]  }
  0x3b   :  { %1580 = vmatpush2.bf16.msra.mxu0 %v8501_v60  ;;  %v8589_v60 = vld [vmem:[%s12349_s1 + $0x2b0] ss:$8 sps:$4 sm:$0xff]  }
  0x3c   :  { %1581 = vmatprep.subr.bf16.mxu0 %v8505_v61  ;;  %1631 = vmatpush2.bf16.msra.mxu1 %v8504_v62  ;;  %v8600_v61 = vld [vmem:[%s12349_s1 + $0x2a4] ss:$8 sps:$4 sm:$0xff]   ;;  %v8594_v62 = vld [vmem:[%s12349_s1 + $0x3b0] ss:$8 sps:$4 sm:$0xff]  }
  0x3d   :  { %1632 = vmatprep.subr.bf16.mxu1 %v8508_v63  ;;  %v8603_v63 = vld [vmem:[%s12349_s1 + $0x3a4] ss:$8 sps:$4 sm:$0xff]  }
  0x3f   :  { %1582 = vmatpush2.bf16.msra.mxu0 %v8507_v0  ;;  %v8598_v0 = vld [vmem:[%s12349_s1 + $0x2a0] ss:$8 sps:$4 sm:$0xff]  }
  0x40   :  { %1653 = vmatprep.subr.bf16.mxu0 %v8516_v1  ;;  %1633 = vmatpush2.bf16.msra.mxu1 %v8513_v2  ;;  %v8608_v1 = vld [vmem:[%s12349_s1 + $0x294] ss:$8 sps:$4 sm:$0xff]   ;;  %v8601_v2 = vld [vmem:[%s12349_s1 + $0x3a0] ss:$8 sps:$4 sm:$0xff]  }
  0x41   :  { %1704 = vmatprep.subr.bf16.mxu1 %v8522_v4  ;;  %v8606_v4 = vld [vmem:[%s12349_s1 + $0x290] ss:$8 sps:$4 sm:$0xff]  }
  0x42   :  { %1584 = vmatmul.mubr.bf16.vlgmr.msra.gmra.mxu0 %v8510_v3  ;;  %v8612_v3 = vld [vmem:[%s12349_s1 + $0x394] ss:$8 sps:$4 sm:$0xff]  }
  0x43   :  { %1654 = vmatpush1.bf16.msra.mxu0 %v8514_v5  ;;  %1635 = vmatmul.mubr.bf16.vlgmr.msra.gmra.mxu1 %v8517_v6  ;;  %v8615_v5 = vld [vmem:[%s12349_s1 + $0x284] ss:$8 sps:$4 sm:$0xff]   ;;  %v8610_v6 = vld [vmem:[%s12349_s1 + $0x390] ss:$8 sps:$4 sm:$0xff]  }
  0x44   :  { %1655 = vmatprep.subr.bf16.mxu0 %v8525_v7  ;;  %1705 = vmatpush1.bf16.msra.mxu1 %v8520_v8  ;;  %v8618_v7 = vld [vmem:[%s12349_s1 + $0x384] ss:$8 sps:$4 sm:$0xff]   ;;  %v8613_v8 = vld [vmem:[%s12349_s1 + $0x280] ss:$8 sps:$4 sm:$0xff]  }
  0x45   :  { %1706 = vmatprep.subr.bf16.mxu1 %v8528_v9  ;;  %1593 = vmatprep.mubr.bf16.mxu0 %v8592_v23  ;;  %v8616_v9 = vld [vmem:[%s12349_s1 + $0x380] ss:$8 sps:$4 sm:$0xff]  }
  0x46   :  { %1644 = vmatprep.mubr.bf16.mxu1 %v8604_v30  ;;  %v8639_v23 = vld [vmem:[%s12350_s0 + $0x80] ss:$56 sps:$4 sm:$0xff]  }
  0x47   :  { %1656 = vmatpush1.bf16.msra.mxu0 %v8523_v10  ;;  %v8619_v10 = vld [vmem:[%s12350_s0 + $0x10] ss:$56 sps:$4 sm:$0xff]  }
  0x48   :  { %1657 = vmatprep.subr.bf16.mxu0 %v8531_v11  ;;  %1707 = vmatpush1.bf16.msra.mxu1 %v8526_v12  ;;  %v8624_v11 = vld [vmem:[%s12349_s1 + $0x474] ss:$8 sps:$4 sm:$0xff]   ;;  %v8622_v12 = vld [vmem:[%s12349_s1 + $0x470] ss:$8 sps:$4 sm:$0xff]   ;;  %v8649_v30 = vld [vmem:[%s12349_s1 + $0x440] ss:$8 sps:$4 sm:$0xff]  }
  0x49   :  { %1708 = vmatprep.subr.bf16.mxu1 %v8534_v13  ;;  %v8625_v13 = vld [vmem:[%s12350_s0 + $0x18] ss:$56 sps:$4 sm:$0xff]  }
  0x4a   :  { %1594 = vmatmul.mubr.bf16.gmra.mxu0 %v8597_v26  ;;  %v8645_v26 = vld [vmem:[%s12350_s0 + $0x88] ss:$56 sps:$4 sm:$0xff]  }
  0x4b   :  { %1658 = vmatpush1.bf16.msra.mxu0 %v8529_v14  ;;  %1645 = vmatmul.mubr.bf16.gmra.mxu1 %v8609_v33  ;;  %v8630_v14 = vld [vmem:[%s12349_s1 + $0x574] ss:$8 sps:$4 sm:$0xff]   ;;  %v8652_v33 = vld [vmem:[%s12349_s1 + $0x540] ss:$8 sps:$4 sm:$0xff]  }
  0x4c   :  { %1659 = vmatprep.subr.bf16.mxu0 %v8537_v15  ;;  %1709 = vmatpush1.bf16.msra.mxu1 %v8532_v16  ;;  %v8628_v15 = vld [vmem:[%s12349_s1 + $0x570] ss:$8 sps:$4 sm:$0xff]   ;;  %v8637_v16 = vld [vmem:[%s12350_s0 + $0x84] ss:$56 sps:$4 sm:$0xff]  }
  0x4d   :  { %1710 = vmatprep.subr.bf16.mxu1 %v8540_v17  ;;  %1685 = vmatprep.mubr.bf16.mxu0 %v8621_v39  ;;  %v8633_v17 = vld [vmem:[%s12349_s1 + $0x464] ss:$8 sps:$4 sm:$0xff]  }
  0x4e   :  { %1736 = vmatprep.mubr.bf16.mxu1 %v8627_v43  ;;  %v8666_v39 = vld [vmem:[%s12349_s1 + $0x524] ss:$8 sps:$4 sm:$0xff]   ;;  %v8672_v43 = vld [vmem:[%s12349_s1 + $0x514] ss:$8 sps:$4 sm:$0xff]  }
  0x4f   :  { %1660 = vmatpush1.bf16.msra.mxu0 %v8535_v18  ;;  %v8643_v18 = vld [vmem:[%s12350_s0 + $0x8c] ss:$56 sps:$4 sm:$0xff]  }
  0x50   :  { %1661 = vmatprep.subr.bf16.mxu0 %v8543_v19  ;;  %1711 = vmatpush1.bf16.msra.mxu1 %v8538_v20  ;;  %v8636_v19 = vld [vmem:[%s12349_s1 + $0x564] ss:$8 sps:$4 sm:$0xff]   ;;  %v8631_v20 = vld [vmem:[%s12349_s1 + $0x460] ss:$8 sps:$4 sm:$0xff]  }
  0x51   :  { %1712 = vmatprep.subr.bf16.mxu1 %v8546_v22  ;;  %v8634_v22 = vld [vmem:[%s12349_s1 + $0x560] ss:$8 sps:$4 sm:$0xff]  }
  0x53   :  { %1662 = vmatpush1.bf16.msra.mxu0 %v8541_v21  ;;  %v8642_v21 = vld [vmem:[%s12349_s1 + $0x454] ss:$8 sps:$4 sm:$0xff]  }
  0x54   :  { %1663 = vmatprep.subr.bf16.mxu0 %v8549_v25  ;;  %1713 = vmatpush1.bf16.msra.mxu1 %v8544_v24  ;;  %v8648_v24 = vld [vmem:[%s12349_s1 + $0x554] ss:$8 sps:$4 sm:$0xff]   ;;  %v8640_v25 = vld [vmem:[%s12349_s1 + $0x450] ss:$8 sps:$4 sm:$0xff]  }
  0x55   :  { %1714 = vmatprep.subr.bf16.mxu1 %v8552_v27  ;;  %v8651_v27 = vld [vmem:[%s12349_s1 + $0x444] ss:$8 sps:$4 sm:$0xff]  }
  0x57   :  { %1664 = vmatpush1.bf16.msra.mxu0 %v8547_v28  ;;  %v8646_v28 = vld [vmem:[%s12349_s1 + $0x550] ss:$8 sps:$4 sm:$0xff]  }
  0x58   :  { %1665 = vmatprep.subr.bf16.mxu0 %v8555_v29  ;;  %1715 = vmatpush1.bf16.msra.mxu1 %v8550_v31  ;;  %v8654_v29 = vld [vmem:[%s12349_s1 + $0x544] ss:$8 sps:$4 sm:$0xff]  }
  0x59   :  { %1716 = vmatprep.subr.bf16.mxu1 %v8558_v32  ;;  %v8729_v31 = vld [vmem:[%s12350_s0 + $0x24] ss:$56 sps:$4 sm:$0xff]  }
  0x5a   :  { %v8657_v32 = vld [vmem:[%s12349_s1 + $0x434] ss:$8 sps:$4 sm:$0xff]  }
  0x5b   :  { %1666 = vmatpush1.bf16.msra.mxu0 %v8553_v34  ;;  %v8660_v34 = vld [vmem:[%s12349_s1 + $0x534] ss:$8 sps:$4 sm:$0xff]  }
  0x5c   :  { %1667 = vmatprep.subr.bf16.mxu0 %v8561_v35  ;;  %1717 = vmatpush1.bf16.msra.mxu1 %v8556_v36  ;;  %v8735_v35 = vld [vmem:[%s12350_s0 + $0x2c] ss:$56 sps:$4 sm:$0xff]   ;;  %v8655_v36 = vld [vmem:[%s12349_s1 + $0x430] ss:$8 sps:$4 sm:$0xff]  }
  0x5d   :  { %1718 = vmatprep.subr.bf16.mxu1 %v8564_v37  ;;  %v8663_v37 = vld [vmem:[%s12349_s1 + $0x424] ss:$8 sps:$4 sm:$0xff]  }
  0x5f   :  { %1668 = vmatpush1.bf16.msra.mxu0 %v8559_v38  ;;  %v8658_v38 = vld [vmem:[%s12349_s1 + $0x530] ss:$8 sps:$4 sm:$0xff]  }
  0x60   :  { %1669 = vmatprep.subr.bf16.mxu0 %v8567_v40  ;;  %1719 = vmatpush1.bf16.msra.mxu1 %v8562_v41  ;;  %v8661_v40 = vld [vmem:[%s12349_s1 + $0x420] ss:$8 sps:$4 sm:$0xff]   ;;  %v8669_v41 = vld [vmem:[%s12349_s1 + $0x414] ss:$8 sps:$4 sm:$0xff]  }
  0x61   :  { %1720 = vmatprep.subr.bf16.mxu1 %v8570_v42  ;;  %v8664_v42 = vld [vmem:[%s12349_s1 + $0x520] ss:$8 sps:$4 sm:$0xff]  }
  0x63   :  { %1670 = vmatpush2.bf16.msra.mxu0 %v8565_v44  ;;  %v8667_v44 = vld [vmem:[%s12349_s1 + $0x410] ss:$8 sps:$4 sm:$0xff]  }
  0x64   :  { %1671 = vmatprep.subr.bf16.mxu0 %v8573_v45  ;;  %1721 = vmatpush2.bf16.msra.mxu1 %v8568_v46  ;;  %v8675_v45 = vld [vmem:[%s12349_s1 + $0x404] ss:$8 sps:$4 sm:$0xff]   ;;  %v8670_v46 = vld [vmem:[%s12349_s1 + $0x510] ss:$8 sps:$4 sm:$0xff]  }
  0x65   :  { %1722 = vmatprep.subr.bf16.mxu1 %v8576_v47  ;;  %v8678_v47 = vld [vmem:[%s12349_s1 + $0x504] ss:$8 sps:$4 sm:$0xff]  }
  0x67   :  { %1672 = vmatpush2.bf16.msra.mxu0 %v8571_v48  ;;  %v8673_v48 = vld [vmem:[%s12349_s1 + $0x400] ss:$8 sps:$4 sm:$0xff]  }
  0x68   :  { %1673 = vmatprep.subr.bf16.mxu0 %v8579_v49  ;;  %1723 = vmatpush2.bf16.msra.mxu1 %v8574_v50  ;;  %v8681_v49 = vld [vmem:[%s12349_s1 + $0x4f4] ss:$8 sps:$4 sm:$0xff]   ;;  %v8676_v50 = vld [vmem:[%s12349_s1 + $0x500] ss:$8 sps:$4 sm:$0xff]  }
  0x69   :  { %1724 = vmatprep.subr.bf16.mxu1 %v8582_v51  ;;  %v8684_v51 = vld [vmem:[%s12349_s1 + $0x5f4] ss:$8 sps:$4 sm:$0xff]  }
  0x6b   :  { %1674 = vmatpush2.bf16.msra.mxu0 %v8577_v52  ;;  %v8679_v52 = vld [vmem:[%s12349_s1 + $0x4f0] ss:$8 sps:$4 sm:$0xff]  }
  0x6c   :  { %1675 = vmatprep.subr.bf16.mxu0 %v8585_v53  ;;  %1725 = vmatpush2.bf16.msra.mxu1 %v8580_v54  ;;  %v8687_v53 = vld [vmem:[%s12349_s1 + $0x4e4] ss:$8 sps:$4 sm:$0xff]   ;;  %v8682_v54 = vld [vmem:[%s12349_s1 + $0x5f0] ss:$8 sps:$4 sm:$0xff]  }
  0x6d   :  { %1726 = vmatprep.subr.bf16.mxu1 %v8588_v55  ;;  %v8690_v55 = vld [vmem:[%s12349_s1 + $0x5e4] ss:$8 sps:$4 sm:$0xff]  }
  0x6f   :  { %1676 = vmatpush2.bf16.msra.mxu0 %v8583_v56  ;;  %v8685_v56 = vld [vmem:[%s12349_s1 + $0x4e0] ss:$8 sps:$4 sm:$0xff]  }
  0x70   :  { %1677 = vmatprep.subr.bf16.mxu0 %v8591_v57  ;;  %1727 = vmatpush2.bf16.msra.mxu1 %v8586_v58  ;;  %v8693_v57 = vld [vmem:[%s12349_s1 + $0x4d4] ss:$8 sps:$4 sm:$0xff]   ;;  %v8688_v58 = vld [vmem:[%s12349_s1 + $0x5e0] ss:$8 sps:$4 sm:$0xff]  }
  0x71   :  { %1728 = vmatprep.subr.bf16.mxu1 %v8596_v59  ;;  %v8696_v59 = vld [vmem:[%s12349_s1 + $0x5d4] ss:$8 sps:$4 sm:$0xff]  }
  0x73   :  { %1678 = vmatpush2.bf16.msra.mxu0 %v8589_v60  ;;  %v8691_v60 = vld [vmem:[%s12349_s1 + $0x4d0] ss:$8 sps:$4 sm:$0xff]  }
  0x74   :  { %1679 = vmatprep.subr.bf16.mxu0 %v8600_v61  ;;  %1729 = vmatpush2.bf16.msra.mxu1 %v8594_v62  ;;  %v8699_v61 = vld [vmem:[%s12349_s1 + $0x4c4] ss:$8 sps:$4 sm:$0xff]   ;;  %v8694_v62 = vld [vmem:[%s12349_s1 + $0x5d0] ss:$8 sps:$4 sm:$0xff]  }
  0x75   :  { %1730 = vmatprep.subr.bf16.mxu1 %v8603_v63  ;;  %v8702_v63 = vld [vmem:[%s12349_s1 + $0x5c4] ss:$8 sps:$4 sm:$0xff]  }
  0x77   :  { %1680 = vmatpush2.bf16.msra.mxu0 %v8598_v0  ;;  %v8697_v0 = vld [vmem:[%s12349_s1 + $0x4c0] ss:$8 sps:$4 sm:$0xff]  }
  0x78   :  { %1681 = vmatprep.subr.bf16.mxu0 %v8608_v1  ;;  %1731 = vmatpush2.bf16.msra.mxu1 %v8601_v2  ;;  %v8705_v1 = vld [vmem:[%s12349_s1 + $0x4b4] ss:$8 sps:$4 sm:$0xff]   ;;  %v8700_v2 = vld [vmem:[%s12349_s1 + $0x5c0] ss:$8 sps:$4 sm:$0xff]  }
  0x79   :  { %1732 = vmatprep.subr.bf16.mxu1 %v8612_v3  ;;  %v8708_v3 = vld [vmem:[%s12349_s1 + $0x5b4] ss:$8 sps:$4 sm:$0xff]  }
  0x7b   :  { %1682 = vmatpush2.bf16.msra.mxu0 %v8606_v4  ;;  %v8703_v4 = vld [vmem:[%s12349_s1 + $0x4b0] ss:$8 sps:$4 sm:$0xff]  }
  0x7c   :  { %1683 = vmatprep.subr.bf16.mxu0 %v8615_v5  ;;  %1733 = vmatpush2.bf16.msra.mxu1 %v8610_v6  ;;  %v8711_v5 = vld [vmem:[%s12349_s1 + $0x4a4] ss:$8 sps:$4 sm:$0xff]   ;;  %v8706_v6 = vld [vmem:[%s12349_s1 + $0x5b0] ss:$8 sps:$4 sm:$0xff]  }
  0x7d   :  { %1734 = vmatprep.subr.bf16.mxu1 %v8618_v7  ;;  %v8714_v7 = vld [vmem:[%s12349_s1 + $0x5a4] ss:$8 sps:$4 sm:$0xff]  }
  0x7f   :  { %1684 = vmatpush2.bf16.msra.mxu0 %v8613_v8  ;;  %v8709_v8 = vld [vmem:[%s12349_s1 + $0x4a0] ss:$8 sps:$4 sm:$0xff]  }
  0x80   :  { %1755 = vmatprep.subr.bf16.mxu0 %v8624_v11  ;;  %1735 = vmatpush2.bf16.msra.mxu1 %v8616_v9  ;;  %v8717_v9 = vld [vmem:[%s12349_s1 + $0x494] ss:$8 sps:$4 sm:$0xff]  }
  0x81   :  { %1806 = vmatprep.subr.bf16.mxu1 %v8630_v14  ;;  %v8720_v11 = vld [vmem:[%s12349_s1 + $0x594] ss:$8 sps:$4 sm:$0xff]   ;;  %v8718_v14 = vld [vmem:[%s12349_s1 + $0x590] ss:$8 sps:$4 sm:$0xff]  }
  0x82   :  { %1686 = vmatmul.mubr.bf16.vlgmr.msra.gmra.mxu0 %v8619_v10  ;;  %v8712_v10 = vld [vmem:[%s12349_s1 + $0x5a0] ss:$8 sps:$4 sm:$0xff]  }
  0x83   :  { %1756 = vmatpush1.bf16.msra.mxu0 %v8622_v12  ;;  %1695 = vmatprep.mubr.bf16.mxu0 %v8637_v16  ;;  %v8715_v12 = vld [vmem:[%s12349_s1 + $0x490] ss:$8 sps:$4 sm:$0xff]   ;;  %v8721_v16 = vld [vmem:[%s12349_s1 + $0x480] ss:$8 sps:$4 sm:$0xff]  }
  0x84   :  { %1737 = vmatmul.mubr.bf16.vlgmr.msra.gmra.mxu1 %v8625_v13  ;;  %1757 = vmatprep.subr.bf16.mxu0 %v8633_v17  ;;  %v8723_v13 = vld [vmem:[%s12349_s1 + $0x484] ss:$8 sps:$4 sm:$0xff]   ;;  %v8732_v17 = vld [vmem:[%s12349_s1 + $0x674] ss:$8 sps:$4 sm:$0xff]  }
  0x85   :  { %1807 = vmatpush1.bf16.msra.mxu1 %v8628_v15  ;;  %1746 = vmatprep.mubr.bf16.mxu1 %v8643_v18  ;;  %v8726_v15 = vld [vmem:[%s12349_s1 + $0x584] ss:$8 sps:$4 sm:$0xff]   ;;  %v8724_v18 = vld [vmem:[%s12349_s1 + $0x580] ss:$8 sps:$4 sm:$0xff]  }
  0x86   :  { %1808 = vmatprep.subr.bf16.mxu1 %v8636_v19  ;;  %v8727_v19 = vld [vmem:[%s12350_s0 + $0x20] ss:$56 sps:$4 sm:$0xff]  }
  0x87   :  { %1758 = vmatpush1.bf16.msra.mxu0 %v8631_v20  ;;  %v8730_v20 = vld [vmem:[%s12349_s1 + $0x670] ss:$8 sps:$4 sm:$0xff]  }
  0x88   :  { %1759 = vmatprep.subr.bf16.mxu0 %v8642_v21  ;;  %v8739_v21 = vld [vmem:[%s12350_s0 + $0x94] ss:$56 sps:$4 sm:$0xff]  }
  0x89   :  { %1809 = vmatpush1.bf16.msra.mxu1 %v8634_v22  ;;  %v8733_v22 = vld [vmem:[%s12350_s0 + $0x28] ss:$56 sps:$4 sm:$0xff]  }
  0x8a   :  { %1696 = vmatmul.mubr.bf16.gmra.mxu0 %v8639_v23  ;;  %1810 = vmatprep.subr.bf16.mxu1 %v8648_v24  ;;  %v8738_v23 = vld [vmem:[%s12349_s1 + $0x664] ss:$8 sps:$4 sm:$0xff]   ;;  %v8745_v24 = vld [vmem:[%s12350_s0 + $0x9c] ss:$56 sps:$4 sm:$0xff]  }
  0x8b   :  { %1760 = vmatpush1.bf16.msra.mxu0 %v8640_v25  ;;  %1787 = vmatprep.mubr.bf16.mxu0 %v8729_v31  ;;  %v8736_v25 = vld [vmem:[%s12349_s1 + $0x660] ss:$8 sps:$4 sm:$0xff]   ;;  %v8750_v31 = vld [vmem:[%s12349_s1 + $0x644] ss:$8 sps:$4 sm:$0xff]  }
  0x8c   :  { %1747 = vmatmul.mubr.bf16.gmra.mxu1 %v8645_v26  ;;  %1761 = vmatprep.subr.bf16.mxu0 %v8651_v27  ;;  %v8744_v26 = vld [vmem:[%s12349_s1 + $0x654] ss:$8 sps:$4 sm:$0xff]   ;;  %v8741_v27 = vld [vmem:[%s12350_s0 + $0x90] ss:$56 sps:$4 sm:$0xff]  }
  0x8d   :  { %1811 = vmatpush1.bf16.msra.mxu1 %v8646_v28  ;;  %1838 = vmatprep.mubr.bf16.mxu1 %v8735_v35  ;;  %v8742_v28 = vld [vmem:[%s12349_s1 + $0x650] ss:$8 sps:$4 sm:$0xff]   ;;  %v8756_v35 = vld [vmem:[%s12349_s1 + $0x624] ss:$8 sps:$4 sm:$0xff]  }
  0x8e   :  { %1812 = vmatprep.subr.bf16.mxu1 %v8654_v29  ;;  %v8789_v29 = vld [vmem:[%s12350_s0 + $0x34] ss:$56 sps:$4 sm:$0xff]  }
  0x8f   :  { %1762 = vmatpush1.bf16.msra.mxu0 %v8649_v30  ;;  %v8747_v30 = vld [vmem:[%s12350_s0 + $0x98] ss:$56 sps:$4 sm:$0xff]  }
  0x90   :  { %1763 = vmatprep.subr.bf16.mxu0 %v8657_v32  ;;  %v8748_v32 = vld [vmem:[%s12349_s1 + $0x640] ss:$8 sps:$4 sm:$0xff]  }
  0x91   :  { %1813 = vmatpush1.bf16.msra.mxu1 %v8652_v33  ;;  %v8753_v33 = vld [vmem:[%s12349_s1 + $0x634] ss:$8 sps:$4 sm:$0xff]  }
  0x92   :  { %1814 = vmatprep.subr.bf16.mxu1 %v8660_v34  ;;  %v8751_v34 = vld [vmem:[%s12349_s1 + $0x630] ss:$8 sps:$4 sm:$0xff]  }
  0x93   :  { %1764 = vmatpush1.bf16.msra.mxu0 %v8655_v36  ;;  %v8754_v36 = vld [vmem:[%s12349_s1 + $0x620] ss:$8 sps:$4 sm:$0xff]  }
  0x94   :  { %1765 = vmatprep.subr.bf16.mxu0 %v8663_v37  ;;  %v8759_v37 = vld [vmem:[%s12349_s1 + $0x614] ss:$8 sps:$4 sm:$0xff]  }
  0x95   :  { %1815 = vmatpush1.bf16.msra.mxu1 %v8658_v38  ;;  %v8757_v38 = vld [vmem:[%s12349_s1 + $0x610] ss:$8 sps:$4 sm:$0xff]  }
  0x96   :  { %1816 = vmatprep.subr.bf16.mxu1 %v8666_v39  ;;  %v8762_v39 = vld [vmem:[%s12349_s1 + $0x604] ss:$8 sps:$4 sm:$0xff]  }
  0x97   :  { %1766 = vmatpush1.bf16.msra.mxu0 %v8661_v40  ;;  %v8760_v40 = vld [vmem:[%s12349_s1 + $0x600] ss:$8 sps:$4 sm:$0xff]  }
  0x98   :  { %1767 = vmatprep.subr.bf16.mxu0 %v8669_v41  ;;  %v8765_v41 = vld [vmem:[%s12349_s1 + $0x6f4] ss:$8 sps:$4 sm:$0xff]  }
  0x99   :  { %1817 = vmatpush1.bf16.msra.mxu1 %v8664_v42  ;;  %v8763_v42 = vld [vmem:[%s12349_s1 + $0x6f0] ss:$8 sps:$4 sm:$0xff]  }
  0x9a   :  { %1818 = vmatprep.subr.bf16.mxu1 %v8672_v43  ;;  %v8768_v43 = vld [vmem:[%s12349_s1 + $0x6e4] ss:$8 sps:$4 sm:$0xff]  }
  0x9b   :  { %1768 = vmatpush1.bf16.msra.mxu0 %v8667_v44  ;;  %v8766_v44 = vld [vmem:[%s12349_s1 + $0x6e0] ss:$8 sps:$4 sm:$0xff]  }
  0x9c   :  { %1769 = vmatprep.subr.bf16.mxu0 %v8675_v45  ;;  %v8771_v45 = vld [vmem:[%s12349_s1 + $0x6d4] ss:$8 sps:$4 sm:$0xff]  }
  0x9d   :  { %1819 = vmatpush1.bf16.msra.mxu1 %v8670_v46  ;;  %v8769_v46 = vld [vmem:[%s12349_s1 + $0x6d0] ss:$8 sps:$4 sm:$0xff]  }
  0x9e   :  { %1820 = vmatprep.subr.bf16.mxu1 %v8678_v47  ;;  %v8774_v47 = vld [vmem:[%s12349_s1 + $0x6c4] ss:$8 sps:$4 sm:$0xff]  }
  0x9f   :  { %1770 = vmatpush1.bf16.msra.mxu0 %v8673_v48  ;;  %v8772_v48 = vld [vmem:[%s12349_s1 + $0x6c0] ss:$8 sps:$4 sm:$0xff]  }
  0xa0   :  { %1771 = vmatprep.subr.bf16.mxu0 %v8681_v49  ;;  %v8777_v49 = vld [vmem:[%s12349_s1 + $0x6b4] ss:$8 sps:$4 sm:$0xff]  }
  0xa1   :  { %1821 = vmatpush1.bf16.msra.mxu1 %v8676_v50  ;;  %v8775_v50 = vld [vmem:[%s12349_s1 + $0x6b0] ss:$8 sps:$4 sm:$0xff]  }
  0xa2   :  { %1822 = vmatprep.subr.bf16.mxu1 %v8684_v51  ;;  %v8780_v51 = vld [vmem:[%s12349_s1 + $0x6a4] ss:$8 sps:$4 sm:$0xff]  }
  0xa3   :  { %1772 = vmatpush2.bf16.msra.mxu0 %v8679_v52  ;;  %v8778_v52 = vld [vmem:[%s12349_s1 + $0x6a0] ss:$8 sps:$4 sm:$0xff]  }
  0xa4   :  { %1773 = vmatprep.subr.bf16.mxu0 %v8687_v53  ;;  %v281_v53 = vlaneseq }
  0xa5   :  { %1823 = vmatpush2.bf16.msra.mxu1 %v8682_v54  ;;  %v8783_v54 = vld [vmem:[%s12349_s1 + $0x694] ss:$8 sps:$4 sm:$0xff]  }
  0xa6   :  { %1824 = vmatprep.subr.bf16.mxu1 %v8690_v55  ;;  %v8781_v55 = vld [vmem:[%s12349_s1 + $0x690] ss:$8 sps:$4 sm:$0xff]   ;;  %vm10420_vm0 = vcmp.lt.s32.totalorder %v281_v53, 256 }
  0xa7   :  { %1774 = vmatpush2.bf16.msra.mxu0 %v8685_v56  ;;  %v10155_v56 = vshrl.u32 %v281_v53, 7 }
  0xa8   :  { %1775 = vmatprep.subr.bf16.mxu0 %v8693_v57  ;;  %v8786_v57 = vld [vmem:[%s12349_s1 + $0x684] ss:$8 sps:$4 sm:$0xff]  }
  0xa9   :  { %1825 = vmatpush2.bf16.msra.mxu1 %v8688_v58  ;;  %v8784_v58 = vld [vmem:[%s12349_s1 + $0x680] ss:$8 sps:$4 sm:$0xff]  }
  0xaa   :  { %1826 = vmatprep.subr.bf16.mxu1 %v8696_v59  ;;  %v10164_v59 = vsub.s32 0, %v10155_v56 }
  0xab   :  { %1776 = vmatpush2.bf16.msra.mxu0 %v8691_v60  ;;  %v279_v60 = vld [vmem:[%s12351_s2] sm:$0x3] }
  0xac   :  { %1777 = vmatprep.subr.bf16.mxu0 %v8699_v61  ;;  %v10170_v61 = vsub.s32 1, %v10155_v56 }
  0xad   :  { %1827 = vmatpush2.bf16.msra.mxu1 %v8694_v62  ;;  %v8787_v62 = vld [vmem:[%s12350_s0 + $0x30] ss:$56 sps:$4 sm:$0xff]  }
  0xae   :  { %1828 = vmatprep.subr.bf16.mxu1 %v8702_v63  ;;  %v284_v63 = vrot.slane %v279_v60, %v10164_v59 }
  0xaf   :  { %1778 = vmatpush2.bf16.msra.mxu0 %v8697_v0  ;;  %v8790_v0 = vld [vmem:[%s12350_s0 + $0xa4] ss:$56 sps:$4 sm:$0xff]  }
  0xb0   :  { %1779 = vmatprep.subr.bf16.mxu0 %v8705_v1  ;;  %v288_v1 = vrot.slane %v279_v60, %v10170_v61  ;;  %v8834_v60 = vld [vmem:[%s12352_s3 + $0x19c] ss:$12 sps:$4 sm:$0xff]  }
  0xb1   :  { %1829 = vmatpush2.bf16.msra.mxu1 %v8700_v2 }
  0xb2   :  { %1830 = vmatprep.subr.bf16.mxu1 %v8708_v3 }
  0xb3   :  { %1780 = vmatpush2.bf16.msra.mxu0 %v8703_v4 }
  0xb4   :  { %1781 = vmatprep.subr.bf16.mxu0 %v8711_v5 }
  0xb5   :  { %1831 = vmatpush2.bf16.msra.mxu1 %v8706_v6 }
  0xb6   :  { %1832 = vmatprep.subr.bf16.mxu1 %v8714_v7 }
  0xb7   :  { %1782 = vmatpush2.bf16.msra.mxu0 %v8709_v8 }
  0xb8   :  { %1783 = vmatprep.subr.bf16.mxu0 %v8717_v9 }
  0xb9   :  { %1833 = vmatpush2.bf16.msra.mxu1 %v8712_v10  ;;  %v8792_v10 = vld [vmem:[%s12350_s0 + $0xa0] ss:$56 sps:$4 sm:$0xff]  }
  0xba   :  { %1834 = vmatprep.subr.bf16.mxu1 %v8720_v11 }
  0xbb   :  { %1784 = vmatpush2.bf16.msra.mxu0 %v8715_v12 }
  0xbc   :  { %1785 = vmatprep.subr.bf16.mxu0 %v8723_v13 }
  0xbd   :  { %1835 = vmatpush2.bf16.msra.mxu1 %v8718_v14 }
  0xbe   :  { %1836 = vmatprep.subr.bf16.mxu1 %v8726_v15 }
  0xbf   :  { %1786 = vmatpush2.bf16.msra.mxu0 %v8721_v16 }
  0xc0   :  { %1857 = vmatprep.subr.bf16.mxu0 %v8732_v17 }
  0xc1   :  { %1837 = vmatpush2.bf16.msra.mxu1 %v8724_v18 }
  0xc2   :  { %1788 = vmatmul.mubr.bf16.vlgmr.msra.gmra.mxu0 %v8727_v19  ;;  %v8793_v19 = vld [vmem:[%s12352_s3 + $0xa8] ss:$12 sps:$4 sm:$0xff]  }
  0xc3   :  { %1858 = vmatpush1.bf16.msra.mxu0 %v8730_v20  ;;  %1797 = vmatprep.mubr.bf16.mxu0 %v8739_v21  ;;  %v8795_v20 = vld [vmem:[%s12352_s3 + $0xac] ss:$12 sps:$4 sm:$0xff]   ;;  %v8796_v21 = vld [vmem:[%s12352_s3 + $0x228] ss:$12 sps:$4 sm:$0xff]  }
  0xc4   :  { %1839 = vmatmul.mubr.bf16.vlgmr.msra.gmra.mxu1 %v8733_v22  ;;  %1859 = vmatprep.subr.bf16.mxu0 %v8738_v23  ;;  %v8798_v22 = vld [vmem:[%s12352_s3 + $0x22c] ss:$12 sps:$4 sm:$0xff]   ;;  %v8799_v23 = vld [vmem:[%s12352_s3 + $0x90] ss:$12 sps:$4 sm:$0xff]  }
  0xc5   :  { %1848 = vmatprep.mubr.bf16.mxu1 %v8745_v24  ;;  %5069 = vmatprep.subr.bf16.mxu1 %v8795_v20  ;;  %v8801_v24 = vld [vmem:[%s12352_s3 + $0x94] ss:$12 sps:$4 sm:$0xff]  }
  0xc6   :  { %5070 = vmatpush1.bf16.msra.mxu1 %v8793_v19 }
  0xc7   :  { %1860 = vmatpush1.bf16.msra.mxu0 %v8736_v25  ;;  %5071 = vmatprep.subr.bf16.mxu1 %v8801_v24  ;;  %v8853_v24 = vld [vmem:[%s12352_s3 + $0x138] ss:$12 sps:$4 sm:$0xff]  }
  0xc8   :  { %1861 = vmatprep.subr.bf16.mxu0 %v8744_v26  ;;  %v8802_v26 = vld [vmem:[%s12352_s3 + $0x210] ss:$12 sps:$4 sm:$0xff]  }
  0xca   :  { %1798 = vmatmul.mubr.bf16.gmra.mxu0 %v8741_v27  ;;  %5072 = vmatpush1.bf16.msra.mxu1 %v8799_v23 }
  0xcb   :  { %1862 = vmatpush1.bf16.msra.mxu0 %v8742_v28  ;;  %1889 = vmatprep.mubr.bf16.mxu0 %v8789_v29  ;;  %v8804_v28 = vld [vmem:[%s12352_s3 + $0x214] ss:$12 sps:$4 sm:$0xff]  }
  0xcc   :  { %1849 = vmatmul.mubr.bf16.gmra.mxu1 %v8747_v30  ;;  %1863 = vmatprep.subr.bf16.mxu0 %v8750_v31  ;;  %v8807_v30 = vld [vmem:[%s12352_s3 + $0x7c] ss:$12 sps:$4 sm:$0xff]  }
  0xcd   :  { %5073 = vmatprep.subr.bf16.mxu1 %v8807_v30 }
  0xcf   :  { %1864 = vmatpush1.bf16.msra.mxu0 %v8748_v32  ;;  %v8805_v32 = vld [vmem:[%s12352_s3 + $0x78] ss:$12 sps:$4 sm:$0xff]  }
  0xd0   :  { %1865 = vmatprep.subr.bf16.mxu0 %v8753_v33  ;;  %v8810_v33 = vld [vmem:[%s12352_s3 + $0x1fc] ss:$12 sps:$4 sm:$0xff]   ;;  %5074 = vmatpush1.bf16.msra.mxu1 %v8805_v32 }
  0xd3   :  { %1866 = vmatpush1.bf16.msra.mxu0 %v8751_v34 }
  0xd4   :  { %1867 = vmatprep.subr.bf16.mxu0 %v8756_v35 }
  0xd7   :  { %1868 = vmatpush1.bf16.msra.mxu0 %v8754_v36  ;;  %v8808_v36 = vld [vmem:[%s12352_s3 + $0x1f8] ss:$12 sps:$4 sm:$0xff]  }
  0xd8   :  { %1869 = vmatprep.subr.bf16.mxu0 %v8759_v37 }
  0xdb   :  { %1870 = vmatpush1.bf16.msra.mxu0 %v8757_v38  ;;  %v8813_v38 = vld [vmem:[%s12352_s3 + $0x64] ss:$12 sps:$4 sm:$0xff]  }
  0xdc   :  { %1871 = vmatprep.subr.bf16.mxu0 %v8762_v39  ;;  %5075 = vmatprep.subr.bf16.mxu1 %v8813_v38  ;;  %v8862_v38 = vld [vmem:[%s12352_s3 + $0x2a0] ss:$12 sps:$4 sm:$0xff]  }
  0xdf   :  { %1872 = vmatpush1.bf16.msra.mxu0 %v8760_v40 }
  0xe0   :  { %1873 = vmatprep.subr.bf16.mxu0 %v8765_v41  ;;  %v8816_v41 = vld [vmem:[%s12352_s3 + $0x1e4] ss:$12 sps:$4 sm:$0xff]  }
  0xe3   :  { %1874 = vmatpush2.bf16.msra.mxu0 %v8763_v42 }
  0xe4   :  { %1875 = vmatprep.subr.bf16.mxu0 %v8768_v43  ;;  %v8811_v43 = vld [vmem:[%s12352_s3 + $0x60] ss:$12 sps:$4 sm:$0xff]  }
  0xe5   :  { %5076 = vmatpush1.bf16.msra.mxu1 %v8811_v43 }
  0xe7   :  { %1876 = vmatpush2.bf16.msra.mxu0 %v8766_v44 }
  0xe8   :  { %1877 = vmatprep.subr.bf16.mxu0 %v8771_v45  ;;  %v8814_v45 = vld [vmem:[%s12352_s3 + $0x1e0] ss:$12 sps:$4 sm:$0xff]  }
  0xeb   :  { %1878 = vmatpush2.bf16.msra.mxu0 %v8769_v46  ;;  %v8819_v46 = vld [vmem:[%s12352_s3 + $0x4c] ss:$12 sps:$4 sm:$0xff]  }
  0xec   :  { %1879 = vmatprep.subr.bf16.mxu0 %v8774_v47  ;;  %5077 = vmatprep.subr.bf16.mxu1 %v8819_v46  ;;  %v8867_v46 = vld [vmem:[%s12352_s3 + $0x10c] ss:$12 sps:$4 sm:$0xff]  }
  0xef   :  { %1880 = vmatpush2.bf16.msra.mxu0 %v8772_v48  ;;  %v8822_v48 = vld [vmem:[%s12352_s3 + $0x1cc] ss:$12 sps:$4 sm:$0xff]  }
  0xf0   :  { %1881 = vmatprep.subr.bf16.mxu0 %v8777_v49  ;;  %v8817_v49 = vld [vmem:[%s12352_s3 + $0x48] ss:$12 sps:$4 sm:$0xff]  }
  0xf1   :  { %5078 = vmatpush1.bf16.msra.mxu1 %v8817_v49 }
  0xf3   :  { %1882 = vmatpush2.bf16.msra.mxu0 %v8775_v50  ;;  %v8820_v50 = vld [vmem:[%s12352_s3 + $0x1c8] ss:$12 sps:$4 sm:$0xff]  }
  0xf4   :  { %1883 = vmatprep.subr.bf16.mxu0 %v8780_v51  ;;  %v8825_v51 = vld [vmem:[%s12352_s3 + $0x34] ss:$12 sps:$4 sm:$0xff]  }
  0xf5   :  { %5079 = vmatprep.subr.bf16.mxu1 %v8825_v51 }
  0xf7   :  { %1884 = vmatpush2.bf16.msra.mxu0 %v8778_v52  ;;  %v8828_v52 = vld [vmem:[%s12352_s3 + $0x1b4] ss:$12 sps:$4 sm:$0xff]  }
  0xf8   :  { %1885 = vmatprep.subr.bf16.mxu0 %v8783_v54  ;;  %v8823_v54 = vld [vmem:[%s12352_s3 + $0x30] ss:$12 sps:$4 sm:$0xff]  }
  0xf9   :  { %5080 = vmatpush1.bf16.msra.mxu1 %v8823_v54  ;;  %v8876_v54 = vld [vmem:[%s12352_s3 + $0x274] ss:$12 sps:$4 sm:$0xff]  }
  0xfb   :  { %1886 = vmatpush2.bf16.msra.mxu0 %v8781_v55  ;;  %v8826_v55 = vld [vmem:[%s12352_s3 + $0x1b0] ss:$12 sps:$4 sm:$0xff]  }
  0xfc   :  { %1887 = vmatprep.subr.bf16.mxu0 %v8786_v57  ;;  %v8831_v57 = vld [vmem:[%s12352_s3 + $0x1c] ss:$12 sps:$4 sm:$0xff]  }
  0xfd   :  { %5081 = vmatprep.subr.bf16.mxu1 %v8831_v57  ;;  %v8874_v57 = vld [vmem:[%s12352_s3 + $0x270] ss:$12 sps:$4 sm:$0xff]  }
  0xff   :  { %1888 = vmatpush2.bf16.msra.mxu0 %v8784_v58  ;;  %v8829_v58 = vld [vmem:[%s12352_s3 + $0x18] ss:$12 sps:$4 sm:$0xff]  }
 0x100   :  { %5110 = vmatprep.subr.bf16.mxu0 %v8798_v22  ;;  %5082 = vmatpush1.bf16.msra.mxu1 %v8829_v58  ;;  %v8858_v22 = vld [vmem:[%s12352_s3 + $0x2bc] ss:$12 sps:$4 sm:$0xff]  }
 0x101   :  { %v8879_v58 = vld [vmem:[%s12352_s3 + $0xdc] ss:$12 sps:$4 sm:$0xff]  }
 0x102   :  { %v1585_v2 = vpop.f32.mrf.mxu0  ;;  %1890 = vmatmul.mubr.bf16.vlgmr.msra.gmra.mxu0 %v8787_v62  ;;  %v8832_v62 = vld [vmem:[%s12352_s3 + $0x198] ss:$12 sps:$4 sm:$0xff]  }
 0x103   :  { %v1586_v3 = vadd.f32 %v1585_v2, %v284_v63  ;;  %1899 = vmatprep.mubr.bf16.mxu0 %v8790_v0  ;;  %v1636_v5 = vpop.f32.mrf.mxu1  ;;  %5111 = vmatpush1.bf16.msra.mxu0 %v8796_v21  ;;  %v8840_v0 = vld [vmem:[%s12352_s3 + $0x184] ss:$12 sps:$4 sm:$0xff]   ;;  %v8838_v2 = vld [vmem:[%s12352_s3 + $0x180] ss:$12 sps:$4 sm:$0xff]   ;;  %v8855_v21 = vld [vmem:[%s12352_s3 + $0x13c] ss:$12 sps:$4 sm:$0xff]  }
 0x104   :  { %v1587_v4 = vpop.f32.mrf.mxu0  ;;  %5112 = vmatprep.subr.bf16.mxu0 %v8804_v28 }
 0x105   :  { %v1588_v6 = vadd.f32 %v1587_v4, %v288_v1  ;;  %v10180_v7 = vadd.f32 %v1636_v5, %v1586_v3  ;;  %v1638_v9 = vpop.f32.mrf.mxu1  ;;  %v8843_v3 = vld [vmem:[%s12352_s3 + $0x16c] ss:$12 sps:$4 sm:$0xff]   ;;  %v8841_v5 = vld [vmem:[%s12352_s3 + $0x168] ss:$12 sps:$4 sm:$0xff]  }
 0x106   :  { %v1589_v8 = vpop.f32.mrf.mxu0  ;;  %v8846_v4 = vld [vmem:[%s12352_s3 + $0x2ec] ss:$12 sps:$4 sm:$0xff]  }
 0x107   :  { %v1590_v11 = vadd.f32 %v1589_v8, %v284_v63  ;;  %v10185_v12 = vadd.f32 %v1638_v9, %v1588_v6  ;;  %v1640_v14 = vpop.f32.mrf.mxu1  ;;  %5113 = vmatpush1.bf16.msra.mxu0 %v8802_v26  ;;  %v8844_v6 = vld [vmem:[%s12352_s3 + $0x2e8] ss:$12 sps:$4 sm:$0xff]  }
 0x108   :  { %v1591_v13 = vpop.f32.mrf.mxu0  ;;  %5114 = vmatprep.subr.bf16.mxu0 %v8810_v33  ;;  %v8849_v8 = vld [vmem:[%s12352_s3 + $0x154] ss:$12 sps:$4 sm:$0xff]   ;;  %v8861_v33 = vld [vmem:[%s12352_s3 + $0x124] ss:$12 sps:$4 sm:$0xff]  }
 0x109   :  { %v1592_v15 = vadd.f32 %v1591_v13, %v288_v1  ;;  %v10187_v16 = vadd.f32 %v1640_v14, %v1590_v11  ;;  %v1642_v17 = vpop.f32.mrf.mxu1  ;;  %v8852_v9 = vld [vmem:[%s12352_s3 + $0x2d4] ss:$12 sps:$4 sm:$0xff]   ;;  %v8847_v11 = vld [vmem:[%s12352_s3 + $0x150] ss:$12 sps:$4 sm:$0xff]  }
 0x10a   :  { %1900 = vmatmul.mubr.bf16.gmra.mxu0 %v8792_v10  ;;  %v1595_v25 = vpop.f32.mrf.mxu0  ;;  %v8850_v13 = vld [vmem:[%s12352_s3 + $0x2d0] ss:$12 sps:$4 sm:$0xff]  }
 0x10b   :  { %v10189_v18 = vadd.f32 %v1642_v17, %v1592_v15  ;;  %v1596_v27 = vadd.f32 %v1595_v25, %v284_v63  ;;  %v1646_v35 = vpop.f32.mrf.mxu1  ;;  %5115 = vmatpush1.bf16.msra.mxu0 %v8808_v36  ;;  %v8837_v63 = vld [vmem:[%s12352_s3 + $0x4] ss:$12 sps:$4 sm:$0xff]  }
 0x10c   :  { %v1597_v29 = vpop.f32.mrf.mxu0  ;;  %5116 = vmatprep.subr.bf16.mxu0 %v8816_v41  ;;  %5083 = vmatprep.subr.bf16.mxu1 %v8837_v63  ;;  %v8880_v63 = vld [vmem:[%s12352_s3 + $0x258] ss:$12 sps:$4 sm:$0xff]  }
 0x10d   :  { %v1598_v31 = vadd.f32 %v1597_v29, %v288_v1  ;;  %v10227_v37 = vadd.f32 %v1646_v35, %v1596_v27  ;;  %v1648_v40 = vpop.f32.mrf.mxu1  ;;  %v8835_v1 = vld [vmem:[%s12352_s3] ss:$12 sps:$4 sm:$0xff]   ;;  %v9370_v29 = vmov 0.0  }
 0x10e   :  { %v1599_v34 = vpop.f32.mrf.mxu0  ;;  %5084 = vmatpush1.bf16.msra.mxu1 %v8835_v1  ;;  %1914 = vst [vmem:[#allocation2] sm:$0xff] %v9370_v29  ;;  %1915 = vst [vmem:[#allocation2 + $0x8] sm:$0xff] %v9370_v29  ;;  %v8885_v1 = vld [vmem:[%s12352_s3 + $0xc4] ss:$12 sps:$4 sm:$0xff]  }
 0x10f   :  { %v10235_v42 = vadd.f32 %v1648_v40, %v1598_v31  ;;  %v1650_v44 = vpop.f32.mrf.mxu1  ;;  %5117 = vmatpush1.bf16.msra.mxu0 %v8814_v45  ;;  %5085 = vmatprep.subr.bf16.mxu1 %v8843_v3  ;;  %1916 = vst [vmem:[#allocation2 + $0x10] sm:$0xff] %v9370_v29  ;;  %1917 = vst [vmem:[#allocation2 + $0x18] sm:$0xff] %v9370_v29  ;;  %v8864_v34 = vld [vmem:[%s12352_s3 + $0x2a4] ss:$12 sps:$4 sm:$0xff]  }
 0x110   :  { %v1600_v39 = vpop.f32.mrf.mxu0  ;;  %5118 = vmatprep.subr.bf16.mxu0 %v8822_v48  ;;  %1918 = vst [vmem:[#allocation2 + $0x20] sm:$0xff] %v9370_v29  ;;  %1919 = vst [vmem:[#allocation2 + $0x28] sm:$0xff] %v9370_v29  ;;  %v8888_v3 = vld [vmem:[%s12352_s3 + $0x244] ss:$12 sps:$4 sm:$0xff]  }
 0x111   :  { %v1651_v47 = vpop.f32.mrf.mxu1  ;;  %1920 = vst [vmem:[#allocation2 + $0x30] sm:$0xff] %v9370_v29  ;;  %1921 = vst [vmem:[#allocation2 + $0x38] sm:$0xff] %v9370_v29 }
 0x112   :  { %5086 = vmatpush2.bf16.msra.mxu1 %v8841_v5  ;;  %1922 = vst [vmem:[#allocation2 + $0x40] sm:$0xff] %v9370_v29  ;;  %1923 = vst [vmem:[#allocation2 + $0x48] sm:$0xff] %v9370_v29  ;;  %v8870_v47 = vld [vmem:[%s12352_s3 + $0x28c] ss:$12 sps:$4 sm:$0xff]  }
 0x113   :  { %5119 = vmatpush1.bf16.msra.mxu0 %v8820_v50  ;;  %5087 = vmatprep.subr.bf16.mxu1 %v8849_v8  ;;  %1924 = vst [vmem:[#allocation2 + $0x50] sm:$0xff] %v9370_v29  ;;  %1925 = vst [vmem:[#allocation2 + $0x58] sm:$0xff] %v9370_v29  ;;  %v8868_v50 = vld [vmem:[%s12352_s3 + $0x288] ss:$12 sps:$4 sm:$0xff]   ;;  %v8894_v5 = vld [vmem:[%s12352_s3 + $0x52c] ss:$12 sps:$4 sm:$0xff]  }
 0x114   :  { %5120 = vmatprep.subr.bf16.mxu0 %v8828_v52  ;;  %1926 = vst [vmem:[#allocation2 + $0x60] sm:$0xff] %v9370_v29  ;;  %1927 = vst [vmem:[#allocation2 + $0x68] sm:$0xff] %v9370_v29  ;;  %v8873_v52 = vld [vmem:[%s12352_s3 + $0xf4] ss:$12 sps:$4 sm:$0xff]  }
 0x115   :  { %1928 = vst [vmem:[#allocation2 + $0x70] sm:$0xff] %v9370_v29  ;;  %1929 = vst [vmem:[#allocation2 + $0x78] sm:$0xff] %v9370_v29 }
 0x116   :  { %5088 = vmatpush2.bf16.msra.mxu1 %v8847_v11  ;;  %1930 = vst [vmem:[#allocation2 + $0x80] sm:$0xff] %v9370_v29  ;;  %1931 = vst [vmem:[#allocation2 + $0x88] sm:$0xff] %v9370_v29 }
 0x117   :  { %5121 = vmatpush1.bf16.msra.mxu0 %v8826_v55  ;;  %5089 = vmatprep.subr.bf16.mxu1 %v8855_v21  ;;  %v8871_v55 = vld [vmem:[%s12352_s3 + $0xf0] ss:$12 sps:$4 sm:$0xff]  }
 0x118   :  { %5122 = vmatprep.subr.bf16.mxu0 %v8834_v60  ;;  %v8882_v60 = vld [vmem:[%s12352_s3 + $0x25c] ss:$12 sps:$4 sm:$0xff]  }
 0x11a   :  { %5090 = vmatpush2.bf16.msra.mxu1 %v8853_v24 }
 0x11b   :  { %5123 = vmatpush1.bf16.msra.mxu0 %v8832_v62  ;;  %5091 = vmatprep.subr.bf16.mxu1 %v8861_v33  ;;  %v8877_v62 = vld [vmem:[%s12352_s3 + $0xd8] ss:$12 sps:$4 sm:$0xff]  }
 0x11c   :  { %5124 = vmatprep.subr.bf16.mxu0 %v8840_v0  ;;  %v8883_v0 = vld [vmem:[%s12352_s3 + $0xc0] ss:$12 sps:$4 sm:$0xff]  }
 0x11f   :  { %5125 = vmatpush1.bf16.msra.mxu0 %v8838_v2  ;;  %v8886_v2 = vld [vmem:[%s12352_s3 + $0x240] ss:$12 sps:$4 sm:$0xff]  }
 0x120   :  { %5126 = vmatprep.subr.bf16.mxu0 %v8846_v4  ;;  %v8891_v4 = vld [vmem:[%s12352_s3 + $0x3ac] ss:$12 sps:$4 sm:$0xff]  }
 0x123   :  { %5127 = vmatpush2.bf16.msra.mxu0 %v8844_v6 }
 0x124   :  { %5128 = vmatprep.subr.bf16.mxu0 %v8852_v9 }
 0x127   :  { %5129 = vmatpush2.bf16.msra.mxu0 %v8850_v13 }
 0x128   :  { %5130 = vmatprep.subr.bf16.mxu0 %v8858_v22 }
 0x142   :  { %v1687_v10 = vpop.f32.mrf.mxu0 }
 0x143   :  { %v1688_v14 = vadd.f32 %v1687_v10, %v10180_v7 }
 0x144   :  { %v1689_v15 = vpop.f32.mrf.mxu0  ;;  %v1738_v17 = vpop.f32.mrf.mxu1 }
 0x145   :  { %v1690_v19 = vadd.f32 %v1689_v15, %v10185_v12  ;;  %v10317_v20 = vadd.f32 %v1738_v17, %v1688_v14  ;;  %v8856_v12 = vld [vmem:[%s12352_s3 + $0x2b8] ss:$12 sps:$4 sm:$0xff]  }
 0x146   :  { %v1691_v23 = vpop.f32.mrf.mxu0  ;;  %v1740_v7 = vpop.f32.mrf.mxu1  ;;  %5131 = vmatpush2.bf16.msra.mxu0 %v8856_v12 }
 0x147   :  { %v1692_v25 = vadd.f32 %v1691_v23, %v10187_v16  ;;  %v10332_v26 = vadd.f32 %v1740_v7, %v1690_v19  ;;  %5132 = vmatprep.subr.bf16.mxu0 %v8864_v34 }
 0x148   :  { %v1693_v27 = vpop.f32.mrf.mxu0  ;;  %v1742_v28 = vpop.f32.mrf.mxu1 }
 0x149   :  { %v1694_v16 = vadd.f32 %v1693_v27, %v10189_v18  ;;  %v10335_v30 = vadd.f32 %v1742_v28, %v1692_v25  ;;  %v8859_v18 = vld [vmem:[%s12352_s3 + $0x120] ss:$12 sps:$4 sm:$0xff]  }
 0x14a   :  { %v1697_v31 = vpop.f32.mrf.mxu0  ;;  %v1744_v32 = vpop.f32.mrf.mxu1  ;;  %5092 = vmatpush2.bf16.msra.mxu1 %v8859_v18  ;;  %5133 = vmatpush2.bf16.msra.mxu0 %v8862_v38 }
 0x14b   :  { %v1698_v35 = vadd.f32 %v1697_v31, %v10227_v37  ;;  %v10344_v36 = vadd.f32 %v1744_v32, %v1694_v16  ;;  %5093 = vmatprep.subr.bf16.mxu1 %v8867_v46  ;;  %5134 = vmatprep.subr.bf16.mxu0 %v8870_v47  ;;  %v9371_v16 = vmov 1966171168  }
 0x14c   :  { %v1699_v39 = vpop.f32.mrf.mxu0  ;;  %v1748_v40 = vpop.f32.mrf.mxu1  ;;  %v1936_v31 = vunpack.c.l.s4 %v9371_v16 }
 0x14d   :  { %v1700_v41 = vadd.f32 %v1699_v39, %v10235_v42  ;;  %v1749_v43 = vadd.f32 %v1748_v40, %v1698_v35  ;;  %v8865_v42 = vld [vmem:[%s12352_s3 + $0x108] ss:$12 sps:$4 sm:$0xff]  }
 0x14e   :  { %v1750_v37 = vpop.f32.mrf.mxu1  ;;  %v1701_v44 = vpop.f32.mrf.mxu0  ;;  %5094 = vmatpush2.bf16.msra.mxu1 %v8865_v42  ;;  %5135 = vmatpush2.bf16.msra.mxu0 %v8868_v50  ;;  %v1937_v39 = vunpack.c.0.s8 %v1936_v31 }
 0x14f   :  { %v10353_v45 = vadd.f32 %v1750_v37, %v1700_v41  ;;  %5095 = vmatprep.subr.bf16.mxu1 %v8873_v52  ;;  %5136 = vmatprep.subr.bf16.mxu0 %v8876_v54 }
 0x150   :  { %v1702_v48 = vpop.f32.mrf.mxu0  ;;  %v1752_v49 = vpop.f32.mrf.mxu1 }
 0x152   :  { %v1753_v51 = vpop.f32.mrf.mxu1  ;;  %5096 = vmatpush2.bf16.msra.mxu1 %v8871_v55  ;;  %5137 = vmatpush2.bf16.msra.mxu0 %v8874_v57  ;;  %v8909_v55 = vld [vmem:[%s12352_s3 + $0x364] ss:$12 sps:$4 sm:$0xff]  }
 0x153   :  { %5097 = vmatprep.subr.bf16.mxu1 %v8879_v58  ;;  %5138 = vmatprep.subr.bf16.mxu0 %v8882_v60 }
 0x156   :  { %5098 = vmatpush2.bf16.msra.mxu1 %v8877_v62  ;;  %5139 = vmatpush2.bf16.msra.mxu0 %v8880_v63 }
 0x157   :  { %5099 = vmatprep.subr.bf16.mxu1 %v8885_v1  ;;  %5140 = vmatprep.subr.bf16.mxu0 %v8888_v3 }
 0x15a   :  { %5100 = vmatpush2.bf16.msra.mxu1 %v8883_v0  ;;  %5141 = vmatpush2.bf16.msra.mxu0 %v8886_v2 }
 0x15b   :  { %5151 = vmatprep.subr.bf16.mxu1 %v8891_v4  ;;  %5192 = vmatprep.subr.bf16.mxu0 %v8894_v5 }
 0x182   :  { %v1789_v6 = vpop.f32.mrf.mxu0 }
 0x183   :  { %v1790_v28 = vadd.f32 %v1789_v6, %v10317_v20 }
 0x184   :  { %v1791_v8 = vpop.f32.mrf.mxu0  ;;  %v1840_v9 = vpop.f32.mrf.mxu1 }
 0x185   :  { %v1792_v29 = vadd.f32 %v1791_v8, %v10332_v26  ;;  %v1841_v32 = vadd.f32 %v1840_v9, %v1790_v28  ;;  %v10414_v26 = vsub.s32 %v1937_v39, %v10155_v56 }
 0x186   :  { %v1793_v10 = vpop.f32.mrf.mxu0  ;;  %v1842_v11 = vpop.f32.mrf.mxu1 }
 0x187   :  { %v1794_v33 = vadd.f32 %v1793_v10, %v10335_v30  ;;  %v1843_v35 = vadd.f32 %v1842_v11, %v1792_v29 }
 0x188   :  { %v1795_v13 = vpop.f32.mrf.mxu0  ;;  %v1844_v14 = vpop.f32.mrf.mxu1 }
 0x189   :  { %v1796_v18 = vadd.f32 %v1795_v13, %v10344_v36 }
 0x18a   :  { %v1799_v15 = vpop.f32.mrf.mxu0  ;;  %v1846_v17 = vpop.f32.mrf.mxu1 }
 0x18b   :  { %v1800_v19 = vadd.f32 %v1799_v15, %v1749_v43  ;;  %v1845_v43 = vadd.f32 %v1844_v14, %v1794_v33  ;;  %v1847_v44 = vadd.f32 %v1846_v17, %v1796_v18 }
 0x18c   :  { %v1801_v21 = vpop.f32.mrf.mxu0  ;;  %v1850_v22 = vpop.f32.mrf.mxu1 }
 0x18d   :  { %v1851_v23 = vadd.f32 %v1850_v22, %v1800_v19  ;;  %v1802_v47 = vadd.f32 %v1801_v21, %v10353_v45 }
 0x18e   :  { %v1852_v7 = vpop.f32.mrf.mxu1  ;;  %v1803_v24 = vpop.f32.mrf.mxu0 }
 0x18f   :  { %v1853_v57 = vadd.f32 %v1852_v7, %v1802_v47 }
 0x190   :  { %v1804_v12 = vpop.f32.mrf.mxu0  ;;  %v1854_v25 = vpop.f32.mrf.mxu1 }
 0x192   :  { %v1855_v27 = vpop.f32.mrf.mxu1 }
 0x1c2   :  { %v1891_v34 = vpop.f32.mrf.mxu0 }
 0x1c3   :  { %v1892_v38 = vadd.f32 %v1891_v34, %v1841_v32 }
 0x1c4   :  { %v1893_v40 = vpop.f32.mrf.mxu0 }
 0x1c5   :  { %v1894_v41 = vadd.f32 %v1893_v40, %v1843_v35  ;;  %v1908_v46 = vmax.f32 %v1892_v38, 0.0  ;;  %v8889_v35 = vld [vmem:[%s12352_s3 + $0x3a8] ss:$12 sps:$4 sm:$0xff]  }
 0x1c6   :  { %v1895_v37 = vpop.f32.mrf.mxu0 }
 0x1c7   :  { %v1909_v20 = vmax.f32 %v1894_v41, 0.0  ;;  %v1896_v48 = vadd.f32 %v1895_v37, %v1845_v43  ;;  %v8892_v43 = vld [vmem:[%s12352_s3 + $0x528] ss:$12 sps:$4 sm:$0xff]  }
 0x1c8   :  { %v1897_v30 = vpop.f32.mrf.mxu0 }
 0x1c9   :  { %v1934_v49 = vcombine.low %v1908_v46, %v1909_v20  ;;  %v1978_v42 = vcombine.high %v1908_v46, %v1909_v20  ;;  %v1898_v50 = vadd.f32 %v1897_v30, %v1847_v44  ;;  %v1910_v58 = vmax.f32 %v1896_v48, 0.0  ;;  %v8897_v48 = vld [vmem:[%s12352_s3 + $0x394] ss:$12 sps:$4 sm:$0xff]  }
 0x1ca   :  { %v1901_v36 = vpop.f32.mrf.mxu0  ;;  %v8900_v30 = vld [vmem:[%s12352_s3 + $0x514] ss:$12 sps:$4 sm:$0xff]  }
 0x1cb   :  { %v1941_v51 = vrot.slane %v1934_v49, %v10414_v26  ;;  %v1985_v52 = vrot.slane %v1978_v42, %v10414_v26  ;;  %v1911_v54 = vmax.f32 %v1898_v50, 0.0  ;;  %v1902_v60 = vadd.f32 %v1901_v36, %v1851_v23  ;;  %v8895_v42 = vld [vmem:[%s12352_s3 + $0x390] ss:$12 sps:$4 sm:$0xff]  }
 0x1cc   :  { %v1903_v45 = vpop.f32.mrf.mxu0  ;;  %v8898_v50 = vld [vmem:[%s12352_s3 + $0x510] ss:$12 sps:$4 sm:$0xff]  }
 0x1cd   :  { %v1948_v62 = vrot.slane %v1941_v51, %v10414_v26  ;;  %v1956_v63 = vcombine.high %v1941_v51, %v1941_v51  ;;  %v1992_v0 = vrot.slane %v1985_v52, %v10414_v26  ;;  %v1997_v1 = vcombine.high %v1985_v52, %v1985_v52  ;;  %v8903_v36 = vld [vmem:[%s12352_s3 + $0x37c] ss:$12 sps:$4 sm:$0xff]   ;;  %v8901_v52 = vld [vmem:[%s12352_s3 + $0x378] ss:$12 sps:$4 sm:$0xff]  }
 0x1ce   :  { %v2021_v2 = vcombine.low %v1910_v58, %v1911_v54  ;;  %v2062_v3 = vcombine.high %v1910_v58, %v1911_v54  ;;  %v1904_v4 = vadd.f32 %v1903_v45, %v1853_v57  ;;  %v1905_v5 = vpop.f32.mrf.mxu0  ;;  %v1912_v13 = vmax.f32 %v1902_v60, 0.0  ;;  %v8906_v51 = vld [vmem:[%s12352_s3 + $0x4fc] ss:$12 sps:$4 sm:$0xff]   ;;  %v8904_v54 = vld [vmem:[%s12352_s3 + $0x4f8] ss:$12 sps:$4 sm:$0xff]  }
 0x1cf   :  { %1954 = vst.msk [vmem:[#allocation2] ss:$8 sm:$0x3] %vm10420_vm0, %v1948_v62  ;;  %v1963_v53 = vrot.slane %v1956_v63, %v10414_v26  ;;  %v1968_v6 = vcombine.high %v1948_v62, %v1948_v62  ;;  %1995 = vst.msk [vmem:[#allocation2 + $0x40] ss:$8 sm:$0x3] %vm10420_vm0, %v1992_v0  ;;  %v2004_v8 = vrot.slane %v1997_v1, %v10414_v26 }
 0x1d0   :  { %v2009_v9 = vcombine.high %v1992_v0, %v1992_v0  ;;  %v2028_v10 = vrot.slane %v2021_v2, %v10414_v26  ;;  %v2069_v11 = vrot.slane %v2062_v3, %v10414_v26  ;;  %v1913_v14 = vmax.f32 %v1904_v4, 0.0  ;;  %v1906_v15 = vpop.f32.mrf.mxu0  ;;  %v8912_v57 = vld [vmem:[%s12352_s3 + $0x4e4] ss:$12 sps:$4 sm:$0xff]   ;;  %v8907_v58 = vld [vmem:[%s12352_s3 + $0x360] ss:$12 sps:$4 sm:$0xff]  }
 0x1d1   :  { %1966 = vst.msk [vmem:[#allocation2 + $0x10] ss:$8 sm:$0x3] %vm10420_vm0, %v1963_v53  ;;  %1971 = vst.msk [vmem:[#allocation2 + $0x20] ss:$8 sm:$0x3] %vm10420_vm0, %v1968_v6  ;;  %v1973_v17 = vcombine.high %v1963_v53, %v1963_v53  ;;  %v2014_v19 = vcombine.high %v2004_v8, %v2004_v8 }
 0x1d2   :  { %2007 = vst.msk [vmem:[#allocation2 + $0x50] ss:$8 sm:$0x3] %vm10420_vm0, %v2004_v8  ;;  %2012 = vst.msk [vmem:[#allocation2 + $0x60] ss:$8 sm:$0x3] %vm10420_vm0, %v2009_v9  ;;  %v2035_v21 = vrot.slane %v2028_v10, %v10414_v26  ;;  %v2040_v22 = vcombine.high %v2028_v10, %v2028_v10  ;;  %v2076_v23 = vrot.slane %v2069_v11, %v10414_v26 }
 0x1d3   :  { %v2081_v7 = vcombine.high %v2069_v11, %v2069_v11  ;;  %1976 = vst.msk [vmem:[#allocation2 + $0x30] ss:$8 sm:$0x3] %vm10420_vm0, %v1973_v17  ;;  %2017 = vst.msk [vmem:[#allocation2 + $0x70] ss:$8 sm:$0x3] %vm10420_vm0, %v2014_v19  ;;  %v2105_v24 = vcombine.low %v1912_v13, %v1913_v14 }
 0x1d4   :  { %2038 = vst.msk [vmem:[#allocation2 + $0x80] ss:$8 sm:$0x3] %vm10420_vm0, %v2035_v21  ;;  %v2047_v12 = vrot.slane %v2040_v22, %v10414_v26  ;;  %v2052_v25 = vcombine.high %v2035_v21, %v2035_v21  ;;  %2079 = vst.msk [vmem:[#allocation2 + $0x31] ss:$8 sm:$0x3] %vm10420_vm0, %v2076_v23  ;;  %v2093_v28 = vcombine.high %v2076_v23, %v2076_v23 }
 0x1d5   :  { %v2088_v27 = vrot.slane %v2081_v7, %v10414_v26  ;;  %v2112_v29 = vrot.slane %v2105_v24, %v10414_v26  ;;  %v8910_v60 = vld [vmem:[%s12352_s3 + $0x4e0] ss:$12 sps:$4 sm:$0xff]   ;;  %v8913_v63 = vld [vmem:[%s12352_s3 + $0x348] ss:$12 sps:$4 sm:$0xff]   ;;  %v8919_v3 = vld [vmem:[%s12352_s3 + $0x330] ss:$12 sps:$4 sm:$0xff]  }
 0x1d6   :  { %2050 = vst.msk [vmem:[#allocation2 + $0x1] ss:$8 sm:$0x3] %vm10420_vm0, %v2047_v12  ;;  %2055 = vst.msk [vmem:[#allocation2 + $0x11] ss:$8 sm:$0x3] %vm10420_vm0, %v2052_v25  ;;  %v2057_v16 = vcombine.high %v2047_v12, %v2047_v12 }
 0x1d7   :  { %2091 = vst.msk [vmem:[#allocation2 + $0x41] ss:$8 sm:$0x3] %vm10420_vm0, %v2088_v27  ;;  %2096 = vst.msk [vmem:[#allocation2 + $0x51] ss:$8 sm:$0x3] %vm10420_vm0, %v2093_v28  ;;  %v2098_v31 = vcombine.high %v2088_v27, %v2088_v27  ;;  %v2119_v32 = vrot.slane %v2112_v29, %v10414_v26  ;;  %v2124_v33 = vcombine.high %v2112_v29, %v2112_v29 }
 0x1d8   :  { %2060 = vst.msk [vmem:[#allocation2 + $0x21] ss:$8 sm:$0x3] %vm10420_vm0, %v2057_v16  ;;  %v8915_v45 = vld [vmem:[%s12352_s3 + $0x34c] ss:$12 sps:$4 sm:$0xff]  }
 0x1d9   :  { %2101 = vst.msk [vmem:[#allocation2 + $0x61] ss:$8 sm:$0x3] %vm10420_vm0, %v2098_v31  ;;  %2122 = vst.msk [vmem:[#allocation2 + $0x71] ss:$8 sm:$0x3] %vm10420_vm0, %v2119_v32  ;;  %v2131_v34 = vrot.slane %v2124_v33, %v10414_v26 }
 0x1da   :  { %v8918_v62 = vld [vmem:[%s12352_s3 + $0x4cc] ss:$12 sps:$4 sm:$0xff]   ;;  %v8916_v0 = vld [vmem:[%s12352_s3 + $0x4c8] ss:$12 sps:$4 sm:$0xff]   ;;  %v8922_v4 = vld [vmem:[%s12352_s3 + $0x4b0] ss:$12 sps:$4 sm:$0xff]  }
 0x1db   :  { %2134 = vst.msk [vmem:[#allocation2 + $0x81] ss:$8 sm:$0x3] %vm10420_vm0, %v2131_v34  ;;  %v2143_v46 = vld [vmem:[#allocation2 + $0x38] sm:$0xff]  ;;  %v8921_v1 = vld [vmem:[%s12352_s3 + $0x334] ss:$12 sps:$4 sm:$0xff]  }
 0x1dc   :  { %v10499_v49 = vpack.c.bf16 %v2143_v46, %v2143_v46  ;;  %v8924_v2 = vld [vmem:[%s12352_s3 + $0x4b4] ss:$12 sps:$4 sm:$0xff]   ;;  %v8927_v5 = vld [vmem:[%s12352_s3 + $0x31c] ss:$12 sps:$4 sm:$0xff]   ;;  %v8925_v6 = vld [vmem:[%s12352_s3 + $0x318] ss:$12 sps:$4 sm:$0xff]  }
 0x1dd   :  { %v2137_v18 = vld [vmem:[#allocation2 + $0x8] sm:$0xff]  ;;  %v2139_v38 = vld [vmem:[#allocation2 + $0x18] sm:$0xff]  ;;  %v2136_v39 = vld [vmem:[#allocation2] sm:$0xff] }
 0x1de   :  { %v10476_v40 = vpack.c.bf16 %v2137_v18, %v2137_v18  ;;  %v10478_v41 = vpack.c.bf16 %v2139_v38, %v2139_v38  ;;  %v10483_v37 = vpack.c.bf16 %v2136_v39, %v2136_v39  ;;  %v2138_v44 = vld [vmem:[#allocation2 + $0x10] sm:$0xff]  ;;  %v8930_v53 = vld [vmem:[%s12352_s3 + $0x49c] ss:$12 sps:$4 sm:$0xff]   ;;  %v8928_v8 = vld [vmem:[%s12352_s3 + $0x498] ss:$12 sps:$4 sm:$0xff]  }
 0x1df   :  { %v10485_v20 = vpack.c.bf16 %v2138_v44, %v2138_v44  ;;  %v2141_v26 = vld [vmem:[#allocation2 + $0x28] sm:$0xff]  ;;  %v8933_v9 = vld [vmem:[%s12352_s3 + $0x304] ss:$12 sps:$4 sm:$0xff]   ;;  %v8945_v21 = vld [vmem:[%s12352_s3 + $0x454] ss:$12 sps:$4 sm:$0xff]  }
 0x1e0   :  { %5101 = vmatprep.mubr.bf16.mxu1 %v10476_v40  ;;  %5142 = vmatprep.mubr.bf16.mxu0 %v10478_v41  ;;  %v10489_v47 = vpack.c.bf16 %v2141_v26, %v2141_v26  ;;  %v8936_v10 = vld [vmem:[%s12352_s3 + $0x484] ss:$12 sps:$4 sm:$0xff]   ;;  %v8931_v11 = vld [vmem:[%s12352_s3 + $0x300] ss:$12 sps:$4 sm:$0xff]   ;;  %v8937_v17 = vld [vmem:[%s12352_s3 + $0x468] ss:$12 sps:$4 sm:$0xff]  }
 0x1e1   :  { %5102 = vmatmul.mubr.bf16.vlgmr.msra.gmra.mxu1 %v10483_v37  ;;  %5143 = vmatmul.mubr.bf16.vlgmr.msra.gmra.mxu0 %v10485_v20  ;;  %v8934_v13 = vld [vmem:[%s12352_s3 + $0x480] ss:$12 sps:$4 sm:$0xff]   ;;  %v8940_v19 = vld [vmem:[%s12352_s3 + $0x5e8] ss:$12 sps:$4 sm:$0xff]   ;;  %v8943_v23 = vld [vmem:[%s12352_s3 + $0x450] ss:$12 sps:$4 sm:$0xff]  }
 0x1e2   :  { %5152 = vmatpush1.bf16.msra.mxu1 %v8889_v35  ;;  %5193 = vmatpush1.bf16.msra.mxu0 %v8892_v43  ;;  %v8939_v14 = vld [vmem:[%s12352_s3 + $0x46c] ss:$12 sps:$4 sm:$0xff]   ;;  %v8948_v22 = vld [vmem:[%s12352_s3 + $0x5d4] ss:$12 sps:$4 sm:$0xff]   ;;  %v8946_v7 = vld [vmem:[%s12352_s3 + $0x5d0] ss:$12 sps:$4 sm:$0xff]  }
 0x1e3   :  { %5183 = vmatprep.mubr.bf16.mxu1 %v10489_v47  ;;  %5224 = vmatprep.mubr.bf16.mxu0 %v10499_v49  ;;  %v8942_v15 = vld [vmem:[%s12352_s3 + $0x5ec] ss:$12 sps:$4 sm:$0xff]   ;;  %v8951_v24 = vld [vmem:[%s12352_s3 + $0x43c] ss:$12 sps:$4 sm:$0xff]   ;;  %v8957_v28 = vld [vmem:[%s12352_s3 + $0x424] ss:$12 sps:$4 sm:$0xff]  }
 0x1e4   :  { %5153 = vmatprep.subr.bf16.mxu1 %v8897_v48  ;;  %5194 = vmatprep.subr.bf16.mxu0 %v8900_v30  ;;  %v8954_v12 = vld [vmem:[%s12352_s3 + $0x5bc] ss:$12 sps:$4 sm:$0xff]   ;;  %v8949_v25 = vld [vmem:[%s12352_s3 + $0x438] ss:$12 sps:$4 sm:$0xff]   ;;  %v8955_v16 = vld [vmem:[%s12352_s3 + $0x420] ss:$12 sps:$4 sm:$0xff]  }
 0x1e5   :  { %v8952_v27 = vld [vmem:[%s12352_s3 + $0x5b8] ss:$12 sps:$4 sm:$0xff]   ;;  %v8958_v31 = vld [vmem:[%s12352_s3 + $0x5a0] ss:$12 sps:$4 sm:$0xff]   ;;  %v8961_v34 = vld [vmem:[%s12352_s3 + $0x408] ss:$12 sps:$4 sm:$0xff]  }
 0x1e6   :  { %5154 = vmatpush1.bf16.msra.mxu1 %v8895_v42  ;;  %5195 = vmatpush1.bf16.msra.mxu0 %v8898_v50  ;;  %v8960_v29 = vld [vmem:[%s12352_s3 + $0x5a4] ss:$12 sps:$4 sm:$0xff]   ;;  %v8963_v32 = vld [vmem:[%s12352_s3 + $0x40c] ss:$12 sps:$4 sm:$0xff]   ;;  %v8964_v35 = vld [vmem:[%s12352_s3 + $0x588] ss:$12 sps:$4 sm:$0xff]  }
 0x1e7   :  { %5155 = vmatprep.subr.bf16.mxu1 %v8903_v36  ;;  %5196 = vmatprep.subr.bf16.mxu0 %v8906_v51  ;;  %v8966_v33 = vld [vmem:[%s12352_s3 + $0x58c] ss:$12 sps:$4 sm:$0xff]   ;;  %v8969_v18 = vld [vmem:[%s12352_s3 + $0x3f4] ss:$12 sps:$4 sm:$0xff]   ;;  %v8967_v39 = vld [vmem:[%s12352_s3 + $0x3f0] ss:$12 sps:$4 sm:$0xff]  }
 0x1e8   :  { %v8972_v38 = vld [vmem:[%s12352_s3 + $0x574] ss:$12 sps:$4 sm:$0xff]   ;;  %v8970_v43 = vld [vmem:[%s12352_s3 + $0x570] ss:$12 sps:$4 sm:$0xff]   ;;  %v8973_v26 = vld [vmem:[%s12352_s3 + $0x3d8] ss:$12 sps:$4 sm:$0xff]  }
 0x1e9   :  { %v8975_v44 = vld [vmem:[%s12352_s3 + $0x3dc] ss:$12 sps:$4 sm:$0xff]   ;;  %v8976_v48 = vld [vmem:[%s12352_s3 + $0x558] ss:$12 sps:$4 sm:$0xff]   ;;  %v8979_v50 = vld [vmem:[%s12352_s3 + $0x3c0] ss:$12 sps:$4 sm:$0xff]  }
 0x1ea   :  { %5156 = vmatpush1.bf16.msra.mxu1 %v8901_v52  ;;  %5197 = vmatpush1.bf16.msra.mxu0 %v8904_v54  ;;  %v8978_v46 = vld [vmem:[%s12352_s3 + $0x55c] ss:$12 sps:$4 sm:$0xff]   ;;  %v8981_v30 = vld [vmem:[%s12352_s3 + $0x3c4] ss:$12 sps:$4 sm:$0xff]   ;;  %v8982_v36 = vld [vmem:[%s12352_s3 + $0x540] ss:$12 sps:$4 sm:$0xff]  }
 0x1eb   :  { %5157 = vmatprep.subr.bf16.mxu1 %v8909_v55  ;;  %5198 = vmatprep.subr.bf16.mxu0 %v8912_v57  ;;  %v8984_v42 = vld [vmem:[%s12352_s3 + $0x544] ss:$12 sps:$4 sm:$0xff]   ;;  %v8987_v51 = vld [vmem:[%s12352_s3 + $0x6ac] ss:$12 sps:$4 sm:$0xff]  }
 0x1ec   :  { %v2142_v52 = vld [vmem:[#allocation2 + $0x30] sm:$0xff]  ;;  %v8990_v54 = vld [vmem:[%s12352_s3 + $0x82c] ss:$12 sps:$4 sm:$0xff]   ;;  %v2140_v57 = vld [vmem:[#allocation2 + $0x20] sm:$0xff] }
 0x1ed   :  { %v2145_v55 = vld [vmem:[#allocation2 + $0x48] sm:$0xff] }
 0x1ee   :  { %5158 = vmatpush1.bf16.msra.mxu1 %v8907_v58  ;;  %5199 = vmatpush1.bf16.msra.mxu0 %v8910_v60  ;;  %v8985_v58 = vld [vmem:[%s12352_s3 + $0x6a8] ss:$12 sps:$4 sm:$0xff]   ;;  %v2147_v60 = vld [vmem:[#allocation2 + $0x58] sm:$0xff] }
 0x1ef   :  { %5159 = vmatprep.subr.bf16.mxu1 %v8915_v45  ;;  %5200 = vmatprep.subr.bf16.mxu0 %v8918_v62  ;;  %v8988_v45 = vld [vmem:[%s12352_s3 + $0x828] ss:$12 sps:$4 sm:$0xff]  }
 0x1f0   :  { %v8993_v62 = vld [vmem:[%s12352_s3 + $0x694] ss:$12 sps:$4 sm:$0xff]  }
 0x1f2   :  { %5160 = vmatpush1.bf16.msra.mxu1 %v8913_v63  ;;  %5201 = vmatpush1.bf16.msra.mxu0 %v8916_v0  ;;  %v8996_v63 = vld [vmem:[%s12352_s3 + $0x814] ss:$12 sps:$4 sm:$0xff]   ;;  %v10695_v0 = vpack.c.bf16 %v2140_v57, %v2140_v57 }
 0x1f3   :  { %5161 = vmatprep.subr.bf16.mxu1 %v8921_v1  ;;  %5202 = vmatprep.subr.bf16.mxu0 %v8924_v2  ;;  %v10697_v1 = vpack.c.bf16 %v2142_v52, %v2142_v52  ;;  %v10699_v2 = vpack.c.bf16 %v2145_v55, %v2145_v55  ;;  %v9059_v52 = vld [vmem:[%s12352_s3 + $0x70c] ss:$12 sps:$4 sm:$0xff]   ;;  %v9057_v55 = vld [vmem:[%s12352_s3 + $0x708] ss:$12 sps:$4 sm:$0xff]  }
 0x1f4   :  { %v9060_v57 = vld [vmem:[%s12352_s3 + $0x888] ss:$12 sps:$4 sm:$0xff]  }
 0x1f6   :  { %5162 = vmatpush1.bf16.msra.mxu1 %v8919_v3  ;;  %5203 = vmatpush1.bf16.msra.mxu0 %v8922_v4  ;;  %v10703_v3 = vpack.c.bf16 %v2147_v60, %v2147_v60  ;;  %v8991_v4 = vld [vmem:[%s12352_s3 + $0x690] ss:$12 sps:$4 sm:$0xff]   ;;  %v9068_v60 = vld [vmem:[%s12352_s3 + $0x874] ss:$12 sps:$4 sm:$0xff]  }
 0x1f7   :  { %5163 = vmatprep.subr.bf16.mxu1 %v8927_v5  ;;  %5204 = vmatprep.subr.bf16.mxu0 %v8930_v53  ;;  %v8994_v5 = vld [vmem:[%s12352_s3 + $0x810] ss:$12 sps:$4 sm:$0xff]  }
 0x1f8   :  { %v8999_v53 = vld [vmem:[%s12352_s3 + $0x67c] ss:$12 sps:$4 sm:$0xff]  }
 0x1fa   :  { %5164 = vmatpush1.bf16.msra.mxu1 %v8925_v6  ;;  %5205 = vmatpush1.bf16.msra.mxu0 %v8928_v8  ;;  %v9002_v6 = vld [vmem:[%s12352_s3 + $0x7fc] ss:$12 sps:$4 sm:$0xff]   ;;  %v8997_v8 = vld [vmem:[%s12352_s3 + $0x678] ss:$12 sps:$4 sm:$0xff]  }
 0x1fb   :  { %5165 = vmatprep.subr.bf16.mxu1 %v8933_v9  ;;  %5206 = vmatprep.subr.bf16.mxu0 %v8936_v10  ;;  %v9000_v9 = vld [vmem:[%s12352_s3 + $0x7f8] ss:$12 sps:$4 sm:$0xff]  }
 0x1fc   :  { %v9005_v10 = vld [vmem:[%s12352_s3 + $0x664] ss:$12 sps:$4 sm:$0xff]  }
 0x1fe   :  { %5166 = vmatpush1.bf16.msra.mxu1 %v8931_v11  ;;  %5207 = vmatpush1.bf16.msra.mxu0 %v8934_v13  ;;  %v9008_v11 = vld [vmem:[%s12352_s3 + $0x7e4] ss:$12 sps:$4 sm:$0xff]   ;;  %v9003_v13 = vld [vmem:[%s12352_s3 + $0x660] ss:$12 sps:$4 sm:$0xff]  }
 0x1ff   :  { %5167 = vmatprep.subr.bf16.mxu1 %v8939_v14  ;;  %5208 = vmatprep.subr.bf16.mxu0 %v8942_v15  ;;  %v9006_v14 = vld [vmem:[%s12352_s3 + $0x7e0] ss:$12 sps:$4 sm:$0xff]  }
 0x200   :  { %v9011_v15 = vld [vmem:[%s12352_s3 + $0x64c] ss:$12 sps:$4 sm:$0xff]  }
 0x202   :  { %5168 = vmatpush2.bf16.msra.mxu1 %v8937_v17  ;;  %5209 = vmatpush2.bf16.msra.mxu0 %v8940_v19  ;;  %v9014_v17 = vld [vmem:[%s12352_s3 + $0x7cc] ss:$12 sps:$4 sm:$0xff]   ;;  %v9009_v19 = vld [vmem:[%s12352_s3 + $0x648] ss:$12 sps:$4 sm:$0xff]  }
 0x203   :  { %5169 = vmatprep.subr.bf16.mxu1 %v8945_v21  ;;  %5210 = vmatprep.subr.bf16.mxu0 %v8948_v22  ;;  %v9012_v21 = vld [vmem:[%s12352_s3 + $0x7c8] ss:$12 sps:$4 sm:$0xff]  }
 0x204   :  { %v9017_v22 = vld [vmem:[%s12352_s3 + $0x634] ss:$12 sps:$4 sm:$0xff]  }
 0x206   :  { %5170 = vmatpush2.bf16.msra.mxu1 %v8943_v23  ;;  %5211 = vmatpush2.bf16.msra.mxu0 %v8946_v7  ;;  %v9020_v23 = vld [vmem:[%s12352_s3 + $0x7b4] ss:$12 sps:$4 sm:$0xff]   ;;  %v9015_v7 = vld [vmem:[%s12352_s3 + $0x630] ss:$12 sps:$4 sm:$0xff]  }
 0x207   :  { %5171 = vmatprep.subr.bf16.mxu1 %v8951_v24  ;;  %5212 = vmatprep.subr.bf16.mxu0 %v8954_v12  ;;  %v9018_v24 = vld [vmem:[%s12352_s3 + $0x7b0] ss:$12 sps:$4 sm:$0xff]  }
 0x208   :  { %v9023_v12 = vld [vmem:[%s12352_s3 + $0x61c] ss:$12 sps:$4 sm:$0xff]  }
 0x20a   :  { %5172 = vmatpush2.bf16.msra.mxu1 %v8949_v25  ;;  %5213 = vmatpush2.bf16.msra.mxu0 %v8952_v27  ;;  %v9026_v25 = vld [vmem:[%s12352_s3 + $0x79c] ss:$12 sps:$4 sm:$0xff]   ;;  %v9021_v27 = vld [vmem:[%s12352_s3 + $0x618] ss:$12 sps:$4 sm:$0xff]  }
 0x20b   :  { %5173 = vmatprep.subr.bf16.mxu1 %v8957_v28  ;;  %5214 = vmatprep.subr.bf16.mxu0 %v8960_v29  ;;  %v9024_v28 = vld [vmem:[%s12352_s3 + $0x798] ss:$12 sps:$4 sm:$0xff]  }
 0x20c   :  { %v9029_v29 = vld [vmem:[%s12352_s3 + $0x604] ss:$12 sps:$4 sm:$0xff]  }
 0x20e   :  { %5174 = vmatpush2.bf16.msra.mxu1 %v8955_v16  ;;  %5215 = vmatpush2.bf16.msra.mxu0 %v8958_v31  ;;  %v9032_v16 = vld [vmem:[%s12352_s3 + $0x784] ss:$12 sps:$4 sm:$0xff]   ;;  %v9027_v31 = vld [vmem:[%s12352_s3 + $0x600] ss:$12 sps:$4 sm:$0xff]  }
 0x20f   :  { %5175 = vmatprep.subr.bf16.mxu1 %v8963_v32  ;;  %5216 = vmatprep.subr.bf16.mxu0 %v8966_v33  ;;  %v9030_v32 = vld [vmem:[%s12352_s3 + $0x780] ss:$12 sps:$4 sm:$0xff]  }
 0x210   :  { %v9035_v33 = vld [vmem:[%s12352_s3 + $0x76c] ss:$12 sps:$4 sm:$0xff]  }
 0x212   :  { %5176 = vmatpush2.bf16.msra.mxu1 %v8961_v34  ;;  %5217 = vmatpush2.bf16.msra.mxu0 %v8964_v35  ;;  %v9038_v34 = vld [vmem:[%s12352_s3 + $0x8ec] ss:$12 sps:$4 sm:$0xff]   ;;  %v9033_v35 = vld [vmem:[%s12352_s3 + $0x768] ss:$12 sps:$4 sm:$0xff]  }
 0x213   :  { %5177 = vmatprep.subr.bf16.mxu1 %v8969_v18  ;;  %5218 = vmatprep.subr.bf16.mxu0 %v8972_v38  ;;  %v9036_v18 = vld [vmem:[%s12352_s3 + $0x8e8] ss:$12 sps:$4 sm:$0xff]  }
 0x214   :  { %v9041_v38 = vld [vmem:[%s12352_s3 + $0x754] ss:$12 sps:$4 sm:$0xff]  }
 0x216   :  { %5178 = vmatpush2.bf16.msra.mxu1 %v8967_v39  ;;  %5219 = vmatpush2.bf16.msra.mxu0 %v8970_v43  ;;  %v9044_v39 = vld [vmem:[%s12352_s3 + $0x8d4] ss:$12 sps:$4 sm:$0xff]   ;;  %v9039_v43 = vld [vmem:[%s12352_s3 + $0x750] ss:$12 sps:$4 sm:$0xff]  }
 0x217   :  { %5179 = vmatprep.subr.bf16.mxu1 %v8975_v44  ;;  %5220 = vmatprep.subr.bf16.mxu0 %v8978_v46  ;;  %v9042_v44 = vld [vmem:[%s12352_s3 + $0x8d0] ss:$12 sps:$4 sm:$0xff]  }
 0x218   :  { %v9047_v46 = vld [vmem:[%s12352_s3 + $0x73c] ss:$12 sps:$4 sm:$0xff]  }
 0x21a   :  { %5180 = vmatpush2.bf16.msra.mxu1 %v8973_v26  ;;  %5221 = vmatpush2.bf16.msra.mxu0 %v8976_v48  ;;  %v9050_v26 = vld [vmem:[%s12352_s3 + $0x8bc] ss:$12 sps:$4 sm:$0xff]   ;;  %v9045_v48 = vld [vmem:[%s12352_s3 + $0x738] ss:$12 sps:$4 sm:$0xff]  }
 0x21b   :  { %5181 = vmatprep.subr.bf16.mxu1 %v8981_v30  ;;  %5222 = vmatprep.subr.bf16.mxu0 %v8984_v42  ;;  %v9048_v30 = vld [vmem:[%s12352_s3 + $0x8b8] ss:$12 sps:$4 sm:$0xff]  }
 0x21c   :  { %v9053_v42 = vld [vmem:[%s12352_s3 + $0x724] ss:$12 sps:$4 sm:$0xff]  }
 0x21e   :  { %5182 = vmatpush2.bf16.msra.mxu1 %v8979_v50  ;;  %5223 = vmatpush2.bf16.msra.mxu0 %v8982_v36  ;;  %v9056_v50 = vld [vmem:[%s12352_s3 + $0x8a4] ss:$12 sps:$4 sm:$0xff]   ;;  %v9051_v36 = vld [vmem:[%s12352_s3 + $0x720] ss:$12 sps:$4 sm:$0xff]  }
 0x21f   :  { %5233 = vmatprep.subr.bf16.mxu1 %v8987_v51  ;;  %5274 = vmatprep.subr.bf16.mxu0 %v8990_v54  ;;  %v9054_v51 = vld [vmem:[%s12352_s3 + $0x8a0] ss:$12 sps:$4 sm:$0xff]  }
 0x220   :  { %v9062_v54 = vld [vmem:[%s12352_s3 + $0x88c] ss:$12 sps:$4 sm:$0xff]  }
 0x221   :  { %5184 = vmatmul.mubr.bf16.vlgmr.msra.gmra.mxu1 %v10695_v0  ;;  %5225 = vmatmul.mubr.bf16.vlgmr.msra.gmra.mxu0 %v10697_v1 }
 0x222   :  { %5234 = vmatpush1.bf16.msra.mxu1 %v8985_v58  ;;  %5265 = vmatprep.mubr.bf16.mxu1 %v10699_v2  ;;  %v9065_v58 = vld [vmem:[%s12352_s3 + $0x6f4] ss:$12 sps:$4 sm:$0xff]  }
 0x223   :  { %5275 = vmatpush1.bf16.msra.mxu0 %v8988_v45  ;;  %5306 = vmatprep.mubr.bf16.mxu0 %v10703_v3  ;;  %v9063_v45 = vld [vmem:[%s12352_s3 + $0x6f0] ss:$12 sps:$4 sm:$0xff]  }
 0x224   :  { %5235 = vmatprep.subr.bf16.mxu1 %v8993_v62  ;;  %5276 = vmatprep.subr.bf16.mxu0 %v8996_v63  ;;  %v9066_v62 = vld [vmem:[%s12352_s3 + $0x870] ss:$12 sps:$4 sm:$0xff]  }
 0x225   :  { %v9071_v63 = vld [vmem:[%s12352_s3 + $0x6dc] ss:$12 sps:$4 sm:$0xff]  }
 0x226   :  { %5236 = vmatpush1.bf16.msra.mxu1 %v8991_v4  ;;  %v9074_v4 = vld [vmem:[%s12352_s3 + $0x85c] ss:$12 sps:$4 sm:$0xff]  }
 0x227   :  { %5277 = vmatpush1.bf16.msra.mxu0 %v8994_v5  ;;  %5237 = vmatprep.subr.bf16.mxu1 %v8999_v53  ;;  %v9069_v5 = vld [vmem:[%s12352_s3 + $0x6d8] ss:$12 sps:$4 sm:$0xff]  }
 0x228   :  { %5278 = vmatprep.subr.bf16.mxu0 %v9002_v6  ;;  %v9072_v53 = vld [vmem:[%s12352_s3 + $0x858] ss:$12 sps:$4 sm:$0xff]  }
 0x229   :  { %v9077_v6 = vld [vmem:[%s12352_s3 + $0x6c4] ss:$12 sps:$4 sm:$0xff]  }
 0x22a   :  { %5238 = vmatpush1.bf16.msra.mxu1 %v8997_v8  ;;  %v9080_v8 = vld [vmem:[%s12352_s3 + $0x844] ss:$12 sps:$4 sm:$0xff]  }
 0x22b   :  { %5279 = vmatpush1.bf16.msra.mxu0 %v9000_v9  ;;  %5239 = vmatprep.subr.bf16.mxu1 %v9005_v10  ;;  %v9075_v9 = vld [vmem:[%s12352_s3 + $0x6c0] ss:$12 sps:$4 sm:$0xff]  }
 0x22c   :  { %5280 = vmatprep.subr.bf16.mxu0 %v9008_v11  ;;  %v9078_v10 = vld [vmem:[%s12352_s3 + $0x840] ss:$12 sps:$4 sm:$0xff]  }
 0x22d   :  { %v9083_v11 = vld [vmem:[%s12352_s3 + $0x9ac] ss:$12 sps:$4 sm:$0xff]  }
 0x22e   :  { %5240 = vmatpush1.bf16.msra.mxu1 %v9003_v13  ;;  %v2144_v13 = vld [vmem:[#allocation2 + $0x40] sm:$0xff] }
 0x22f   :  { %5281 = vmatpush1.bf16.msra.mxu0 %v9006_v14  ;;  %5241 = vmatprep.subr.bf16.mxu1 %v9011_v15  ;;  %v9086_v14 = vld [vmem:[%s12352_s3 + $0xb2c] ss:$12 sps:$4 sm:$0xff]   ;;  %v2146_v15 = vld [vmem:[#allocation2 + $0x50] sm:$0xff] }
 0x230   :  { %5282 = vmatprep.subr.bf16.mxu0 %v9014_v17  ;;  %v9081_v17 = vld [vmem:[%s12352_s3 + $0x9a8] ss:$12 sps:$4 sm:$0xff]  }
 0x232   :  { %5242 = vmatpush1.bf16.msra.mxu1 %v9009_v19  ;;  %v2149_v19 = vld [vmem:[#allocation2 + $0x68] sm:$0xff] }
 0x233   :  { %5283 = vmatpush1.bf16.msra.mxu0 %v9012_v21  ;;  %5243 = vmatprep.subr.bf16.mxu1 %v9017_v22  ;;  %v10890_v21 = vpack.c.bf16 %v2144_v13, %v2144_v13  ;;  %v9084_v22 = vld [vmem:[%s12352_s3 + $0xb28] ss:$12 sps:$4 sm:$0xff]   ;;  %v9149_v13 = vld [vmem:[%s12352_s3 + $0xa24] ss:$12 sps:$4 sm:$0xff]  }
 0x234   :  { %5284 = vmatprep.subr.bf16.mxu0 %v9020_v23  ;;  %v2151_v23 = vld [vmem:[#allocation2 + $0x78] sm:$0xff] }
 0x236   :  { %5244 = vmatpush1.bf16.msra.mxu1 %v9015_v7  ;;  %v10895_v7 = vpack.c.bf16 %v2146_v15, %v2146_v15  ;;  %v9147_v15 = vld [vmem:[%s12352_s3 + $0xa20] ss:$12 sps:$4 sm:$0xff]  }
 0x237   :  { %5285 = vmatpush1.bf16.msra.mxu0 %v9018_v24  ;;  %5245 = vmatprep.subr.bf16.mxu1 %v9023_v12  ;;  %v9089_v24 = vld [vmem:[%s12352_s3 + $0x994] ss:$12 sps:$4 sm:$0xff]   ;;  %v10901_v12 = vpack.c.bf16 %v2149_v19, %v2149_v19  ;;  %v9155_v19 = vld [vmem:[%s12352_s3 + $0xa0c] ss:$12 sps:$4 sm:$0xff]  }
 0x238   :  { %5286 = vmatprep.subr.bf16.mxu0 %v9026_v25  ;;  %v9092_v25 = vld [vmem:[%s12352_s3 + $0xb14] ss:$12 sps:$4 sm:$0xff]  }
 0x23a   :  { %5246 = vmatpush1.bf16.msra.mxu1 %v9021_v27  ;;  %v10907_v27 = vpack.c.bf16 %v2151_v23, %v2151_v23  ;;  %v9153_v23 = vld [vmem:[%s12352_s3 + $0xa08] ss:$12 sps:$4 sm:$0xff]  }
 0x23b   :  { %5287 = vmatpush1.bf16.msra.mxu0 %v9024_v28  ;;  %5247 = vmatprep.subr.bf16.mxu1 %v9029_v29  ;;  %v9087_v28 = vld [vmem:[%s12352_s3 + $0x990] ss:$12 sps:$4 sm:$0xff]  }
 0x23c   :  { %5288 = vmatprep.subr.bf16.mxu0 %v9032_v16  ;;  %v9090_v29 = vld [vmem:[%s12352_s3 + $0xb10] ss:$12 sps:$4 sm:$0xff]  }
 0x23d   :  { %v9095_v16 = vld [vmem:[%s12352_s3 + $0x97c] ss:$12 sps:$4 sm:$0xff]  }
 0x23e   :  { %5248 = vmatpush1.bf16.msra.mxu1 %v9027_v31  ;;  %v9098_v31 = vld [vmem:[%s12352_s3 + $0xafc] ss:$12 sps:$4 sm:$0xff]  }
 0x23f   :  { %5289 = vmatpush1.bf16.msra.mxu0 %v9030_v32  ;;  %5249 = vmatprep.subr.bf16.mxu1 %v9035_v33  ;;  %v9093_v32 = vld [vmem:[%s12352_s3 + $0x978] ss:$12 sps:$4 sm:$0xff]  }
 0x240   :  { %5290 = vmatprep.subr.bf16.mxu0 %v9038_v34  ;;  %v9096_v33 = vld [vmem:[%s12352_s3 + $0xaf8] ss:$12 sps:$4 sm:$0xff]  }
 0x241   :  { %v9101_v34 = vld [vmem:[%s12352_s3 + $0x964] ss:$12 sps:$4 sm:$0xff]  }
 0x242   :  { %5250 = vmatpush2.bf16.msra.mxu1 %v9033_v35  ;;  %v9104_v35 = vld [vmem:[%s12352_s3 + $0xae4] ss:$12 sps:$4 sm:$0xff]  }
 0x243   :  { %5291 = vmatpush2.bf16.msra.mxu0 %v9036_v18  ;;  %5251 = vmatprep.subr.bf16.mxu1 %v9041_v38  ;;  %v9099_v18 = vld [vmem:[%s12352_s3 + $0x960] ss:$12 sps:$4 sm:$0xff]  }
 0x244   :  { %5292 = vmatprep.subr.bf16.mxu0 %v9044_v39  ;;  %v9102_v38 = vld [vmem:[%s12352_s3 + $0xae0] ss:$12 sps:$4 sm:$0xff]  }
 0x245   :  { %v9107_v39 = vld [vmem:[%s12352_s3 + $0x94c] ss:$12 sps:$4 sm:$0xff]  }
 0x246   :  { %5252 = vmatpush2.bf16.msra.mxu1 %v9039_v43  ;;  %v9110_v43 = vld [vmem:[%s12352_s3 + $0xacc] ss:$12 sps:$4 sm:$0xff]  }
 0x247   :  { %5293 = vmatpush2.bf16.msra.mxu0 %v9042_v44  ;;  %5253 = vmatprep.subr.bf16.mxu1 %v9047_v46  ;;  %v9105_v44 = vld [vmem:[%s12352_s3 + $0x948] ss:$12 sps:$4 sm:$0xff]  }
 0x248   :  { %5294 = vmatprep.subr.bf16.mxu0 %v9050_v26  ;;  %v9108_v46 = vld [vmem:[%s12352_s3 + $0xac8] ss:$12 sps:$4 sm:$0xff]  }
 0x249   :  { %v9113_v26 = vld [vmem:[%s12352_s3 + $0x934] ss:$12 sps:$4 sm:$0xff]  }
 0x24a   :  { %5254 = vmatpush2.bf16.msra.mxu1 %v9045_v48  ;;  %v9116_v48 = vld [vmem:[%s12352_s3 + $0xab4] ss:$12 sps:$4 sm:$0xff]  }
 0x24b   :  { %5295 = vmatpush2.bf16.msra.mxu0 %v9048_v30  ;;  %5255 = vmatprep.subr.bf16.mxu1 %v9053_v42  ;;  %v9111_v30 = vld [vmem:[%s12352_s3 + $0x930] ss:$12 sps:$4 sm:$0xff]  }
 0x24c   :  { %5296 = vmatprep.subr.bf16.mxu0 %v9056_v50  ;;  %v9114_v42 = vld [vmem:[%s12352_s3 + $0xab0] ss:$12 sps:$4 sm:$0xff]  }
 0x24d   :  { %v9119_v50 = vld [vmem:[%s12352_s3 + $0x91c] ss:$12 sps:$4 sm:$0xff]  }
 0x24e   :  { %5256 = vmatpush2.bf16.msra.mxu1 %v9051_v36  ;;  %v9122_v36 = vld [vmem:[%s12352_s3 + $0xa9c] ss:$12 sps:$4 sm:$0xff]  }
 0x24f   :  { %5297 = vmatpush2.bf16.msra.mxu0 %v9054_v51  ;;  %5257 = vmatprep.subr.bf16.mxu1 %v9059_v52  ;;  %v9117_v51 = vld [vmem:[%s12352_s3 + $0x918] ss:$12 sps:$4 sm:$0xff]  }
 0x250   :  { %5298 = vmatprep.subr.bf16.mxu0 %v9062_v54  ;;  %v9120_v52 = vld [vmem:[%s12352_s3 + $0xa98] ss:$12 sps:$4 sm:$0xff]  }
 0x251   :  { %v9125_v54 = vld [vmem:[%s12352_s3 + $0x904] ss:$12 sps:$4 sm:$0xff]  }
 0x252   :  { %5258 = vmatpush2.bf16.msra.mxu1 %v9057_v55  ;;  %v9128_v55 = vld [vmem:[%s12352_s3 + $0xa84] ss:$12 sps:$4 sm:$0xff]  }
 0x253   :  { %5299 = vmatpush2.bf16.msra.mxu0 %v9060_v57  ;;  %5259 = vmatprep.subr.bf16.mxu1 %v9065_v58  ;;  %v9123_v57 = vld [vmem:[%s12352_s3 + $0x900] ss:$12 sps:$4 sm:$0xff]  }
 0x254   :  { %5300 = vmatprep.subr.bf16.mxu0 %v9068_v60  ;;  %v9126_v58 = vld [vmem:[%s12352_s3 + $0xa80] ss:$12 sps:$4 sm:$0xff]  }
 0x255   :  { %v9131_v60 = vld [vmem:[%s12352_s3 + $0xa6c] ss:$12 sps:$4 sm:$0xff]  }
 0x256   :  { %5260 = vmatpush2.bf16.msra.mxu1 %v9063_v45  ;;  %v9134_v45 = vld [vmem:[%s12352_s3 + $0xbec] ss:$12 sps:$4 sm:$0xff]  }
 0x257   :  { %5301 = vmatpush2.bf16.msra.mxu0 %v9066_v62  ;;  %5261 = vmatprep.subr.bf16.mxu1 %v9071_v63  ;;  %v9129_v62 = vld [vmem:[%s12352_s3 + $0xa68] ss:$12 sps:$4 sm:$0xff]  }
 0x258   :  { %5302 = vmatprep.subr.bf16.mxu0 %v9074_v4  ;;  %v9132_v63 = vld [vmem:[%s12352_s3 + $0xbe8] ss:$12 sps:$4 sm:$0xff]  }
 0x259   :  { %v9137_v4 = vld [vmem:[%s12352_s3 + $0xa54] ss:$12 sps:$4 sm:$0xff]  }
 0x25a   :  { %5262 = vmatpush2.bf16.msra.mxu1 %v9069_v5  ;;  %v9140_v5 = vld [vmem:[%s12352_s3 + $0xbd4] ss:$12 sps:$4 sm:$0xff]  }
 0x25b   :  { %5303 = vmatpush2.bf16.msra.mxu0 %v9072_v53  ;;  %5263 = vmatprep.subr.bf16.mxu1 %v9077_v6  ;;  %v9135_v53 = vld [vmem:[%s12352_s3 + $0xa50] ss:$12 sps:$4 sm:$0xff]  }
 0x25c   :  { %5304 = vmatprep.subr.bf16.mxu0 %v9080_v8  ;;  %v9138_v6 = vld [vmem:[%s12352_s3 + $0xbd0] ss:$12 sps:$4 sm:$0xff]  }
 0x25d   :  { %v9143_v8 = vld [vmem:[%s12352_s3 + $0xa3c] ss:$12 sps:$4 sm:$0xff]  }
 0x25e   :  { %5264 = vmatpush2.bf16.msra.mxu1 %v9075_v9  ;;  %v9146_v9 = vld [vmem:[%s12352_s3 + $0xbbc] ss:$12 sps:$4 sm:$0xff]  }
 0x25f   :  { %5305 = vmatpush2.bf16.msra.mxu0 %v9078_v10  ;;  %5315 = vmatprep.subr.bf16.mxu1 %v9083_v11  ;;  %v9141_v10 = vld [vmem:[%s12352_s3 + $0xa38] ss:$12 sps:$4 sm:$0xff]  }
 0x260   :  { %5356 = vmatprep.subr.bf16.mxu0 %v9086_v14  ;;  %v9144_v11 = vld [vmem:[%s12352_s3 + $0xbb8] ss:$12 sps:$4 sm:$0xff]  }
 0x261   :  { %5266 = vmatmul.mubr.bf16.vlgmr.msra.gmra.mxu1 %v10890_v21  ;;  %v9152_v14 = vld [vmem:[%s12352_s3 + $0xba4] ss:$12 sps:$4 sm:$0xff]  }
 0x262   :  { %5307 = vmatmul.mubr.bf16.vlgmr.msra.gmra.mxu0 %v10895_v7  ;;  %5316 = vmatpush1.bf16.msra.mxu1 %v9081_v17  ;;  %v9150_v17 = vld [vmem:[%s12352_s3 + $0xba0] ss:$12 sps:$4 sm:$0xff]  }
 0x263   :  { %5347 = vmatprep.mubr.bf16.mxu1 %v10901_v12  ;;  %5357 = vmatpush1.bf16.msra.mxu0 %v9084_v22  ;;  %v9158_v22 = vld [vmem:[%s12352_s3 + $0xb8c] ss:$12 sps:$4 sm:$0xff]  }
 0x264   :  { %5388 = vmatprep.mubr.bf16.mxu0 %v10907_v27  ;;  %5317 = vmatprep.subr.bf16.mxu1 %v9089_v24  ;;  %v9156_v24 = vld [vmem:[%s12352_s3 + $0xb88] ss:$12 sps:$4 sm:$0xff]  }
 0x265   :  { %5358 = vmatprep.subr.bf16.mxu0 %v9092_v25  ;;  %v9161_v25 = vld [vmem:[%s12352_s3 + $0x9f4] ss:$12 sps:$4 sm:$0xff]  }
 0x266   :  { %5318 = vmatpush1.bf16.msra.mxu1 %v9087_v28  ;;  %v9164_v28 = vld [vmem:[%s12352_s3 + $0xb74] ss:$12 sps:$4 sm:$0xff]  }
 0x267   :  { %5359 = vmatpush1.bf16.msra.mxu0 %v9090_v29  ;;  %5319 = vmatprep.subr.bf16.mxu1 %v9095_v16  ;;  %v9159_v29 = vld [vmem:[%s12352_s3 + $0x9f0] ss:$12 sps:$4 sm:$0xff]  }
 0x268   :  { %5360 = vmatprep.subr.bf16.mxu0 %v9098_v31  ;;  %v9162_v16 = vld [vmem:[%s12352_s3 + $0xb70] ss:$12 sps:$4 sm:$0xff]  }
 0x269   :  { %v9167_v31 = vld [vmem:[%s12352_s3 + $0x9dc] ss:$12 sps:$4 sm:$0xff]  }
 0x26a   :  { %5320 = vmatpush1.bf16.msra.mxu1 %v9093_v32  ;;  %v9170_v32 = vld [vmem:[%s12352_s3 + $0xb5c] ss:$12 sps:$4 sm:$0xff]  }
 0x26b   :  { %5361 = vmatpush1.bf16.msra.mxu0 %v9096_v33  ;;  %5321 = vmatprep.subr.bf16.mxu1 %v9101_v34  ;;  %v9165_v33 = vld [vmem:[%s12352_s3 + $0x9d8] ss:$12 sps:$4 sm:$0xff]  }
 0x26c   :  { %5362 = vmatprep.subr.bf16.mxu0 %v9104_v35  ;;  %v9168_v34 = vld [vmem:[%s12352_s3 + $0xb58] ss:$12 sps:$4 sm:$0xff]  }
 0x26d   :  { %v9173_v35 = vld [vmem:[%s12352_s3 + $0x9c4] ss:$12 sps:$4 sm:$0xff]  }
 0x26e   :  { %5322 = vmatpush1.bf16.msra.mxu1 %v9099_v18  ;;  %v9176_v18 = vld [vmem:[%s12352_s3 + $0xb44] ss:$12 sps:$4 sm:$0xff]  }
 0x26f   :  { %5363 = vmatpush1.bf16.msra.mxu0 %v9102_v38  ;;  %5323 = vmatprep.subr.bf16.mxu1 %v9107_v39  ;;  %v9171_v38 = vld [vmem:[%s12352_s3 + $0x9c0] ss:$12 sps:$4 sm:$0xff]  }
 0x270   :  { %5364 = vmatprep.subr.bf16.mxu0 %v9110_v43  ;;  %v9174_v39 = vld [vmem:[%s12352_s3 + $0xb40] ss:$12 sps:$4 sm:$0xff]  }
 0x271   :  { %v9179_v43 = vld [vmem:[%s12352_s3 + $0xcac] ss:$12 sps:$4 sm:$0xff]  }
 0x272   :  { %5324 = vmatpush1.bf16.msra.mxu1 %v9105_v44  ;;  %v2748_v44 = vld [vmem:[%s12353_s4] sm:$0x7] }
 0x273   :  { %5365 = vmatpush1.bf16.msra.mxu0 %v9108_v46  ;;  %5325 = vmatprep.subr.bf16.mxu1 %v9113_v26  ;;  %v2148_v46 = vld [vmem:[#allocation2 + $0x60] sm:$0xff]  ;;  %v9180_v26 = vld [vmem:[%s12352_s3 + $0x170] ss:$12 sps:$4 sm:$0xff]  }
 0x274   :  { %5366 = vmatprep.subr.bf16.mxu0 %v9116_v48  ;;  %v2150_v48 = vld [vmem:[#allocation2 + $0x70] sm:$0xff] }
 0x276   :  { %5326 = vmatpush1.bf16.msra.mxu1 %v9111_v30  ;;  %v9177_v30 = vld [vmem:[%s12352_s3 + $0xca8] ss:$12 sps:$4 sm:$0xff]  }
 0x277   :  { %5367 = vmatpush1.bf16.msra.mxu0 %v9114_v42  ;;  %5327 = vmatprep.subr.bf16.mxu1 %v9119_v50  ;;  %v2753_v42 = vrot.slane %v2748_v44, %v10164_v59  ;;  %v2153_v50 = vld [vmem:[#allocation2 + $0x88] sm:$0xff] }
 0x278   :  { %5368 = vmatprep.subr.bf16.mxu0 %v9122_v36  ;;  %v11098_v36 = vpack.c.bf16 %v2148_v46, %v2148_v46  ;;  %v9215_v46 = vld [vmem:[%s12352_s3 + $0xc8] ss:$12 sps:$4 sm:$0xff]  }
 0x27a   :  { %5328 = vmatpush1.bf16.msra.mxu1 %v9117_v51  ;;  %v9181_v51 = vld [vmem:[%s12352_s3 + $0xb0] ss:$12 sps:$4 sm:$0xff]  }
 0x27b   :  { %5369 = vmatpush1.bf16.msra.mxu0 %v9120_v52  ;;  %5329 = vmatprep.subr.bf16.mxu1 %v9125_v54  ;;  %v11103_v52 = vpack.c.bf16 %v2150_v48, %v2150_v48  ;;  %v2757_v54 = vrot.slane %v2748_v44, %v10170_v61  ;;  %v9214_v44 = vld [vmem:[%s12352_s3 + $0xc04] ss:$12 sps:$4 sm:$0xff]   ;;  %v9216_v48 = vld [vmem:[%s12352_s3 + $0x8] ss:$12 sps:$4 sm:$0xff]  }
 0x27c   :  { %5370 = vmatprep.subr.bf16.mxu0 %v9128_v55  ;;  %v9184_v55 = vld [vmem:[%s12352_s3 + $0xc94] ss:$12 sps:$4 sm:$0xff]  }
 0x27e   :  { %5330 = vmatpush1.bf16.msra.mxu1 %v9123_v57 }
 0x27f   :  { %5371 = vmatpush1.bf16.msra.mxu0 %v9126_v58  ;;  %5331 = vmatprep.subr.bf16.mxu1 %v9131_v60  ;;  %v11110_v60 = vpack.c.bf16 %v2153_v50, %v2153_v50  ;;  %v9217_v50 = vld [vmem:[%s12352_s3 + $0xd68] ss:$12 sps:$4 sm:$0xff]  }
 0x280   :  { %5372 = vmatprep.subr.bf16.mxu0 %v9134_v45  ;;  %v9185_v45 = vld [vmem:[%s12352_s3 + $0x158] ss:$12 sps:$4 sm:$0xff]  }
 0x282   :  { %5332 = vmatpush2.bf16.msra.mxu1 %v9129_v62 }
 0x283   :  { %5373 = vmatpush2.bf16.msra.mxu0 %v9132_v63  ;;  %5333 = vmatprep.subr.bf16.mxu1 %v9137_v4  ;;  %v9182_v63 = vld [vmem:[%s12352_s3 + $0xc90] ss:$12 sps:$4 sm:$0xff]  }
 0x284   :  { %5374 = vmatprep.subr.bf16.mxu0 %v9140_v5 }
 0x286   :  { %5334 = vmatpush2.bf16.msra.mxu1 %v9135_v53  ;;  %v9186_v53 = vld [vmem:[%s12352_s3 + $0x98] ss:$12 sps:$4 sm:$0xff]  }
 0x287   :  { %5375 = vmatpush2.bf16.msra.mxu0 %v9138_v6  ;;  %5335 = vmatprep.subr.bf16.mxu1 %v9143_v8  ;;  %v9189_v6 = vld [vmem:[%s12352_s3 + $0xc7c] ss:$12 sps:$4 sm:$0xff]  }
 0x288   :  { %5376 = vmatprep.subr.bf16.mxu0 %v9146_v9 }
 0x28a   :  { %5336 = vmatpush2.bf16.msra.mxu1 %v9141_v10  ;;  %v9190_v10 = vld [vmem:[%s12352_s3 + $0x140] ss:$12 sps:$4 sm:$0xff]  }
 0x28b   :  { %5377 = vmatpush2.bf16.msra.mxu0 %v9144_v11  ;;  %5337 = vmatprep.subr.bf16.mxu1 %v9149_v13 }
 0x28c   :  { %5378 = vmatprep.subr.bf16.mxu0 %v9152_v14 }
 0x28e   :  { %5338 = vmatpush2.bf16.msra.mxu1 %v9147_v15  ;;  %v9187_v15 = vld [vmem:[%s12352_s3 + $0xc78] ss:$12 sps:$4 sm:$0xff]  }
 0x28f   :  { %5379 = vmatpush2.bf16.msra.mxu0 %v9150_v17  ;;  %5339 = vmatprep.subr.bf16.mxu1 %v9155_v19 }
 0x290   :  { %5380 = vmatprep.subr.bf16.mxu0 %v9158_v22  ;;  %v9194_v22 = vld [vmem:[%s12352_s3 + $0xc64] ss:$12 sps:$4 sm:$0xff]  }
 0x292   :  { %5340 = vmatpush2.bf16.msra.mxu1 %v9153_v23  ;;  %v9195_v23 = vld [vmem:[%s12352_s3 + $0x128] ss:$12 sps:$4 sm:$0xff]  }
 0x293   :  { %5381 = vmatpush2.bf16.msra.mxu0 %v9156_v24  ;;  %5341 = vmatprep.subr.bf16.mxu1 %v9161_v25  ;;  %v9192_v24 = vld [vmem:[%s12352_s3 + $0xc60] ss:$12 sps:$4 sm:$0xff]   ;;  %v9196_v25 = vld [vmem:[%s12352_s3 + $0x68] ss:$12 sps:$4 sm:$0xff]  }
 0x294   :  { %5382 = vmatprep.subr.bf16.mxu0 %v9164_v28  ;;  %v9199_v28 = vld [vmem:[%s12352_s3 + $0xc4c] ss:$12 sps:$4 sm:$0xff]  }
 0x296   :  { %5342 = vmatpush2.bf16.msra.mxu1 %v9159_v29  ;;  %v9200_v29 = vld [vmem:[%s12352_s3 + $0x110] ss:$12 sps:$4 sm:$0xff]  }
 0x297   :  { %5383 = vmatpush2.bf16.msra.mxu0 %v9162_v16  ;;  %5343 = vmatprep.subr.bf16.mxu1 %v9167_v31  ;;  %v9197_v16 = vld [vmem:[%s12352_s3 + $0xc48] ss:$12 sps:$4 sm:$0xff]   ;;  %v9201_v31 = vld [vmem:[%s12352_s3 + $0x50] ss:$12 sps:$4 sm:$0xff]  }
 0x298   :  { %5384 = vmatprep.subr.bf16.mxu0 %v9170_v32  ;;  %v9204_v32 = vld [vmem:[%s12352_s3 + $0xc34] ss:$12 sps:$4 sm:$0xff]  }
 0x29a   :  { %5344 = vmatpush2.bf16.msra.mxu1 %v9165_v33  ;;  %v9205_v33 = vld [vmem:[%s12352_s3 + $0xf8] ss:$12 sps:$4 sm:$0xff]  }
 0x29b   :  { %5385 = vmatpush2.bf16.msra.mxu0 %v9168_v34  ;;  %5345 = vmatprep.subr.bf16.mxu1 %v9173_v35  ;;  %v9202_v34 = vld [vmem:[%s12352_s3 + $0xc30] ss:$12 sps:$4 sm:$0xff]   ;;  %v9206_v35 = vld [vmem:[%s12352_s3 + $0x38] ss:$12 sps:$4 sm:$0xff]  }
 0x29c   :  { %5386 = vmatprep.subr.bf16.mxu0 %v9176_v18  ;;  %v9209_v18 = vld [vmem:[%s12352_s3 + $0xc1c] ss:$12 sps:$4 sm:$0xff]  }
 0x29e   :  { %5346 = vmatpush2.bf16.msra.mxu1 %v9171_v38  ;;  %v9210_v38 = vld [vmem:[%s12352_s3 + $0xe0] ss:$12 sps:$4 sm:$0xff]  }
 0x29f   :  { %5387 = vmatpush2.bf16.msra.mxu0 %v9174_v39  ;;  %5397 = vmatprep.subr.bf16.mxu1 %v9179_v43  ;;  %v9207_v39 = vld [vmem:[%s12352_s3 + $0xc18] ss:$12 sps:$4 sm:$0xff]   ;;  %v9211_v43 = vld [vmem:[%s12352_s3 + $0x20] ss:$12 sps:$4 sm:$0xff]  }
 0x2a0   :  { %8214 = vmatprep.subr.bf16.mxu0 %v9180_v26  ;;  %v9212_v26 = vld [vmem:[%s12352_s3 + $0xc00] ss:$12 sps:$4 sm:$0xff]  }
 0x2a1   :  { %5348 = vmatmul.mubr.bf16.vlgmr.msra.gmra.mxu1 %v11098_v36  ;;  %v5103_v57 = vpop.f32.mrf.mxu1  ;;  %v5144_v58 = vpop.f32.mrf.mxu0 }
 0x2a2   :  { %5389 = vmatmul.mubr.bf16.vlgmr.msra.gmra.mxu0 %v11103_v52  ;;  %v5104_v62 = vadd.f32 %v5103_v57, %v2753_v42  ;;  %5398 = vmatpush1.bf16.msra.mxu1 %v9177_v30  ;;  %v9219_v30 = vld [vmem:[%s12352_s3 + $0xd6c] ss:$12 sps:$4 sm:$0xff]   ;;  %v9220_v42 = vld [vmem:[%s12352_s3 + $0x470] ss:$12 sps:$4 sm:$0xff]  }
 0x2a3   :  { %5429 = vmatprep.mubr.bf16.mxu1 %v11110_v60  ;;  %8215 = vmatpush3.bf16.msra.mxu0 %v9181_v51  ;;  %v5105_v4 = vpop.f32.mrf.mxu1  ;;  %v5146_v5 = vpop.f32.mrf.mxu0  ;;  %v9221_v51 = vld [vmem:[%s12352_s3 + $0x3b0] ss:$12 sps:$4 sm:$0xff]  }
 0x2a4   :  { %v11126_v8 = vadd.f32 %v5144_v58, %v5104_v62  ;;  %5470 = vmatprep.mubr.bf16.mxu0 %v10476_v40  ;;  %v5106_v9 = vadd.f32 %v5105_v4, %v2757_v54  ;;  %5399 = vmatprep.subr.bf16.mxu1 %v9184_v55  ;;  %v9191_v40 = vld [vmem:[%s12352_s3 + $0x80] ss:$12 sps:$4 sm:$0xff]   ;;  %v9225_v55 = vld [vmem:[%s12352_s3 + $0x458] ss:$12 sps:$4 sm:$0xff]   ;;  %v9222_v57 = vld [vmem:[%s12352_s3 + $0xd50] ss:$12 sps:$4 sm:$0xff]  }
 0x2a5   :  { %8216 = vmatprep.subr.bf16.mxu0 %v9185_v45  ;;  %v5107_v11 = vpop.f32.mrf.mxu1  ;;  %v5148_v13 = vpop.f32.mrf.mxu0  ;;  %v9224_v54 = vld [vmem:[%s12352_s3 + $0xd54] ss:$12 sps:$4 sm:$0xff]   ;;  %v9226_v58 = vld [vmem:[%s12352_s3 + $0x398] ss:$12 sps:$4 sm:$0xff]   ;;  %v9229_v45 = vld [vmem:[%s12352_s3 + $0xd3c] ss:$12 sps:$4 sm:$0xff]  }
 0x2a6   :  { %v11132_v14 = vadd.f32 %v5146_v5, %v5106_v9  ;;  %5400 = vmatpush1.bf16.msra.mxu1 %v9182_v63  ;;  %v9227_v62 = vld [vmem:[%s12352_s3 + $0xd38] ss:$12 sps:$4 sm:$0xff]   ;;  %v9235_v4 = vld [vmem:[%s12352_s3 + $0x428] ss:$12 sps:$4 sm:$0xff]   ;;  %v9232_v5 = vld [vmem:[%s12352_s3 + $0xd20] ss:$12 sps:$4 sm:$0xff]  }
 0x2a7   :  { %8217 = vmatpush3.bf16.msra.mxu0 %v9186_v53  ;;  %v5108_v17 = vpop.f32.mrf.mxu1  ;;  %v5149_v19 = vpop.f32.mrf.mxu0  ;;  %5401 = vmatprep.subr.bf16.mxu1 %v9189_v6  ;;  %v9234_v63 = vld [vmem:[%s12352_s3 + $0xd24] ss:$12 sps:$4 sm:$0xff]   ;;  %v9236_v53 = vld [vmem:[%s12352_s3 + $0x368] ss:$12 sps:$4 sm:$0xff]   ;;  %v9239_v6 = vld [vmem:[%s12352_s3 + $0xd0c] ss:$12 sps:$4 sm:$0xff]  }
 0x2a8   :  { %8218 = vmatprep.subr.bf16.mxu0 %v9190_v10  ;;  %v9240_v9 = vld [vmem:[%s12352_s3 + $0x410] ss:$12 sps:$4 sm:$0xff]   ;;  %v9237_v10 = vld [vmem:[%s12352_s3 + $0xd08] ss:$12 sps:$4 sm:$0xff]   ;;  %v9246_v19 = vld [vmem:[%s12352_s3 + $0x338] ss:$12 sps:$4 sm:$0xff]  }
 0x2a9   :  { %v9241_v11 = vld [vmem:[%s12352_s3 + $0x350] ss:$12 sps:$4 sm:$0xff]   ;;  %v9244_v13 = vld [vmem:[%s12352_s3 + $0xcf4] ss:$12 sps:$4 sm:$0xff]  }
 0x2aa   :  { %5402 = vmatpush1.bf16.msra.mxu1 %v9187_v15  ;;  %v9245_v15 = vld [vmem:[%s12352_s3 + $0x3f8] ss:$12 sps:$4 sm:$0xff]   ;;  %v9242_v17 = vld [vmem:[%s12352_s3 + $0xcf0] ss:$12 sps:$4 sm:$0xff]  }
 0x2ab   :  { %8219 = vmatpush3.bf16.msra.mxu0 %v9191_v40  ;;  %5403 = vmatprep.subr.bf16.mxu1 %v9194_v22  ;;  %v9249_v40 = vld [vmem:[%s12352_s3 + $0xcdc] ss:$12 sps:$4 sm:$0xff]   ;;  %v9250_v22 = vld [vmem:[%s12352_s3 + $0x3e0] ss:$12 sps:$4 sm:$0xff]  }
 0x2ac   :  { %8220 = vmatprep.subr.bf16.mxu0 %v9195_v23  ;;  %v9247_v23 = vld [vmem:[%s12352_s3 + $0xcd8] ss:$12 sps:$4 sm:$0xff]  }
 0x2ae   :  { %5404 = vmatpush1.bf16.msra.mxu1 %v9192_v24  ;;  %v9251_v24 = vld [vmem:[%s12352_s3 + $0x320] ss:$12 sps:$4 sm:$0xff]  }
 0x2af   :  { %8221 = vmatpush3.bf16.msra.mxu0 %v9196_v25  ;;  %5405 = vmatprep.subr.bf16.mxu1 %v9199_v28  ;;  %v9254_v25 = vld [vmem:[%s12352_s3 + $0xcc4] ss:$12 sps:$4 sm:$0xff]   ;;  %v9255_v28 = vld [vmem:[%s12352_s3 + $0x3c8] ss:$12 sps:$4 sm:$0xff]  }
 0x2b0   :  { %8222 = vmatprep.subr.bf16.mxu0 %v9200_v29  ;;  %v9252_v29 = vld [vmem:[%s12352_s3 + $0xcc0] ss:$12 sps:$4 sm:$0xff]  }
 0x2b2   :  { %5406 = vmatpush1.bf16.msra.mxu1 %v9197_v16  ;;  %v9256_v16 = vld [vmem:[%s12352_s3 + $0x308] ss:$12 sps:$4 sm:$0xff]  }
 0x2b3   :  { %8223 = vmatpush3.bf16.msra.mxu0 %v9201_v31  ;;  %5407 = vmatprep.subr.bf16.mxu1 %v9204_v32  ;;  %v9257_v31 = vld [vmem:[%s12352_s3 + $0x2f0] ss:$12 sps:$4 sm:$0xff]   ;;  %v2152_v32 = vld [vmem:[#allocation2 + $0x80] sm:$0xff] }
 0x2b4   :  { %8224 = vmatprep.subr.bf16.mxu0 %v9205_v33  ;;  %v9258_v33 = vld [vmem:[%s12352_s3 + $0x770] ss:$12 sps:$4 sm:$0xff]  }
 0x2b6   :  { %5408 = vmatpush1.bf16.msra.mxu1 %v9202_v34  ;;  %v9259_v34 = vld [vmem:[%s12352_s3 + $0x230] ss:$12 sps:$4 sm:$0xff]  }
 0x2b7   :  { %8225 = vmatpush3.bf16.msra.mxu0 %v9206_v35  ;;  %5409 = vmatprep.subr.bf16.mxu1 %v9209_v18  ;;  %v11307_v35 = vpack.c.bf16 %v2152_v32, %v2152_v32  ;;  %v9260_v18 = vld [vmem:[%s12352_s3 + $0x6b0] ss:$12 sps:$4 sm:$0xff]   ;;  %v9294_v32 = vld [vmem:[%s12352_s3 + $0xa58] ss:$12 sps:$4 sm:$0xff]  }
 0x2b8   :  { %8226 = vmatprep.subr.bf16.mxu0 %v9210_v38  ;;  %v9261_v38 = vld [vmem:[%s12352_s3 + $0x2d8] ss:$12 sps:$4 sm:$0xff]  }
 0x2ba   :  { %5410 = vmatpush1.bf16.msra.mxu1 %v9207_v39 }
 0x2bb   :  { %8227 = vmatpush3.bf16.msra.mxu0 %v9211_v43  ;;  %5411 = vmatprep.subr.bf16.mxu1 %v9214_v44  ;;  %v9262_v44 = vld [vmem:[%s12352_s3 + $0x758] ss:$12 sps:$4 sm:$0xff]  }
 0x2bc   :  { %8228 = vmatprep.subr.bf16.mxu0 %v9215_v46 }
 0x2be   :  { %5412 = vmatpush1.bf16.msra.mxu1 %v9212_v26  ;;  %v9263_v26 = vld [vmem:[%s12352_s3 + $0x218] ss:$12 sps:$4 sm:$0xff]  }
 0x2bf   :  { %8229 = vmatpush3.bf16.msra.mxu0 %v9216_v48  ;;  %5413 = vmatprep.subr.bf16.mxu1 %v9219_v30 }
 0x2c0   :  { %8258 = vmatprep.subr.bf16.mxu0 %v9220_v42  ;;  %v9264_v42 = vld [vmem:[%s12352_s3 + $0x698] ss:$12 sps:$4 sm:$0xff]  }
 0x2c2   :  { %5471 = vmatmul.mubr.bf16.vlgmr.msra.gmra.mxu0 %v10483_v37  ;;  %5414 = vmatpush2.bf16.msra.mxu1 %v9217_v50  ;;  %v9230_v37 = vld [vmem:[%s12352_s3 + $0x440] ss:$12 sps:$4 sm:$0xff]  }
 0x2c3   :  { %8259 = vmatpush3.bf16.msra.mxu0 %v9221_v51  ;;  %5550 = vmatprep.mubr.bf16.mxu0 %v10489_v47  ;;  %v9231_v47 = vld [vmem:[%s12352_s3 + $0x380] ss:$12 sps:$4 sm:$0xff]  }
 0x2c4   :  { %5415 = vmatprep.subr.bf16.mxu1 %v9224_v54  ;;  %8260 = vmatprep.subr.bf16.mxu0 %v9225_v55 }
 0x2c6   :  { %5416 = vmatpush2.bf16.msra.mxu1 %v9222_v57  ;;  %v9267_v57 = vld [vmem:[%s12352_s3 + $0x200] ss:$12 sps:$4 sm:$0xff]  }
 0x2c7   :  { %8261 = vmatpush3.bf16.msra.mxu0 %v9226_v58  ;;  %5417 = vmatprep.subr.bf16.mxu1 %v9229_v45  ;;  %v9269_v45 = vld [vmem:[%s12352_s3 + $0x2a8] ss:$12 sps:$4 sm:$0xff]  }
 0x2c8   :  { %8262 = vmatprep.subr.bf16.mxu0 %v9230_v37  ;;  %v9270_v37 = vld [vmem:[%s12352_s3 + $0x728] ss:$12 sps:$4 sm:$0xff]  }
 0x2ca   :  { %5418 = vmatpush2.bf16.msra.mxu1 %v9227_v62  ;;  %v9271_v62 = vld [vmem:[%s12352_s3 + $0x1e8] ss:$12 sps:$4 sm:$0xff]  }
 0x2cb   :  { %8263 = vmatpush3.bf16.msra.mxu0 %v9231_v47  ;;  %5419 = vmatprep.subr.bf16.mxu1 %v9234_v63  ;;  %v9272_v47 = vld [vmem:[%s12352_s3 + $0x668] ss:$12 sps:$4 sm:$0xff]   ;;  %v9273_v63 = vld [vmem:[%s12352_s3 + $0x290] ss:$12 sps:$4 sm:$0xff]  }
 0x2cc   :  { %8264 = vmatprep.subr.bf16.mxu0 %v9235_v4  ;;  %v9274_v4 = vld [vmem:[%s12352_s3 + $0x710] ss:$12 sps:$4 sm:$0xff]  }
 0x2ce   :  { %5420 = vmatpush2.bf16.msra.mxu1 %v9232_v5  ;;  %v9275_v5 = vld [vmem:[%s12352_s3 + $0x1d0] ss:$12 sps:$4 sm:$0xff]  }
 0x2cf   :  { %8265 = vmatpush3.bf16.msra.mxu0 %v9236_v53  ;;  %5421 = vmatprep.subr.bf16.mxu1 %v9239_v6  ;;  %v9276_v53 = vld [vmem:[%s12352_s3 + $0x650] ss:$12 sps:$4 sm:$0xff]   ;;  %v9277_v6 = vld [vmem:[%s12352_s3 + $0x278] ss:$12 sps:$4 sm:$0xff]  }
 0x2d0   :  { %8266 = vmatprep.subr.bf16.mxu0 %v9240_v9  ;;  %v9278_v9 = vld [vmem:[%s12352_s3 + $0x6f8] ss:$12 sps:$4 sm:$0xff]  }
 0x2d2   :  { %5422 = vmatpush2.bf16.msra.mxu1 %v9237_v10  ;;  %v9279_v10 = vld [vmem:[%s12352_s3 + $0x1b8] ss:$12 sps:$4 sm:$0xff]  }
 0x2d3   :  { %8267 = vmatpush3.bf16.msra.mxu0 %v9241_v11  ;;  %5423 = vmatprep.subr.bf16.mxu1 %v9244_v13  ;;  %v9280_v11 = vld [vmem:[%s12352_s3 + $0x638] ss:$12 sps:$4 sm:$0xff]   ;;  %v9281_v13 = vld [vmem:[%s12352_s3 + $0x260] ss:$12 sps:$4 sm:$0xff]  }
 0x2d4   :  { %8268 = vmatprep.subr.bf16.mxu0 %v9245_v15  ;;  %v9282_v15 = vld [vmem:[%s12352_s3 + $0x6e0] ss:$12 sps:$4 sm:$0xff]  }
 0x2d6   :  { %5424 = vmatpush2.bf16.msra.mxu1 %v9242_v17  ;;  %v9283_v17 = vld [vmem:[%s12352_s3 + $0x1a0] ss:$12 sps:$4 sm:$0xff]  }
 0x2d7   :  { %8269 = vmatpush3.bf16.msra.mxu0 %v9246_v19  ;;  %5425 = vmatprep.subr.bf16.mxu1 %v9249_v40  ;;  %v9284_v19 = vld [vmem:[%s12352_s3 + $0x620] ss:$12 sps:$4 sm:$0xff]   ;;  %v9285_v40 = vld [vmem:[%s12352_s3 + $0x248] ss:$12 sps:$4 sm:$0xff]  }
 0x2d8   :  { %8270 = vmatprep.subr.bf16.mxu0 %v9250_v22  ;;  %v9286_v22 = vld [vmem:[%s12352_s3 + $0x6c8] ss:$12 sps:$4 sm:$0xff]  }
 0x2da   :  { %5426 = vmatpush2.bf16.msra.mxu1 %v9247_v23  ;;  %v9287_v23 = vld [vmem:[%s12352_s3 + $0x188] ss:$12 sps:$4 sm:$0xff]  }
 0x2db   :  { %8271 = vmatpush3.bf16.msra.mxu0 %v9251_v24  ;;  %5427 = vmatprep.subr.bf16.mxu1 %v9254_v25  ;;  %v9288_v24 = vld [vmem:[%s12352_s3 + $0x608] ss:$12 sps:$4 sm:$0xff]   ;;  %v9289_v25 = vld [vmem:[%s12352_s3 + $0x5f0] ss:$12 sps:$4 sm:$0xff]  }
 0x2dc   :  { %8272 = vmatprep.subr.bf16.mxu0 %v9255_v28  ;;  %v9290_v28 = vld [vmem:[%s12352_s3 + $0xa70] ss:$12 sps:$4 sm:$0xff]  }
 0x2de   :  { %5428 = vmatpush2.bf16.msra.mxu1 %v9252_v29  ;;  %v9291_v29 = vld [vmem:[%s12352_s3 + $0x530] ss:$12 sps:$4 sm:$0xff]  }
 0x2df   :  { %8273 = vmatpush3.bf16.msra.mxu0 %v9256_v16  ;;  %8236 = vmatprep.subr.bf16.mxu1 %v9257_v31  ;;  %v9292_v16 = vld [vmem:[%s12352_s3 + $0x9b0] ss:$12 sps:$4 sm:$0xff]   ;;  %v9293_v31 = vld [vmem:[%s12352_s3 + $0x5d8] ss:$12 sps:$4 sm:$0xff]  }
 0x2e0   :  { %8302 = vmatprep.subr.bf16.mxu0 %v9258_v33  ;;  %v9295_v33 = vld [vmem:[%s12352_s3 + $0x518] ss:$12 sps:$4 sm:$0xff]  }
 0x2e1   :  { %v5185_v39 = vpop.f32.mrf.mxu1  ;;  %v5226_v43 = vpop.f32.mrf.mxu0  ;;  %5430 = vmatmul.mubr.bf16.vlgmr.msra.gmra.mxu1 %v11307_v35 }
 0x2e2   :  { %v5186_v46 = vadd.f32 %v5185_v39, %v11126_v8  ;;  %5551 = vmatmul.mubr.bf16.vlgmr.msra.gmra.mxu0 %v10695_v0  ;;  %8237 = vmatpush3.bf16.msra.mxu1 %v9259_v34  ;;  %v9265_v8 = vld [vmem:[%s12352_s3 + $0x2c0] ss:$12 sps:$4 sm:$0xff]   ;;  %v9296_v34 = vld [vmem:[%s12352_s3 + $0x998] ss:$12 sps:$4 sm:$0xff]   ;;  %v9303_v39 = vld [vmem:[%s12352_s3 + $0x4e8] ss:$12 sps:$4 sm:$0xff]  }
 0x2e3   :  { %5510 = vmatprep.mubr.bf16.mxu1 %v10478_v41  ;;  %8303 = vmatpush3.bf16.msra.mxu0 %v9260_v18  ;;  %v5187_v48 = vpop.f32.mrf.mxu1  ;;  %v5228_v30 = vpop.f32.mrf.mxu0  ;;  %v9266_v41 = vld [vmem:[%s12352_s3 + $0x740] ss:$12 sps:$4 sm:$0xff]  }
 0x2e4   :  { %v11331_v50 = vadd.f32 %v5226_v43, %v5186_v46  ;;  %5630 = vmatprep.mubr.bf16.mxu0 %v10699_v2  ;;  %v5188_v0 = vadd.f32 %v5187_v48, %v11132_v14  ;;  %8238 = vmatprep.subr.bf16.mxu1 %v9261_v38  ;;  %v9268_v14 = vld [vmem:[%s12352_s3 + $0x680] ss:$12 sps:$4 sm:$0xff]   ;;  %v9302_v38 = vld [vmem:[%s12352_s3 + $0xa28] ss:$12 sps:$4 sm:$0xff]   ;;  %v9306_v46 = vld [vmem:[%s12352_s3 + $0xa10] ss:$12 sps:$4 sm:$0xff]  }
 0x2e5   :  { %v5189_v51 = vpop.f32.mrf.mxu1  ;;  %v5230_v54 = vpop.f32.mrf.mxu0  ;;  %8304 = vmatprep.subr.bf16.mxu0 %v9262_v44  ;;  %v9300_v18 = vld [vmem:[%s12352_s3 + $0x980] ss:$12 sps:$4 sm:$0xff]   ;;  %v9304_v43 = vld [vmem:[%s12352_s3 + $0x968] ss:$12 sps:$4 sm:$0xff]   ;;  %v9305_v44 = vld [vmem:[%s12352_s3 + $0x590] ss:$12 sps:$4 sm:$0xff]  }
 0x2e6   :  { %v11338_v55 = vadd.f32 %v5228_v30, %v5188_v0  ;;  %8239 = vmatpush3.bf16.msra.mxu1 %v9263_v26  ;;  %v9307_v26 = vld [vmem:[%s12352_s3 + $0x4d0] ss:$12 sps:$4 sm:$0xff]   ;;  %v9309_v30 = vld [vmem:[%s12352_s3 + $0x578] ss:$12 sps:$4 sm:$0xff]   ;;  %v9314_v51 = vld [vmem:[%s12352_s3 + $0x9e0] ss:$12 sps:$4 sm:$0xff]  }
 0x2e7   :  { %8305 = vmatpush3.bf16.msra.mxu0 %v9264_v42  ;;  %v5190_v58 = vpop.f32.mrf.mxu1  ;;  %v5231_v2 = vpop.f32.mrf.mxu0  ;;  %8240 = vmatprep.subr.bf16.mxu1 %v9265_v8  ;;  %v9308_v48 = vld [vmem:[%s12352_s3 + $0x950] ss:$12 sps:$4 sm:$0xff]   ;;  %v9310_v42 = vld [vmem:[%s12352_s3 + $0x9f8] ss:$12 sps:$4 sm:$0xff]   ;;  %v9315_v54 = vld [vmem:[%s12352_s3 + $0x4a0] ss:$12 sps:$4 sm:$0xff]  }
 0x2e8   :  { %8306 = vmatprep.subr.bf16.mxu0 %v9266_v41  ;;  %v9311_v8 = vld [vmem:[%s12352_s3 + $0x4b8] ss:$12 sps:$4 sm:$0xff]   ;;  %v9313_v41 = vld [vmem:[%s12352_s3 + $0x560] ss:$12 sps:$4 sm:$0xff]   ;;  %v9317_v58 = vld [vmem:[%s12352_s3 + $0x548] ss:$12 sps:$4 sm:$0xff]  }
 0x2e9   :  { %v9312_v0 = vld [vmem:[%s12352_s3 + $0x938] ss:$12 sps:$4 sm:$0xff]   ;;  %v9318_v2 = vld [vmem:[%s12352_s3 + $0x9c8] ss:$12 sps:$4 sm:$0xff]  }
 0x2ea   :  { %8241 = vmatpush3.bf16.msra.mxu1 %v9267_v57  ;;  %v9316_v57 = vld [vmem:[%s12352_s3 + $0x920] ss:$12 sps:$4 sm:$0xff]  }
 0x2eb   :  { %8307 = vmatpush3.bf16.msra.mxu0 %v9268_v14  ;;  %8242 = vmatprep.subr.bf16.mxu1 %v9269_v45  ;;  %v9319_v14 = vld [vmem:[%s12352_s3 + $0x488] ss:$12 sps:$4 sm:$0xff]  }
 0x2ec   :  { %8308 = vmatprep.subr.bf16.mxu0 %v9270_v37  ;;  %v9320_v45 = vld [vmem:[%s12352_s3 + $0x908] ss:$12 sps:$4 sm:$0xff]   ;;  %v9321_v37 = vld [vmem:[%s12352_s3 + $0x8f0] ss:$12 sps:$4 sm:$0xff]  }
 0x2ee   :  { %8243 = vmatpush3.bf16.msra.mxu1 %v9271_v62  ;;  %v9322_v62 = vld [vmem:[%s12352_s3 + $0xd70] ss:$12 sps:$4 sm:$0xff]  }
 0x2ef   :  { %8309 = vmatpush3.bf16.msra.mxu0 %v9272_v47  ;;  %8244 = vmatprep.subr.bf16.mxu1 %v9273_v63  ;;  %v9323_v47 = vld [vmem:[%s12352_s3 + $0x830] ss:$12 sps:$4 sm:$0xff]  }
 0x2f0   :  { %8310 = vmatprep.subr.bf16.mxu0 %v9274_v4  ;;  %v9324_v63 = vld [vmem:[%s12352_s3 + $0xcb0] ss:$12 sps:$4 sm:$0xff]   ;;  %v9325_v4 = vld [vmem:[%s12352_s3 + $0x8d8] ss:$12 sps:$4 sm:$0xff]  }
 0x2f2   :  { %8245 = vmatpush3.bf16.msra.mxu1 %v9275_v5 }
 0x2f3   :  { %8311 = vmatpush3.bf16.msra.mxu0 %v9276_v53  ;;  %8246 = vmatprep.subr.bf16.mxu1 %v9277_v6  ;;  %v9326_v53 = vld [vmem:[%s12352_s3 + $0xd58] ss:$12 sps:$4 sm:$0xff]  }
 0x2f4   :  { %8312 = vmatprep.subr.bf16.mxu0 %v9278_v9 }
 0x2f6   :  { %8247 = vmatpush3.bf16.msra.mxu1 %v9279_v10  ;;  %v9327_v10 = vld [vmem:[%s12352_s3 + $0x818] ss:$12 sps:$4 sm:$0xff]  }
 0x2f7   :  { %8313 = vmatpush3.bf16.msra.mxu0 %v9280_v11  ;;  %8248 = vmatprep.subr.bf16.mxu1 %v9281_v13 }
 0x2f8   :  { %8314 = vmatprep.subr.bf16.mxu0 %v9282_v15 }
 0x2fa   :  { %8249 = vmatpush3.bf16.msra.mxu1 %v9283_v17 }
 0x2fb   :  { %8315 = vmatpush3.bf16.msra.mxu0 %v9284_v19  ;;  %8250 = vmatprep.subr.bf16.mxu1 %v9285_v40 }
 0x2fc   :  { %8316 = vmatprep.subr.bf16.mxu0 %v9286_v22  ;;  %v9331_v22 = vld [vmem:[%s12352_s3 + $0x800] ss:$12 sps:$4 sm:$0xff]  }
 0x2fe   :  { %8251 = vmatpush3.bf16.msra.mxu1 %v9287_v23  ;;  %v9333_v23 = vld [vmem:[%s12352_s3 + $0x8a8] ss:$12 sps:$4 sm:$0xff]  }
 0x2ff   :  { %8317 = vmatpush3.bf16.msra.mxu0 %v9288_v24  ;;  %8280 = vmatprep.subr.bf16.mxu1 %v9289_v25  ;;  %v9334_v25 = vld [vmem:[%s12352_s3 + $0xd28] ss:$12 sps:$4 sm:$0xff]  }
 0x300   :  { %8346 = vmatprep.subr.bf16.mxu0 %v9290_v28  ;;  %v9335_v28 = vld [vmem:[%s12352_s3 + $0x7e8] ss:$12 sps:$4 sm:$0xff]  }
 0x301   :  { %5511 = vmatmul.mubr.bf16.vlgmr.msra.gmra.mxu1 %v10485_v20  ;;  %v9297_v20 = vld [vmem:[%s12352_s3 + $0x5c0] ss:$12 sps:$4 sm:$0xff]  }
 0x302   :  { %5631 = vmatmul.mubr.bf16.vlgmr.msra.gmra.mxu0 %v10890_v21  ;;  %8281 = vmatpush3.bf16.msra.mxu1 %v9291_v29  ;;  %v9298_v21 = vld [vmem:[%s12352_s3 + $0xa40] ss:$12 sps:$4 sm:$0xff]   ;;  %v9336_v29 = vld [vmem:[%s12352_s3 + $0xc68] ss:$12 sps:$4 sm:$0xff]  }
 0x303   :  { %5590 = vmatprep.mubr.bf16.mxu1 %v10499_v49  ;;  %8347 = vmatpush3.bf16.msra.mxu0 %v9292_v16  ;;  %v9299_v49 = vld [vmem:[%s12352_s3 + $0x500] ss:$12 sps:$4 sm:$0xff]   ;;  %v9337_v16 = vld [vmem:[%s12352_s3 + $0x890] ss:$12 sps:$4 sm:$0xff]  }
 0x304   :  { %5710 = vmatprep.mubr.bf16.mxu0 %v10901_v12  ;;  %8282 = vmatprep.subr.bf16.mxu1 %v9293_v31  ;;  %v9301_v12 = vld [vmem:[%s12352_s3 + $0x5a8] ss:$12 sps:$4 sm:$0xff]   ;;  %v9338_v31 = vld [vmem:[%s12352_s3 + $0xd10] ss:$12 sps:$4 sm:$0xff]  }
 0x305   :  { %8348 = vmatprep.subr.bf16.mxu0 %v9294_v32  ;;  %v9339_v32 = vld [vmem:[%s12352_s3 + $0x7d0] ss:$12 sps:$4 sm:$0xff]  }
 0x306   :  { %8283 = vmatpush3.bf16.msra.mxu1 %v9295_v33  ;;  %v9340_v33 = vld [vmem:[%s12352_s3 + $0xc50] ss:$12 sps:$4 sm:$0xff]  }
 0x307   :  { %8349 = vmatpush3.bf16.msra.mxu0 %v9296_v34  ;;  %8284 = vmatprep.subr.bf16.mxu1 %v9297_v20  ;;  %v9341_v34 = vld [vmem:[%s12352_s3 + $0x878] ss:$12 sps:$4 sm:$0xff]  }
 0x308   :  { %8350 = vmatprep.subr.bf16.mxu0 %v9298_v21  ;;  %v9342_v20 = vld [vmem:[%s12352_s3 + $0xcf8] ss:$12 sps:$4 sm:$0xff]  }
 0x309   :  { %v9343_v21 = vld [vmem:[%s12352_s3 + $0x7b8] ss:$12 sps:$4 sm:$0xff]  }
 0x30a   :  { %8285 = vmatpush3.bf16.msra.mxu1 %v9299_v49  ;;  %v9344_v49 = vld [vmem:[%s12352_s3 + $0xc38] ss:$12 sps:$4 sm:$0xff]  }
 0x30b   :  { %8351 = vmatpush3.bf16.msra.mxu0 %v9300_v18  ;;  %8286 = vmatprep.subr.bf16.mxu1 %v9301_v12  ;;  %v9345_v18 = vld [vmem:[%s12352_s3 + $0x860] ss:$12 sps:$4 sm:$0xff]  }
 0x30c   :  { %8352 = vmatprep.subr.bf16.mxu0 %v9302_v38  ;;  %v9346_v12 = vld [vmem:[%s12352_s3 + $0xce0] ss:$12 sps:$4 sm:$0xff]  }
 0x30d   :  { %v9347_v38 = vld [vmem:[%s12352_s3 + $0x7a0] ss:$12 sps:$4 sm:$0xff]  }
 0x30e   :  { %8287 = vmatpush3.bf16.msra.mxu1 %v9303_v39  ;;  %v9348_v39 = vld [vmem:[%s12352_s3 + $0xc20] ss:$12 sps:$4 sm:$0xff]  }
 0x30f   :  { %8353 = vmatpush3.bf16.msra.mxu0 %v9304_v43  ;;  %8288 = vmatprep.subr.bf16.mxu1 %v9305_v44  ;;  %v9349_v43 = vld [vmem:[%s12352_s3 + $0x848] ss:$12 sps:$4 sm:$0xff]  }
 0x310   :  { %8354 = vmatprep.subr.bf16.mxu0 %v9306_v46  ;;  %v9350_v44 = vld [vmem:[%s12352_s3 + $0xcc8] ss:$12 sps:$4 sm:$0xff]  }
 0x311   :  { %v9351_v46 = vld [vmem:[%s12352_s3 + $0x788] ss:$12 sps:$4 sm:$0xff]  }
 0x312   :  { %8289 = vmatpush3.bf16.msra.mxu1 %v9307_v26  ;;  %v9352_v26 = vld [vmem:[%s12352_s3 + $0xc08] ss:$12 sps:$4 sm:$0xff]  }
 0x313   :  { %8355 = vmatpush3.bf16.msra.mxu0 %v9308_v48  ;;  %8290 = vmatprep.subr.bf16.mxu1 %v9309_v30  ;;  %v9353_v48 = vld [vmem:[%s12352_s3 + $0xbf0] ss:$12 sps:$4 sm:$0xff]  }
 0x314   :  { %8356 = vmatprep.subr.bf16.mxu0 %v9310_v42  ;;  %v9354_v30 = vld [vmem:[%s12352_s3 + $0xb30] ss:$12 sps:$4 sm:$0xff]   ;;  %v9355_v42 = vld [vmem:[%s12352_s3 + $0xbd8] ss:$12 sps:$4 sm:$0xff]  }
 0x316   :  { %8291 = vmatpush3.bf16.msra.mxu1 %v9311_v8  ;;  %v9356_v8 = vld [vmem:[%s12352_s3 + $0xb18] ss:$12 sps:$4 sm:$0xff]  }
 0x317   :  { %8357 = vmatpush3.bf16.msra.mxu0 %v9312_v0  ;;  %8292 = vmatprep.subr.bf16.mxu1 %v9313_v41  ;;  %v9357_v0 = vld [vmem:[%s12352_s3 + $0xbc0] ss:$12 sps:$4 sm:$0xff]  }
 0x318   :  { %8358 = vmatprep.subr.bf16.mxu0 %v9314_v51  ;;  %v9358_v41 = vld [vmem:[%s12352_s3 + $0xb00] ss:$12 sps:$4 sm:$0xff]   ;;  %v9362_v51 = vld [vmem:[%s12352_s3 + $0xad0] ss:$12 sps:$4 sm:$0xff]  }
 0x31a   :  { %8293 = vmatpush3.bf16.msra.mxu1 %v9315_v54  ;;  %v9363_v54 = vld [vmem:[%s12352_s3 + $0xb78] ss:$12 sps:$4 sm:$0xff]  }
 0x31b   :  { %8359 = vmatpush3.bf16.msra.mxu0 %v9316_v57  ;;  %8294 = vmatprep.subr.bf16.mxu1 %v9317_v58  ;;  %v9364_v57 = vld [vmem:[%s12352_s3 + $0xab8] ss:$12 sps:$4 sm:$0xff]   ;;  %v9365_v58 = vld [vmem:[%s12352_s3 + $0xb60] ss:$12 sps:$4 sm:$0xff]  }
 0x31c   :  { %8360 = vmatprep.subr.bf16.mxu0 %v9318_v2  ;;  %v9366_v2 = vld [vmem:[%s12352_s3 + $0xaa0] ss:$12 sps:$4 sm:$0xff]  }
 0x31e   :  { %8295 = vmatpush3.bf16.msra.mxu1 %v9319_v14  ;;  %v9367_v14 = vld [vmem:[%s12352_s3 + $0xb48] ss:$12 sps:$4 sm:$0xff]  }
 0x31f   :  { %8361 = vmatpush3.bf16.msra.mxu0 %v9320_v45  ;;  %8324 = vmatprep.subr.bf16.mxu1 %v9321_v37  ;;  %v5860_v45 = vld [vmem:[%s12354_s5 + $0x1c0] sm:$0xff] }
 0x320   :  { %8390 = vmatprep.subr.bf16.mxu0 %v9322_v62  ;;  %v5864_v37 = vld [vmem:[%s12354_s5 + $0x1e0] sm:$0xff]  ;;  %v9368_v62 = vld [vmem:[%s12352_s3 + $0xa88] ss:$12 sps:$4 sm:$0xff]  }
 0x321   :  { %v5267_v5 = vpop.f32.mrf.mxu1  ;;  %5591 = vmatmul.mubr.bf16.vlgmr.msra.gmra.mxu1 %v10697_v1  ;;  %v9328_v1 = vld [vmem:[%s12352_s3 + $0xc98] ss:$12 sps:$4 sm:$0xff]  }
 0x322   :  { %v5268_v6 = vadd.f32 %v5267_v5, %v11331_v50  ;;  %v5308_v9 = vpop.f32.mrf.mxu0  ;;  %5711 = vmatmul.mubr.bf16.vlgmr.msra.gmra.mxu0 %v11098_v36  ;;  %8325 = vmatpush3.bf16.msra.mxu1 %v9323_v47  ;;  %v9329_v50 = vld [vmem:[%s12352_s3 + $0x8c0] ss:$12 sps:$4 sm:$0xff]   ;;  %v8079_v47 = vcombine.high %v5860_v45, %v5864_v37  ;;  %v8078_v5 = vcombine.low %v5860_v45, %v5864_v37 }
 0x323   :  { %5670 = vmatprep.mubr.bf16.mxu1 %v10703_v3  ;;  %8391 = vmatpush3.bf16.msra.mxu0 %v9324_v63  ;;  %v5269_v11 = vpop.f32.mrf.mxu1  ;;  %v9330_v3 = vld [vmem:[%s12352_s3 + $0xd40] ss:$12 sps:$4 sm:$0xff]  }
 0x324   :  { %v11537_v13 = vadd.f32 %v5308_v9, %v5268_v6  ;;  %5790 = vmatprep.mubr.bf16.mxu0 %v11110_v60  ;;  %v5270_v36 = vadd.f32 %v5269_v11, %v11338_v55  ;;  %v5310_v15 = vpop.f32.mrf.mxu0  ;;  %8326 = vmatprep.subr.bf16.mxu1 %v9325_v4  ;;  %v9332_v55 = vld [vmem:[%s12352_s3 + $0xc80] ss:$12 sps:$4 sm:$0xff]  }
 0x325   :  { %v5271_v17 = vpop.f32.mrf.mxu1  ;;  %8392 = vmatprep.subr.bf16.mxu0 %v9326_v53  ;;  %v5852_v63 = vld [vmem:[%s12354_s5 + $0x180] sm:$0xff] }
 0x326   :  { %v11544_v19 = vadd.f32 %v5310_v15, %v5270_v36  ;;  %v5312_v40 = vpop.f32.mrf.mxu0  ;;  %8327 = vmatpush3.bf16.msra.mxu1 %v9327_v10  ;;  %v5856_v4 = vld [vmem:[%s12354_s5 + $0x1a0] sm:$0xff] }
 0x327   :  { %8393 = vmatpush3.bf16.msra.mxu0 %v9328_v1  ;;  %v5272_v60 = vpop.f32.mrf.mxu1  ;;  %8328 = vmatprep.subr.bf16.mxu1 %v9329_v50  ;;  %v8071_v53 = vcombine.high %v5852_v63, %v5856_v4  ;;  %v5844_v6 = vld [vmem:[%s12354_s5 + $0x140] sm:$0xff]  ;;  %v8070_v50 = vcombine.low %v5852_v63, %v5856_v4 }
 0x328   :  { %v5313_v24 = vpop.f32.mrf.mxu0  ;;  %8394 = vmatprep.subr.bf16.mxu0 %v9330_v3  ;;  %v5848_v9 = vld [vmem:[%s12354_s5 + $0x160] sm:$0xff] }
 0x329   :  { %v8063_v15 = vcombine.high %v5844_v6, %v5848_v9  ;;  %v5836_v40 = vld [vmem:[%s12354_s5 + $0x100] sm:$0xff]  ;;  %v8062_v60 = vcombine.low %v5844_v6, %v5848_v9 }
 0x32a   :  { %8329 = vmatpush3.bf16.msra.mxu1 %v9331_v22  ;;  %v5896_v63 = vld [vmem:[%s12354_s5 + $0x2e0] sm:$0xff] }
 0x32b   :  { %8395 = vmatpush3.bf16.msra.mxu0 %v9332_v55  ;;  %8330 = vmatprep.subr.bf16.mxu1 %v9333_v23  ;;  %v5988_v4 = vld [vmem:[%s12354_s5 + $0x5c0] sm:$0xff] }
 0x32c   :  { %8396 = vmatprep.subr.bf16.mxu0 %v9334_v25  ;;  %v5828_v25 = vld [vmem:[%s12354_s5 + $0xc0] sm:$0xff] }
 0x32d   :  { %v5980_v9 = vld [vmem:[%s12354_s5 + $0x580] sm:$0xff] }
 0x32e   :  { %8331 = vmatpush3.bf16.msra.mxu1 %v9335_v28  ;;  %v5832_v28 = vld [vmem:[%s12354_s5 + $0xe0] sm:$0xff] }
 0x32f   :  { %8397 = vmatpush3.bf16.msra.mxu0 %v9336_v29  ;;  %8332 = vmatprep.subr.bf16.mxu1 %v9337_v16  ;;  %v8047_v16 = vcombine.high %v5828_v25, %v5832_v28 }
 0x330   :  { %8398 = vmatprep.subr.bf16.mxu0 %v9338_v31  ;;  %v5820_v31 = vld [vmem:[%s12354_s5 + $0x80] sm:$0xff] }
 0x332   :  { %8333 = vmatpush3.bf16.msra.mxu1 %v9339_v32  ;;  %v5824_v32 = vld [vmem:[%s12354_s5 + $0xa0] sm:$0xff] }
 0x333   :  { %8399 = vmatpush3.bf16.msra.mxu0 %v9340_v33  ;;  %8334 = vmatprep.subr.bf16.mxu1 %v9341_v34  ;;  %v8046_v33 = vcombine.low %v5828_v25, %v5832_v28  ;;  %v8039_v34 = vcombine.high %v5820_v31, %v5824_v32  ;;  %v5876_v28 = vld [vmem:[%s12354_s5 + $0x240] sm:$0xff] }
 0x334   :  { %8400 = vmatprep.subr.bf16.mxu0 %v9342_v20  ;;  %v5812_v20 = vld [vmem:[%s12354_s5 + $0x40] sm:$0xff] }
 0x336   :  { %8335 = vmatpush3.bf16.msra.mxu1 %v9343_v21  ;;  %v5816_v21 = vld [vmem:[%s12354_s5 + $0x60] sm:$0xff] }
 0x337   :  { %8401 = vmatpush3.bf16.msra.mxu0 %v9344_v49  ;;  %8336 = vmatprep.subr.bf16.mxu1 %v9345_v18  ;;  %v8038_v49 = vcombine.low %v5820_v31, %v5824_v32  ;;  %v8031_v18 = vcombine.high %v5812_v20, %v5816_v21 }
 0x338   :  { %8402 = vmatprep.subr.bf16.mxu0 %v9346_v12  ;;  %v5804_v12 = vld [vmem:[%s12354_s5] sm:$0xff] }
 0x33a   :  { %8337 = vmatpush3.bf16.msra.mxu1 %v9347_v38  ;;  %v5808_v38 = vld [vmem:[%s12354_s5 + $0x20] sm:$0xff] }
 0x33b   :  { %8403 = vmatpush3.bf16.msra.mxu0 %v9348_v39  ;;  %8338 = vmatprep.subr.bf16.mxu1 %v9349_v43  ;;  %v8030_v39 = vcombine.low %v5812_v20, %v5816_v21  ;;  %v8023_v43 = vcombine.high %v5804_v12, %v5808_v38  ;;  %v5868_v21 = vld [vmem:[%s12354_s5 + $0x200] sm:$0xff] }
 0x33c   :  { %8404 = vmatprep.subr.bf16.mxu0 %v9350_v44  ;;  %v5924_v44 = vld [vmem:[%s12354_s5 + $0x3c0] sm:$0xff] }
 0x33e   :  { %8339 = vmatpush3.bf16.msra.mxu1 %v9351_v46  ;;  %v5928_v46 = vld [vmem:[%s12354_s5 + $0x3e0] sm:$0xff] }
 0x33f   :  { %8405 = vmatpush3.bf16.msra.mxu0 %v9352_v26  ;;  %8368 = vmatprep.subr.bf16.mxu1 %v9353_v48  ;;  %v8022_v26 = vcombine.low %v5804_v12, %v5808_v38  ;;  %v8143_v48 = vcombine.high %v5924_v44, %v5928_v46 }
 0x341   :  { %5671 = vmatmul.mubr.bf16.vlgmr.msra.gmra.mxu1 %v10895_v7  ;;  %v9359_v7 = vld [vmem:[%s12352_s3 + $0xba8] ss:$12 sps:$4 sm:$0xff]  }
 0x342   :  { %5791 = vmatmul.mubr.bf16.vlgmr.msra.gmra.mxu0 %v11307_v35  ;;  %8369 = vmatpush3.bf16.msra.mxu1 %v9354_v30  ;;  %v9361_v35 = vld [vmem:[%s12352_s3 + $0xb90] ss:$12 sps:$4 sm:$0xff]   ;;  %v5916_v30 = vld [vmem:[%s12354_s5 + $0x380] sm:$0xff] }
 0x343   :  { %5750 = vmatprep.mubr.bf16.mxu1 %v10907_v27  ;;  %8370 = vmatprep.subr.bf16.mxu1 %v9355_v42  ;;  %v9360_v27 = vld [vmem:[%s12352_s3 + $0xae8] ss:$12 sps:$4 sm:$0xff]   ;;  %v5920_v42 = vld [vmem:[%s12354_s5 + $0x3a0] sm:$0xff] }
 0x346   :  { %8371 = vmatpush3.bf16.msra.mxu1 %v9356_v8  ;;  %v8142_v8 = vcombine.low %v5924_v44, %v5928_v46  ;;  %v5993_v44 = vld [vmem:[%s12354_s5 + $0x5e8] sm:$0xff] }
 0x347   :  { %8372 = vmatprep.subr.bf16.mxu1 %v9357_v0  ;;  %v8135_v0 = vcombine.high %v5916_v30, %v5920_v42 }
 0x34a   :  { %8373 = vmatpush3.bf16.msra.mxu1 %v9358_v41  ;;  %v5908_v41 = vld [vmem:[%s12354_s5 + $0x340] sm:$0xff] }
 0x34b   :  { %8374 = vmatprep.subr.bf16.mxu1 %v9359_v7  ;;  %v5912_v7 = vld [vmem:[%s12354_s5 + $0x360] sm:$0xff] }
 0x34c   :  { %v8126_v45 = vcombine.low %v5908_v41, %v5912_v7 }
 0x34e   :  { %8375 = vmatpush3.bf16.msra.mxu1 %v9360_v27 }
 0x34f   :  { %8376 = vmatprep.subr.bf16.mxu1 %v9361_v35  ;;  %v8134_v35 = vcombine.low %v5916_v30, %v5920_v42  ;;  %v5948_v42 = vld [vmem:[%s12354_s5 + $0x480] sm:$0xff] }
 0x352   :  { %8377 = vmatpush3.bf16.msra.mxu1 %v9362_v51  ;;  %v8127_v51 = vcombine.high %v5908_v41, %v5912_v7 }
 0x353   :  { %8378 = vmatprep.subr.bf16.mxu1 %v9363_v54 }
 0x356   :  { %8379 = vmatpush3.bf16.msra.mxu1 %v9364_v57  ;;  %v5900_v57 = vld [vmem:[%s12354_s5 + $0x300] sm:$0xff] }
 0x357   :  { %8380 = vmatprep.subr.bf16.mxu1 %v9365_v58  ;;  %v5904_v58 = vld [vmem:[%s12354_s5 + $0x320] sm:$0xff] }
 0x358   :  { %v8119_v37 = vcombine.high %v5900_v57, %v5904_v58 }
 0x35a   :  { %8381 = vmatpush3.bf16.msra.mxu1 %v9366_v2 }
 0x35b   :  { %8382 = vmatprep.subr.bf16.mxu1 %v9367_v14 }
 0x35e   :  { %8383 = vmatpush3.bf16.msra.mxu1 %v9368_v62  ;;  %v5892_v62 = vld [vmem:[%s12354_s5 + $0x2c0] sm:$0xff] }
 0x35f   :  { %6998 = vmatprep.subr.bf16.mxu1 %v8079_v47 }
 0x361   :  { %v5349_v10 = vpop.f32.mrf.mxu1  ;;  %5751 = vmatmul.mubr.bf16.vlgmr.msra.gmra.mxu1 %v11103_v52  ;;  %v5840_v52 = vld [vmem:[%s12354_s5 + $0x120] sm:$0xff] }
 0x362   :  { %v5350_v11 = vadd.f32 %v5349_v10, %v11537_v13  ;;  %v5390_v1 = vpop.f32.mrf.mxu0  ;;  %6999 = vmatpush1.bf16.msra.mxu1 %v8078_v5  ;;  %v8055_v23 = vcombine.high %v5836_v40, %v5840_v52  ;;  %v8054_v29 = vcombine.low %v5836_v40, %v5840_v52  ;;  %v5992_v5 = vld [vmem:[%s12354_s5 + $0x5e0] sm:$0xff] }
 0x363   :  { %v11683_v36 = vpop.f32.mrf.mxu1  ;;  %7000 = vmatprep.subr.bf16.mxu1 %v8071_v53  ;;  %v8206_v53 = vcombine.low %v5988_v4, %v5992_v5  ;;  %v8207_v6 = vcombine.high %v5988_v4, %v5992_v5  ;;  %v5984_v10 = vld [vmem:[%s12354_s5 + $0x5a0] sm:$0xff] }
 0x364   :  { %v11685_v3 = vadd.f32 %v5390_v1, %v5350_v11  ;;  %v11687_v17 = vpop.f32.mrf.mxu0  ;;  %v8118_v11 = vcombine.low %v5900_v57, %v5904_v58  ;;  %v8199_v1 = vcombine.high %v5980_v9, %v5984_v10  ;;  %v5976_v40 = vld [vmem:[%s12354_s5 + $0x560] sm:$0xff]  ;;  %v5352_v30 = vadd.f32 %v11683_v36, %v11544_v19 }
 0x365   :  { %v5353_v13 = vpop.f32.mrf.mxu1  ;;  %7039 = vmatprep.subr.bf16.mxu0 %v8207_v6  ;;  %v5884_v52 = vld [vmem:[%s12354_s5 + $0x280] sm:$0xff] }
 0x366   :  { %v5394_v22 = vpop.f32.mrf.mxu0  ;;  %7001 = vmatpush1.bf16.msra.mxu1 %v8070_v50  ;;  %v5972_v50 = vld [vmem:[%s12354_s5 + $0x540] sm:$0xff]  ;;  %7040 = vmatpush1.bf16.msra.mxu0 %v8206_v53 }
 0x367   :  { %v5354_v55 = vpop.f32.mrf.mxu1  ;;  %7002 = vmatprep.subr.bf16.mxu1 %v8063_v15  ;;  %v8111_v15 = vcombine.high %v5892_v62, %v5896_v63  ;;  %v5888_v13 = vld [vmem:[%s12354_s5 + $0x2a0] sm:$0xff]  ;;  %v8198_v22 = vcombine.low %v5980_v9, %v5984_v10  ;;  %7041 = vmatprep.subr.bf16.mxu0 %v8199_v1 }
 0x368   :  { %v5395_v24 = vpop.f32.mrf.mxu0  ;;  %v8110_v55 = vcombine.low %v5892_v62, %v5896_v63  ;;  %v8103_v25 = vcombine.high %v5884_v52, %v5888_v13  ;;  %v8102_v32 = vcombine.low %v5884_v52, %v5888_v13  ;;  %v5940_v57 = vld [vmem:[%s12354_s5 + $0x440] sm:$0xff]  ;;  %v5985_v63 = vld [vmem:[%s12354_s5 + $0x5a8] sm:$0xff] }
 0x369   :  { %v5968_v24 = vld [vmem:[%s12354_s5 + $0x520] sm:$0xff]  ;;  %v5977_v52 = vld [vmem:[%s12354_s5 + $0x568] sm:$0xff] }
 0x36a   :  { %7003 = vmatpush1.bf16.msra.mxu1 %v8062_v60  ;;  %v8191_v60 = vcombine.high %v5972_v50, %v5976_v40  ;;  %7042 = vmatpush1.bf16.msra.mxu0 %v8198_v22  ;;  %v5944_v58 = vld [vmem:[%s12354_s5 + $0x460] sm:$0xff] }
 0x36b   :  { %7004 = vmatprep.subr.bf16.mxu1 %v8055_v23  ;;  %v5964_v23 = vld [vmem:[%s12354_s5 + $0x500] sm:$0xff]  ;;  %v8158_v4 = vcombine.low %v5940_v57, %v5944_v58 }
 0x36c   :  { %7043 = vmatprep.subr.bf16.mxu0 %v8191_v60  ;;  %v8183_v31 = vcombine.high %v5964_v23, %v5968_v24  ;;  %v5932_v10 = vld [vmem:[%s12354_s5 + $0x400] sm:$0xff]  ;;  %v11850_v60 = vld [vmem:[%s12354_s5 + $0x1c8] sm:$0xff] }
 0x36e   :  { %7005 = vmatpush1.bf16.msra.mxu1 %v8054_v29  ;;  %v5880_v29 = vld [vmem:[%s12354_s5 + $0x260] sm:$0xff] }
 0x36f   :  { %7006 = vmatprep.subr.bf16.mxu1 %v8047_v16  ;;  %v8190_v16 = vcombine.low %v5972_v50, %v5976_v40  ;;  %v8095_v20 = vcombine.high %v5876_v28, %v5880_v29  ;;  %v8094_v38 = vcombine.low %v5876_v28, %v5880_v29  ;;  %v5973_v40 = vld [vmem:[%s12354_s5 + $0x548] sm:$0xff] }
 0x371   :  { %7044 = vmatpush1.bf16.msra.mxu0 %v8190_v16  ;;  %v11870_v16 = vld [vmem:[%s12354_s5 + $0x1f0] sm:$0xff] }
 0x372   :  { %7007 = vmatpush1.bf16.msra.mxu1 %v8046_v33  ;;  %v5956_v33 = vld [vmem:[%s12354_s5 + $0x4c0] sm:$0xff]  ;;  %7045 = vmatprep.subr.bf16.mxu0 %v8183_v31  ;;  %v5965_v31 = vld [vmem:[%s12354_s5 + $0x508] sm:$0xff] }
 0x373   :  { %7008 = vmatprep.subr.bf16.mxu1 %v8039_v34  ;;  %v5960_v34 = vld [vmem:[%s12354_s5 + $0x4e0] sm:$0xff] }
 0x374   :  { %v8175_v12 = vcombine.high %v5956_v33, %v5960_v34  ;;  %v8174_v46 = vcombine.low %v5956_v33, %v5960_v34  ;;  %v8192_v34 = vcombine.low %v5973_v40, %v5977_v52 }
 0x376   :  { %7009 = vmatpush1.bf16.msra.mxu1 %v8038_v49  ;;  %v5872_v49 = vld [vmem:[%s12354_s5 + $0x220] sm:$0xff] }
 0x377   :  { %7010 = vmatprep.subr.bf16.mxu1 %v8031_v18  ;;  %v8182_v18 = vcombine.low %v5964_v23, %v5968_v24  ;;  %v11860_v23 = vld [vmem:[%s12354_s5 + $0x1d0] sm:$0xff]  ;;  %v8193_v24 = vcombine.high %v5973_v40, %v5977_v52 }
 0x378   :  { %v8082_v33 = vcombine.low %v11860_v23, %v11870_v16 }
 0x379   :  { %7046 = vmatpush1.bf16.msra.mxu0 %v8182_v18 }
 0x37a   :  { %7011 = vmatpush1.bf16.msra.mxu1 %v8030_v39  ;;  %v8087_v39 = vcombine.high %v5868_v21, %v5872_v49  ;;  %7047 = vmatprep.subr.bf16.mxu0 %v8175_v12 }
 0x37b   :  { %7012 = vmatprep.subr.bf16.mxu1 %v8023_v43  ;;  %v5989_v43 = vld [vmem:[%s12354_s5 + $0x5c8] sm:$0xff] }
 0x37c   :  { %v8208_v9 = vcombine.low %v5989_v43, %v5993_v44 }
 0x37d   :  { %7048 = vmatpush1.bf16.msra.mxu0 %v8174_v46  ;;  %v5941_v46 = vld [vmem:[%s12354_s5 + $0x448] sm:$0xff] }
 0x37e   :  { %7013 = vmatpush1.bf16.msra.mxu1 %v8022_v26  ;;  %v8086_v26 = vcombine.low %v5868_v21, %v5872_v49  ;;  %v5957_v21 = vld [vmem:[%s12354_s5 + $0x4c8] sm:$0xff] }
 0x37f   :  { %7014 = vmatprep.subr.bf16.mxu1 %v8143_v48  ;;  %v8209_v48 = vcombine.high %v5989_v43, %v5993_v44  ;;  %v5961_v49 = vld [vmem:[%s12354_s5 + $0x4e8] sm:$0xff] }
 0x380   :  { %v8177_v12 = vcombine.high %v5957_v21, %v5961_v49  ;;  %v8176_v43 = vcombine.low %v5957_v21, %v5961_v49 }
 0x382   :  { %v8230_v27 = vpop.f32.mrf.mxu0  ;;  %7015 = vmatpush2.bf16.msra.mxu1 %v8142_v8  ;;  %v5952_v8 = vld [vmem:[%s12354_s5 + $0x4a0] sm:$0xff] }
 0x383   :  { %7016 = vmatprep.subr.bf16.mxu1 %v8135_v0  ;;  %v8166_v41 = vcombine.low %v5948_v42, %v5952_v8  ;;  %v8167_v7 = vcombine.high %v5948_v42, %v5952_v8  ;;  %v5933_v8 = vld [vmem:[%s12354_s5 + $0x408] sm:$0xff] }
 0x384   :  { %v8231_v54 = vpop.f32.mrf.mxu0 }
 0x385   :  { %v11743_v2 = vadd.f32 %v8231_v54, %v8230_v27  ;;  %v5393_v27 = vadd.f32 %v11687_v17, %v5352_v30  ;;  %7049 = vmatprep.subr.bf16.mxu0 %v8167_v7 }
 0x386   :  { %v8233_v14 = vpop.f32.mrf.mxu0  ;;  %7017 = vmatpush2.bf16.msra.mxu1 %v8134_v35  ;;  %7050 = vmatpush1.bf16.msra.mxu0 %v8166_v41  ;;  %v9369_v41 = vld [vmem:[%s12353_s4] sm:$0x7] }
 0x387   :  { %7018 = vmatprep.subr.bf16.mxu1 %v8127_v51 }
 0x388   :  { %v8234_v47 = vpop.f32.mrf.mxu0 }
 0x389   :  { %v5981_v47 = vld [vmem:[%s12354_s5 + $0x588] sm:$0xff] }
 0x38a   :  { %7019 = vmatpush2.bf16.msra.mxu1 %v8126_v45  ;;  %v8201_v50 = vcombine.high %v5981_v47, %v5985_v63  ;;  %v8200_v22 = vcombine.low %v5981_v47, %v5985_v63 }
 0x38b   :  { %7020 = vmatprep.subr.bf16.mxu1 %v8119_v37  ;;  %v8159_v37 = vcombine.high %v5940_v57, %v5944_v58 }
 0x38d   :  { %7051 = vmatprep.subr.bf16.mxu0 %v8159_v37 }
 0x38e   :  { %7021 = vmatpush2.bf16.msra.mxu1 %v8118_v11  ;;  %7052 = vmatpush1.bf16.msra.mxu0 %v8158_v4  ;;  %v5936_v11 = vld [vmem:[%s12354_s5 + $0x420] sm:$0xff] }
 0x38f   :  { %7022 = vmatprep.subr.bf16.mxu1 %v8111_v15  ;;  %v8151_v15 = vcombine.high %v5932_v10, %v5936_v11  ;;  %v8150_v13 = vcombine.low %v5932_v10, %v5936_v11 }
 0x391   :  { %7053 = vmatprep.subr.bf16.mxu0 %v8151_v15 }
 0x392   :  { %7023 = vmatpush2.bf16.msra.mxu1 %v8110_v55  ;;  %7054 = vmatpush1.bf16.msra.mxu0 %v8150_v13  ;;  %v11855_v55 = vld [vmem:[%s12354_s5 + $0x1e8] sm:$0xff] }
 0x393   :  { %7024 = vmatprep.subr.bf16.mxu1 %v8103_v25  ;;  %v9372_v25 = vmov 0   ;;  %v8080_v28 = vcombine.low %v11850_v60, %v11855_v55  ;;  %v8081_v29 = vcombine.high %v11850_v60, %v11855_v55  ;;  %v5841_v60 = vld [vmem:[%s12354_s5 + $0x128] sm:$0xff]  ;;  %v5838_v55 = vld [vmem:[%s12354_s5 + $0x110] sm:$0xff] }
 0x394   :  { %7071 = vmatprep.mubr.bf16.mxu0 %v9372_v25 }
 0x395   :  { %7080 = vmatprep.subr.bf16.mxu0 %v8081_v29 }
 0x396   :  { %7025 = vmatpush2.bf16.msra.mxu1 %v8102_v32  ;;  %v5969_v32 = vld [vmem:[%s12354_s5 + $0x528] sm:$0xff] }
 0x397   :  { %7026 = vmatprep.subr.bf16.mxu1 %v8095_v20  ;;  %v8185_v20 = vcombine.high %v5965_v31, %v5969_v32  ;;  %v8184_v18 = vcombine.low %v5965_v31, %v5969_v32 }
 0x39a   :  { %7027 = vmatpush2.bf16.msra.mxu1 %v8094_v38  ;;  %v5949_v38 = vld [vmem:[%s12354_s5 + $0x488] sm:$0xff] }
 0x39b   :  { %7028 = vmatprep.subr.bf16.mxu1 %v8087_v39  ;;  %v5953_v39 = vld [vmem:[%s12354_s5 + $0x4a8] sm:$0xff] }
 0x39c   :  { %v8169_v44 = vcombine.high %v5949_v38, %v5953_v39  ;;  %v8168_v30 = vcombine.low %v5949_v38, %v5953_v39 }
 0x39e   :  { %7029 = vmatpush2.bf16.msra.mxu1 %v8086_v26  ;;  %v5945_v26 = vld [vmem:[%s12354_s5 + $0x468] sm:$0xff] }
 0x39f   :  { %7121 = vmatprep.subr.bf16.mxu1 %v8209_v48  ;;  %v2760_v48 = vsub.s32 2, %v10155_v56  ;;  %v8161_v42 = vcombine.high %v5941_v46, %v5945_v26 }
 0x3a1   :  { %v5431_v0 = vpop.f32.mrf.mxu1  ;;  %v2761_v7 = vrot.slane %v9369_v41, %v2760_v48 }
 0x3a2   :  { %v5432_v35 = vadd.f32 %v5431_v0, %v11685_v3  ;;  %v8274_v51 = vpop.f32.mrf.mxu0  ;;  %v5937_v0 = vld [vmem:[%s12354_s5 + $0x428] sm:$0xff] }
 0x3a3   :  { %v5433_v54 = vpop.f32.mrf.mxu1 }
 0x3a4   :  { %v5434_v19 = vadd.f32 %v5433_v54, %v5393_v27  ;;  %v8275_v36 = vpop.f32.mrf.mxu0  ;;  %v5798_v14 = vmax.f32 %v5432_v35, 0.0  ;;  %v8160_v27 = vcombine.low %v5941_v46, %v5945_v26 }
 0x3a5   :  { %v11821_v45 = vadd.f32 %v8275_v36, %v8274_v51  ;;  %v5435_v17 = vpop.f32.mrf.mxu1  ;;  %v8153_v51 = vcombine.high %v5933_v8, %v5937_v0  ;;  %v5473_v36 = vadd.f32 %v11743_v2, %v2761_v7  ;;  %v5857_v7 = vld [vmem:[%s12354_s5 + $0x1a8] sm:$0xff] }
 0x3a6   :  { %v5799_v3 = vmax.f32 %v5434_v19, 0.0  ;;  %v8277_v62 = vpop.f32.mrf.mxu0  ;;  %v11837_v1 = vpack.c.bf16 %v5798_v14, %v5798_v14  ;;  %v8152_v14 = vcombine.low %v5933_v8, %v5937_v0  ;;  %v5853_v0 = vld [vmem:[%s12354_s5 + $0x188] sm:$0xff] }
 0x3a7   :  { %v5436_v5 = vpop.f32.mrf.mxu1 }
 0x3a8   :  { %v11829_v53 = vpack.c.bf16 %v5799_v3, %v5799_v3  ;;  %v8278_v6 = vpop.f32.mrf.mxu0  ;;  %v8083_v3 = vcombine.high %v11860_v23, %v11870_v16  ;;  %v5842_v23 = vld [vmem:[%s12354_s5 + $0x130] sm:$0xff] }
 0x3aa   :  { %7030 = vmatprep.mubr.bf16.mxu1 %v11829_v53 }
 0x3ab   :  { %7031 = vmatmul.mubr.bf16.vlgmr.msra.gmra.mxu1 %v11837_v1 }
 0x3ac   :  { %7122 = vmatpush1.bf16.msra.mxu1 %v8208_v9  ;;  %7153 = vmatprep.mubr.bf16.mxu1 %v9372_v25 }
 0x3ad   :  { %7123 = vmatprep.subr.bf16.mxu1 %v8201_v50 }
 0x3b0   :  { %7124 = vmatpush1.bf16.msra.mxu1 %v8200_v22 }
 0x3b1   :  { %7125 = vmatprep.subr.bf16.mxu1 %v8193_v24 }
 0x3b4   :  { %7126 = vmatpush1.bf16.msra.mxu1 %v8192_v34 }
 0x3b5   :  { %7127 = vmatprep.subr.bf16.mxu1 %v8185_v20 }
 0x3b8   :  { %7128 = vmatpush1.bf16.msra.mxu1 %v8184_v18 }
 0x3b9   :  { %7129 = vmatprep.subr.bf16.mxu1 %v8177_v12 }
 0x3bc   :  { %7130 = vmatpush1.bf16.msra.mxu1 %v8176_v43 }
 0x3bd   :  { %7131 = vmatprep.subr.bf16.mxu1 %v8169_v44 }
 0x3c0   :  { %7132 = vmatpush1.bf16.msra.mxu1 %v8168_v30 }
 0x3c1   :  { %v8252_v35 = vpop.f32.mrf.mxu1  ;;  %7133 = vmatprep.subr.bf16.mxu1 %v8161_v42 }
 0x3c2   :  { %v8318_v54 = vpop.f32.mrf.mxu0 }
 0x3c3   :  { %v8253_v19 = vpop.f32.mrf.mxu1 }
 0x3c4   :  { %v8254_v57 = vadd.f32 %v8253_v19, %v8252_v35  ;;  %v8319_v58 = vpop.f32.mrf.mxu0  ;;  %7134 = vmatpush1.bf16.msra.mxu1 %v8160_v27  ;;  %v5854_v27 = vld [vmem:[%s12354_s5 + $0x190] sm:$0xff]  ;;  %v8073_v19 = vcombine.high %v5853_v0, %v5857_v7 }
 0x3c5   :  { %v8320_v17 = vadd.f32 %v8319_v58, %v8318_v54  ;;  %v8255_v37 = vpop.f32.mrf.mxu1  ;;  %7135 = vmatprep.subr.bf16.mxu1 %v8153_v51  ;;  %v5858_v35 = vld [vmem:[%s12354_s5 + $0x1b0] sm:$0xff]  ;;  %v5845_v54 = vld [vmem:[%s12354_s5 + $0x148] sm:$0xff] }
 0x3c6   :  { %v5513_v62 = vadd.f32 %v8254_v57, %v5473_v36  ;;  %v8321_v47 = vpop.f32.mrf.mxu0  ;;  %v8075_v36 = vcombine.high %v5854_v27, %v5858_v35  ;;  %v5849_v57 = vld [vmem:[%s12354_s5 + $0x168] sm:$0xff]  ;;  %v5846_v58 = vld [vmem:[%s12354_s5 + $0x150] sm:$0xff]  ;;  %v8074_v37 = vcombine.low %v5854_v27, %v5858_v35 }
 0x3c7   :  { %v8256_v63 = vpop.f32.mrf.mxu1  ;;  %v5837_v47 = vld [vmem:[%s12354_s5 + $0x108] sm:$0xff] }
 0x3c8   :  { %v8322_v4 = vpop.f32.mrf.mxu0  ;;  %v5553_v5 = vadd.f32 %v11821_v45, %v5513_v62  ;;  %7136 = vmatpush1.bf16.msra.mxu1 %v8152_v14  ;;  %v5850_v14 = vld [vmem:[%s12354_s5 + $0x170] sm:$0xff]  ;;  %v8059_v63 = vcombine.high %v5838_v55, %v5842_v23 }
 0x3c9   :  { %7162 = vmatprep.subr.bf16.mxu1 %v8083_v3  ;;  %v8065_v3 = vcombine.high %v5845_v54, %v5849_v57  ;;  %v8067_v62 = vcombine.high %v5846_v58, %v5850_v14  ;;  %v8066_v16 = vcombine.low %v5846_v58, %v5850_v14  ;;  %v5829_v4 = vld [vmem:[%s12354_s5 + $0xc8] sm:$0xff]  ;;  %v5918_v58 = vld [vmem:[%s12354_s5 + $0x390] sm:$0xff] }
 0x3ca   :  { %v5922_v14 = vld [vmem:[%s12354_s5 + $0x3b0] sm:$0xff] }
 0x3e1   :  { %v8296_v6 = vpop.f32.mrf.mxu1 }
 0x3e2   :  { %v8362_v2 = vpop.f32.mrf.mxu0 }
 0x3e3   :  { %v8297_v9 = vpop.f32.mrf.mxu1 }
 0x3e4   :  { %v8298_v10 = vadd.f32 %v8297_v9, %v8296_v6  ;;  %v8363_v11 = vpop.f32.mrf.mxu0  ;;  %v5830_v6 = vld [vmem:[%s12354_s5 + $0xd0] sm:$0xff]  ;;  %v8056_v9 = vcombine.low %v5837_v47, %v5841_v60 }
 0x3e5   :  { %v8299_v50 = vpop.f32.mrf.mxu1  ;;  %v8364_v38 = vadd.f32 %v8363_v11, %v8362_v2  ;;  %v5834_v2 = vld [vmem:[%s12354_s5 + $0xf0] sm:$0xff] }
 0x3e6   :  { %v5593_v15 = vadd.f32 %v8298_v10, %v5553_v5  ;;  %v8365_v40 = vpop.f32.mrf.mxu0  ;;  %v5833_v5 = vld [vmem:[%s12354_s5 + $0xe8] sm:$0xff]  ;;  %v8058_v10 = vcombine.low %v5838_v55, %v5842_v23  ;;  %v8051_v50 = vcombine.high %v5830_v6, %v5834_v2  ;;  %v5910_v55 = vld [vmem:[%s12354_s5 + $0x350] sm:$0xff] }
 0x3e7   :  { %v8300_v52 = vpop.f32.mrf.mxu1  ;;  %v8049_v11 = vcombine.high %v5829_v4, %v5833_v5  ;;  %v5825_v40 = vld [vmem:[%s12354_s5 + $0xa8] sm:$0xff]  ;;  %v5914_v23 = vld [vmem:[%s12354_s5 + $0x370] sm:$0xff] }
 0x3e8   :  { %v8366_v13 = vpop.f32.mrf.mxu0  ;;  %v5633_v22 = vadd.f32 %v8320_v17, %v5593_v15  ;;  %v8072_v17 = vcombine.low %v5853_v0, %v5857_v7  ;;  %v5821_v15 = vld [vmem:[%s12354_s5 + $0x88] sm:$0xff]  ;;  %v5822_v52 = vld [vmem:[%s12354_s5 + $0x90] sm:$0xff] }
 0x3e9   :  { %v5826_v13 = vld [vmem:[%s12354_s5 + $0xb0] sm:$0xff]  ;;  %v5929_v0 = vld [vmem:[%s12354_s5 + $0x3e8] sm:$0xff] }
 0x3ea   :  { %v5930_v7 = vld [vmem:[%s12354_s5 + $0x3f0] sm:$0xff] }
 0x401   :  { %v8340_v24 = vpop.f32.mrf.mxu1 }
 0x402   :  { %v8406_v29 = vpop.f32.mrf.mxu0 }
 0x403   :  { %v8341_v31 = vpop.f32.mrf.mxu1 }
 0x404   :  { %v8407_v32 = vpop.f32.mrf.mxu0  ;;  %v8342_v49 = vadd.f32 %v8341_v31, %v8340_v24  ;;  %v8050_v24 = vcombine.low %v5830_v6, %v5834_v2  ;;  %v8043_v31 = vcombine.high %v5822_v52, %v5826_v13  ;;  %v5902_v6 = vld [vmem:[%s12354_s5 + $0x310] sm:$0xff] }
 0x405   :  { %v8343_v34 = vpop.f32.mrf.mxu1  ;;  %v8408_v26 = vadd.f32 %v8407_v32, %v8406_v29  ;;  %v8041_v29 = vcombine.high %v5821_v15, %v5825_v40  ;;  %v5813_v32 = vld [vmem:[%s12354_s5 + $0x48] sm:$0xff]  ;;  %v5906_v2 = vld [vmem:[%s12354_s5 + $0x330] sm:$0xff] }
 0x406   :  { %v8409_v20 = vpop.f32.mrf.mxu0  ;;  %v5673_v18 = vadd.f32 %v8342_v49, %v5633_v22  ;;  %v8048_v22 = vcombine.low %v5829_v4, %v5833_v5  ;;  %v5817_v34 = vld [vmem:[%s12354_s5 + $0x68] sm:$0xff]  ;;  %v8042_v49 = vcombine.low %v5822_v52, %v5826_v13  ;;  %v5894_v52 = vld [vmem:[%s12354_s5 + $0x2d0] sm:$0xff] }
 0x407   :  { %v8344_v45 = vpop.f32.mrf.mxu1  ;;  %v5814_v20 = vld [vmem:[%s12354_s5 + $0x50] sm:$0xff]  ;;  %v5901_v4 = vld [vmem:[%s12354_s5 + $0x308] sm:$0xff] }
 0x408   :  { %v8410_v21 = vpop.f32.mrf.mxu0  ;;  %v5713_v43 = vadd.f32 %v8364_v38, %v5673_v18  ;;  %v5818_v45 = vld [vmem:[%s12354_s5 + $0x70] sm:$0xff]  ;;  %v8033_v18 = vcombine.high %v5813_v32, %v5817_v34  ;;  %v5805_v38 = vld [vmem:[%s12354_s5 + $0x8] sm:$0xff] }
 0x409   :  { %v8040_v21 = vcombine.low %v5821_v15, %v5825_v40  ;;  %v5905_v5 = vld [vmem:[%s12354_s5 + $0x328] sm:$0xff]  ;;  %v5898_v13 = vld [vmem:[%s12354_s5 + $0x2f0] sm:$0xff] }
 0x40a   :  { %v5893_v15 = vld [vmem:[%s12354_s5 + $0x2c8] sm:$0xff] }
 0x40b   :  { %v5897_v40 = vld [vmem:[%s12354_s5 + $0x2e8] sm:$0xff] }
 0x421   :  { %v8384_v12 = vpop.f32.mrf.mxu1 }
 0x423   :  { %v8385_v39 = vpop.f32.mrf.mxu1 }
 0x424   :  { %v8386_v44 = vadd.f32 %v8385_v39, %v8384_v12  ;;  %v8035_v12 = vcombine.high %v5814_v20, %v5818_v45  ;;  %v5809_v39 = vld [vmem:[%s12354_s5 + $0x28] sm:$0xff] }
 0x425   :  { %v8387_v46 = vpop.f32.mrf.mxu1  ;;  %v8024_v27 = vcombine.low %v5805_v38, %v5809_v39 }
 0x426   :  { %v5753_v30 = vadd.f32 %v8386_v44, %v5713_v43  ;;  %v5806_v43 = vld [vmem:[%s12354_s5 + $0x10] sm:$0xff]  ;;  %v8032_v46 = vcombine.low %v5813_v32, %v5817_v34  ;;  %v5885_v32 = vld [vmem:[%s12354_s5 + $0x288] sm:$0xff] }
 0x427   :  { %v8388_v42 = vpop.f32.mrf.mxu1  ;;  %v5810_v44 = vld [vmem:[%s12354_s5 + $0x30] sm:$0xff]  ;;  %v5889_v34 = vld [vmem:[%s12354_s5 + $0x2a8] sm:$0xff] }
 0x428   :  { %v5793_v8 = vadd.f32 %v8408_v26, %v5753_v30  ;;  %v8034_v26 = vcombine.low %v5814_v20, %v5818_v45  ;;  %v8025_v30 = vcombine.high %v5805_v38, %v5809_v39  ;;  %v8027_v42 = vcombine.high %v5806_v43, %v5810_v44  ;;  %v5886_v20 = vld [vmem:[%s12354_s5 + $0x290] sm:$0xff]  ;;  %v5877_v38 = vld [vmem:[%s12354_s5 + $0x248] sm:$0xff] }
 0x429   :  { %v8026_v35 = vcombine.low %v5806_v43, %v5810_v44  ;;  %v5890_v45 = vld [vmem:[%s12354_s5 + $0x2b0] sm:$0xff]  ;;  %v5881_v39 = vld [vmem:[%s12354_s5 + $0x268] sm:$0xff] }
 0x42a   :  { %v5800_v41 = vmax.f32 %v5793_v8, 0.0  ;;  %v5925_v8 = vld [vmem:[%s12354_s5 + $0x3c8] sm:$0xff]  ;;  %v5878_v43 = vld [vmem:[%s12354_s5 + $0x250] sm:$0xff] }
 0x42b   :  { %v5882_v44 = vld [vmem:[%s12354_s5 + $0x270] sm:$0xff] }
 0x42c   :  { %v11927_v51 = vpack.c.bf16 %v5800_v41, %v5800_v41  ;;  %v5926_v41 = vld [vmem:[%s12354_s5 + $0x3d0] sm:$0xff] }
 0x42e   :  { %7072 = vmatmul.mubr.bf16.vlgmr.msra.gmra.mxu0 %v11927_v51  ;;  %7154 = vmatmul.mubr.bf16.vlgmr.msra.gmra.mxu1 %v11927_v51 }
 0x42f   :  { %7081 = vmatpush1.bf16.msra.mxu0 %v8080_v28  ;;  %7163 = vmatpush1.bf16.msra.mxu1 %v8082_v33  ;;  %v8064_v28 = vcombine.low %v5845_v54, %v5849_v57  ;;  %v8057_v33 = vcombine.high %v5837_v47, %v5841_v60  ;;  %v8145_v54 = vcombine.high %v5925_v8, %v5929_v0  ;;  %v5921_v57 = vld [vmem:[%s12354_s5 + $0x3a8] sm:$0xff] }
 0x430   :  { %7112 = vmatprep.mubr.bf16.mxu0 %v11829_v53  ;;  %7194 = vmatprep.mubr.bf16.mxu1 %v11829_v53  ;;  %v5909_v47 = vld [vmem:[%s12354_s5 + $0x348] sm:$0xff] }
 0x431   :  { %7082 = vmatprep.subr.bf16.mxu0 %v8073_v19  ;;  %7164 = vmatprep.subr.bf16.mxu1 %v8075_v36  ;;  %v8147_v19 = vcombine.high %v5926_v41, %v5930_v7  ;;  %v5917_v36 = vld [vmem:[%s12354_s5 + $0x388] sm:$0xff] }
 0x432   :  { %v5913_v60 = vld [vmem:[%s12354_s5 + $0x368] sm:$0xff] }
 0x433   :  { %7083 = vmatpush1.bf16.msra.mxu0 %v8072_v17  ;;  %7165 = vmatpush1.bf16.msra.mxu1 %v8074_v37  ;;  %v8144_v17 = vcombine.low %v5925_v8, %v5929_v0  ;;  %v8146_v37 = vcombine.low %v5926_v41, %v5930_v7  ;;  %v5869_v8 = vld [vmem:[%s12354_s5 + $0x208] sm:$0xff]  ;;  %v5870_v41 = vld [vmem:[%s12354_s5 + $0x210] sm:$0xff] }
 0x434   :  { %7084 = vmatprep.subr.bf16.mxu0 %v8065_v3  ;;  %7166 = vmatprep.subr.bf16.mxu1 %v8067_v62  ;;  %v8137_v3 = vcombine.high %v5917_v36, %v5921_v57  ;;  %v8139_v62 = vcombine.high %v5918_v58, %v5922_v14  ;;  %v5873_v0 = vld [vmem:[%s12354_s5 + $0x228] sm:$0xff]  ;;  %v5874_v7 = vld [vmem:[%s12354_s5 + $0x230] sm:$0xff] }
 0x437   :  { %7085 = vmatpush1.bf16.msra.mxu0 %v8064_v28  ;;  %7167 = vmatpush1.bf16.msra.mxu1 %v8066_v16  ;;  %v8136_v28 = vcombine.low %v5917_v36, %v5921_v57  ;;  %v8138_v16 = vcombine.low %v5918_v58, %v5922_v14  ;;  %v5990_v36 = vld [vmem:[%s12354_s5 + $0x5d0] sm:$0xff]  ;;  %v5991_v58 = vld [vmem:[%s12354_s5 + $0x5d8] sm:$0xff] }
 0x438   :  { %7086 = vmatprep.subr.bf16.mxu0 %v8057_v33  ;;  %7168 = vmatprep.subr.bf16.mxu1 %v8059_v63  ;;  %v8129_v33 = vcombine.high %v5909_v47, %v5913_v60  ;;  %v8131_v63 = vcombine.high %v5910_v55, %v5914_v23  ;;  %v5994_v57 = vld [vmem:[%s12354_s5 + $0x5f0] sm:$0xff]  ;;  %v5995_v14 = vld [vmem:[%s12354_s5 + $0x5f8] sm:$0xff] }
 0x43b   :  { %7087 = vmatpush1.bf16.msra.mxu0 %v8056_v9  ;;  %7169 = vmatpush1.bf16.msra.mxu1 %v8058_v10  ;;  %v8128_v9 = vcombine.low %v5909_v47, %v5913_v60  ;;  %v8130_v10 = vcombine.low %v5910_v55, %v5914_v23  ;;  %v5982_v47 = vld [vmem:[%s12354_s5 + $0x590] sm:$0xff]  ;;  %v5983_v55 = vld [vmem:[%s12354_s5 + $0x598] sm:$0xff] }
 0x43c   :  { %7088 = vmatprep.subr.bf16.mxu0 %v8049_v11  ;;  %7170 = vmatprep.subr.bf16.mxu1 %v8051_v50  ;;  %v8121_v11 = vcombine.high %v5901_v4, %v5905_v5  ;;  %v8123_v50 = vcombine.high %v5902_v6, %v5906_v2  ;;  %v5986_v60 = vld [vmem:[%s12354_s5 + $0x5b0] sm:$0xff]  ;;  %v5987_v23 = vld [vmem:[%s12354_s5 + $0x5b8] sm:$0xff] }
 0x43f   :  { %7089 = vmatpush1.bf16.msra.mxu0 %v8048_v22  ;;  %7171 = vmatpush1.bf16.msra.mxu1 %v8050_v24  ;;  %v8120_v22 = vcombine.low %v5901_v4, %v5905_v5  ;;  %v8122_v24 = vcombine.low %v5902_v6, %v5906_v2  ;;  %v8205_v4 = vcombine.high %v5983_v55, %v5987_v23  ;;  %v5974_v5 = vld [vmem:[%s12354_s5 + $0x550] sm:$0xff] }
 0x440   :  { %7090 = vmatprep.subr.bf16.mxu0 %v8041_v29  ;;  %7172 = vmatprep.subr.bf16.mxu1 %v8043_v31  ;;  %v8113_v29 = vcombine.high %v5893_v15, %v5897_v40  ;;  %v8115_v31 = vcombine.high %v5894_v52, %v5898_v13  ;;  %v5978_v2 = vld [vmem:[%s12354_s5 + $0x570] sm:$0xff] }
 0x443   :  { %7091 = vmatpush1.bf16.msra.mxu0 %v8040_v21  ;;  %7173 = vmatpush1.bf16.msra.mxu1 %v8042_v49  ;;  %v8112_v21 = vcombine.low %v5893_v15, %v5897_v40  ;;  %v8114_v49 = vcombine.low %v5894_v52, %v5898_v13  ;;  %v8204_v15 = vcombine.low %v5983_v55, %v5987_v23  ;;  %v5966_v13 = vld [vmem:[%s12354_s5 + $0x510] sm:$0xff]  ;;  %v5863_v23 = vld [vmem:[%s12354_s5 + $0x1d8] sm:$0xff] }
 0x444   :  { %7092 = vmatprep.subr.bf16.mxu0 %v8033_v18  ;;  %7174 = vmatprep.subr.bf16.mxu1 %v8035_v12  ;;  %v8105_v18 = vcombine.high %v5885_v32, %v5889_v34  ;;  %v8107_v12 = vcombine.high %v5886_v20, %v5890_v45  ;;  %v8195_v40 = vcombine.high %v5974_v5, %v5978_v2 }
 0x447   :  { %7093 = vmatpush1.bf16.msra.mxu0 %v8032_v46  ;;  %7175 = vmatpush1.bf16.msra.mxu1 %v8034_v26  ;;  %v8104_v46 = vcombine.low %v5885_v32, %v5889_v34  ;;  %v8106_v26 = vcombine.low %v5886_v20, %v5890_v45  ;;  %v8194_v32 = vcombine.low %v5974_v5, %v5978_v2  ;;  %v5855_v5 = vld [vmem:[%s12354_s5 + $0x198] sm:$0xff] }
 0x448   :  { %7094 = vmatprep.subr.bf16.mxu0 %v8025_v30  ;;  %7176 = vmatprep.subr.bf16.mxu1 %v8027_v42  ;;  %v8097_v30 = vcombine.high %v5877_v38, %v5881_v39  ;;  %v8099_v42 = vcombine.high %v5878_v43, %v5882_v44  ;;  %v5859_v2 = vld [vmem:[%s12354_s5 + $0x1b8] sm:$0xff] }
 0x44b   :  { %7095 = vmatpush1.bf16.msra.mxu0 %v8024_v27  ;;  %7177 = vmatpush1.bf16.msra.mxu1 %v8026_v35  ;;  %v8096_v27 = vcombine.low %v5877_v38, %v5881_v39  ;;  %v8098_v35 = vcombine.low %v5878_v43, %v5882_v44  ;;  %v5950_v44 = vld [vmem:[%s12354_s5 + $0x490] sm:$0xff] }
 0x44c   :  { %7096 = vmatprep.subr.bf16.mxu0 %v8145_v54  ;;  %7178 = vmatprep.subr.bf16.mxu1 %v8147_v19  ;;  %v8089_v54 = vcombine.high %v5869_v8, %v5873_v0  ;;  %v8091_v19 = vcombine.high %v5870_v41, %v5874_v7 }
 0x44f   :  { %7097 = vmatpush2.bf16.msra.mxu0 %v8144_v17  ;;  %7179 = vmatpush2.bf16.msra.mxu1 %v8146_v37  ;;  %v8088_v17 = vcombine.low %v5869_v8, %v5873_v0  ;;  %v8090_v37 = vcombine.low %v5870_v41, %v5874_v7  ;;  %v5942_v7 = vld [vmem:[%s12354_s5 + $0x450] sm:$0xff] }
 0x450   :  { %7098 = vmatprep.subr.bf16.mxu0 %v8137_v3  ;;  %7180 = vmatprep.subr.bf16.mxu1 %v8139_v62  ;;  %v8211_v3 = vcombine.high %v5990_v36, %v5994_v57  ;;  %v8213_v62 = vcombine.high %v5991_v58, %v5995_v14 }
 0x453   :  { %7099 = vmatpush2.bf16.msra.mxu0 %v8136_v28  ;;  %7181 = vmatpush2.bf16.msra.mxu1 %v8138_v16  ;;  %v8210_v16 = vcombine.low %v5990_v36, %v5994_v57 }
 0x454   :  { %7100 = vmatprep.subr.bf16.mxu0 %v8129_v33  ;;  %7182 = vmatprep.subr.bf16.mxu1 %v8131_v63  ;;  %v8212_v33 = vcombine.low %v5991_v58, %v5995_v14  ;;  %v8203_v63 = vcombine.high %v5982_v47, %v5986_v60  ;;  %v5934_v14 = vld [vmem:[%s12354_s5 + $0x410] sm:$0xff] }
 0x457   :  { %7101 = vmatpush2.bf16.msra.mxu0 %v8128_v9  ;;  %7183 = vmatpush2.bf16.msra.mxu1 %v8130_v10  ;;  %v5975_v9 = vld [vmem:[%s12354_s5 + $0x558] sm:$0xff] }
 0x458   :  { %7102 = vmatprep.subr.bf16.mxu0 %v8121_v11  ;;  %7184 = vmatprep.subr.bf16.mxu1 %v8123_v50  ;;  %v5979_v10 = vld [vmem:[%s12354_s5 + $0x578] sm:$0xff]  ;;  %v8202_v50 = vcombine.low %v5982_v47, %v5986_v60 }
 0x459   :  { %v8197_v52 = vcombine.high %v5975_v9, %v5979_v10  ;;  %v8196_v34 = vcombine.low %v5975_v9, %v5979_v10  ;;  %v8077_v10 = vcombine.high %v5855_v5, %v5859_v2 }
 0x45b   :  { %7103 = vmatpush2.bf16.msra.mxu0 %v8120_v22  ;;  %7185 = vmatpush2.bf16.msra.mxu1 %v8122_v24  ;;  %v5970_v24 = vld [vmem:[%s12354_s5 + $0x530] sm:$0xff] }
 0x45c   :  { %7104 = vmatprep.subr.bf16.mxu0 %v8113_v29  ;;  %7186 = vmatprep.subr.bf16.mxu1 %v8115_v31  ;;  %v5967_v29 = vld [vmem:[%s12354_s5 + $0x518] sm:$0xff]  ;;  %v8187_v20 = vcombine.high %v5966_v13, %v5970_v24 }
 0x45d   :  { %v5971_v31 = vld [vmem:[%s12354_s5 + $0x538] sm:$0xff] }
 0x45e   :  { %v8189_v45 = vcombine.high %v5967_v29, %v5971_v31  ;;  %v8188_v38 = vcombine.low %v5967_v29, %v5971_v31 }
 0x45f   :  { %7105 = vmatpush2.bf16.msra.mxu0 %v8112_v21  ;;  %7187 = vmatpush2.bf16.msra.mxu1 %v8114_v49  ;;  %v5958_v21 = vld [vmem:[%s12354_s5 + $0x4d0] sm:$0xff] }
 0x460   :  { %7106 = vmatprep.subr.bf16.mxu0 %v8105_v18  ;;  %7188 = vmatprep.subr.bf16.mxu1 %v8107_v12  ;;  %v5962_v49 = vld [vmem:[%s12354_s5 + $0x4f0] sm:$0xff]  ;;  %v5963_v18 = vld [vmem:[%s12354_s5 + $0x4f8] sm:$0xff]  ;;  %v8186_v12 = vcombine.low %v5966_v13, %v5970_v24 }
 0x461   :  { %v8179_v39 = vcombine.high %v5958_v21, %v5962_v49  ;;  %v5843_v13 = vld [vmem:[%s12354_s5 + $0x138] sm:$0xff] }
 0x463   :  { %7107 = vmatpush2.bf16.msra.mxu0 %v8104_v46  ;;  %7189 = vmatpush2.bf16.msra.mxu1 %v8106_v26  ;;  %v5954_v46 = vld [vmem:[%s12354_s5 + $0x4b0] sm:$0xff]  ;;  %v5951_v26 = vld [vmem:[%s12354_s5 + $0x498] sm:$0xff] }
 0x464   :  { %7108 = vmatprep.subr.bf16.mxu0 %v8097_v30  ;;  %7190 = vmatprep.subr.bf16.mxu1 %v8099_v42  ;;  %v5955_v30 = vld [vmem:[%s12354_s5 + $0x4b8] sm:$0xff]  ;;  %v8178_v42 = vcombine.low %v5958_v21, %v5962_v49  ;;  %v8171_v0 = vcombine.high %v5950_v44, %v5954_v46 }
 0x465   :  { %v8173_v41 = vcombine.high %v5951_v26, %v5955_v30  ;;  %v8172_v36 = vcombine.low %v5951_v26, %v5955_v30  ;;  %v5815_v21 = vld [vmem:[%s12354_s5 + $0x58] sm:$0xff] }
 0x466   :  { %v5819_v49 = vld [vmem:[%s12354_s5 + $0x78] sm:$0xff] }
 0x467   :  { %7109 = vmatpush2.bf16.msra.mxu0 %v8096_v27  ;;  %7191 = vmatpush2.bf16.msra.mxu1 %v8098_v35  ;;  %v5946_v27 = vld [vmem:[%s12354_s5 + $0x470] sm:$0xff]  ;;  %v5943_v35 = vld [vmem:[%s12354_s5 + $0x458] sm:$0xff] }
 0x468   :  { %7110 = vmatprep.subr.bf16.mxu0 %v8089_v54  ;;  %7192 = vmatprep.subr.bf16.mxu1 %v8091_v19  ;;  %v5947_v54 = vld [vmem:[%s12354_s5 + $0x478] sm:$0xff]  ;;  %v8170_v19 = vcombine.low %v5950_v44, %v5954_v46  ;;  %v8163_v57 = vcombine.high %v5942_v7, %v5946_v27 }
 0x469   :  { %v8165_v58 = vcombine.high %v5943_v35, %v5947_v54  ;;  %v8164_v47 = vcombine.low %v5943_v35, %v5947_v54  ;;  %v5927_v44 = vld [vmem:[%s12354_s5 + $0x3d8] sm:$0xff] }
 0x46a   :  { %v5931_v46 = vld [vmem:[%s12354_s5 + $0x3f8] sm:$0xff] }
 0x46b   :  { %7111 = vmatpush2.bf16.msra.mxu0 %v8088_v17  ;;  %7193 = vmatpush2.bf16.msra.mxu1 %v8090_v37  ;;  %v12131_v28 = vpop.f32.mrf.mxu1  ;;  %v5938_v17 = vld [vmem:[%s12354_s5 + $0x430] sm:$0xff]  ;;  %v5935_v37 = vld [vmem:[%s12354_s5 + $0x418] sm:$0xff]  ;;  %v8149_v30 = vcombine.high %v5927_v44, %v5931_v46 }
 0x46c   :  { %7203 = vmatprep.subr.bf16.mxu0 %v8211_v3  ;;  %7285 = vmatprep.subr.bf16.mxu1 %v8213_v62  ;;  %v5939_v3 = vld [vmem:[%s12354_s5 + $0x438] sm:$0xff]  ;;  %v8162_v62 = vcombine.low %v5942_v7, %v5946_v27  ;;  %v8155_v60 = vcombine.high %v5934_v14, %v5938_v17 }
 0x46d   :  { %v12136_v6 = vpop.f32.mrf.mxu1  ;;  %v8157_v55 = vcombine.high %v5935_v37, %v5939_v3  ;;  %v5911_v7 = vld [vmem:[%s12354_s5 + $0x358] sm:$0xff] }
 0x46e   :  { %7113 = vmatmul.mubr.bf16.vlgmr.msra.gmra.mxu0 %v11837_v1  ;;  %7195 = vmatmul.mubr.bf16.vlgmr.msra.gmra.mxu1 %v11837_v1  ;;  %v5915_v27 = vld [vmem:[%s12354_s5 + $0x378] sm:$0xff] }
 0x46f   :  { %7204 = vmatpush1.bf16.msra.mxu0 %v8210_v16  ;;  %7286 = vmatpush1.bf16.msra.mxu1 %v8212_v33  ;;  %v7036_v11 = vpop.f32.mrf.mxu1  ;;  %v5867_v16 = vld [vmem:[%s12354_s5 + $0x1f8] sm:$0xff]  ;;  %v8154_v33 = vcombine.low %v5934_v14, %v5938_v17  ;;  %v8133_v54 = vcombine.high %v5911_v7, %v5915_v27 }
 0x470   :  { %7205 = vmatprep.subr.bf16.mxu0 %v8203_v63  ;;  %7287 = vmatprep.subr.bf16.mxu1 %v8205_v4  ;;  %v8156_v63 = vcombine.low %v5935_v37, %v5939_v3  ;;  %v8085_v4 = vcombine.high %v5863_v23, %v5867_v16  ;;  %v8084_v9 = vcombine.low %v5863_v23, %v5867_v16  ;;  %v5847_v11 = vld [vmem:[%s12354_s5 + $0x158] sm:$0xff] }
 0x471   :  { %v7037_v22 = vpop.f32.mrf.mxu1  ;;  %7235 = vmatprep.mubr.bf16.mxu0 %v9372_v25  ;;  %7317 = vmatprep.mubr.bf16.mxu1 %v9372_v25  ;;  %v5959_v25 = vld [vmem:[%s12354_s5 + $0x4d8] sm:$0xff] }
 0x472   :  { %v8181_v43 = vcombine.high %v5959_v25, %v5963_v18  ;;  %v8180_v8 = vcombine.low %v5959_v25, %v5963_v18  ;;  %v8037_v18 = vcombine.high %v5815_v21, %v5819_v49  ;;  %v5895_v14 = vld [vmem:[%s12354_s5 + $0x2d8] sm:$0xff] }
 0x473   :  { %7206 = vmatpush1.bf16.msra.mxu0 %v8202_v50  ;;  %7288 = vmatpush1.bf16.msra.mxu1 %v8204_v15  ;;  %v5851_v50 = vld [vmem:[%s12354_s5 + $0x178] sm:$0xff]  ;;  %v8076_v15 = vcombine.low %v5855_v5, %v5859_v2 }
 0x474   :  { %7207 = vmatprep.subr.bf16.mxu0 %v8195_v40  ;;  %7289 = vmatprep.subr.bf16.mxu1 %v8197_v52  ;;  %v8069_v40 = vcombine.high %v5847_v11, %v5851_v50  ;;  %v5839_v52 = vld [vmem:[%s12354_s5 + $0x118] sm:$0xff]  ;;  %v8068_v22 = vcombine.low %v5847_v11, %v5851_v50  ;;  %v5996_v11 = vld [vmem:[%s12355_s6] sm:$0xff] }
 0x475   :  { %v8061_v24 = vcombine.high %v5839_v52, %v5843_v13  ;;  %v8060_v29 = vcombine.low %v5839_v52, %v5843_v13  ;;  %v5899_v17 = vld [vmem:[%s12354_s5 + $0x2f8] sm:$0xff]  ;;  %v6001_v50 = vrot.slane %v5996_v11, %v10164_v59 }
 0x476   :  { %v8117_v3 = vcombine.high %v5895_v14, %v5899_v17  ;;  %v5879_v23 = vld [vmem:[%s12354_s5 + $0x258] sm:$0xff] }
 0x477   :  { %7208 = vmatpush1.bf16.msra.mxu0 %v8194_v32  ;;  %7290 = vmatpush1.bf16.msra.mxu1 %v8196_v34  ;;  %v5823_v32 = vld [vmem:[%s12354_s5 + $0x98] sm:$0xff] }
 0x478   :  { %7209 = vmatprep.subr.bf16.mxu0 %v8187_v20  ;;  %7291 = vmatprep.subr.bf16.mxu1 %v8189_v45  ;;  %v5827_v34 = vld [vmem:[%s12354_s5 + $0xb8] sm:$0xff] }
 0x479   :  { %v8045_v45 = vcombine.high %v5823_v32, %v5827_v34  ;;  %v8044_v25 = vcombine.low %v5823_v32, %v5827_v34  ;;  %v5883_v16 = vld [vmem:[%s12354_s5 + $0x278] sm:$0xff] }
 0x47a   :  { %v5875_v5 = vld [vmem:[%s12354_s5 + $0x238] sm:$0xff]  ;;  %v8100_v2 = vcombine.low %v5879_v23, %v5883_v16 }
 0x47b   :  { %7210 = vmatpush1.bf16.msra.mxu0 %v8186_v12  ;;  %7292 = vmatpush1.bf16.msra.mxu1 %v8188_v38  ;;  %v5807_v12 = vld [vmem:[%s12354_s5 + $0x18] sm:$0xff] }
 0x47c   :  { %7211 = vmatprep.subr.bf16.mxu0 %v8179_v39  ;;  %7293 = vmatprep.subr.bf16.mxu1 %v8181_v43  ;;  %v5811_v38 = vld [vmem:[%s12354_s5 + $0x38] sm:$0xff]  ;;  %v8036_v39 = vcombine.low %v5815_v21, %v5819_v49 }
 0x47d   :  { %v8029_v43 = vcombine.high %v5807_v12, %v5811_v38  ;;  %v8028_v26 = vcombine.low %v5807_v12, %v5811_v38 }
 0x47f   :  { %7212 = vmatpush1.bf16.msra.mxu0 %v8178_v42  ;;  %7294 = vmatpush1.bf16.msra.mxu1 %v8180_v8  ;;  %v5919_v42 = vld [vmem:[%s12354_s5 + $0x398] sm:$0xff] }
 0x480   :  { %7213 = vmatprep.subr.bf16.mxu0 %v8171_v0  ;;  %7295 = vmatprep.subr.bf16.mxu1 %v8173_v41  ;;  %v5923_v8 = vld [vmem:[%s12354_s5 + $0x3b8] sm:$0xff]  ;;  %v8148_v0 = vcombine.low %v5927_v44, %v5931_v46  ;;  %v6020_v46 = vsub.s32 5, %v10155_v56 }
 0x481   :  { %v8141_v41 = vcombine.high %v5919_v42, %v5923_v8  ;;  %v8140_v35 = vcombine.low %v5919_v42, %v5923_v8 }
 0x483   :  { %7214 = vmatpush1.bf16.msra.mxu0 %v8170_v19  ;;  %7296 = vmatpush1.bf16.msra.mxu1 %v8172_v36  ;;  %v5903_v19 = vld [vmem:[%s12354_s5 + $0x318] sm:$0xff] }
 0x484   :  { %7215 = vmatprep.subr.bf16.mxu0 %v8163_v57  ;;  %7297 = vmatprep.subr.bf16.mxu1 %v8165_v58  ;;  %v5907_v36 = vld [vmem:[%s12354_s5 + $0x338] sm:$0xff]  ;;  %v8132_v57 = vcombine.low %v5911_v7, %v5915_v27 }
 0x485   :  { %v8125_v58 = vcombine.high %v5903_v19, %v5907_v36  ;;  %v8124_v37 = vcombine.low %v5903_v19, %v5907_v36 }
 0x487   :  { %7216 = vmatpush1.bf16.msra.mxu0 %v8162_v62  ;;  %7298 = vmatpush1.bf16.msra.mxu1 %v8164_v47  ;;  %v5887_v62 = vld [vmem:[%s12354_s5 + $0x298] sm:$0xff] }
 0x488   :  { %7217 = vmatprep.subr.bf16.mxu0 %v8155_v60  ;;  %7299 = vmatprep.subr.bf16.mxu1 %v8157_v55  ;;  %v5891_v47 = vld [vmem:[%s12354_s5 + $0x2b8] sm:$0xff]  ;;  %v8116_v60 = vcombine.low %v5895_v14, %v5899_v17  ;;  %v6024_v14 = vsub.s32 6, %v10155_v56  ;;  %v6028_v17 = vsub.s32 7, %v10155_v56 }
 0x489   :  { %v8109_v55 = vcombine.high %v5887_v62, %v5891_v47 }
 0x48b   :  { %7218 = vmatpush1.bf16.msra.mxu0 %v8154_v33  ;;  %7300 = vmatpush1.bf16.msra.mxu1 %v8156_v63  ;;  %v8108_v33 = vcombine.low %v5887_v62, %v5891_v47  ;;  %v8101_v63 = vcombine.high %v5879_v23, %v5883_v16 }
 0x48c   :  { %7244 = vmatprep.subr.bf16.mxu0 %v8085_v4  ;;  %v5871_v4 = vld [vmem:[%s12354_s5 + $0x218] sm:$0xff] }
 0x48e   :  { %7236 = vmatmul.mubr.bf16.vlgmr.msra.gmra.mxu0 %v11927_v51  ;;  %7318 = vmatmul.mubr.bf16.vlgmr.msra.gmra.mxu1 %v11927_v51  ;;  %v5831_v51 = vld [vmem:[%s12354_s5 + $0xd8] sm:$0xff] }
 0x48f   :  { %7245 = vmatpush1.bf16.msra.mxu0 %v8084_v9  ;;  %7276 = vmatprep.mubr.bf16.mxu0 %v11829_v53  ;;  %v5835_v53 = vld [vmem:[%s12354_s5 + $0xf8] sm:$0xff]  ;;  %v8093_v9 = vcombine.high %v5871_v4, %v5875_v5 }
 0x490   :  { %7246 = vmatprep.subr.bf16.mxu0 %v8077_v10  ;;  %v8053_v31 = vcombine.high %v5831_v51, %v5835_v53  ;;  %v8052_v20 = vcombine.low %v5831_v51, %v5835_v53  ;;  %v8092_v10 = vcombine.low %v5871_v4, %v5875_v5 }
 0x493   :  { %7247 = vmatpush1.bf16.msra.mxu0 %v8076_v15  ;;  %v6005_v15 = vrot.slane %v5996_v11, %v10170_v61 }
 0x494   :  { %7248 = vmatprep.subr.bf16.mxu0 %v8069_v40  ;;  %v7033_v40 = vadd.f32 %v12131_v28, %v6001_v50  ;;  %v6012_v28 = vsub.s32 3, %v10155_v56 }
 0x496   :  { %v6013_v32 = vrot.slane %v5996_v11, %v6012_v28 }
 0x497   :  { %7249 = vmatpush1.bf16.msra.mxu0 %v8068_v22  ;;  %v7035_v22 = vadd.f32 %v12136_v6, %v6005_v15  ;;  %v6009_v6 = vrot.slane %v5996_v11, %v2760_v48  ;;  %v6016_v48 = vsub.s32 4, %v10155_v56 }
 0x498   :  { %7250 = vmatprep.subr.bf16.mxu0 %v8061_v24 }
 0x49b   :  { %7251 = vmatpush1.bf16.msra.mxu0 %v8060_v29 }
 0x49c   :  { %7252 = vmatprep.subr.bf16.mxu0 %v8053_v31 }
 0x49f   :  { %7253 = vmatpush1.bf16.msra.mxu0 %v8052_v20 }
 0x4a0   :  { %7254 = vmatprep.subr.bf16.mxu0 %v8045_v45 }
 0x4a3   :  { %7255 = vmatpush1.bf16.msra.mxu0 %v8044_v25 }
 0x4a4   :  { %7256 = vmatprep.subr.bf16.mxu0 %v8037_v18 }
 0x4a7   :  { %7257 = vmatpush1.bf16.msra.mxu0 %v8036_v39 }
 0x4a8   :  { %7258 = vmatprep.subr.bf16.mxu0 %v8029_v43 }
 0x4ab   :  { %7259 = vmatpush1.bf16.msra.mxu0 %v8028_v26  ;;  %v6017_v26 = vrot.slane %v5996_v11, %v6016_v48 }
 0x4ac   :  { %7260 = vmatprep.subr.bf16.mxu0 %v8149_v30  ;;  %v6021_v30 = vrot.slane %v5996_v11, %v6020_v46 }
 0x4af   :  { %7261 = vmatpush2.bf16.msra.mxu0 %v8148_v0 }
 0x4b0   :  { %7262 = vmatprep.subr.bf16.mxu0 %v8141_v41 }
 0x4b3   :  { %7263 = vmatpush2.bf16.msra.mxu0 %v8140_v35 }
 0x4b4   :  { %7264 = vmatprep.subr.bf16.mxu0 %v8133_v54 }
 0x4b7   :  { %7265 = vmatpush2.bf16.msra.mxu0 %v8132_v57 }
 0x4b8   :  { %7266 = vmatprep.subr.bf16.mxu0 %v8125_v58 }
 0x4bb   :  { %7267 = vmatpush2.bf16.msra.mxu0 %v8124_v37  ;;  %v6025_v37 = vrot.slane %v5996_v11, %v6024_v14 }
 0x4bc   :  { %7268 = vmatprep.subr.bf16.mxu0 %v8117_v3  ;;  %v6029_v3 = vrot.slane %v5996_v11, %v6028_v17 }
 0x4bf   :  { %7269 = vmatpush2.bf16.msra.mxu0 %v8116_v60 }
 0x4c0   :  { %7270 = vmatprep.subr.bf16.mxu0 %v8109_v55 }
 0x4c3   :  { %7271 = vmatpush2.bf16.msra.mxu0 %v8108_v33 }
 0x4c4   :  { %7272 = vmatprep.subr.bf16.mxu0 %v8101_v63 }
 0x4c7   :  { %7273 = vmatpush2.bf16.msra.mxu0 %v8100_v2 }
 0x4c8   :  { %7274 = vmatprep.subr.bf16.mxu0 %v8093_v9 }
 0x4cb   :  { %7275 = vmatpush2.bf16.msra.mxu0 %v8092_v10 }
 0x4ce   :  { %7277 = vmatmul.mubr.bf16.vlgmr.msra.gmra.mxu0 %v11837_v1 }
 0x4ee   :  { %v7073_v52 = vpop.f32.mrf.mxu0  ;;  %v7155_v13 = vpop.f32.mrf.mxu1 }
 0x4ef   :  { %v7074_v24 = vadd.f32 %v7073_v52, %v7033_v40 }
 0x4f0   :  { %v7075_v51 = vpop.f32.mrf.mxu0  ;;  %v7157_v53 = vpop.f32.mrf.mxu1 }
 0x4f1   :  { %7326 = vst [vmem:[%s12356_s7] sm:$0xff] %v7074_v24  ;;  %v7076_v1 = vadd.f32 %v7075_v51, %v7035_v22 }
 0x4f2   :  { %v7077_v29 = vpop.f32.mrf.mxu0  ;;  %v7159_v31 = vpop.f32.mrf.mxu1 }
 0x4f3   :  { %7327 = vst [vmem:[%s12356_s7 + $0x8] sm:$0xff] %v7076_v1 }
 0x4f4   :  { %v7078_v59 = vpop.f32.mrf.mxu0  ;;  %v7160_v61 = vpop.f32.mrf.mxu1 }
 0x52e   :  { %v7114_v34 = vpop.f32.mrf.mxu0  ;;  %v7196_v20 = vpop.f32.mrf.mxu1 }
 0x52f   :  { %v7115_v45 = vadd.f32 %v7114_v34, %v6009_v6  ;;  %v7197_v42 = vadd.f32 %v7196_v20, %v6017_v26 }
 0x530   :  { %v7116_v21 = vpop.f32.mrf.mxu0  ;;  %v7198_v49 = vpop.f32.mrf.mxu1 }
 0x531   :  { %v7156_v25 = vadd.f32 %v7155_v13, %v7115_v45  ;;  %v7117_v18 = vadd.f32 %v7116_v21, %v6013_v32  ;;  %v7199_v41 = vadd.f32 %v7198_v49, %v6021_v30 }
 0x532   :  { %v7118_v12 = vpop.f32.mrf.mxu0  ;;  %v7200_v38 = vpop.f32.mrf.mxu1 }
 0x533   :  { %7328 = vst [vmem:[%s12356_s7 + $0x10] sm:$0xff] %v7156_v25  ;;  %v7158_v39 = vadd.f32 %v7157_v53, %v7117_v18 }
 0x534   :  { %v7119_v43 = vpop.f32.mrf.mxu0  ;;  %v7201_v44 = vpop.f32.mrf.mxu1 }
 0x535   :  { %7329 = vst [vmem:[%s12356_s7 + $0x18] sm:$0xff] %v7158_v39 }
 0x54e   :  { %v7237_v8 = vpop.f32.mrf.mxu0  ;;  %v7319_v0 = vpop.f32.mrf.mxu1 }
 0x54f   :  { %v7238_v7 = vadd.f32 %v7237_v8, %v7197_v42 }
 0x550   :  { %v7239_v27 = vpop.f32.mrf.mxu0  ;;  %v7321_v35 = vpop.f32.mrf.mxu1 }
 0x551   :  { %7330 = vst [vmem:[%s12356_s7 + $0x20] sm:$0xff] %v7238_v7  ;;  %v7240_v54 = vadd.f32 %v7239_v27, %v7199_v41 }
 0x552   :  { %v7241_v19 = vpop.f32.mrf.mxu0  ;;  %v7323_v36 = vpop.f32.mrf.mxu1 }
 0x553   :  { %7331 = vst [vmem:[%s12356_s7 + $0x28] sm:$0xff] %v7240_v54 }
 0x554   :  { %v7242_v57 = vpop.f32.mrf.mxu0  ;;  %v7324_v58 = vpop.f32.mrf.mxu1 }
 0x58e   :  { %v7278_v62 = vpop.f32.mrf.mxu0 }
 0x58f   :  { %v7279_v47 = vadd.f32 %v7278_v62, %v6025_v37 }
 0x590   :  { %v7280_v60 = vpop.f32.mrf.mxu0 }
 0x591   :  { %v7320_v55 = vadd.f32 %v7319_v0, %v7279_v47  ;;  %v7281_v23 = vadd.f32 %v7280_v60, %v6029_v3 }
 0x592   :  { %v7282_v16 = vpop.f32.mrf.mxu0 }
 0x593   :  { %7332 = vst [vmem:[%s12356_s7 + $0x30] sm:$0xff] %v7320_v55  ;;  %v7322_v33 = vadd.f32 %v7321_v35, %v7281_v23 }
 0x594   :  { %v7283_v63 = vpop.f32.mrf.mxu0 }
 0x595   :  { %7333 = vst [vmem:[%s12356_s7 + $0x38] sm:$0xff] %v7322_v33 }

</bundles_post_ra>
